<compile_context>
chip_gen: v7x
topology: tpu7x:2x2x1
jax: 0.10.0
libtpu: 0.0.40
codegen_flags: <defaults>
</compile_context>

<pallas_src>
import jax
import jax.numpy as jnp
from jax.experimental import pallas as pl
from jax.experimental.pallas import tpu as pltpu

# ---------------------------------------------------------------------------
# Static geometry (hardcoded by the PyTorch module: 1x28x28 input).
# Slab layout inside the kernel:  slab[c, h*W + w]  (channels on sublanes,
# flattened spatial on lanes).  Conv outputs are kept "row-wide" (full input
# width per row); columns whose w-index exceeds the valid output width are
# junk that the pooling selection matrices never pick.
# ---------------------------------------------------------------------------
H0 = W0 = 28
S0 = H0 * W0                 # 784
X_COLS = 896                 # zero-padded input slab width (>= 4*28+4+672), 7*128

OH1 = 24                     # conv1 valid output height/width
WIDE1 = OH1 * W0             # 672: row-wide conv1 output (cols w >= 24 junk)
M4_1 = WIDE1 - (W0 + 1)      # 643: 2x2 window max at every alignment
P1_W = 12                    # pool1 output is 12x12, 20 channels
P1_COLS = 160                # pooled1 slab width (>= 4*12+4+96), zero-padded

OH2 = 8                      # conv2 valid output height/width
WIDE2 = OH2 * P1_W           # 96
M4_2 = WIDE2 - (P1_W + 1)    # 83
P2_W = 4                     # pool2 output is 4x4, 50 channels
NFLAT = 4 * 4 * 50           # 800
NCLASS = 10


# ---------------------------------------------------------------------------
# Fused forward kernel (one image per grid step).
# ---------------------------------------------------------------------------
def _mnist_fused_kernel(x_ref, w1_ref, b1_ref, sel1_ref, w2_ref, b2_ref,
                        selrep_ref, cmask_ref, fc1w_ref, fc1b_ref,
                        fc2w_ref, fc2b_ref, out_ref):
    f32, bf16 = jnp.float32, jnp.bfloat16

    # ---- conv1 (1 -> 20, 5x5, valid) + bias + ReLU ------------------------
    # C_in == 1, so each of the 25 taps is a VPU broadcast-FMA of a (20, 1)
    # weight column with a contiguous (1, 672) slice of the flattened image.
    x = x_ref[0]                                    # (1, X_COLS) f32, 0-padded
    w1 = w1_ref[...]                                # (20, 25)    f32
    wide1 = jnp.zeros((20, WIDE1), f32)
    for i in range(5):
        for j in range(5):
            t = i * 5 + j
            off = i * W0 + j
            wide1 = wide1 + w1[:, t:t + 1] * x[:, off:off + WIDE1]
    wide1 = jnp.maximum(wide1 + b1_ref[...], 0.0)               # (20, 672)

    # ---- pool1: 2x2/2 max = 4-way shifted max + MXU compaction ------------
    m4 = jnp.maximum(
        jnp.maximum(wide1[:, 0:M4_1], wide1[:, 1:1 + M4_1]),
        jnp.maximum(wide1[:, W0:W0 + M4_1], wide1[:, W0 + 1:W0 + 1 + M4_1]))
    # sel1 is a constant 0/1 matrix picking the stride-2 sample grid and
    # laying it out as a dense (12*12 + pad) slab (no strided loads/gathers).
    pooled1 = jnp.dot(m4.astype(bf16), sel1_ref[...],
                      preferred_element_type=f32).astype(bf16)  # (20, 160)

    # ---- conv2 (20 -> 50, 5x5, valid) + bias + ReLU -----------------------
    wide2 = jnp.zeros((50, WIDE2), f32)
    for i in range(5):
        for j in range(5):
            off = i * P1_W + j
            wide2 = wide2 + jnp.dot(w2_ref[i * 5 + j],          # (50, 20) bf16
                                    pooled1[:, off:off + WIDE2],
                                    preferred_element_type=f32)
    wide2 = jnp.maximum(wide2 + b2_ref[...], 0.0)               # (50, 96)

    # ---- pool2 + flatten to PyTorch (c, h, w) order -----------------------
    m4b = jnp.maximum(
        jnp.maximum(wide2[:, 0:M4_2], wide2[:, 1:1 + M4_2]),
        jnp.maximum(wide2[:, P1_W:P1_W + M4_2],
                    wide2[:, P1_W + 1:P1_W + 1 + M4_2]))        # (50, 83)
    # selrep[t, k] = 1 iff column t of m4b holds pooled value (k % 16);
    # cmask[c, k]  = 1 iff c == k // 16.  Two matmuls + a mask lay the pooled
    # (50, 4, 4) map out as a (1, 800) row in torch's (c, h, w) flatten order
    # with no reshape/transpose/gather inside the kernel.
    spread = jnp.dot(m4b.astype(bf16), selrep_ref[...],
                     preferred_element_type=f32)                # (50, 800)
    masked = (spread * cmask_ref[...]).astype(bf16)             # exact in bf16
    flat = jnp.dot(jnp.ones((1, 50), bf16), masked,
                   preferred_element_type=f32)                  # (1, 800)

    # ---- fc1 + ReLU, fc2, log_softmax -------------------------------------
    h = jnp.dot(flat.astype(bf16), fc1w_ref[...],
                preferred_element_type=f32) + fc1b_ref[...]
    h = jnp.maximum(h, 0.0)                                     # (1, 500)
    logits = jnp.dot(h.astype(bf16), fc2w_ref[...],
                     preferred_element_type=f32) + fc2b_ref[...]  # (1, 10)
    m = jnp.max(logits, axis=-1, keepdims=True)
    s = logits - m
    out_ref[0] = s - jnp.log(jnp.sum(jnp.exp(s), axis=-1, keepdims=True))


# ---------------------------------------------------------------------------
# Constant 0/1 selection matrices (built once at init).
# ---------------------------------------------------------------------------
def _pool_compaction_matrix(src_len, row_stride, out_hw, out_cols, dtype):
    """S[s, k] = 1 iff window-max column s corresponds to pooled output
    position k = ph*out_hw + pw (stride-2 sampling); k >= out_hw^2 -> zero."""
    k = jnp.arange(out_cols)
    ph, pw = k // out_hw, k % out_hw
    src = 2 * ph * row_stride + 2 * pw
    valid = k < out_hw * out_hw
    s = jnp.arange(src_len)[:, None]
    return ((s == src[None, :]) & valid[None, :]).astype(dtype)


def _pool2_flatten_matrices():
    """Matrices implementing pool2 selection + torch (c, h, w)-order flatten."""
    k = jnp.arange(NFLAT)                                # k = c*16 + h*4 + w
    s = k % 16
    c = k // 16
    src = 2 * (s // P2_W) * P1_W + 2 * (s % P2_W)        # column in m4b (< 83)
    selrep = (jnp.arange(M4_2)[:, None] == src[None, :]).astype(jnp.bfloat16)
    cmask = (jnp.arange(50)[:, None] == c[None, :]).astype(jnp.float32)
    return selrep, cmask                                 # (83, 800), (50, 800)


# ---------------------------------------------------------------------------
# Parameters (PyTorch-style init) and one-time kernel-layout repack.
# ---------------------------------------------------------------------------
def init_params(key):
    ks = jax.random.split(key, 8)

    def uinit(k, shape, fan_in):
        bound = 1.0 / jnp.sqrt(jnp.float32(fan_in))
        return jax.random.uniform(k, shape, jnp.float32, -bound, bound)

    return {
        "conv1_w": uinit(ks[0], (20, 1, 5, 5), 1 * 5 * 5),
        "conv1_b": uinit(ks[1], (20,), 1 * 5 * 5),
        "conv2_w": uinit(ks[2], (50, 20, 5, 5), 20 * 5 * 5),
        "conv2_b": uinit(ks[3], (50,), 20 * 5 * 5),
        "fc1_w": uinit(ks[4], (500, NFLAT), NFLAT),   # torch Linear: (out, in)
        "fc1_b": uinit(ks[5], (500,), NFLAT),
        "fc2_w": uinit(ks[6], (NCLASS, 500), 500),
        "fc2_b": uinit(ks[7], (NCLASS,), 500),
    }


def prepare_params(params):
    """One-time repack of PyTorch-layout weights into kernel layout: per-tap
    conv matrices, transposed fc weights, bf16 matmul operands, and the
    constant 0/1 pooling / flatten matrices."""
    f32, bf16 = jnp.float32, jnp.bfloat16
    selrep, cmask = _pool2_flatten_matrices()
    return {
        "w1": params["conv1_w"].reshape(20, 25).astype(f32),
        "b1": params["conv1_b"].reshape(20, 1).astype(f32),
        "sel1": _pool_compaction_matrix(M4_1, W0, P1_W, P1_COLS, bf16),
        # w2[t, oc, c] = conv2_w[oc, c, i, j] with t = i*5 + j
        "w2": (params["conv2_w"].transpose(2, 3, 0, 1)
               .reshape(25, 50, 20).astype(bf16)),
        "b2": params["conv2_b"].reshape(50, 1).astype(f32),
        "selrep": selrep,                               # (83, 800) bf16
        "cmask": cmask,                                 # (50, 800) f32
        "fc1_w": params["fc1_w"].T.astype(bf16),        # (800, 500)
        "fc1_b": params["fc1_b"].reshape(1, 500).astype(f32),
        "fc2_w": params["fc2_w"].T.astype(bf16),        # (500, 10)
        "fc2_b": params["fc2_b"].reshape(1, NCLASS).astype(f32),
    }


# ---------------------------------------------------------------------------
# Forward: one fused pallas_call, gridded one image per step.
# ---------------------------------------------------------------------------
def mnist_net_forward(kp, x):
    """x: (B, 1, 28, 28) float32 -> (B, 10) log-probabilities."""
    B = x.shape[0]
    # Only per-forward glue: flatten the image and zero-pad the lane axis so
    # every conv1 tap is an in-bounds contiguous slice (~3.5 KB per image).
    xs = jnp.pad(x.reshape(B, 1, S0), ((0, 0), (0, 0), (0, X_COLS - S0)))

    c2 = lambda b: (0, 0)         # weights: same block every step -> resident
    c3 = lambda b: (0, 0, 0)

    out = pl.pallas_call(
        _mnist_fused_kernel,
        out_shape=jax.ShapeDtypeStruct((B, 1, NCLASS), jnp.float32),
        grid=(B,),
        in_specs=[
            pl.BlockSpec((1, 1, X_COLS), lambda b: (b, 0, 0)),   # image
            pl.BlockSpec((20, 25), c2),                          # w1
            pl.BlockSpec((20, 1), c2),                           # b1
            pl.BlockSpec((M4_1, P1_COLS), c2),                   # sel1
            pl.BlockSpec((25, 50, 20), c3),                      # w2
            pl.BlockSpec((50, 1), c2),                           # b2
            pl.BlockSpec((M4_2, NFLAT), c2),                     # selrep
            pl.BlockSpec((50, NFLAT), c2),                       # cmask
            pl.BlockSpec((NFLAT, 500), c2),                      # fc1_w
            pl.BlockSpec((1, 500), c2),                          # fc1_b
            pl.BlockSpec((500, NCLASS), c2),                     # fc2_w
            pl.BlockSpec((1, NCLASS), c2),                       # fc2_b
        ],
        out_specs=pl.BlockSpec((1, 1, NCLASS), lambda b: (b, 0, 0)),
        compiler_params=pltpu.CompilerParams(
            dimension_semantics=("parallel",),
            vmem_limit_bytes=32 * 1024 * 1024,
        ),
    )(xs, kp["w1"], kp["b1"], kp["sel1"], kp["w2"], kp["b2"],
      kp["selrep"], kp["cmask"], kp["fc1_w"], kp["fc1_b"],
      kp["fc2_w"], kp["fc2_b"])
    return out.reshape(B, NCLASS)


# ---------------------------------------------------------------------------
# Pure-XLA f32 reference (matches the PyTorch module) for the self-check.
# ---------------------------------------------------------------------------
def reference_forward(params, x):
    dn = ("NCHW", "OIHW", "NCHW")
    y = jax.lax.conv_general_dilated(x, params["conv1_w"], (1, 1), "VALID",
                                     dimension_numbers=dn)
    y = jax.nn.relu(y + params["conv1_b"][None, :, None, None])
    y = jax.lax.reduce_window(y, -jnp.inf, jax.lax.max,
                              (1, 1, 2, 2), (1, 1, 2, 2), "VALID")
    y = jax.lax.conv_general_dilated(y, params["conv2_w"], (1, 1), "VALID",
                                     dimension_numbers=dn)
    y = jax.nn.relu(y + params["conv2_b"][None, :, None, None])
    y = jax.lax.reduce_window(y, -jnp.inf, jax.lax.max,
                              (1, 1, 2, 2), (1, 1, 2, 2), "VALID")
    y = y.reshape(y.shape[0], -1)
    y = jax.nn.relu(y @ params["fc1_w"].T + params["fc1_b"])
    y = y @ params["fc2_w"].T + params["fc2_b"]
    return jax.nn.log_softmax(y, axis=-1)


if __name__ == "__main__":
    key = jax.random.PRNGKey(0)
    pkey, xkey = jax.random.split(key)
    params = init_params(pkey)
    kparams = prepare_params(params)            # one-time weight repack

    # MNIST-shaped input (28x28 is required by the hardcoded 4*4*50 flatten).
    x = jax.random.normal(xkey, (2, 1, 28, 28), dtype=jnp.float32)

    fwd = jax.jit(mnist_net_forward)
    out = jax.block_until_ready(fwd(kparams, x))

    assert out.shape == (2, NCLASS)
    assert bool(jnp.all(jnp.isfinite(out)))
    # rows of exp(log_softmax) must sum to ~1
    assert bool(jnp.allclose(jnp.sum(jnp.exp(out), axis=1), 1.0, atol=1e-3))
    # close to the f32 XLA reference (matmuls run in bf16 with f32 accum)
    ref = reference_forward(params, x)
    assert float(jnp.max(jnp.abs(out - ref))) < 0.05
    print("KERNEL_OK")
</pallas_src>

<mosaic_0001>
module attributes {stable_mosaic.version = 11 : i64} {
  func.func @_mnist_fused_kernel(%arg0: i32, %arg1: memref<1x1x896xf32, #tpu.memory_space<vmem>>, %arg2: memref<20x25xf32, #tpu.memory_space<vmem>>, %arg3: memref<20x1xf32, #tpu.memory_space<vmem>>, %arg4: memref<643x160xbf16, #tpu.memory_space<vmem>>, %arg5: memref<25x50x20xbf16, #tpu.memory_space<vmem>>, %arg6: memref<50x1xf32, #tpu.memory_space<vmem>>, %arg7: memref<83x800xbf16, #tpu.memory_space<vmem>>, %arg8: memref<50x800xf32, #tpu.memory_space<vmem>>, %arg9: memref<800x500xbf16, #tpu.memory_space<vmem>>, %arg10: memref<1x500xf32, #tpu.memory_space<vmem>>, %arg11: memref<500x10xbf16, #tpu.memory_space<vmem>>, %arg12: memref<1x10xf32, #tpu.memory_space<vmem>>, %arg13: memref<1x1x10xf32, #tpu.memory_space<vmem>>) attributes {dimension_semantics = [#tpu.dimension_semantics<parallel>], iteration_bounds = array<i64: 2>, scalar_prefetch = 0 : i64, scratch_operands = 0 : i64, tpu.core_type = #tpu.core_type<tc>, window_params = [{transform_indices = @transform_0, window_bounds = array<i64: 1, 1, 896>}, {pipeline_mode = #tpu.pipeline_mode<synchronous>, transform_indices = @transform_1, window_bounds = array<i64: 20, 25>}, {pipeline_mode = #tpu.pipeline_mode<synchronous>, transform_indices = @transform_2, window_bounds = array<i64: 20, 1>}, {pipeline_mode = #tpu.pipeline_mode<synchronous>, transform_indices = @transform_3, window_bounds = array<i64: 643, 160>}, {pipeline_mode = #tpu.pipeline_mode<synchronous>, transform_indices = @transform_4, window_bounds = array<i64: 25, 50, 20>}, {pipeline_mode = #tpu.pipeline_mode<synchronous>, transform_indices = @transform_5, window_bounds = array<i64: 50, 1>}, {pipeline_mode = #tpu.pipeline_mode<synchronous>, transform_indices = @transform_6, window_bounds = array<i64: 83, 800>}, {pipeline_mode = #tpu.pipeline_mode<synchronous>, transform_indices = @transform_7, window_bounds = array<i64: 50, 800>}, {pipeline_mode = #tpu.pipeline_mode<synchronous>, transform_indices = @transform_8, window_bounds = array<i64: 800, 500>}, {pipeline_mode = #tpu.pipeline_mode<synchronous>, transform_indices = @transform_9, window_bounds = array<i64: 1, 500>}, {pipeline_mode = #tpu.pipeline_mode<synchronous>, transform_indices = @transform_10, window_bounds = array<i64: 500, 10>}, {pipeline_mode = #tpu.pipeline_mode<synchronous>, transform_indices = @transform_11, window_bounds = array<i64: 1, 10>}, {transform_indices = @transform_12, window_bounds = array<i64: 1, 1, 10>}]} {
    %c0 = arith.constant 0 : index
    %c0_0 = arith.constant 0 : index
    %c0_1 = arith.constant 0 : index
    %0 = vector.load %arg1[%c0, %c0_0, %c0_1] : memref<1x1x896xf32, #tpu.memory_space<vmem>>, vector<1x1x896xf32>
    %1 = vector.shape_cast %0 : vector<1x1x896xf32> to vector<1x896xf32>
    %c0_2 = arith.constant 0 : index
    %c0_3 = arith.constant 0 : index
    %2 = vector.load %arg2[%c0_2, %c0_3] : memref<20x25xf32, #tpu.memory_space<vmem>>, vector<20x25xf32>
    %cst = arith.constant 0.000000e+00 : f32
    %3 = vector.broadcast %cst : f32 to vector<20x672xf32>
    %4 = vector.extract_strided_slice %2 {offsets = [0, 0], sizes = [20, 1], strides = [1, 1]} : vector<20x25xf32> to vector<20x1xf32>
    %5 = vector.extract_strided_slice %1 {offsets = [0, 0], sizes = [1, 672], strides = [1, 1]} : vector<1x896xf32> to vector<1x672xf32>
    %6 = vector.broadcast %4 : vector<20x1xf32> to vector<20x672xf32>
    %7 = vector.broadcast %5 : vector<1x672xf32> to vector<20x672xf32>
    %8 = arith.mulf %6, %7 : vector<20x672xf32>
    %9 = arith.addf %3, %8 : vector<20x672xf32>
    %10 = vector.extract_strided_slice %2 {offsets = [0, 1], sizes = [20, 1], strides = [1, 1]} : vector<20x25xf32> to vector<20x1xf32>
    %11 = vector.extract_strided_slice %1 {offsets = [0, 1], sizes = [1, 672], strides = [1, 1]} : vector<1x896xf32> to vector<1x672xf32>
    %12 = vector.broadcast %10 : vector<20x1xf32> to vector<20x672xf32>
    %13 = vector.broadcast %11 : vector<1x672xf32> to vector<20x672xf32>
    %14 = arith.mulf %12, %13 : vector<20x672xf32>
    %15 = arith.addf %9, %14 : vector<20x672xf32>
    %16 = vector.extract_strided_slice %2 {offsets = [0, 2], sizes = [20, 1], strides = [1, 1]} : vector<20x25xf32> to vector<20x1xf32>
    %17 = vector.extract_strided_slice %1 {offsets = [0, 2], sizes = [1, 672], strides = [1, 1]} : vector<1x896xf32> to vector<1x672xf32>
    %18 = vector.broadcast %16 : vector<20x1xf32> to vector<20x672xf32>
    %19 = vector.broadcast %17 : vector<1x672xf32> to vector<20x672xf32>
    %20 = arith.mulf %18, %19 : vector<20x672xf32>
    %21 = arith.addf %15, %20 : vector<20x672xf32>
    %22 = vector.extract_strided_slice %2 {offsets = [0, 3], sizes = [20, 1], strides = [1, 1]} : vector<20x25xf32> to vector<20x1xf32>
    %23 = vector.extract_strided_slice %1 {offsets = [0, 3], sizes = [1, 672], strides = [1, 1]} : vector<1x896xf32> to vector<1x672xf32>
    %24 = vector.broadcast %22 : vector<20x1xf32> to vector<20x672xf32>
    %25 = vector.broadcast %23 : vector<1x672xf32> to vector<20x672xf32>
    %26 = arith.mulf %24, %25 : vector<20x672xf32>
    %27 = arith.addf %21, %26 : vector<20x672xf32>
    %28 = vector.extract_strided_slice %2 {offsets = [0, 4], sizes = [20, 1], strides = [1, 1]} : vector<20x25xf32> to vector<20x1xf32>
    %29 = vector.extract_strided_slice %1 {offsets = [0, 4], sizes = [1, 672], strides = [1, 1]} : vector<1x896xf32> to vector<1x672xf32>
    %30 = vector.broadcast %28 : vector<20x1xf32> to vector<20x672xf32>
    %31 = vector.broadcast %29 : vector<1x672xf32> to vector<20x672xf32>
    %32 = arith.mulf %30, %31 : vector<20x672xf32>
    %33 = arith.addf %27, %32 : vector<20x672xf32>
    %34 = vector.extract_strided_slice %2 {offsets = [0, 5], sizes = [20, 1], strides = [1, 1]} : vector<20x25xf32> to vector<20x1xf32>
    %35 = vector.extract_strided_slice %1 {offsets = [0, 28], sizes = [1, 672], strides = [1, 1]} : vector<1x896xf32> to vector<1x672xf32>
    %36 = vector.broadcast %34 : vector<20x1xf32> to vector<20x672xf32>
    %37 = vector.broadcast %35 : vector<1x672xf32> to vector<20x672xf32>
    %38 = arith.mulf %36, %37 : vector<20x672xf32>
    %39 = arith.addf %33, %38 : vector<20x672xf32>
    %40 = vector.extract_strided_slice %2 {offsets = [0, 6], sizes = [20, 1], strides = [1, 1]} : vector<20x25xf32> to vector<20x1xf32>
    %41 = vector.extract_strided_slice %1 {offsets = [0, 29], sizes = [1, 672], strides = [1, 1]} : vector<1x896xf32> to vector<1x672xf32>
    %42 = vector.broadcast %40 : vector<20x1xf32> to vector<20x672xf32>
    %43 = vector.broadcast %41 : vector<1x672xf32> to vector<20x672xf32>
    %44 = arith.mulf %42, %43 : vector<20x672xf32>
    %45 = arith.addf %39, %44 : vector<20x672xf32>
    %46 = vector.extract_strided_slice %2 {offsets = [0, 7], sizes = [20, 1], strides = [1, 1]} : vector<20x25xf32> to vector<20x1xf32>
    %47 = vector.extract_strided_slice %1 {offsets = [0, 30], sizes = [1, 672], strides = [1, 1]} : vector<1x896xf32> to vector<1x672xf32>
    %48 = vector.broadcast %46 : vector<20x1xf32> to vector<20x672xf32>
    %49 = vector.broadcast %47 : vector<1x672xf32> to vector<20x672xf32>
    %50 = arith.mulf %48, %49 : vector<20x672xf32>
    %51 = arith.addf %45, %50 : vector<20x672xf32>
    %52 = vector.extract_strided_slice %2 {offsets = [0, 8], sizes = [20, 1], strides = [1, 1]} : vector<20x25xf32> to vector<20x1xf32>
    %53 = vector.extract_strided_slice %1 {offsets = [0, 31], sizes = [1, 672], strides = [1, 1]} : vector<1x896xf32> to vector<1x672xf32>
    %54 = vector.broadcast %52 : vector<20x1xf32> to vector<20x672xf32>
    %55 = vector.broadcast %53 : vector<1x672xf32> to vector<20x672xf32>
    %56 = arith.mulf %54, %55 : vector<20x672xf32>
    %57 = arith.addf %51, %56 : vector<20x672xf32>
    %58 = vector.extract_strided_slice %2 {offsets = [0, 9], sizes = [20, 1], strides = [1, 1]} : vector<20x25xf32> to vector<20x1xf32>
    %59 = vector.extract_strided_slice %1 {offsets = [0, 32], sizes = [1, 672], strides = [1, 1]} : vector<1x896xf32> to vector<1x672xf32>
    %60 = vector.broadcast %58 : vector<20x1xf32> to vector<20x672xf32>
    %61 = vector.broadcast %59 : vector<1x672xf32> to vector<20x672xf32>
    %62 = arith.mulf %60, %61 : vector<20x672xf32>
    %63 = arith.addf %57, %62 : vector<20x672xf32>
    %64 = vector.extract_strided_slice %2 {offsets = [0, 10], sizes = [20, 1], strides = [1, 1]} : vector<20x25xf32> to vector<20x1xf32>
    %65 = vector.extract_strided_slice %1 {offsets = [0, 56], sizes = [1, 672], strides = [1, 1]} : vector<1x896xf32> to vector<1x672xf32>
    %66 = vector.broadcast %64 : vector<20x1xf32> to vector<20x672xf32>
    %67 = vector.broadcast %65 : vector<1x672xf32> to vector<20x672xf32>
    %68 = arith.mulf %66, %67 : vector<20x672xf32>
    %69 = arith.addf %63, %68 : vector<20x672xf32>
    %70 = vector.extract_strided_slice %2 {offsets = [0, 11], sizes = [20, 1], strides = [1, 1]} : vector<20x25xf32> to vector<20x1xf32>
    %71 = vector.extract_strided_slice %1 {offsets = [0, 57], sizes = [1, 672], strides = [1, 1]} : vector<1x896xf32> to vector<1x672xf32>
    %72 = vector.broadcast %70 : vector<20x1xf32> to vector<20x672xf32>
    %73 = vector.broadcast %71 : vector<1x672xf32> to vector<20x672xf32>
    %74 = arith.mulf %72, %73 : vector<20x672xf32>
    %75 = arith.addf %69, %74 : vector<20x672xf32>
    %76 = vector.extract_strided_slice %2 {offsets = [0, 12], sizes = [20, 1], strides = [1, 1]} : vector<20x25xf32> to vector<20x1xf32>
    %77 = vector.extract_strided_slice %1 {offsets = [0, 58], sizes = [1, 672], strides = [1, 1]} : vector<1x896xf32> to vector<1x672xf32>
    %78 = vector.broadcast %76 : vector<20x1xf32> to vector<20x672xf32>
    %79 = vector.broadcast %77 : vector<1x672xf32> to vector<20x672xf32>
    %80 = arith.mulf %78, %79 : vector<20x672xf32>
    %81 = arith.addf %75, %80 : vector<20x672xf32>
    %82 = vector.extract_strided_slice %2 {offsets = [0, 13], sizes = [20, 1], strides = [1, 1]} : vector<20x25xf32> to vector<20x1xf32>
    %83 = vector.extract_strided_slice %1 {offsets = [0, 59], sizes = [1, 672], strides = [1, 1]} : vector<1x896xf32> to vector<1x672xf32>
    %84 = vector.broadcast %82 : vector<20x1xf32> to vector<20x672xf32>
    %85 = vector.broadcast %83 : vector<1x672xf32> to vector<20x672xf32>
    %86 = arith.mulf %84, %85 : vector<20x672xf32>
    %87 = arith.addf %81, %86 : vector<20x672xf32>
    %88 = vector.extract_strided_slice %2 {offsets = [0, 14], sizes = [20, 1], strides = [1, 1]} : vector<20x25xf32> to vector<20x1xf32>
    %89 = vector.extract_strided_slice %1 {offsets = [0, 60], sizes = [1, 672], strides = [1, 1]} : vector<1x896xf32> to vector<1x672xf32>
    %90 = vector.broadcast %88 : vector<20x1xf32> to vector<20x672xf32>
    %91 = vector.broadcast %89 : vector<1x672xf32> to vector<20x672xf32>
    %92 = arith.mulf %90, %91 : vector<20x672xf32>
    %93 = arith.addf %87, %92 : vector<20x672xf32>
    %94 = vector.extract_strided_slice %2 {offsets = [0, 15], sizes = [20, 1], strides = [1, 1]} : vector<20x25xf32> to vector<20x1xf32>
    %95 = vector.extract_strided_slice %1 {offsets = [0, 84], sizes = [1, 672], strides = [1, 1]} : vector<1x896xf32> to vector<1x672xf32>
    %96 = vector.broadcast %94 : vector<20x1xf32> to vector<20x672xf32>
    %97 = vector.broadcast %95 : vector<1x672xf32> to vector<20x672xf32>
    %98 = arith.mulf %96, %97 : vector<20x672xf32>
    %99 = arith.addf %93, %98 : vector<20x672xf32>
    %100 = vector.extract_strided_slice %2 {offsets = [0, 16], sizes = [20, 1], strides = [1, 1]} : vector<20x25xf32> to vector<20x1xf32>
    %101 = vector.extract_strided_slice %1 {offsets = [0, 85], sizes = [1, 672], strides = [1, 1]} : vector<1x896xf32> to vector<1x672xf32>
    %102 = vector.broadcast %100 : vector<20x1xf32> to vector<20x672xf32>
    %103 = vector.broadcast %101 : vector<1x672xf32> to vector<20x672xf32>
    %104 = arith.mulf %102, %103 : vector<20x672xf32>
    %105 = arith.addf %99, %104 : vector<20x672xf32>
    %106 = vector.extract_strided_slice %2 {offsets = [0, 17], sizes = [20, 1], strides = [1, 1]} : vector<20x25xf32> to vector<20x1xf32>
    %107 = vector.extract_strided_slice %1 {offsets = [0, 86], sizes = [1, 672], strides = [1, 1]} : vector<1x896xf32> to vector<1x672xf32>
    %108 = vector.broadcast %106 : vector<20x1xf32> to vector<20x672xf32>
    %109 = vector.broadcast %107 : vector<1x672xf32> to vector<20x672xf32>
    %110 = arith.mulf %108, %109 : vector<20x672xf32>
    %111 = arith.addf %105, %110 : vector<20x672xf32>
    %112 = vector.extract_strided_slice %2 {offsets = [0, 18], sizes = [20, 1], strides = [1, 1]} : vector<20x25xf32> to vector<20x1xf32>
    %113 = vector.extract_strided_slice %1 {offsets = [0, 87], sizes = [1, 672], strides = [1, 1]} : vector<1x896xf32> to vector<1x672xf32>
    %114 = vector.broadcast %112 : vector<20x1xf32> to vector<20x672xf32>
    %115 = vector.broadcast %113 : vector<1x672xf32> to vector<20x672xf32>
    %116 = arith.mulf %114, %115 : vector<20x672xf32>
    %117 = arith.addf %111, %116 : vector<20x672xf32>
    %118 = vector.extract_strided_slice %2 {offsets = [0, 19], sizes = [20, 1], strides = [1, 1]} : vector<20x25xf32> to vector<20x1xf32>
    %119 = vector.extract_strided_slice %1 {offsets = [0, 88], sizes = [1, 672], strides = [1, 1]} : vector<1x896xf32> to vector<1x672xf32>
    %120 = vector.broadcast %118 : vector<20x1xf32> to vector<20x672xf32>
    %121 = vector.broadcast %119 : vector<1x672xf32> to vector<20x672xf32>
    %122 = arith.mulf %120, %121 : vector<20x672xf32>
    %123 = arith.addf %117, %122 : vector<20x672xf32>
    %124 = vector.extract_strided_slice %2 {offsets = [0, 20], sizes = [20, 1], strides = [1, 1]} : vector<20x25xf32> to vector<20x1xf32>
    %125 = vector.extract_strided_slice %1 {offsets = [0, 112], sizes = [1, 672], strides = [1, 1]} : vector<1x896xf32> to vector<1x672xf32>
    %126 = vector.broadcast %124 : vector<20x1xf32> to vector<20x672xf32>
    %127 = vector.broadcast %125 : vector<1x672xf32> to vector<20x672xf32>
    %128 = arith.mulf %126, %127 : vector<20x672xf32>
    %129 = arith.addf %123, %128 : vector<20x672xf32>
    %130 = vector.extract_strided_slice %2 {offsets = [0, 21], sizes = [20, 1], strides = [1, 1]} : vector<20x25xf32> to vector<20x1xf32>
    %131 = vector.extract_strided_slice %1 {offsets = [0, 113], sizes = [1, 672], strides = [1, 1]} : vector<1x896xf32> to vector<1x672xf32>
    %132 = vector.broadcast %130 : vector<20x1xf32> to vector<20x672xf32>
    %133 = vector.broadcast %131 : vector<1x672xf32> to vector<20x672xf32>
    %134 = arith.mulf %132, %133 : vector<20x672xf32>
    %135 = arith.addf %129, %134 : vector<20x672xf32>
    %136 = vector.extract_strided_slice %2 {offsets = [0, 22], sizes = [20, 1], strides = [1, 1]} : vector<20x25xf32> to vector<20x1xf32>
    %137 = vector.extract_strided_slice %1 {offsets = [0, 114], sizes = [1, 672], strides = [1, 1]} : vector<1x896xf32> to vector<1x672xf32>
    %138 = vector.broadcast %136 : vector<20x1xf32> to vector<20x672xf32>
    %139 = vector.broadcast %137 : vector<1x672xf32> to vector<20x672xf32>
    %140 = arith.mulf %138, %139 : vector<20x672xf32>
    %141 = arith.addf %135, %140 : vector<20x672xf32>
    %142 = vector.extract_strided_slice %2 {offsets = [0, 23], sizes = [20, 1], strides = [1, 1]} : vector<20x25xf32> to vector<20x1xf32>
    %143 = vector.extract_strided_slice %1 {offsets = [0, 115], sizes = [1, 672], strides = [1, 1]} : vector<1x896xf32> to vector<1x672xf32>
    %144 = vector.broadcast %142 : vector<20x1xf32> to vector<20x672xf32>
    %145 = vector.broadcast %143 : vector<1x672xf32> to vector<20x672xf32>
    %146 = arith.mulf %144, %145 : vector<20x672xf32>
    %147 = arith.addf %141, %146 : vector<20x672xf32>
    %148 = vector.extract_strided_slice %2 {offsets = [0, 24], sizes = [20, 1], strides = [1, 1]} : vector<20x25xf32> to vector<20x1xf32>
    %149 = vector.extract_strided_slice %1 {offsets = [0, 116], sizes = [1, 672], strides = [1, 1]} : vector<1x896xf32> to vector<1x672xf32>
    %150 = vector.broadcast %148 : vector<20x1xf32> to vector<20x672xf32>
    %151 = vector.broadcast %149 : vector<1x672xf32> to vector<20x672xf32>
    %152 = arith.mulf %150, %151 : vector<20x672xf32>
    %153 = arith.addf %147, %152 : vector<20x672xf32>
    %c0_4 = arith.constant 0 : index
    %c0_5 = arith.constant 0 : index
    %154 = vector.load %arg3[%c0_4, %c0_5] : memref<20x1xf32, #tpu.memory_space<vmem>>, vector<20x1xf32>
    %155 = vector.broadcast %154 : vector<20x1xf32> to vector<20x672xf32>
    %156 = arith.addf %153, %155 : vector<20x672xf32>
    %cst_6 = arith.constant 0.000000e+00 : f32
    %157 = vector.broadcast %cst_6 : f32 to vector<20x672xf32>
    %158 = arith.maximumf %156, %157 : vector<20x672xf32>
    %159 = vector.extract_strided_slice %158 {offsets = [0, 0], sizes = [20, 643], strides = [1, 1]} : vector<20x672xf32> to vector<20x643xf32>
    %160 = vector.extract_strided_slice %158 {offsets = [0, 1], sizes = [20, 643], strides = [1, 1]} : vector<20x672xf32> to vector<20x643xf32>
    %161 = arith.maximumf %159, %160 : vector<20x643xf32>
    %162 = vector.extract_strided_slice %158 {offsets = [0, 28], sizes = [20, 643], strides = [1, 1]} : vector<20x672xf32> to vector<20x643xf32>
    %163 = vector.extract_strided_slice %158 {offsets = [0, 29], sizes = [20, 643], strides = [1, 1]} : vector<20x672xf32> to vector<20x643xf32>
    %164 = arith.maximumf %162, %163 : vector<20x643xf32>
    %165 = arith.maximumf %161, %164 : vector<20x643xf32>
    %166 = arith.truncf %165 : vector<20x643xf32> to vector<20x643xbf16>
    %c0_7 = arith.constant 0 : index
    %c0_8 = arith.constant 0 : index
    %167 = vector.load %arg4[%c0_7, %c0_8] : memref<643x160xbf16, #tpu.memory_space<vmem>>, vector<643x160xbf16>
    %cst_9 = arith.constant dense<0.000000e+00> : vector<20x160xf32>
    %168 = tpu.matmul %166, %167, %cst_9 {dimension_numbers = #tpu.dot_dimension_numbers<[1], [0], [0], [1], [0, 0, 1, 1], [], []>} : vector<20x643xbf16>, vector<643x160xbf16>, vector<20x160xf32> -> vector<20x160xf32>
    %169 = arith.truncf %168 : vector<20x160xf32> to vector<20x160xbf16>
    %cst_10 = arith.constant 0.000000e+00 : f32
    %170 = vector.broadcast %cst_10 : f32 to vector<50x96xf32>
    %c0_11 = arith.constant 0 : index
    %c0_12 = arith.constant 0 : index
    %c0_13 = arith.constant 0 : index
    %171 = vector.load %arg5[%c0_11, %c0_12, %c0_13] : memref<25x50x20xbf16, #tpu.memory_space<vmem>>, vector<1x50x20xbf16>
    %172 = vector.shape_cast %171 : vector<1x50x20xbf16> to vector<50x20xbf16>
    %173 = vector.extract_strided_slice %169 {offsets = [0, 0], sizes = [20, 96], strides = [1, 1]} : vector<20x160xbf16> to vector<20x96xbf16>
    %cst_14 = arith.constant dense<0.000000e+00> : vector<50x96xf32>
    %174 = tpu.matmul %172, %173, %cst_14 {dimension_numbers = #tpu.dot_dimension_numbers<[1], [0], [0], [1], [0, 0, 1, 1], [], []>} : vector<50x20xbf16>, vector<20x96xbf16>, vector<50x96xf32> -> vector<50x96xf32>
    %175 = arith.addf %170, %174 : vector<50x96xf32>
    %c1 = arith.constant 1 : index
    %c0_15 = arith.constant 0 : index
    %c0_16 = arith.constant 0 : index
    %176 = vector.load %arg5[%c1, %c0_15, %c0_16] : memref<25x50x20xbf16, #tpu.memory_space<vmem>>, vector<1x50x20xbf16>
    %177 = vector.shape_cast %176 : vector<1x50x20xbf16> to vector<50x20xbf16>
    %178 = vector.extract_strided_slice %169 {offsets = [0, 1], sizes = [20, 96], strides = [1, 1]} : vector<20x160xbf16> to vector<20x96xbf16>
    %cst_17 = arith.constant dense<0.000000e+00> : vector<50x96xf32>
    %179 = tpu.matmul %177, %178, %cst_17 {dimension_numbers = #tpu.dot_dimension_numbers<[1], [0], [0], [1], [0, 0, 1, 1], [], []>} : vector<50x20xbf16>, vector<20x96xbf16>, vector<50x96xf32> -> vector<50x96xf32>
    %180 = arith.addf %175, %179 : vector<50x96xf32>
    %c2 = arith.constant 2 : index
    %c0_18 = arith.constant 0 : index
    %c0_19 = arith.constant 0 : index
    %181 = vector.load %arg5[%c2, %c0_18, %c0_19] : memref<25x50x20xbf16, #tpu.memory_space<vmem>>, vector<1x50x20xbf16>
    %182 = vector.shape_cast %181 : vector<1x50x20xbf16> to vector<50x20xbf16>
    %183 = vector.extract_strided_slice %169 {offsets = [0, 2], sizes = [20, 96], strides = [1, 1]} : vector<20x160xbf16> to vector<20x96xbf16>
    %cst_20 = arith.constant dense<0.000000e+00> : vector<50x96xf32>
    %184 = tpu.matmul %182, %183, %cst_20 {dimension_numbers = #tpu.dot_dimension_numbers<[1], [0], [0], [1], [0, 0, 1, 1], [], []>} : vector<50x20xbf16>, vector<20x96xbf16>, vector<50x96xf32> -> vector<50x96xf32>
    %185 = arith.addf %180, %184 : vector<50x96xf32>
    %c3 = arith.constant 3 : index
    %c0_21 = arith.constant 0 : index
    %c0_22 = arith.constant 0 : index
    %186 = vector.load %arg5[%c3, %c0_21, %c0_22] : memref<25x50x20xbf16, #tpu.memory_space<vmem>>, vector<1x50x20xbf16>
    %187 = vector.shape_cast %186 : vector<1x50x20xbf16> to vector<50x20xbf16>
    %188 = vector.extract_strided_slice %169 {offsets = [0, 3], sizes = [20, 96], strides = [1, 1]} : vector<20x160xbf16> to vector<20x96xbf16>
    %cst_23 = arith.constant dense<0.000000e+00> : vector<50x96xf32>
    %189 = tpu.matmul %187, %188, %cst_23 {dimension_numbers = #tpu.dot_dimension_numbers<[1], [0], [0], [1], [0, 0, 1, 1], [], []>} : vector<50x20xbf16>, vector<20x96xbf16>, vector<50x96xf32> -> vector<50x96xf32>
    %190 = arith.addf %185, %189 : vector<50x96xf32>
    %c4 = arith.constant 4 : index
    %c0_24 = arith.constant 0 : index
    %c0_25 = arith.constant 0 : index
    %191 = vector.load %arg5[%c4, %c0_24, %c0_25] : memref<25x50x20xbf16, #tpu.memory_space<vmem>>, vector<1x50x20xbf16>
    %192 = vector.shape_cast %191 : vector<1x50x20xbf16> to vector<50x20xbf16>
    %193 = vector.extract_strided_slice %169 {offsets = [0, 4], sizes = [20, 96], strides = [1, 1]} : vector<20x160xbf16> to vector<20x96xbf16>
    %cst_26 = arith.constant dense<0.000000e+00> : vector<50x96xf32>
    %194 = tpu.matmul %192, %193, %cst_26 {dimension_numbers = #tpu.dot_dimension_numbers<[1], [0], [0], [1], [0, 0, 1, 1], [], []>} : vector<50x20xbf16>, vector<20x96xbf16>, vector<50x96xf32> -> vector<50x96xf32>
    %195 = arith.addf %190, %194 : vector<50x96xf32>
    %c5 = arith.constant 5 : index
    %c0_27 = arith.constant 0 : index
    %c0_28 = arith.constant 0 : index
    %196 = vector.load %arg5[%c5, %c0_27, %c0_28] : memref<25x50x20xbf16, #tpu.memory_space<vmem>>, vector<1x50x20xbf16>
    %197 = vector.shape_cast %196 : vector<1x50x20xbf16> to vector<50x20xbf16>
    %198 = vector.extract_strided_slice %169 {offsets = [0, 12], sizes = [20, 96], strides = [1, 1]} : vector<20x160xbf16> to vector<20x96xbf16>
    %cst_29 = arith.constant dense<0.000000e+00> : vector<50x96xf32>
    %199 = tpu.matmul %197, %198, %cst_29 {dimension_numbers = #tpu.dot_dimension_numbers<[1], [0], [0], [1], [0, 0, 1, 1], [], []>} : vector<50x20xbf16>, vector<20x96xbf16>, vector<50x96xf32> -> vector<50x96xf32>
    %200 = arith.addf %195, %199 : vector<50x96xf32>
    %c6 = arith.constant 6 : index
    %c0_30 = arith.constant 0 : index
    %c0_31 = arith.constant 0 : index
    %201 = vector.load %arg5[%c6, %c0_30, %c0_31] : memref<25x50x20xbf16, #tpu.memory_space<vmem>>, vector<1x50x20xbf16>
    %202 = vector.shape_cast %201 : vector<1x50x20xbf16> to vector<50x20xbf16>
    %203 = vector.extract_strided_slice %169 {offsets = [0, 13], sizes = [20, 96], strides = [1, 1]} : vector<20x160xbf16> to vector<20x96xbf16>
    %cst_32 = arith.constant dense<0.000000e+00> : vector<50x96xf32>
    %204 = tpu.matmul %202, %203, %cst_32 {dimension_numbers = #tpu.dot_dimension_numbers<[1], [0], [0], [1], [0, 0, 1, 1], [], []>} : vector<50x20xbf16>, vector<20x96xbf16>, vector<50x96xf32> -> vector<50x96xf32>
    %205 = arith.addf %200, %204 : vector<50x96xf32>
    %c7 = arith.constant 7 : index
    %c0_33 = arith.constant 0 : index
    %c0_34 = arith.constant 0 : index
    %206 = vector.load %arg5[%c7, %c0_33, %c0_34] : memref<25x50x20xbf16, #tpu.memory_space<vmem>>, vector<1x50x20xbf16>
    %207 = vector.shape_cast %206 : vector<1x50x20xbf16> to vector<50x20xbf16>
    %208 = vector.extract_strided_slice %169 {offsets = [0, 14], sizes = [20, 96], strides = [1, 1]} : vector<20x160xbf16> to vector<20x96xbf16>
    %cst_35 = arith.constant dense<0.000000e+00> : vector<50x96xf32>
    %209 = tpu.matmul %207, %208, %cst_35 {dimension_numbers = #tpu.dot_dimension_numbers<[1], [0], [0], [1], [0, 0, 1, 1], [], []>} : vector<50x20xbf16>, vector<20x96xbf16>, vector<50x96xf32> -> vector<50x96xf32>
    %210 = arith.addf %205, %209 : vector<50x96xf32>
    %c8 = arith.constant 8 : index
    %c0_36 = arith.constant 0 : index
    %c0_37 = arith.constant 0 : index
    %211 = vector.load %arg5[%c8, %c0_36, %c0_37] : memref<25x50x20xbf16, #tpu.memory_space<vmem>>, vector<1x50x20xbf16>
    %212 = vector.shape_cast %211 : vector<1x50x20xbf16> to vector<50x20xbf16>
    %213 = vector.extract_strided_slice %169 {offsets = [0, 15], sizes = [20, 96], strides = [1, 1]} : vector<20x160xbf16> to vector<20x96xbf16>
    %cst_38 = arith.constant dense<0.000000e+00> : vector<50x96xf32>
    %214 = tpu.matmul %212, %213, %cst_38 {dimension_numbers = #tpu.dot_dimension_numbers<[1], [0], [0], [1], [0, 0, 1, 1], [], []>} : vector<50x20xbf16>, vector<20x96xbf16>, vector<50x96xf32> -> vector<50x96xf32>
    %215 = arith.addf %210, %214 : vector<50x96xf32>
    %c9 = arith.constant 9 : index
    %c0_39 = arith.constant 0 : index
    %c0_40 = arith.constant 0 : index
    %216 = vector.load %arg5[%c9, %c0_39, %c0_40] : memref<25x50x20xbf16, #tpu.memory_space<vmem>>, vector<1x50x20xbf16>
    %217 = vector.shape_cast %216 : vector<1x50x20xbf16> to vector<50x20xbf16>
    %218 = vector.extract_strided_slice %169 {offsets = [0, 16], sizes = [20, 96], strides = [1, 1]} : vector<20x160xbf16> to vector<20x96xbf16>
    %cst_41 = arith.constant dense<0.000000e+00> : vector<50x96xf32>
    %219 = tpu.matmul %217, %218, %cst_41 {dimension_numbers = #tpu.dot_dimension_numbers<[1], [0], [0], [1], [0, 0, 1, 1], [], []>} : vector<50x20xbf16>, vector<20x96xbf16>, vector<50x96xf32> -> vector<50x96xf32>
    %220 = arith.addf %215, %219 : vector<50x96xf32>
    %c10 = arith.constant 10 : index
    %c0_42 = arith.constant 0 : index
    %c0_43 = arith.constant 0 : index
    %221 = vector.load %arg5[%c10, %c0_42, %c0_43] : memref<25x50x20xbf16, #tpu.memory_space<vmem>>, vector<1x50x20xbf16>
    %222 = vector.shape_cast %221 : vector<1x50x20xbf16> to vector<50x20xbf16>
    %223 = vector.extract_strided_slice %169 {offsets = [0, 24], sizes = [20, 96], strides = [1, 1]} : vector<20x160xbf16> to vector<20x96xbf16>
    %cst_44 = arith.constant dense<0.000000e+00> : vector<50x96xf32>
    %224 = tpu.matmul %222, %223, %cst_44 {dimension_numbers = #tpu.dot_dimension_numbers<[1], [0], [0], [1], [0, 0, 1, 1], [], []>} : vector<50x20xbf16>, vector<20x96xbf16>, vector<50x96xf32> -> vector<50x96xf32>
    %225 = arith.addf %220, %224 : vector<50x96xf32>
    %c11 = arith.constant 11 : index
    %c0_45 = arith.constant 0 : index
    %c0_46 = arith.constant 0 : index
    %226 = vector.load %arg5[%c11, %c0_45, %c0_46] : memref<25x50x20xbf16, #tpu.memory_space<vmem>>, vector<1x50x20xbf16>
    %227 = vector.shape_cast %226 : vector<1x50x20xbf16> to vector<50x20xbf16>
    %228 = vector.extract_strided_slice %169 {offsets = [0, 25], sizes = [20, 96], strides = [1, 1]} : vector<20x160xbf16> to vector<20x96xbf16>
    %cst_47 = arith.constant dense<0.000000e+00> : vector<50x96xf32>
    %229 = tpu.matmul %227, %228, %cst_47 {dimension_numbers = #tpu.dot_dimension_numbers<[1], [0], [0], [1], [0, 0, 1, 1], [], []>} : vector<50x20xbf16>, vector<20x96xbf16>, vector<50x96xf32> -> vector<50x96xf32>
    %230 = arith.addf %225, %229 : vector<50x96xf32>
    %c12 = arith.constant 12 : index
    %c0_48 = arith.constant 0 : index
    %c0_49 = arith.constant 0 : index
    %231 = vector.load %arg5[%c12, %c0_48, %c0_49] : memref<25x50x20xbf16, #tpu.memory_space<vmem>>, vector<1x50x20xbf16>
    %232 = vector.shape_cast %231 : vector<1x50x20xbf16> to vector<50x20xbf16>
    %233 = vector.extract_strided_slice %169 {offsets = [0, 26], sizes = [20, 96], strides = [1, 1]} : vector<20x160xbf16> to vector<20x96xbf16>
    %cst_50 = arith.constant dense<0.000000e+00> : vector<50x96xf32>
    %234 = tpu.matmul %232, %233, %cst_50 {dimension_numbers = #tpu.dot_dimension_numbers<[1], [0], [0], [1], [0, 0, 1, 1], [], []>} : vector<50x20xbf16>, vector<20x96xbf16>, vector<50x96xf32> -> vector<50x96xf32>
    %235 = arith.addf %230, %234 : vector<50x96xf32>
    %c13 = arith.constant 13 : index
    %c0_51 = arith.constant 0 : index
    %c0_52 = arith.constant 0 : index
    %236 = vector.load %arg5[%c13, %c0_51, %c0_52] : memref<25x50x20xbf16, #tpu.memory_space<vmem>>, vector<1x50x20xbf16>
    %237 = vector.shape_cast %236 : vector<1x50x20xbf16> to vector<50x20xbf16>
    %238 = vector.extract_strided_slice %169 {offsets = [0, 27], sizes = [20, 96], strides = [1, 1]} : vector<20x160xbf16> to vector<20x96xbf16>
    %cst_53 = arith.constant dense<0.000000e+00> : vector<50x96xf32>
    %239 = tpu.matmul %237, %238, %cst_53 {dimension_numbers = #tpu.dot_dimension_numbers<[1], [0], [0], [1], [0, 0, 1, 1], [], []>} : vector<50x20xbf16>, vector<20x96xbf16>, vector<50x96xf32> -> vector<50x96xf32>
    %240 = arith.addf %235, %239 : vector<50x96xf32>
    %c14 = arith.constant 14 : index
    %c0_54 = arith.constant 0 : index
    %c0_55 = arith.constant 0 : index
    %241 = vector.load %arg5[%c14, %c0_54, %c0_55] : memref<25x50x20xbf16, #tpu.memory_space<vmem>>, vector<1x50x20xbf16>
    %242 = vector.shape_cast %241 : vector<1x50x20xbf16> to vector<50x20xbf16>
    %243 = vector.extract_strided_slice %169 {offsets = [0, 28], sizes = [20, 96], strides = [1, 1]} : vector<20x160xbf16> to vector<20x96xbf16>
    %cst_56 = arith.constant dense<0.000000e+00> : vector<50x96xf32>
    %244 = tpu.matmul %242, %243, %cst_56 {dimension_numbers = #tpu.dot_dimension_numbers<[1], [0], [0], [1], [0, 0, 1, 1], [], []>} : vector<50x20xbf16>, vector<20x96xbf16>, vector<50x96xf32> -> vector<50x96xf32>
    %245 = arith.addf %240, %244 : vector<50x96xf32>
    %c15 = arith.constant 15 : index
    %c0_57 = arith.constant 0 : index
    %c0_58 = arith.constant 0 : index
    %246 = vector.load %arg5[%c15, %c0_57, %c0_58] : memref<25x50x20xbf16, #tpu.memory_space<vmem>>, vector<1x50x20xbf16>
    %247 = vector.shape_cast %246 : vector<1x50x20xbf16> to vector<50x20xbf16>
    %248 = vector.extract_strided_slice %169 {offsets = [0, 36], sizes = [20, 96], strides = [1, 1]} : vector<20x160xbf16> to vector<20x96xbf16>
    %cst_59 = arith.constant dense<0.000000e+00> : vector<50x96xf32>
    %249 = tpu.matmul %247, %248, %cst_59 {dimension_numbers = #tpu.dot_dimension_numbers<[1], [0], [0], [1], [0, 0, 1, 1], [], []>} : vector<50x20xbf16>, vector<20x96xbf16>, vector<50x96xf32> -> vector<50x96xf32>
    %250 = arith.addf %245, %249 : vector<50x96xf32>
    %c16 = arith.constant 16 : index
    %c0_60 = arith.constant 0 : index
    %c0_61 = arith.constant 0 : index
    %251 = vector.load %arg5[%c16, %c0_60, %c0_61] : memref<25x50x20xbf16, #tpu.memory_space<vmem>>, vector<1x50x20xbf16>
    %252 = vector.shape_cast %251 : vector<1x50x20xbf16> to vector<50x20xbf16>
    %253 = vector.extract_strided_slice %169 {offsets = [0, 37], sizes = [20, 96], strides = [1, 1]} : vector<20x160xbf16> to vector<20x96xbf16>
    %cst_62 = arith.constant dense<0.000000e+00> : vector<50x96xf32>
    %254 = tpu.matmul %252, %253, %cst_62 {dimension_numbers = #tpu.dot_dimension_numbers<[1], [0], [0], [1], [0, 0, 1, 1], [], []>} : vector<50x20xbf16>, vector<20x96xbf16>, vector<50x96xf32> -> vector<50x96xf32>
    %255 = arith.addf %250, %254 : vector<50x96xf32>
    %c17 = arith.constant 17 : index
    %c0_63 = arith.constant 0 : index
    %c0_64 = arith.constant 0 : index
    %256 = vector.load %arg5[%c17, %c0_63, %c0_64] : memref<25x50x20xbf16, #tpu.memory_space<vmem>>, vector<1x50x20xbf16>
    %257 = vector.shape_cast %256 : vector<1x50x20xbf16> to vector<50x20xbf16>
    %258 = vector.extract_strided_slice %169 {offsets = [0, 38], sizes = [20, 96], strides = [1, 1]} : vector<20x160xbf16> to vector<20x96xbf16>
    %cst_65 = arith.constant dense<0.000000e+00> : vector<50x96xf32>
    %259 = tpu.matmul %257, %258, %cst_65 {dimension_numbers = #tpu.dot_dimension_numbers<[1], [0], [0], [1], [0, 0, 1, 1], [], []>} : vector<50x20xbf16>, vector<20x96xbf16>, vector<50x96xf32> -> vector<50x96xf32>
    %260 = arith.addf %255, %259 : vector<50x96xf32>
    %c18 = arith.constant 18 : index
    %c0_66 = arith.constant 0 : index
    %c0_67 = arith.constant 0 : index
    %261 = vector.load %arg5[%c18, %c0_66, %c0_67] : memref<25x50x20xbf16, #tpu.memory_space<vmem>>, vector<1x50x20xbf16>
    %262 = vector.shape_cast %261 : vector<1x50x20xbf16> to vector<50x20xbf16>
    %263 = vector.extract_strided_slice %169 {offsets = [0, 39], sizes = [20, 96], strides = [1, 1]} : vector<20x160xbf16> to vector<20x96xbf16>
    %cst_68 = arith.constant dense<0.000000e+00> : vector<50x96xf32>
    %264 = tpu.matmul %262, %263, %cst_68 {dimension_numbers = #tpu.dot_dimension_numbers<[1], [0], [0], [1], [0, 0, 1, 1], [], []>} : vector<50x20xbf16>, vector<20x96xbf16>, vector<50x96xf32> -> vector<50x96xf32>
    %265 = arith.addf %260, %264 : vector<50x96xf32>
    %c19 = arith.constant 19 : index
    %c0_69 = arith.constant 0 : index
    %c0_70 = arith.constant 0 : index
    %266 = vector.load %arg5[%c19, %c0_69, %c0_70] : memref<25x50x20xbf16, #tpu.memory_space<vmem>>, vector<1x50x20xbf16>
    %267 = vector.shape_cast %266 : vector<1x50x20xbf16> to vector<50x20xbf16>
    %268 = vector.extract_strided_slice %169 {offsets = [0, 40], sizes = [20, 96], strides = [1, 1]} : vector<20x160xbf16> to vector<20x96xbf16>
    %cst_71 = arith.constant dense<0.000000e+00> : vector<50x96xf32>
    %269 = tpu.matmul %267, %268, %cst_71 {dimension_numbers = #tpu.dot_dimension_numbers<[1], [0], [0], [1], [0, 0, 1, 1], [], []>} : vector<50x20xbf16>, vector<20x96xbf16>, vector<50x96xf32> -> vector<50x96xf32>
    %270 = arith.addf %265, %269 : vector<50x96xf32>
    %c20 = arith.constant 20 : index
    %c0_72 = arith.constant 0 : index
    %c0_73 = arith.constant 0 : index
    %271 = vector.load %arg5[%c20, %c0_72, %c0_73] : memref<25x50x20xbf16, #tpu.memory_space<vmem>>, vector<1x50x20xbf16>
    %272 = vector.shape_cast %271 : vector<1x50x20xbf16> to vector<50x20xbf16>
    %273 = vector.extract_strided_slice %169 {offsets = [0, 48], sizes = [20, 96], strides = [1, 1]} : vector<20x160xbf16> to vector<20x96xbf16>
    %cst_74 = arith.constant dense<0.000000e+00> : vector<50x96xf32>
    %274 = tpu.matmul %272, %273, %cst_74 {dimension_numbers = #tpu.dot_dimension_numbers<[1], [0], [0], [1], [0, 0, 1, 1], [], []>} : vector<50x20xbf16>, vector<20x96xbf16>, vector<50x96xf32> -> vector<50x96xf32>
    %275 = arith.addf %270, %274 : vector<50x96xf32>
    %c21 = arith.constant 21 : index
    %c0_75 = arith.constant 0 : index
    %c0_76 = arith.constant 0 : index
    %276 = vector.load %arg5[%c21, %c0_75, %c0_76] : memref<25x50x20xbf16, #tpu.memory_space<vmem>>, vector<1x50x20xbf16>
    %277 = vector.shape_cast %276 : vector<1x50x20xbf16> to vector<50x20xbf16>
    %278 = vector.extract_strided_slice %169 {offsets = [0, 49], sizes = [20, 96], strides = [1, 1]} : vector<20x160xbf16> to vector<20x96xbf16>
    %cst_77 = arith.constant dense<0.000000e+00> : vector<50x96xf32>
    %279 = tpu.matmul %277, %278, %cst_77 {dimension_numbers = #tpu.dot_dimension_numbers<[1], [0], [0], [1], [0, 0, 1, 1], [], []>} : vector<50x20xbf16>, vector<20x96xbf16>, vector<50x96xf32> -> vector<50x96xf32>
    %280 = arith.addf %275, %279 : vector<50x96xf32>
    %c22 = arith.constant 22 : index
    %c0_78 = arith.constant 0 : index
    %c0_79 = arith.constant 0 : index
    %281 = vector.load %arg5[%c22, %c0_78, %c0_79] : memref<25x50x20xbf16, #tpu.memory_space<vmem>>, vector<1x50x20xbf16>
    %282 = vector.shape_cast %281 : vector<1x50x20xbf16> to vector<50x20xbf16>
    %283 = vector.extract_strided_slice %169 {offsets = [0, 50], sizes = [20, 96], strides = [1, 1]} : vector<20x160xbf16> to vector<20x96xbf16>
    %cst_80 = arith.constant dense<0.000000e+00> : vector<50x96xf32>
    %284 = tpu.matmul %282, %283, %cst_80 {dimension_numbers = #tpu.dot_dimension_numbers<[1], [0], [0], [1], [0, 0, 1, 1], [], []>} : vector<50x20xbf16>, vector<20x96xbf16>, vector<50x96xf32> -> vector<50x96xf32>
    %285 = arith.addf %280, %284 : vector<50x96xf32>
    %c23 = arith.constant 23 : index
    %c0_81 = arith.constant 0 : index
    %c0_82 = arith.constant 0 : index
    %286 = vector.load %arg5[%c23, %c0_81, %c0_82] : memref<25x50x20xbf16, #tpu.memory_space<vmem>>, vector<1x50x20xbf16>
    %287 = vector.shape_cast %286 : vector<1x50x20xbf16> to vector<50x20xbf16>
    %288 = vector.extract_strided_slice %169 {offsets = [0, 51], sizes = [20, 96], strides = [1, 1]} : vector<20x160xbf16> to vector<20x96xbf16>
    %cst_83 = arith.constant dense<0.000000e+00> : vector<50x96xf32>
    %289 = tpu.matmul %287, %288, %cst_83 {dimension_numbers = #tpu.dot_dimension_numbers<[1], [0], [0], [1], [0, 0, 1, 1], [], []>} : vector<50x20xbf16>, vector<20x96xbf16>, vector<50x96xf32> -> vector<50x96xf32>
    %290 = arith.addf %285, %289 : vector<50x96xf32>
    %c24 = arith.constant 24 : index
    %c0_84 = arith.constant 0 : index
    %c0_85 = arith.constant 0 : index
    %291 = vector.load %arg5[%c24, %c0_84, %c0_85] : memref<25x50x20xbf16, #tpu.memory_space<vmem>>, vector<1x50x20xbf16>
    %292 = vector.shape_cast %291 : vector<1x50x20xbf16> to vector<50x20xbf16>
    %293 = vector.extract_strided_slice %169 {offsets = [0, 52], sizes = [20, 96], strides = [1, 1]} : vector<20x160xbf16> to vector<20x96xbf16>
    %cst_86 = arith.constant dense<0.000000e+00> : vector<50x96xf32>
    %294 = tpu.matmul %292, %293, %cst_86 {dimension_numbers = #tpu.dot_dimension_numbers<[1], [0], [0], [1], [0, 0, 1, 1], [], []>} : vector<50x20xbf16>, vector<20x96xbf16>, vector<50x96xf32> -> vector<50x96xf32>
    %295 = arith.addf %290, %294 : vector<50x96xf32>
    %c0_87 = arith.constant 0 : index
    %c0_88 = arith.constant 0 : index
    %296 = vector.load %arg6[%c0_87, %c0_88] : memref<50x1xf32, #tpu.memory_space<vmem>>, vector<50x1xf32>
    %297 = vector.broadcast %296 : vector<50x1xf32> to vector<50x96xf32>
    %298 = arith.addf %295, %297 : vector<50x96xf32>
    %cst_89 = arith.constant 0.000000e+00 : f32
    %299 = vector.broadcast %cst_89 : f32 to vector<50x96xf32>
    %300 = arith.maximumf %298, %299 : vector<50x96xf32>
    %301 = vector.extract_strided_slice %300 {offsets = [0, 0], sizes = [50, 83], strides = [1, 1]} : vector<50x96xf32> to vector<50x83xf32>
    %302 = vector.extract_strided_slice %300 {offsets = [0, 1], sizes = [50, 83], strides = [1, 1]} : vector<50x96xf32> to vector<50x83xf32>
    %303 = arith.maximumf %301, %302 : vector<50x83xf32>
    %304 = vector.extract_strided_slice %300 {offsets = [0, 12], sizes = [50, 83], strides = [1, 1]} : vector<50x96xf32> to vector<50x83xf32>
    %305 = vector.extract_strided_slice %300 {offsets = [0, 13], sizes = [50, 83], strides = [1, 1]} : vector<50x96xf32> to vector<50x83xf32>
    %306 = arith.maximumf %304, %305 : vector<50x83xf32>
    %307 = arith.maximumf %303, %306 : vector<50x83xf32>
    %308 = arith.truncf %307 : vector<50x83xf32> to vector<50x83xbf16>
    %c0_90 = arith.constant 0 : index
    %c0_91 = arith.constant 0 : index
    %309 = vector.load %arg7[%c0_90, %c0_91] : memref<83x800xbf16, #tpu.memory_space<vmem>>, vector<83x800xbf16>
    %cst_92 = arith.constant dense<0.000000e+00> : vector<50x800xf32>
    %310 = tpu.matmul %308, %309, %cst_92 {dimension_numbers = #tpu.dot_dimension_numbers<[1], [0], [0], [1], [0, 0, 1, 1], [], []>} : vector<50x83xbf16>, vector<83x800xbf16>, vector<50x800xf32> -> vector<50x800xf32>
    %c0_93 = arith.constant 0 : index
    %c0_94 = arith.constant 0 : index
    %311 = vector.load %arg8[%c0_93, %c0_94] : memref<50x800xf32, #tpu.memory_space<vmem>>, vector<50x800xf32>
    %312 = arith.mulf %310, %311 : vector<50x800xf32>
    %313 = arith.truncf %312 : vector<50x800xf32> to vector<50x800xbf16>
    %cst_95 = arith.constant 1.000000e+00 : bf16
    %314 = vector.broadcast %cst_95 : bf16 to vector<1x50xbf16>
    %cst_96 = arith.constant dense<0.000000e+00> : vector<1x800xf32>
    %315 = tpu.matmul %314, %313, %cst_96 {dimension_numbers = #tpu.dot_dimension_numbers<[1], [0], [0], [1], [0, 0, 1, 1], [], []>} : vector<1x50xbf16>, vector<50x800xbf16>, vector<1x800xf32> -> vector<1x800xf32>
    %316 = arith.truncf %315 : vector<1x800xf32> to vector<1x800xbf16>
    %c0_97 = arith.constant 0 : index
    %c0_98 = arith.constant 0 : index
    %317 = vector.load %arg9[%c0_97, %c0_98] : memref<800x500xbf16, #tpu.memory_space<vmem>>, vector<800x500xbf16>
    %cst_99 = arith.constant dense<0.000000e+00> : vector<1x500xf32>
    %318 = tpu.matmul %316, %317, %cst_99 {dimension_numbers = #tpu.dot_dimension_numbers<[1], [0], [0], [1], [0, 0, 1, 1], [], []>} : vector<1x800xbf16>, vector<800x500xbf16>, vector<1x500xf32> -> vector<1x500xf32>
    %c0_100 = arith.constant 0 : index
    %c0_101 = arith.constant 0 : index
    %319 = vector.load %arg10[%c0_100, %c0_101] : memref<1x500xf32, #tpu.memory_space<vmem>>, vector<1x500xf32>
    %320 = arith.addf %318, %319 : vector<1x500xf32>
    %cst_102 = arith.constant 0.000000e+00 : f32
    %321 = vector.broadcast %cst_102 : f32 to vector<1x500xf32>
    %322 = arith.maximumf %320, %321 : vector<1x500xf32>
    %323 = arith.truncf %322 : vector<1x500xf32> to vector<1x500xbf16>
    %c0_103 = arith.constant 0 : index
    %c0_104 = arith.constant 0 : index
    %324 = vector.load %arg11[%c0_103, %c0_104] : memref<500x10xbf16, #tpu.memory_space<vmem>>, vector<500x10xbf16>
    %cst_105 = arith.constant dense<0.000000e+00> : vector<1x10xf32>
    %325 = tpu.matmul %323, %324, %cst_105 {dimension_numbers = #tpu.dot_dimension_numbers<[1], [0], [0], [1], [0, 0, 1, 1], [], []>} : vector<1x500xbf16>, vector<500x10xbf16>, vector<1x10xf32> -> vector<1x10xf32>
    %c0_106 = arith.constant 0 : index
    %c0_107 = arith.constant 0 : index
    %326 = vector.load %arg12[%c0_106, %c0_107] : memref<1x10xf32, #tpu.memory_space<vmem>>, vector<1x10xf32>
    %327 = arith.addf %325, %326 : vector<1x10xf32>
    %cst_108 = arith.constant dense<0xFF800000> : vector<1xf32>
    %328 = vector.multi_reduction <maximumf>, %327, %cst_108 [1] : vector<1x10xf32> to vector<1xf32>
    %329 = vector.shape_cast %328 : vector<1xf32> to vector<1x1xf32>
    %330 = vector.broadcast %329 : vector<1x1xf32> to vector<1x10xf32>
    %331 = arith.subf %327, %330 : vector<1x10xf32>
    %332 = math.exp %331 : vector<1x10xf32>
    %cst_109 = arith.constant dense<0.000000e+00> : vector<1xf32>
    %333 = vector.multi_reduction <add>, %332, %cst_109 [1] : vector<1x10xf32> to vector<1xf32>
    %334 = vector.shape_cast %333 : vector<1xf32> to vector<1x1xf32>
    %335 = math.log %334 : vector<1x1xf32>
    %336 = vector.broadcast %335 : vector<1x1xf32> to vector<1x10xf32>
    %337 = arith.subf %331, %336 : vector<1x10xf32>
    %c0_110 = arith.constant 0 : index
    %c0_111 = arith.constant 0 : index
    %c0_112 = arith.constant 0 : index
    %338 = vector.load %arg13[%c0_110, %c0_111, %c0_112] : memref<1x1x10xf32, #tpu.memory_space<vmem>>, vector<1x1x10xf32>
    %339 = vector.shape_cast %338 : vector<1x1x10xf32> to vector<1x10xf32>
    %340 = vector.shape_cast %337 : vector<1x10xf32> to vector<1x1x10xf32>
    tpu.vector_store %arg13[%c0_110, %c0_111, %c0_112], %340 {strides = array<i32>} : memref<1x1x10xf32, #tpu.memory_space<vmem>>, vector<1x1x10xf32>,
    return
  }
  func.func @transform_0(%arg0: i32) -> (i32, i32, i32) {
    %c0_i32 = arith.constant 0 : i32
    %c0_i32_0 = arith.constant 0 : i32
    %c0_i32_1 = arith.constant 0 : i32
    return %arg0, %c0_i32, %c0_i32_0 : i32, i32, i32
  }
  func.func @transform_1(%arg0: i32) -> (i32, i32) {
    %c0_i32 = arith.constant 0 : i32
    %c0_i32_0 = arith.constant 0 : i32
    %c0_i32_1 = arith.constant 0 : i32
    return %c0_i32, %c0_i32_0 : i32, i32
  }
  func.func @transform_2(%arg0: i32) -> (i32, i32) {
    %c0_i32 = arith.constant 0 : i32
    %c0_i32_0 = arith.constant 0 : i32
    %c0_i32_1 = arith.constant 0 : i32
    return %c0_i32, %c0_i32_0 : i32, i32
  }
  func.func @transform_3(%arg0: i32) -> (i32, i32) {
    %c0_i32 = arith.constant 0 : i32
    %c0_i32_0 = arith.constant 0 : i32
    %c0_i32_1 = arith.constant 0 : i32
    return %c0_i32, %c0_i32_0 : i32, i32
  }
  func.func @transform_4(%arg0: i32) -> (i32, i32, i32) {
    %c0_i32 = arith.constant 0 : i32
    %c0_i32_0 = arith.constant 0 : i32
    %c0_i32_1 = arith.constant 0 : i32
    %c0_i32_2 = arith.constant 0 : i32
    return %c0_i32, %c0_i32_0, %c0_i32_1 : i32, i32, i32
  }
  func.func @transform_5(%arg0: i32) -> (i32, i32) {
    %c0_i32 = arith.constant 0 : i32
    %c0_i32_0 = arith.constant 0 : i32
    %c0_i32_1 = arith.constant 0 : i32
    return %c0_i32, %c0_i32_0 : i32, i32
  }
  func.func @transform_6(%arg0: i32) -> (i32, i32) {
    %c0_i32 = arith.constant 0 : i32
    %c0_i32_0 = arith.constant 0 : i32
    %c0_i32_1 = arith.constant 0 : i32
    return %c0_i32, %c0_i32_0 : i32, i32
  }
  func.func @transform_7(%arg0: i32) -> (i32, i32) {
    %c0_i32 = arith.constant 0 : i32
    %c0_i32_0 = arith.constant 0 : i32
    %c0_i32_1 = arith.constant 0 : i32
    return %c0_i32, %c0_i32_0 : i32, i32
  }
  func.func @transform_8(%arg0: i32) -> (i32, i32) {
    %c0_i32 = arith.constant 0 : i32
    %c0_i32_0 = arith.constant 0 : i32
    %c0_i32_1 = arith.constant 0 : i32
    return %c0_i32, %c0_i32_0 : i32, i32
  }
  func.func @transform_9(%arg0: i32) -> (i32, i32) {
    %c0_i32 = arith.constant 0 : i32
    %c0_i32_0 = arith.constant 0 : i32
    %c0_i32_1 = arith.constant 0 : i32
    return %c0_i32, %c0_i32_0 : i32, i32
  }
  func.func @transform_10(%arg0: i32) -> (i32, i32) {
    %c0_i32 = arith.constant 0 : i32
    %c0_i32_0 = arith.constant 0 : i32
    %c0_i32_1 = arith.constant 0 : i32
    return %c0_i32, %c0_i32_0 : i32, i32
  }
  func.func @transform_11(%arg0: i32) -> (i32, i32) {
    %c0_i32 = arith.constant 0 : i32
    %c0_i32_0 = arith.constant 0 : i32
    %c0_i32_1 = arith.constant 0 : i32
    return %c0_i32, %c0_i32_0 : i32, i32
  }
  func.func @transform_12(%arg0: i32) -> (i32, i32, i32) {
    %c0_i32 = arith.constant 0 : i32
    %c0_i32_0 = arith.constant 0 : i32
    %c0_i32_1 = arith.constant 0 : i32
    return %arg0, %c0_i32, %c0_i32_0 : i32, i32, i32
  }
}

</mosaic_0001>

<bundles_post_ra>
// kernel: mnist_net_forward.1
= control target key start
LH: loop header
LB: loop body
LE: loop exit
PB: predicated region body
PF: predicated region fallthrough
CT: control target
= control target key end

     0   :  { %s19496_s0 = inlined_call_operand.vmem [shape: f32[2,1,896], index: 0, kind: input, shape index: {}]   ;;  %s19497_s1 = inlined_call_operand.vmem [shape: f32[20,25], index: 1, kind: input, shape index: {}]   ;;  %s19498_s2 = inlined_call_operand.vmem [shape: f32[20,1], index: 2, kind: input, shape index: {}]   ;;  %s19499_s3 = inlined_call_operand.vmem [shape: bf16[643,160], index: 3, kind: input, shape index: {}]   ;;  %s19500_s4 = inlined_call_operand.vmem [shape: bf16[25,50,20], index: 4, kind: input, shape index: {}]   ;;  %s19501_s5 = inlined_call_operand.vmem [shape: f32[50,1], index: 5, kind: input, shape index: {}]   ;;  %s19502_s6 = inlined_call_operand.hbm [shape: bf16[83,800], index: 6, kind: input, shape index: {}]   ;;  %s19503_s7 = inlined_call_operand.vmem [shape: f32[50,800], index: 7, kind: input, shape index: {}]   ;;  %s19504_s8 = inlined_call_operand.vmem [shape: bf16[800,500], index: 8, kind: input, shape index: {}]   ;;  %s19505_s9 = inlined_call_operand.vmem [shape: f32[1,500], index: 9, kind: input, shape index: {}]   ;;  %s19506_s10 = inlined_call_operand.vmem [shape: bf16[500,10], index: 10, kind: input, shape index: {}]   ;;  %s19507_s11 = inlined_call_operand.vmem [shape: f32[1,10], index: 11, kind: input, shape index: {}]   ;;  %s19508_s12 = inlined_call_operand.hbm [shape: f32[2,1,10], index: 12, kind: output, shape index: {}]  }
   0x1   :  { %19988 = sst [smem:[#allocation359_spill]] %s19496_s0 }
   0x2   :  { %19989 = sst [smem:[#allocation360_spill]] %s19497_s1 }
   0x3   :  { %19990 = sst [smem:[#allocation361_spill]] %s19502_s6 }
   0x4   :  { %19991 = sst [smem:[#allocation362_spill]] %s19507_s11 }
   0x5   :  { %19992 = sst [smem:[#allocation363_spill]] %s19508_s12 }
   0x6   :  { %17 = vsyncpa [#allocation3], 0 }
   0x7   :  { %18 = vsyncpa [#allocation4], 0 }
   0x8   :  { %20 = vsyncpa [#allocation4 + $0x1], 0  ;;  %s13388_s21 = smov 0   ;;  %s13390_s22 = smov 0  }
   0x9   :  { %s13392_s23 = smov 0   ;;  %s13394_s24 = smov 0  }
   0xa LB: > { %19993 = sst [smem:[#allocation8_spill]] %s13233_s21  ;;  %s13409_s25 = sadd.s32 4294967295, %s13245_s24   ;;  %s13245_s24 = sphi %s13394_s24, %s21172_s24   ;;  %s13241_s23 = sphi %s13392_s23, %s21175_s23   ;;  %s13237_s22 = sphi %s13390_s22, %s21174_s22   ;;  %s13233_s21 = sphi %s13388_s21, %s21173_s21  }
   0xb   : > { %19994 = sst [smem:[#allocation9_spill]] %s13237_s22  ;;  %s10771_s26 = sadd.s32 4294967294, %s13245_s24  }
   0xc   : > { %19995 = sst [smem:[#allocation10_spill]] %s13241_s23  ;;  %s13413_s27 = sadd.s32 1, %s13245_s24  }
   0xd   : > { %19996 = sst [smem:[#allocation11_spill]] %s13245_s24  ;;  %s290_s28 = sadd.s32 1, %s13241_s23 }
   0xe   : > { %19997 = sst [smem:[#allocation12_spill]] %s13409_s25  ;;  %s287_s29 = ssub.s32 %s13245_s24, %s13413_s27 }
   0xf   : > { %19998 = sst [smem:[#allocation13_spill]] %s13413_s27  ;;  %p300_p0 = scmp.ne.s32.totalorder %s13241_s23, %s13237_s22 }
  0x10   : > { %p288_p1 = scmp.eq.s32.totalorder %s287_s29, 0  ;;  %p301_p2 = scmp.eq.s32.totalorder %s13409_s25, 1 }
  0x11   : > { %p306_p3 = scmp.ne.s32.totalorder %s13237_s22, %s13233_s21  ;;  %p307_p4 = scmp.eq.s32.totalorder %s10771_s26, 1 }
  0x12   : > { %s13424_s30 = scalar_select %p288_p1, %s13241_s23, %s290_s28  }
  0x13   : > { %p13426_p5 = por %p301_p2, %p300_p0  ;;  %p13430_p6 = por %p307_p4, %p306_p3 }
  0x14   : > { %19999 = sst [smem:[#allocation14_spill]] %s13424_s30  ;;  %p10772_p7 = scmp.ge.s32.totalorder %s13245_s24, 1 }
  0x15   : > { %s20000_s13 = scalar_select %p13426_p5, 1, 0 }
  0x16   : > { %s20002_s14 = scalar_select %p13430_p6, 1, 0 }
  0x17   : > { %20001 = sst [smem:[#allocation15_spill]] %s20000_s13  ;;  %p314_p8 = scmp.lt.s32.totalorder %s13245_s24, 3 }
  0x18   : > { %20003 = sst [smem:[#allocation16_spill]] %s20002_s14  ;;  %p19510_p9 = scmp.eq.s32.totalorder %s13409_s25, 0 }
  0x19   : > { %p13437_p10 = pnand %p10772_p7, %p314_p8  ;;  %s13247_s16 = smov [#allocation2]  }
  0x1a   : > { %s341_s17 = sshll.u32 %s13247_s16, 4  ;;  %s20006_s6 = sld [smem:[#allocation361_spill]]  ;;  %s342_s17 = int_to_ptr.vmem [resolvable:$true] %s341_s17 }
  0x1b   : > { %s20004_s15 = scalar_select %p13437_p10, 1, 0 }
  0x1c   : > { %p12244_p11 = pneg %p13437_p10 }
  0x1e   : > { %p13445_p12 = pnand %p19510_p9, %p12244_p11 }
  0x20   : > { %s13151_s26 = scalar_lea.hbm %s20006_s6, 4928  ;;  %p13153_p0 = pneg %p13445_p12 }
  0x21   : > { %p13152_p13 = scmp.ne.s32.totalorder %s20006_s6, %s13151_s26  ;;  %p13158_p3 = scmp.lt.u32.totalorder %s13151_s26, %s20006_s6 }
  0x23   : > { %p13154_p1 = pnand %p13153_p0, %p13152_p13 }
  0x25   : > { %p13155_p2 = pneg %p13154_p1 }
  0x27   : > { %p13160_p4 = pnand %p13158_p3, %p13155_p2 }
  0x29   : > { %13163 = shalt.err (!%p13160_p4)
}
  0x2a   : > { %s13164_s23 = scalar_lea.vmem %s342_s17, 4928  ;;  %p13172_p9 = scmp.lt.s32.totalorder %s342_s17, %s342_s17 }
  0x2b   : > { %p13165_p7 = scmp.ne.s32.totalorder %s342_s17, %s13164_s23  ;;  %p13173_p6 = scmp.lt.s32.totalorder %s13164_s23, %s13164_s23 }
  0x2d   : > { %p13167_p8 = pnand %p13165_p7, %p13153_p0  ;;  %p13174_p5 = por %p13173_p6, %p13172_p9 }
  0x2f   : > { %p13168_p11 = pneg %p13167_p8 }
  0x31   : > { %p13175_p10 = pnand %p13174_p5, %p13168_p11 }
  0x33   : > { %13178 = shalt.err (!%p13175_p10)
}
  0x34   : > { %s13248_s19 = smov 448   ;;  %s13249_s20 = smov 28  }
  0x35   : > { %12247 = dma.hbm_to_vmem [thread:$0]  (!%p13445_p12), %s20006_s6, 4928, %s342_s17, [#allocation3], %s13248_s19, %s13248_s19, %s13249_s20  }
  0x36   : > { %p20007_p13 = scmp.ne.s32.totalorder %s20004_s15, 0 }
  0x38   : > { %379 = sbr.rel (%p20007_p13) target bundleno = 4214 (0x1076), region = 68 }
  0x3f   : > { %p20008_p1 = scmp.eq.s32.totalorder %s13409_s25, 0 }
  0x41   : > { %13224 = dma.done.wait (%p20008_p1), [#allocation3], 4928   ;;  %p20009_p0 = pmov %p20008_p1 }
  0x42   : > { %v13250_v0 = vmov 2   ;;  %v13251_v1 = vmov 1   ;;  %s20010_s1 = sld [smem:[#allocation360_spill]]  ;;  %v13252_v4 = vmov 3   ;;  %v13253_v5 = vmov 4   ;;  %p419_p5 = scmp.lt.s32.totalorder %s13409_s25, 1 }
  0x43   : > { %13226 = vsyncadd (%p20009_p0), [#allocation3], 4294962368  ;;  %12363 = vset.pattern.permute.xlu1 %v13250_v0  ;;  %12362 = vset.pattern.permute.xlu0 %v13251_v1  ;;  %v13254_v7 = vmov 5   ;;  %v13255_v8 = vmov 6   ;;  %v13256_v9 = vmov 7   ;;  %v13257_v10 = vmov 8  }
  0x44   : > { %v13258_v11 = vmov 9   ;;  %v13259_v12 = vmov 10   ;;  %v13260_v13 = vmov 11   ;;  %v13261_v14 = vmov 12   ;;  %s420_s16 = scalar_select %p419_p5, %s13409_s25, 1 }
  0x45   : > { %v13262_v15 = vmov 13   ;;  %v19529_v16 = vmov 14   ;;  %v19528_v17 = vmov 15   ;;  %v19527_v18 = vmov 16   ;;  %s20011_s0 = sld [smem:[#allocation359_spill]]  ;;  %s19769_s23 = smov 127  }
  0x46   : > { %v19526_v19 = vmov 17   ;;  %v19525_v20 = vmov 18   ;;  %v19524_v21 = vmov 19   ;;  %s12237_s19 = smul.u32 7, %s420_s16  ;;  %v445_v22 = vlaneseq  ;;  %s19773_s26 = smov 126  }
  0x47   : > { %v19523_v23 = vmov 20   ;;  %v19522_v27 = vmov 21   ;;  %v19521_v30 = vmov 22   ;;  %v19520_v37 = vmov 23   ;;  %s19780_s20 = smov 125   ;;  %s19785_s28 = smov 124  }
  0x48   : > { %v13475_v2 = vld [vmem:[%s20010_s1] sm:$0xff]  ;;  %v13482_v3 = vld [vmem:[%s20010_s1 + $0x8] sm:$0xff]  ;;  %v428_v6 = vld [vmem:[%s20010_s1 + $0x10] sm:$0xf]  ;;  %v13539_v24 = vshrl.u32 %v445_v22, 7  ;;  %v19519_v45 = vmov 24  }
  0x49   : > { %648 = vperm.xlu1 %12363, %v13475_v2   ;;  %512 = vperm.xlu0 %12362, %v13475_v2   ;;  %v13590_v43 = vld [vmem:[%s20010_s1 + $0x8] sm:$0xff]  ;;  %v13607_v48 = vld [vmem:[%s20010_s1 + $0x10] sm:$0xf]  ;;  %v19517_v51 = vmov 0   ;;  %v13621_v52 = vld [vmem:[%s20010_s1] sm:$0xff]  ;;  %s19597_s30 = smov 100  }
  0x4a   : > { %20012 = vst [vmem:[#allocation17_spill] sm:$0xff] %v13539_v24  ;;  %v19513_v26 = vsub.s32 3, %v13539_v24  ;;  %v19515_v29 = vsub.s32 1, %v13539_v24  ;;  %v19516_v39 = vsub.s32 0, %v13539_v24  ;;  %v19514_v61 = vsub.s32 2, %v13539_v24  ;;  %s19583_s15 = smov 99  }
  0x4b   : > { %s13537_s29 = scalar_lea.vmem %s20011_s0, %s12237_s19  ;;  %v463_v63 = vsub.s32 4, %v13539_v24  ;;  %s19558_s17 = smov 98   ;;  %vm595_vm0 = vcmask 1039360   ;;  %vm731_vm1 = vcmask 1031168   ;;  %vm867_vm2 = vcmask 1022976  }
  0x4c   : > { %v13543_v25 = vld [vmem:[%s13537_s29] sm:$0xff]  ;;  %s19571_s18 = smov 97   ;;  %s19581_s16 = smov 96   ;;  %vm19949_vm3 = vcmask 1014784   ;;  %vm1139_vm4 = vcmask 818176   ;;  %vm19945_vm5 = vcmask 809984  }
  0x4d   : > { %652 = vperm.xlu1 %12363, %v13482_v3   ;;  %516 = vperm.xlu0 %12362, %v13482_v3   ;;  %v13551_v28 = vrot.slane %v13543_v25, %v19513_v26  ;;  %v13566_v34 = vrot.slane %v13543_v25, %v19515_v29  ;;  %v13585_v42 = vrot.slane %v13543_v25, %v19516_v39  ;;  %s19586_s19 = smov 72   ;;  %s20342_s0 = smov 43   ;;  %vm19950_vm6 = vcmask 801792  }
  0x4e   : > { %s20361_s6 = smov 41   ;;  %s20371_s27 = smov 40   ;;  %vm19944_vm7 = vcmask 793600   ;;  %vm19946_vm8 = vcmask 785408   ;;  %vm19904_vm9 = vcmask 588800   ;;  %vm19901_vm10 = vcmask 580608  }
  0x4f   : > { %20013 = vst [vmem:[#allocation18_spill] sm:$0xff] %v13551_v28  ;;  %20014 = vst [vmem:[#allocation19_spill] sm:$0xff] %v13566_v34  ;;  %s20381_s14 = smov 16   ;;  %s20392_s21 = smov 15   ;;  %vm19903_vm11 = vcmask 572416   ;;  %vm19902_vm12 = vcmask 564224  }
  0x50   : > { %s20403_s24 = smov 14   ;;  %s20406_s12 = smov 127   ;;  %vm19907_vm13 = vcmask 556032   ;;  %vm19909_vm14 = vcmask 359424   ;;  %vm19911_vm15 = vcmask 351232  }
  0x51   : > { %12364 = vset.pattern.permute.xlu1 %v13252_v4  ;;  %12366 = vset.pattern.permute.xlu0 %v13253_v5  ;;  %s20414_s13 = smov 13   ;;  %s20419_s25 = smov 126  }
  0x52   : > { %788 = vperm.xlu1 %12364, %v13482_v3   ;;  %924 = vperm.xlu0 %12366, %v13482_v3   ;;  %s20478_s22 = smov 12   ;;  %s13301_s11 = smov 115  }
  0x56   : > { %12365 = vset.pattern.permute.xlu1 %v13253_v5  ;;  %12388 = vset.pattern.permute.xlu0 %v13250_v0 }
  0x57   : > { %920 = vperm.xlu1 %12365, %v13475_v2   ;;  %656 = vperm.xlu0 %12388, %v428_v6  }
  0x5b   : > { %12367 = vset.pattern.permute.xlu1 %v13254_v7  ;;  %12389 = vset.pattern.permute.xlu0 %v13252_v4 }
  0x5c   : > { %1056 = vperm.xlu1 %12367, %v13475_v2   ;;  %784 = vperm.xlu0 %12389, %v13475_v2  }
  0x60   : > { %1060 = vperm.xlu1 %12367, %v13482_v3   ;;  %792 = vperm.xlu0 %12389, %v428_v6  }
  0x64   : > { %12368 = vset.pattern.permute.xlu1 %v13255_v8  ;;  %12391 = vset.pattern.permute.xlu0 %v13255_v8 }
  0x65   : > { %1196 = vperm.xlu1 %12368, %v13482_v3   ;;  %1192 = vperm.xlu0 %12391, %v13475_v2  }
  0x69   : > { %12369 = vset.pattern.permute.xlu1 %v13256_v9  ;;  %1200 = vperm.xlu0 %12391, %v428_v6   ;;  %v13674_v6 = vrot.slane %v13543_v25, %v463_v63 }
  0x6a   : > { %1328 = vperm.xlu1 %12369, %v13475_v2  }
  0x6b   : > { %20017 = vst [vmem:[#allocation22_spill] sm:$0xff] %v13674_v6 }
  0x6d   : > { %12394 = vset.pattern.permute.xlu0 %v13256_v9 }
  0x6e   : > { %12370 = vset.pattern.permute.xlu1 %v13257_v10  ;;  %1332 = vperm.xlu0 %12394, %v13482_v3  }
  0x6f   : > { %1464 = vperm.xlu1 %12370, %v13475_v2  }
  0x73   : > { %1468 = vperm.xlu1 %12370, %v13482_v3  }
  0x77   : > { %12371 = vset.pattern.permute.xlu1 %v13258_v11 }
  0x78   : > { %1604 = vperm.xlu1 %12371, %v13482_v3  }
  0x7c   : > { %12372 = vset.pattern.permute.xlu1 %v13259_v12 }
  0x7d   : > { %1736 = vperm.xlu1 %12372, %v13475_v2  }
  0x81   : > { %12373 = vset.pattern.permute.xlu1 %v13260_v13 }
  0x82   : > { %1872 = vperm.xlu1 %12373, %v13475_v2  }
  0x86   : > { %1876 = vperm.xlu1 %12373, %v13482_v3  }
  0x8a   : > { %12374 = vset.pattern.permute.xlu1 %v13261_v14 }
  0x8b   : > { %2012 = vperm.xlu1 %12374, %v13482_v3  }
  0x8f   : > { %12375 = vset.pattern.permute.xlu1 %v13262_v15 }
  0x90   : > { %2144 = vperm.xlu1 %12375, %v13475_v2  }
  0x94   : > { %12376 = vset.pattern.permute.xlu1 %v19529_v16 }
  0x95   : > { %2280 = vperm.xlu1 %12376, %v13475_v2  }
  0x99   : > { %2284 = vperm.xlu1 %12376, %v13482_v3  }
  0x9d   : > { %12377 = vset.pattern.permute.xlu1 %v19528_v17 }
  0x9e   : > { %2420 = vperm.xlu1 %12377, %v13482_v3  }
  0xa2   : > { %12378 = vset.pattern.permute.xlu1 %v19527_v18 }
  0xa3   : > { %2552 = vperm.xlu1 %12378, %v13475_v2  }
  0xa7   : > { %12379 = vset.pattern.permute.xlu1 %v19526_v19 }
  0xa8   : > { %2688 = vperm.xlu1 %12379, %v13475_v2  }
  0xac   : > { %2692 = vperm.xlu1 %12379, %v13482_v3  }
  0xb0   : > { %12380 = vset.pattern.permute.xlu1 %v19525_v20 }
  0xb1   : > { %2828 = vperm.xlu1 %12380, %v13482_v3  }
  0xb5   : > { %12381 = vset.pattern.permute.xlu1 %v19524_v21 }
  0xb6   : > { %2960 = vperm.xlu1 %12381, %v13475_v2  }
  0xba   : > { %12382 = vset.pattern.permute.xlu1 %v19523_v23 }
  0xbb   : > { %3096 = vperm.xlu1 %12382, %v13475_v2  }
  0xbf   : > { %3100 = vperm.xlu1 %12382, %v13482_v3  }
  0xc3   : > { %12383 = vset.pattern.permute.xlu1 %v19522_v27 }
  0xc4   : > { %3256 = vperm.xlu1 %12383, %v13482_v3  }
  0xc8   : > { %12384 = vset.pattern.permute.xlu1 %v19521_v30  ;;  %v13555_v31 = vpop.permute.xlu1 %648  ;;  %v13557_v32 = vpop.permute.xlu0 %512 }
  0xc9   : > { %3403 = vperm.xlu1 %12384, %v13475_v2   ;;  %v526_v33 = vmul.f32 %v13557_v32, %v13551_v28  ;;  %v523_v44 = vmul.f32 %v13557_v32, %v13585_v42  ;;  %v662_v49 = vmul.f32 %v13555_v31, %v13551_v28  ;;  %v659_v58 = vmul.f32 %v13555_v31, %v13585_v42 }
  0xca   : > { %v524_v62 = vmul.f32 %v13557_v32, %v13566_v34 }
  0xcb   : > { %565 = vrot.lane.b32.xlu0 %v526_v33, %s19769_s23 }
  0xcc   : > { %v13568_v35 = vpop.permute.xlu1 %652  ;;  %v13570_v36 = vpop.permute.xlu0 %516 }
  0xcd   : > { %12385 = vset.pattern.permute.xlu1 %v19520_v37  ;;  %v530_v38 = vmul.f32 %v13570_v36, %v13566_v34  ;;  %v532_v40 = vmul.f32 %v13570_v36, %v13551_v28  ;;  %v666_v53 = vmul.f32 %v13568_v35, %v13566_v34  ;;  %v668_v55 = vmul.f32 %v13568_v35, %v13551_v28 }
  0xce   : > { %3554 = vperm.xlu1 %12385, %v13475_v2   ;;  %v13662_v2 = vrot.slane %v13543_v25, %v19514_v61  ;;  %v533_v33 = vmul.f32 %v13570_v36, %v13674_v6 }
  0xcf   : > { %573 = vrot.lane.b32.xlu0 %v530_v38, %s19769_s23 }
  0xd0   : > { %v525_v4 = vmul.f32 %v13557_v32, %v13662_v2 }
  0xd1   : > { %v13580_v41 = vpop.permute.xlu1 %788  ;;  %v13632_v56 = vpop.permute.xlu0 %924 }
  0xd2   : > { %3558 = vperm.xlu1 %12385, %v13590_v43   ;;  %v802_v8 = vmul.f32 %v13580_v41, %v13566_v34 }
  0xd3   : > { %577 = vrot.lane.b32.xlu0 %v532_v40, %s19769_s23  ;;  %v529_v40 = vmul.f32 %v13570_v36, %v13585_v42 }
  0xd6   : > { %12386 = vset.pattern.permute.xlu1 %v19519_v45  ;;  %v13597_v46 = vpop.permute.xlu1 %920  ;;  %v13642_v59 = vpop.permute.xlu0 %656 }
  0xd7   : > { %3709 = vperm.xlu1 %12386, %v13590_v43   ;;  %559 = vrot.lane.b32.xlu0 %v523_v44, %s19769_s23  ;;  %v660_v44 = vmul.f32 %v13555_v31, %v13566_v34  ;;  %v933_v26 = vmul.f32 %v13597_v46, %v13662_v2  ;;  %v935_v61 = vmul.f32 %v13597_v46, %v13674_v6 }
  0xdb   : > { %12387 = vset.pattern.permute.xlu1 %v13251_v1  ;;  %v13602_v47 = vpop.permute.xlu1 %1056  ;;  %1336 = vperm.xlu0 %12394, %v13607_v48   ;;  %v13653_v0 = vpop.permute.xlu0 %784 }
  0xdc   : > { %520 = vperm.xlu1 %12387, %v13607_v48   ;;  %v798_v3 = vmul.f32 %v13653_v0, %v13551_v28  ;;  %v795_v22 = vmul.f32 %v13653_v0, %v13585_v42  ;;  %v1068_v30 = vmul.f32 %v13602_v47, %v13566_v34 }
  0xdf   : > { %v13613_v50 = vpop.permute.xlu1 %1060  ;;  %701 = vrot.lane.b32.xlu0 %v662_v49, %s19773_s26 }
  0xe0   : > { %12390 = vset.pattern.permute.xlu1 %v19517_v51  ;;  %12395 = vset.pattern.permute.xlu0 %v13257_v10  ;;  %v531_v10 = vmul.f32 %v13570_v36, %v13662_v2  ;;  %v1077_v18 = vmul.f32 %v13613_v50, %v13674_v6 }
  0xe1   : > { %431 = vperm.xlu1 %12390, %v13621_v52  }
  0xe3   : > { %709 = vrot.lane.b32.xlu0 %v666_v53, %s19773_s26  ;;  %v661_v53 = vmul.f32 %v13555_v31, %v13662_v2 }
  0xe4   : > { %v13627_v54 = vpop.permute.xlu1 %1196 }
  0xe5   : > { %436 = vperm.xlu1 %12390, %v13590_v43   ;;  %v1212_v39 = vmul.f32 %v13627_v54, %v13551_v28 }
  0xe7   : > { %713 = vrot.lane.b32.xlu0 %v668_v55, %s19773_s26 }
  0xe9   : > { %12392 = vset.pattern.permute.xlu1 %v13253_v5  ;;  %v13636_v57 = vpop.permute.xlu1 %1328 }
  0xea   : > { %928 = vperm.xlu1 %12392, %v13607_v48   ;;  %v1342_v27 = vmul.f32 %v13636_v57, %v13551_v28 }
  0xeb   : > { %695 = vrot.lane.b32.xlu0 %v659_v58, %s19773_s26  ;;  %v934_v58 = vmul.f32 %v13597_v46, %v13551_v28 }
  0xee   : > { %12393 = vset.pattern.permute.xlu1 %v13254_v7  ;;  %v13645_v60 = vpop.permute.xlu1 %1464  ;;  %v527_v7 = vmul.f32 %v13557_v32, %v13674_v6 }
  0xef   : > { %20015 = vst [vmem:[#allocation20_spill] sm:$0xff] %v13645_v60  ;;  %1064 = vperm.xlu1 %12393, %v13607_v48   ;;  %1472 = vperm.xlu0 %12395, %v13607_v48  }
  0xf2   : > { %v13655_v1 = vpop.permute.xlu1 %1468 }
  0xf3   : > { %561 = vrot.lane.b32.xlu1 %v524_v62, %s19769_s23  ;;  %12396 = vset.pattern.permute.xlu0 %v13258_v11  ;;  %v804_v11 = vmul.f32 %v13580_v41, %v13551_v28  ;;  %v663_v62 = vmul.f32 %v13555_v31, %v13674_v6 }
  0xf4   : > { %1600 = vperm.xlu0 %12396, %v13621_v52   ;;  %12413 = vset.pattern.permute.xlu1 %v19517_v51 }
  0xf7   : > { %v13670_v5 = vpop.permute.xlu1 %1604  ;;  %563 = vrot.lane.b32.xlu1 %v525_v4, %s19769_s23  ;;  %v940_v4 = vmul.f32 %v13632_v56, %v13551_v28 }
  0xf8   : > { %20016 = vst [vmem:[#allocation21_spill] sm:$0xff] %v13670_v5  ;;  %837 = vrot.lane.b32.xlu0 %v798_v3, %s19780_s20  ;;  %v667_v3 = vmul.f32 %v13568_v35, %v13662_v2 }
  0xfb   : > { %567 = vrot.lane.b32.xlu1 %v527_v7, %s19769_s23 }
  0xfc   : > { %v13682_v9 = vpop.permute.xlu1 %1736  ;;  %845 = vrot.lane.b32.xlu0 %v802_v8, %s19780_s20  ;;  %v669_v8 = vmul.f32 %v13568_v35, %v13674_v6 }
  0xfd   : > { %20018 = vst [vmem:[#allocation23_spill] sm:$0xff] %v13682_v9 }
  0xff   : > { %575 = vrot.lane.b32.xlu1 %v531_v10, %s19769_s23  ;;  %v931_v10 = vmul.f32 %v13597_v46, %v13585_v42 }
 0x100   : > { %849 = vrot.lane.b32.xlu0 %v804_v11, %s19780_s20 }
 0x101   : > { %v13693_v25 = vpop.permute.xlu1 %1872 }
 0x102   : > { %20019 = vst [vmem:[#allocation24_spill] sm:$0xff] %v13693_v25 }
 0x103   : > { %579 = vrot.lane.b32.xlu1 %v533_v33, %s19769_s23  ;;  %v796_v33 = vmul.f32 %v13653_v0, %v13566_v34 }
 0x104   : > { %831 = vrot.lane.b32.xlu0 %v795_v22, %s19780_s20  ;;  %v665_v22 = vmul.f32 %v13568_v35, %v13585_v42 }
 0x105   : > { %v13699_v38 = vpop.permute.xlu1 %1876 }
 0x106   : > { %20020 = vst [vmem:[#allocation25_spill] sm:$0xff] %v13699_v38 }
 0x107   : > { %571 = vrot.lane.b32.xlu1 %v529_v40, %s19769_s23 }
 0x108   : > { %1608 = vperm.xlu0 %12396, %v13607_v48  }
 0x10a   : > { %v13707_v49 = vpop.permute.xlu1 %2012 }
 0x10b   : > { %20021 = vst [vmem:[#allocation26_spill] sm:$0xff] %v13707_v49  ;;  %697 = vrot.lane.b32.xlu1 %v660_v44, %s19773_s26  ;;  %v1070_v44 = vmul.f32 %v13602_v47, %v13551_v28 }
 0x10c   : > { %12397 = vset.pattern.permute.xlu0 %v13259_v12  ;;  %v938_v12 = vmul.f32 %v13632_v56, %v13566_v34 }
 0x10d   : > { %1740 = vperm.xlu0 %12397, %v13590_v43  }
 0x10f   : > { %v13714_v55 = vpop.permute.xlu1 %2144  ;;  %699 = vrot.lane.b32.xlu1 %v661_v53, %s19773_s26  ;;  %v797_v53 = vmul.f32 %v13653_v0, %v13662_v2 }
 0x110   : > { %20022 = vst [vmem:[#allocation27_spill] sm:$0xff] %v13714_v55 }
 0x111   : > { %973 = vrot.lane.b32.xlu0 %v934_v58, %s19785_s28 }
 0x113   : > { %703 = vrot.lane.b32.xlu1 %v663_v62, %s19773_s26  ;;  %v1074_v62 = vmul.f32 %v13613_v50, %v13566_v34 }
 0x114   : > { %v13725_v63 = vpop.permute.xlu1 %2280 }
 0x115   : > { %20023 = vst [vmem:[#allocation28_spill] sm:$0xff] %v13725_v63  ;;  %981 = vrot.lane.b32.xlu0 %v938_v12, %s19785_s28  ;;  %v799_v12 = vmul.f32 %v13653_v0, %v13674_v6 }
 0x117   : > { %711 = vrot.lane.b32.xlu1 %v667_v3, %s19773_s26 }
 0x118   : > { %v13733_v7 = vpop.permute.xlu1 %2284 }
 0x119   : > { %985 = vrot.lane.b32.xlu0 %v940_v4, %s19785_s28  ;;  %v1076_v4 = vmul.f32 %v13613_v50, %v13551_v28 }
 0x11b   : > { %715 = vrot.lane.b32.xlu1 %v669_v8, %s19773_s26  ;;  %v13775_v8 = vpop.permute.xlu0 %792 }
 0x11d   : > { %v13741_v11 = vpop.permute.xlu1 %2420  ;;  %967 = vrot.lane.b32.xlu0 %v931_v10, %s19785_s28  ;;  %v1067_v10 = vmul.f32 %v13602_v47, %v13585_v42 }
 0x11f   : > { %707 = vrot.lane.b32.xlu1 %v665_v22, %s19773_s26 }
 0x121   : > { %1744 = vperm.xlu0 %12397, %v13607_v48  }
 0x122   : > { %v13750_v40 = vpop.permute.xlu1 %2552 }
 0x123   : > { %20024 = vst [vmem:[#allocation29_spill] sm:$0xff] %v13750_v40  ;;  %833 = vrot.lane.b32.xlu1 %v796_v33, %s19780_s20  ;;  %v805_v33 = vmul.f32 %v13580_v41, %v13674_v6 }
 0x125   : > { %1109 = vrot.lane.b32.xlu0 %v1070_v44, %s19597_s30  ;;  %v13785_v44 = vpop.permute.xlu0 %1192 }
 0x126   : > { %12398 = vset.pattern.permute.xlu0 %v13260_v13  ;;  %v803_v13 = vmul.f32 %v13580_v41, %v13662_v2  ;;  %20028 = vst [vmem:[#allocation33_spill] sm:$0xff] %v13785_v44  ;;  %v1204_v16 = vmul.f32 %v13785_v44, %v13566_v34 }
 0x127   : > { %v13759_v58 = vpop.permute.xlu1 %2688  ;;  %835 = vrot.lane.b32.xlu1 %v797_v53, %s19780_s20 }
 0x128   : > { %20025 = vst [vmem:[#allocation30_spill] sm:$0xff] %v13759_v58 }
 0x129   : > { %1117 = vrot.lane.b32.xlu0 %v1074_v62, %s19597_s30  ;;  %v801_v62 = vmul.f32 %v13580_v41, %v13585_v42 }
 0x12b   : > { %v13767_v3 = vpop.permute.xlu1 %2692  ;;  %839 = vrot.lane.b32.xlu1 %v799_v12, %s19780_s20  ;;  %v13793_v12 = vpop.permute.xlu0 %1200 }
 0x12c   : > { %20026 = vst [vmem:[#allocation31_spill] sm:$0xff] %v13767_v3 }
 0x12d   : > { %1121 = vrot.lane.b32.xlu0 %v1076_v4, %s19597_s30  ;;  %v932_v4 = vmul.f32 %v13597_v46, %v13566_v34 }
 0x12f   : > { %847 = vrot.lane.b32.xlu1 %v803_v13, %s19780_s20 }
 0x130   : > { %v13780_v22 = vpop.permute.xlu1 %2828 }
 0x131   : > { %20027 = vst [vmem:[#allocation32_spill] sm:$0xff] %v13780_v22  ;;  %1103 = vrot.lane.b32.xlu0 %v1067_v10, %s19597_s30  ;;  %v1206_v10 = vmul.f32 %v13785_v44, %v13551_v28 }
 0x133   : > { %851 = vrot.lane.b32.xlu1 %v805_v33, %s19780_s20  ;;  %v13805_v33 = vpop.permute.xlu0 %1332 }
 0x134   : > { %20029 = vst [vmem:[#allocation34_spill] sm:$0xff] %v13805_v33 }
 0x135   : > { %v13788_v53 = vpop.permute.xlu1 %2960  ;;  %1880 = vperm.xlu0 %12398, %v13607_v48  }
 0x137   : > { %843 = vrot.lane.b32.xlu1 %v801_v62, %s19780_s20 }
 0x139   : > { %12399 = vset.pattern.permute.xlu0 %v13261_v14  ;;  %v1210_v14 = vmul.f32 %v13627_v54, %v13566_v34 }
 0x13a   : > { %v13799_v13 = vpop.permute.xlu1 %3096  ;;  %2008 = vperm.xlu0 %12399, %v13621_v52  }
 0x13b   : > { %969 = vrot.lane.b32.xlu1 %v932_v4, %s19785_s28 }
 0x13d   : > { %v13818_v4 = vpop.permute.xlu0 %565 }
 0x13e   : > { %v13809_v62 = vpop.permute.xlu1 %3100  ;;  %1245 = vrot.lane.b32.xlu0 %v1206_v10, %s19583_s15  ;;  %20031 = vst [vmem:[#allocation36_spill] sm:$0xff] %v13818_v4  ;;  %v1203_v10 = vmul.f32 %v13785_v44, %v13585_v42 }
 0x13f   : > { %20030 = vst [vmem:[#allocation35_spill] sm:$0xff] %v13809_v62  ;;  %971 = vrot.lane.b32.xlu1 %v933_v26, %s19785_s28  ;;  %v939_v26 = vmul.f32 %v13632_v56, %v13662_v2 }
 0x141   : > { %v13833_v51 = vpop.permute.xlu0 %573 }
 0x142   : > { %1253 = vrot.lane.b32.xlu0 %v1210_v14, %s19583_s15  ;;  %20034 = vst [vmem:[#allocation39_spill] sm:$0xff] %v13833_v51 }
 0x143   : > { %v13820_v29 = vpop.permute.xlu1 %3256  ;;  %975 = vrot.lane.b32.xlu1 %v935_v61, %s19785_s28  ;;  %v941_v61 = vmul.f32 %v13632_v56, %v13674_v6 }
 0x144   : > { %20032 = vst [vmem:[#allocation37_spill] sm:$0xff] %v13820_v29 }
 0x145   : > { %v13844_v37 = vpop.permute.xlu0 %577 }
 0x146   : > { %1257 = vrot.lane.b32.xlu0 %v1212_v39, %s19583_s15  ;;  %v937_v39 = vmul.f32 %v13632_v56, %v13585_v42  ;;  %20036 = vst [vmem:[#allocation41_spill] sm:$0xff] %v13844_v37 }
 0x147   : > { %983 = vrot.lane.b32.xlu1 %v939_v26, %s19785_s28 }
 0x148   : > { %v13831_v14 = vpop.permute.xlu1 %3403 }
 0x149   : > { %20033 = vst [vmem:[#allocation38_spill] sm:$0xff] %v13831_v14 }
 0x14a   : > { %1239 = vrot.lane.b32.xlu0 %v1203_v10, %s19583_s15  ;;  %v13854_v10 = vpop.permute.xlu0 %559 }
 0x14b   : > { %987 = vrot.lane.b32.xlu1 %v941_v61, %s19785_s28  ;;  %20038 = vst [vmem:[#allocation43_spill] sm:$0xff] %v13854_v10  ;;  %v1069_v61 = vmul.f32 %v13602_v47, %v13662_v2  ;;  %v1482_v10 = vmul.f32 %v13655_v1, %v13566_v34 }
 0x14d   : > { %v13839_v45 = vpop.permute.xlu1 %3554 }
 0x14e   : > { %20035 = vst [vmem:[#allocation40_spill] sm:$0xff] %v13839_v45  ;;  %2016 = vperm.xlu0 %12399, %v13607_v48  }
 0x14f   : > { %979 = vrot.lane.b32.xlu1 %v937_v39, %s19785_s28 }
 0x151   : > { %v13847_v26 = vpop.permute.xlu1 %3558 }
 0x152   : > { %20037 = vst [vmem:[#allocation42_spill] sm:$0xff] %v13847_v26  ;;  %12400 = vset.pattern.permute.xlu0 %v13262_v15  ;;  %v1346_v15 = vmul.f32 %v13805_v33, %v13566_v34 }
 0x153   : > { %1105 = vrot.lane.b32.xlu1 %v1068_v30, %s19597_s30  ;;  %2148 = vperm.xlu0 %12400, %v13590_v43   ;;  %v1071_v30 = vmul.f32 %v13602_v47, %v13674_v6 }
 0x156   : > { %v13860_v39 = vpop.permute.xlu1 %3709 }
 0x157   : > { %20039 = vst [vmem:[#allocation44_spill] sm:$0xff] %v13860_v39  ;;  %1107 = vrot.lane.b32.xlu1 %v1069_v61, %s19597_s30  ;;  %1381 = vrot.lane.b32.xlu0 %v1342_v27, %s19558_s17  ;;  %v1348_v61 = vmul.f32 %v13805_v33, %v13551_v28  ;;  %v1075_v27 = vmul.f32 %v13613_v50, %v13662_v2 }
 0x15a   : > { %v13868_v23 = vpop.permute.xlu0 %1336 }
 0x15b   : > { %v13870_v21 = vpop.permute.xlu1 %520  ;;  %1111 = vrot.lane.b32.xlu1 %v1071_v30, %s19597_s30  ;;  %1389 = vrot.lane.b32.xlu0 %v1346_v15, %s19558_s17  ;;  %v1339_v15 = vmul.f32 %v13636_v57, %v13585_v42 }
 0x15e   : > { %v13878_v20 = vpop.permute.xlu0 %701 }
 0x15f   : > { %20040 = vst [vmem:[#allocation45_spill] sm:$0xff] %v13878_v20  ;;  %1119 = vrot.lane.b32.xlu1 %v1075_v27, %s19597_s30  ;;  %1393 = vrot.lane.b32.xlu0 %v1348_v61, %s19558_s17  ;;  %v1073_v27 = vmul.f32 %v13613_v50, %v13585_v42 }
 0x160   : > { %v13882_v19 = vpop.permute.xlu1 %431 }
 0x161   : > { %20041 = vst [vmem:[#allocation46_spill] sm:$0xff] %v13882_v19  ;;  %v1209_v19 = vmul.f32 %v13627_v54, %v13585_v42 }
 0x162   : > { %v13888_v30 = vpop.permute.xlu0 %709 }
 0x163   : > { %20042 = vst [vmem:[#allocation47_spill] sm:$0xff] %v13888_v30  ;;  %1123 = vrot.lane.b32.xlu1 %v1077_v18, %s19597_s30  ;;  %1375 = vrot.lane.b32.xlu0 %v1339_v15, %s19558_s17  ;;  %v1478_v18 = vmul.f32 %v13645_v60, %v13551_v28  ;;  %v20046_v30 = vmov 14  }
 0x164   : > { %v13892_v17 = vpop.permute.xlu1 %436 }
 0x165   : > { %20043 = vst [vmem:[#allocation48_spill] sm:$0xff] %v13892_v17  ;;  %v1211_v17 = vmul.f32 %v13627_v54, %v13662_v2 }
 0x166   : > { %v13896_v61 = vpop.permute.xlu0 %713 }
 0x167   : > { %20044 = vst [vmem:[#allocation49_spill] sm:$0xff] %v13896_v61  ;;  %1115 = vrot.lane.b32.xlu1 %v1073_v27, %s19597_s30  ;;  %2152 = vperm.xlu0 %12400, %v13607_v48   ;;  %v1205_v27 = vmul.f32 %v13785_v44, %v13662_v2  ;;  %s19640_s30 = smov 68  }
 0x169   : > { %v13902_v51 = vpop.permute.xlu1 %928 }
 0x16a   : > { %v13906_v15 = vpop.permute.xlu0 %695 }
 0x16b   : > { %20045 = vst [vmem:[#allocation50_spill] sm:$0xff] %v13906_v15  ;;  %1241 = vrot.lane.b32.xlu1 %v1204_v16, %s19583_s15  ;;  %1517 = vrot.lane.b32.xlu0 %v1478_v18, %s19571_s18  ;;  %v1207_v16 = vmul.f32 %v13785_v44, %v13674_v6 }
 0x16c   : > { %12401 = vset.pattern.permute.xlu0 %v20046_v30  ;;  %v1484_v30 = vmul.f32 %v13655_v1, %v13551_v28 }
 0x16e   : > { %v13915_v61 = vpop.permute.xlu1 %1064  ;;  %v13917_v20 = vpop.permute.xlu0 %1472 }
 0x16f   : > { %1243 = vrot.lane.b32.xlu1 %v1205_v27, %s19583_s15  ;;  %1525 = vrot.lane.b32.xlu0 %v1482_v10, %s19571_s18  ;;  %v1475_v10 = vmul.f32 %v13645_v60, %v13585_v42 }
 0x172   : > { %v13925_v18 = vpop.permute.xlu1 %561 }
 0x173   : > { %20047 = vst [vmem:[#allocation51_spill] sm:$0xff] %v13925_v18  ;;  %1247 = vrot.lane.b32.xlu1 %v1207_v16, %s19583_s15  ;;  %1529 = vrot.lane.b32.xlu0 %v1484_v30, %s19571_s18  ;;  %v13929_v15 = vpop.permute.xlu0 %1600  ;;  %v1213_v16 = vmul.f32 %v13627_v54, %v13674_v6 }
 0x176   : > { %v13935_v27 = vpop.permute.xlu1 %563 }
 0x177   : > { %20048 = vst [vmem:[#allocation52_spill] sm:$0xff] %v13935_v27  ;;  %1255 = vrot.lane.b32.xlu1 %v1211_v17, %s19583_s15  ;;  %1511 = vrot.lane.b32.xlu0 %v1475_v10, %s19571_s18  ;;  %v13939_v37 = vpop.permute.xlu0 %837  ;;  %v20053_v17 = vmov 15  }
 0x178   : > { %20049 = vst [vmem:[#allocation53_spill] sm:$0xff] %v13939_v37 }
 0x17a   : > { %v13943_v30 = vpop.permute.xlu1 %567 }
 0x17b   : > { %20050 = vst [vmem:[#allocation54_spill] sm:$0xff] %v13943_v30  ;;  %1259 = vrot.lane.b32.xlu1 %v1213_v16, %s19583_s15  ;;  %2288 = vperm.xlu0 %12401, %v13607_v48   ;;  %v13947_v4 = vpop.permute.xlu0 %845  ;;  %v1614_v16 = vmul.f32 %v13929_v15, %v13551_v28  ;;  %v1340_v30 = vmul.f32 %v13636_v57, %v13566_v34 }
 0x17c   : > { %20051 = vst [vmem:[#allocation55_spill] sm:$0xff] %v13947_v4 }
 0x17e   : > { %v13951_v18 = vpop.permute.xlu1 %575 }
 0x17f   : > { %20052 = vst [vmem:[#allocation56_spill] sm:$0xff] %v13951_v18  ;;  %1251 = vrot.lane.b32.xlu1 %v1209_v19, %s19583_s15  ;;  %12402 = vset.pattern.permute.xlu0 %v20053_v17  ;;  %v13955_v10 = vpop.permute.xlu0 %849  ;;  %v1341_v19 = vmul.f32 %v13636_v57, %v13662_v2  ;;  %s19658_s15 = smov 43  }
 0x180   : > { %20054 = vst [vmem:[#allocation57_spill] sm:$0xff] %v13955_v10  ;;  %2416 = vperm.xlu0 %12402, %v13621_v52   ;;  %v1618_v10 = vmul.f32 %v13670_v5, %v13566_v34 }
 0x182   : > { %v13962_v4 = vpop.permute.xlu1 %579 }
 0x183   : > { %20055 = vst [vmem:[#allocation58_spill] sm:$0xff] %v13962_v4  ;;  %1377 = vrot.lane.b32.xlu1 %v1340_v30, %s19558_s17  ;;  %v13965_v37 = vpop.permute.xlu0 %831  ;;  %v1343_v30 = vmul.f32 %v13636_v57, %v13674_v6 }
 0x184   : > { %20056 = vst [vmem:[#allocation59_spill] sm:$0xff] %v13965_v37  ;;  %1653 = vrot.lane.b32.xlu0 %v1614_v16, %s19581_s16  ;;  %v1620_v16 = vmul.f32 %v13670_v5, %v13551_v28 }
 0x186   : > { %v13970_v17 = vpop.permute.xlu1 %571 }
 0x187   : > { %20057 = vst [vmem:[#allocation60_spill] sm:$0xff] %v13970_v17  ;;  %1379 = vrot.lane.b32.xlu1 %v1341_v19, %s19558_s17  ;;  %v13975_v18 = vpop.permute.xlu0 %1608  ;;  %v1611_v19 = vmul.f32 %v13929_v15, %v13585_v42 }
 0x188   : > { %20058 = vst [vmem:[#allocation61_spill] sm:$0xff] %v13975_v18  ;;  %1661 = vrot.lane.b32.xlu0 %v1618_v10, %s19581_s16  ;;  %v1347_v10 = vmul.f32 %v13805_v33, %v13662_v2 }
 0x18a   : > { %v13980_v37 = vpop.permute.xlu1 %697 }
 0x18b   : > { %20059 = vst [vmem:[#allocation62_spill] sm:$0xff] %v13980_v37  ;;  %1383 = vrot.lane.b32.xlu1 %v1343_v30, %s19558_s17  ;;  %v1349_v30 = vmul.f32 %v13805_v33, %v13674_v6 }
 0x18c   : > { %1665 = vrot.lane.b32.xlu0 %v1620_v16, %s19581_s16  ;;  %v13986_v17 = vpop.permute.xlu0 %1740 }
 0x18e   : > { %v13992_v4 = vpop.permute.xlu1 %699 }
 0x18f   : > { %20060 = vst [vmem:[#allocation63_spill] sm:$0xff] %v13992_v4  ;;  %1391 = vrot.lane.b32.xlu1 %v1347_v10, %s19558_s17  ;;  %v1345_v4 = vmul.f32 %v13805_v33, %v13585_v42 }
 0x190   : > { %1647 = vrot.lane.b32.xlu0 %v1611_v19, %s19581_s16  ;;  %v13996_v37 = vpop.permute.xlu0 %973  ;;  %v20065_v19 = vmov 16  }
 0x191   : > { %20061 = vst [vmem:[#allocation64_spill] sm:$0xff] %v13996_v37 }
 0x192   : > { %v14000_v16 = vpop.permute.xlu1 %703 }
 0x193   : > { %20062 = vst [vmem:[#allocation65_spill] sm:$0xff] %v14000_v16  ;;  %1395 = vrot.lane.b32.xlu1 %v1349_v30, %s19558_s17  ;;  %v1476_v30 = vmul.f32 %v13645_v60, %v13566_v34 }
 0x194   : > { %2424 = vperm.xlu0 %12402, %v13607_v48   ;;  %v14004_v27 = vpop.permute.xlu0 %981 }
 0x195   : > { %20063 = vst [vmem:[#allocation66_spill] sm:$0xff] %v14004_v27  ;;  %v1750_v27 = vmul.f32 %v13682_v9, %v13551_v28 }
 0x196   : > { %v14008_v44 = vpop.permute.xlu1 %711 }
 0x197   : > { %20064 = vst [vmem:[#allocation67_spill] sm:$0xff] %v14008_v44  ;;  %1387 = vrot.lane.b32.xlu1 %v1345_v4, %s19558_s17  ;;  %v1477_v4 = vmul.f32 %v13645_v60, %v13662_v2  ;;  %s19610_s17 = smov 71  }
 0x198   : > { %12403 = vset.pattern.permute.xlu0 %v20065_v19  ;;  %v14012_v10 = vpop.permute.xlu0 %985 }
 0x199   : > { %20066 = vst [vmem:[#allocation68_spill] sm:$0xff] %v14012_v10  ;;  %2556 = vperm.xlu0 %12403, %v13590_v43   ;;  %v1754_v43 = vmul.f32 %v13986_v17, %v13566_v34 }
 0x19a   : > { %v14017_v16 = vpop.permute.xlu1 %715 }
 0x19b   : > { %20067 = vst [vmem:[#allocation69_spill] sm:$0xff] %v14017_v16  ;;  %1513 = vrot.lane.b32.xlu1 %v1476_v30, %s19571_s18  ;;  %v1479_v30 = vmul.f32 %v13645_v60, %v13674_v6 }
 0x19c   : > { %v14022_v37 = vpop.permute.xlu0 %967 }
 0x19d   : > { %20068 = vst [vmem:[#allocation70_spill] sm:$0xff] %v14022_v37  ;;  %1789 = vrot.lane.b32.xlu0 %v1750_v27, %s19586_s19  ;;  %v1756_v27 = vmul.f32 %v13986_v17, %v13551_v28 }
 0x19e   : > { %v14029_v19 = vpop.permute.xlu1 %707 }
 0x19f   : > { %20069 = vst [vmem:[#allocation71_spill] sm:$0xff] %v14029_v19  ;;  %1515 = vrot.lane.b32.xlu1 %v1477_v4, %s19571_s18  ;;  %v1483_v4 = vmul.f32 %v13655_v1, %v13662_v2 }
 0x1a0   : > { %v14032_v10 = vpop.permute.xlu0 %1744 }
 0x1a1   : > { %1797 = vrot.lane.b32.xlu0 %v1754_v43, %s19586_s19  ;;  %v1747_v43 = vmul.f32 %v13682_v9, %v13585_v42 }
 0x1a2   : > { %v14039_v37 = vpop.permute.xlu1 %833 }
 0x1a3   : > { %20070 = vst [vmem:[#allocation72_spill] sm:$0xff] %v14039_v37  ;;  %1519 = vrot.lane.b32.xlu1 %v1479_v30, %s19571_s18  ;;  %v1485_v30 = vmul.f32 %v13655_v1, %v13674_v6 }
 0x1a4   : > { %v14042_v16 = vpop.permute.xlu0 %1109 }
 0x1a5   : > { %20071 = vst [vmem:[#allocation73_spill] sm:$0xff] %v14042_v16  ;;  %1801 = vrot.lane.b32.xlu0 %v1756_v27, %s19586_s19 }
 0x1a6   : > { %v14047_v19 = vpop.permute.xlu1 %835 }
 0x1a7   : > { %20072 = vst [vmem:[#allocation74_spill] sm:$0xff] %v14047_v19  ;;  %1527 = vrot.lane.b32.xlu1 %v1483_v4, %s19571_s18  ;;  %v1481_v4 = vmul.f32 %v13655_v1, %v13585_v42 }
 0x1a8   : > { %v14052_v44 = vpop.permute.xlu0 %1117 }
 0x1a9   : > { %20073 = vst [vmem:[#allocation75_spill] sm:$0xff] %v14052_v44  ;;  %1783 = vrot.lane.b32.xlu0 %v1747_v43, %s19586_s19  ;;  %v1886_v43 = vmul.f32 %v13693_v25, %v13551_v28 }
 0x1aa   : > { %v14057_v16 = vpop.permute.xlu1 %839 }
 0x1ab   : > { %20074 = vst [vmem:[#allocation76_spill] sm:$0xff] %v14057_v16  ;;  %1531 = vrot.lane.b32.xlu1 %v1485_v30, %s19571_s18  ;;  %v1612_v30 = vmul.f32 %v13929_v15, %v13566_v34 }
 0x1ac   : > { %v14060_v27 = vpop.permute.xlu0 %1121 }
 0x1ad   : > { %20075 = vst [vmem:[#allocation77_spill] sm:$0xff] %v14060_v27  ;;  %2560 = vperm.xlu0 %12403, %v13607_v48   ;;  %v20079_v27 = vmov 17  }
 0x1ae   : > { %v14065_v37 = vpop.permute.xlu1 %847 }
 0x1af   : > { %20076 = vst [vmem:[#allocation78_spill] sm:$0xff] %v14065_v37  ;;  %1523 = vrot.lane.b32.xlu1 %v1481_v4, %s19571_s18  ;;  %v1890_v4 = vmul.f32 %v13699_v38, %v13566_v34  ;;  %s19687_s18 = smov 70  }
 0x1b0   : > { %v14070_v44 = vpop.permute.xlu0 %1103 }
 0x1b1   : > { %20077 = vst [vmem:[#allocation79_spill] sm:$0xff] %v14070_v44  ;;  %1925 = vrot.lane.b32.xlu0 %v1886_v43, %s19610_s17  ;;  %v1613_v44 = vmul.f32 %v13929_v15, %v13662_v2 }
 0x1b2   : > { %v14075_v16 = vpop.permute.xlu1 %851  ;;  %12404 = vset.pattern.permute.xlu0 %v20079_v27 }
 0x1b3   : > { %20078 = vst [vmem:[#allocation80_spill] sm:$0xff] %v14075_v16  ;;  %1649 = vrot.lane.b32.xlu1 %v1612_v30, %s19581_s16  ;;  %v1892_v16 = vmul.f32 %v13699_v38, %v13551_v28  ;;  %v1615_v30 = vmul.f32 %v13929_v15, %v13674_v6 }
 0x1b4   : > { %v14081_v37 = vpop.permute.xlu0 %1880 }
 0x1b5   : > { %20080 = vst [vmem:[#allocation81_spill] sm:$0xff] %v14081_v37  ;;  %1933 = vrot.lane.b32.xlu0 %v1890_v4, %s19610_s17  ;;  %v1883_v4 = vmul.f32 %v13693_v25, %v13585_v42 }
 0x1b6   : > { %v14086_v43 = vpop.permute.xlu1 %843 }
 0x1b7   : > { %20081 = vst [vmem:[#allocation82_spill] sm:$0xff] %v14086_v43  ;;  %1651 = vrot.lane.b32.xlu1 %v1613_v44, %s19581_s16  ;;  %v1619_v43 = vmul.f32 %v13670_v5, %v13662_v2 }
 0x1b9   : > { %1937 = vrot.lane.b32.xlu0 %v1892_v16, %s19610_s17  ;;  %v14092_v27 = vpop.permute.xlu0 %2008 }
 0x1ba   : > { %20082 = vst [vmem:[#allocation83_spill] sm:$0xff] %v14092_v27  ;;  %v14096_v19 = vpop.permute.xlu1 %969 }
 0x1bb   : > { %20083 = vst [vmem:[#allocation84_spill] sm:$0xff] %v14096_v19  ;;  %1655 = vrot.lane.b32.xlu1 %v1615_v30, %s19581_s16  ;;  %v1621_v30 = vmul.f32 %v13670_v5, %v13674_v6 }
 0x1bd   : > { %1919 = vrot.lane.b32.xlu0 %v1883_v4, %s19610_s17  ;;  %v14102_v44 = vpop.permute.xlu0 %1245  ;;  %v20088_v4 = vmov 18  }
 0x1be   : > { %20084 = vst [vmem:[#allocation85_spill] sm:$0xff] %v14102_v44  ;;  %v14106_v16 = vpop.permute.xlu1 %971 }
 0x1bf   : > { %20085 = vst [vmem:[#allocation86_spill] sm:$0xff] %v14106_v16  ;;  %1663 = vrot.lane.b32.xlu1 %v1619_v43, %s19581_s16  ;;  %v1617_v16 = vmul.f32 %v13670_v5, %v13585_v42  ;;  %v2022_v43 = vmul.f32 %v14092_v27, %v13551_v28 }
 0x1c1   : > { %2696 = vperm.xlu0 %12404, %v13607_v48   ;;  %v14110_v60 = vpop.permute.xlu0 %1253 }
 0x1c2   : > { %20086 = vst [vmem:[#allocation87_spill] sm:$0xff] %v14110_v60  ;;  %v14114_v19 = vpop.permute.xlu1 %975 }
 0x1c3   : > { %20087 = vst [vmem:[#allocation88_spill] sm:$0xff] %v14114_v19  ;;  %1667 = vrot.lane.b32.xlu1 %v1621_v30, %s19581_s16  ;;  %v1748_v30 = vmul.f32 %v13682_v9, %v13566_v34 }
 0x1c5   : > { %12405 = vset.pattern.permute.xlu0 %v20088_v4  ;;  %v14118_v44 = vpop.permute.xlu0 %1257 }
 0x1c6   : > { %20089 = vst [vmem:[#allocation89_spill] sm:$0xff] %v14118_v44  ;;  %v14122_v33 = vpop.permute.xlu1 %983  ;;  %2824 = vperm.xlu0 %12405, %v13621_v52   ;;  %v2026_v52 = vmul.f32 %v13707_v49, %v13566_v34 }
 0x1c7   : > { %20090 = vst [vmem:[#allocation90_spill] sm:$0xff] %v14122_v33  ;;  %1659 = vrot.lane.b32.xlu1 %v1617_v16, %s19581_s16  ;;  %v1749_v16 = vmul.f32 %v13682_v9, %v13662_v2  ;;  %v2019_v33 = vmul.f32 %v14092_v27, %v13585_v42  ;;  %s19668_s16 = smov 42  }
 0x1c9   : > { %v14128_v60 = vpop.permute.xlu0 %1239 }
 0x1ca   : > { %20091 = vst [vmem:[#allocation91_spill] sm:$0xff] %v14128_v60  ;;  %v14132_v4 = vpop.permute.xlu1 %987  ;;  %2061 = vrot.lane.b32.xlu0 %v2022_v43, %s19687_s18  ;;  %v2028_v60 = vmul.f32 %v13707_v49, %v13551_v28  ;;  %v1751_v43 = vmul.f32 %v13682_v9, %v13674_v6 }
 0x1cb   : > { %20092 = vst [vmem:[#allocation92_spill] sm:$0xff] %v14132_v4  ;;  %1785 = vrot.lane.b32.xlu1 %v1748_v30, %s19586_s19 }
 0x1cd   : > { %v14138_v19 = vpop.permute.xlu0 %2016 }
 0x1ce   : > { %20093 = vst [vmem:[#allocation93_spill] sm:$0xff] %v14138_v19  ;;  %v14142_v44 = vpop.permute.xlu1 %979  ;;  %2069 = vrot.lane.b32.xlu0 %v2026_v52, %s19687_s18  ;;  %v1755_v52 = vmul.f32 %v13986_v17, %v13662_v2 }
 0x1cf   : > { %20094 = vst [vmem:[#allocation94_spill] sm:$0xff] %v14142_v44  ;;  %1787 = vrot.lane.b32.xlu1 %v1749_v16, %s19586_s19 }
 0x1d2   : > { %v14150_v30 = vpop.permute.xlu1 %1105  ;;  %2073 = vrot.lane.b32.xlu0 %v2028_v60, %s19687_s18  ;;  %v14153_v4 = vpop.permute.xlu0 %2148  ;;  %v1757_v60 = vmul.f32 %v13986_v17, %v13674_v6 }
 0x1d3   : > { %20095 = vst [vmem:[#allocation95_spill] sm:$0xff] %v14150_v30  ;;  %20096 = vst [vmem:[#allocation96_spill] sm:$0xff] %v14153_v4  ;;  %1791 = vrot.lane.b32.xlu1 %v1751_v43, %s19586_s19  ;;  %v1753_v43 = vmul.f32 %v13986_v17, %v13585_v42 }
 0x1d6   : > { %v14160_v16 = vpop.permute.xlu1 %1107  ;;  %2055 = vrot.lane.b32.xlu0 %v2019_v33, %s19687_s18  ;;  %v14163_v44 = vpop.permute.xlu0 %1381  ;;  %v20102_v33 = vmov 19  }
 0x1d7   : > { %20097 = vst [vmem:[#allocation97_spill] sm:$0xff] %v14160_v16  ;;  %20098 = vst [vmem:[#allocation98_spill] sm:$0xff] %v14163_v44  ;;  %1799 = vrot.lane.b32.xlu1 %v1755_v52, %s19586_s19  ;;  %v14185_v52 = vld [vmem:[%s20010_s1 + $0x8] sm:$0xff] }
 0x1da   : > { %v14168_v30 = vpop.permute.xlu1 %1111  ;;  %2832 = vperm.xlu0 %12405, %v13607_v48   ;;  %v14171_v9 = vpop.permute.xlu0 %1389  ;;  %v1884_v48 = vmul.f32 %v13693_v25, %v13566_v34 }
 0x1db   : > { %20099 = vst [vmem:[#allocation99_spill] sm:$0xff] %v14168_v30  ;;  %20100 = vst [vmem:[#allocation100_spill] sm:$0xff] %v14171_v9  ;;  %1803 = vrot.lane.b32.xlu1 %v1757_v60, %s19586_s19  ;;  %v2158_v60 = vmul.f32 %v13714_v55, %v13551_v28  ;;  %v1885_v30 = vmul.f32 %v13693_v25, %v13662_v2 }
 0x1de   : > { %v14176_v16 = vpop.permute.xlu1 %1119  ;;  %12406 = vset.pattern.permute.xlu0 %v20102_v33  ;;  %v14179_v44 = vpop.permute.xlu0 %1393 }
 0x1df   : > { %20101 = vst [vmem:[#allocation101_spill] sm:$0xff] %v14176_v16  ;;  %20103 = vst [vmem:[#allocation102_spill] sm:$0xff] %v14179_v44  ;;  %1795 = vrot.lane.b32.xlu1 %v1753_v43, %s19586_s19  ;;  %2964 = vperm.xlu0 %12406, %v14185_v52   ;;  %s19679_s19 = smov 69   ;;  %v2162_v43 = vmul.f32 %v14153_v4, %v13566_v34 }
 0x1e2   : > { %v14192_v9 = vpop.permute.xlu1 %1123  ;;  %v14194_v33 = vpop.permute.xlu0 %1375 }
 0x1e3   : > { %20104 = vst [vmem:[#allocation103_spill] sm:$0xff] %v14192_v9  ;;  %20105 = vst [vmem:[#allocation104_spill] sm:$0xff] %v14194_v33  ;;  %1921 = vrot.lane.b32.xlu1 %v1884_v48, %s19610_s17  ;;  %2197 = vrot.lane.b32.xlu0 %v2158_v60, %s19679_s19  ;;  %v2164_v48 = vmul.f32 %v14153_v4, %v13551_v28  ;;  %v1887_v60 = vmul.f32 %v13693_v25, %v13674_v6 }
 0x1e6   : > { %v14202_v44 = vpop.permute.xlu1 %1115  ;;  %v14204_v16 = vpop.permute.xlu0 %2152 }
 0x1e7   : > { %20106 = vst [vmem:[#allocation105_spill] sm:$0xff] %v14202_v44  ;;  %20107 = vst [vmem:[#allocation106_spill] sm:$0xff] %v14204_v16  ;;  %1923 = vrot.lane.b32.xlu1 %v1885_v30, %s19610_s17  ;;  %2205 = vrot.lane.b32.xlu0 %v2162_v43, %s19679_s19  ;;  %v1891_v44 = vmul.f32 %v13699_v38, %v13662_v2  ;;  %v2155_v30 = vmul.f32 %v13714_v55, %v13585_v42 }
 0x1ea   : > { %v14212_v33 = vpop.permute.xlu1 %1241  ;;  %v14214_v9 = vpop.permute.xlu0 %1517 }
 0x1eb   : > { %20108 = vst [vmem:[#allocation107_spill] sm:$0xff] %v14212_v33  ;;  %20109 = vst [vmem:[#allocation108_spill] sm:$0xff] %v14214_v9  ;;  %1927 = vrot.lane.b32.xlu1 %v1887_v60, %s19610_s17  ;;  %2209 = vrot.lane.b32.xlu0 %v2164_v48, %s19679_s19  ;;  %v1893_v9 = vmul.f32 %v13699_v38, %v13674_v6  ;;  %v14238_v33 = vld [vmem:[%s20010_s1 + $0x10] sm:$0xf] }
 0x1ee   : > { %v14222_v43 = vpop.permute.xlu1 %1243  ;;  %v14224_v5 = vpop.permute.xlu0 %1525 }
 0x1ef   : > { %20110 = vst [vmem:[#allocation109_spill] sm:$0xff] %v14222_v43  ;;  %20111 = vst [vmem:[#allocation110_spill] sm:$0xff] %v14224_v5  ;;  %1935 = vrot.lane.b32.xlu1 %v1891_v44, %s19610_s17  ;;  %2191 = vrot.lane.b32.xlu0 %v2155_v30, %s19679_s19  ;;  %v1889_v44 = vmul.f32 %v13699_v38, %v13585_v42  ;;  %v2294_v30 = vmul.f32 %v13725_v63, %v13551_v28 }
 0x1f0   : > { %v2298_v43 = vmul.f32 %v13733_v7, %v13566_v34 }
 0x1f2   : > { %v14230_v60 = vpop.permute.xlu1 %1247  ;;  %v14232_v48 = vpop.permute.xlu0 %1529 }
 0x1f3   : > { %20112 = vst [vmem:[#allocation111_spill] sm:$0xff] %v14230_v60  ;;  %20113 = vst [vmem:[#allocation112_spill] sm:$0xff] %v14232_v48  ;;  %1939 = vrot.lane.b32.xlu1 %v1893_v9, %s19610_s17  ;;  %2968 = vperm.xlu0 %12406, %v14238_v33   ;;  %v20116_v9 = vmov 20   ;;  %v2020_v48 = vmul.f32 %v14092_v27, %v13566_v34 }
 0x1f6   : > { %v14245_v5 = vpop.permute.xlu1 %1255  ;;  %v14247_v60 = vpop.permute.xlu0 %1511 }
 0x1f7   : > { %20114 = vst [vmem:[#allocation113_spill] sm:$0xff] %v14245_v5  ;;  %20115 = vst [vmem:[#allocation114_spill] sm:$0xff] %v14247_v60  ;;  %1931 = vrot.lane.b32.xlu1 %v1889_v44, %s19610_s17  ;;  %2333 = vrot.lane.b32.xlu0 %v2294_v30, %s19640_s30  ;;  %v2021_v44 = vmul.f32 %v14092_v27, %v13662_v2  ;;  %v2300_v30 = vmul.f32 %v13733_v7, %v13551_v28  ;;  %s19649_s17 = smov 44  }
 0x1f8   : > { %12407 = vset.pattern.permute.xlu0 %v20116_v9 }
 0x1fa   : > { %v14256_v38 = vpop.permute.xlu1 %1259  ;;  %v14258_v25 = vpop.permute.xlu0 %2288 }
 0x1fb   : > { %20117 = vst [vmem:[#allocation115_spill] sm:$0xff] %v14256_v38  ;;  %20118 = vst [vmem:[#allocation116_spill] sm:$0xff] %v14258_v25  ;;  %2057 = vrot.lane.b32.xlu1 %v2020_v48, %s19687_s18  ;;  %2341 = vrot.lane.b32.xlu0 %v2298_v43, %s19640_s30  ;;  %v2023_v38 = vmul.f32 %v14092_v27, %v13674_v6  ;;  %v2291_v43 = vmul.f32 %v13725_v63, %v13585_v42 }
 0x1fe   : > { %v14266_v9 = vpop.permute.xlu1 %1251 }
 0x1ff   : > { %20119 = vst [vmem:[#allocation117_spill] sm:$0xff] %v14266_v9  ;;  %2059 = vrot.lane.b32.xlu1 %v2021_v44, %s19687_s18  ;;  %2345 = vrot.lane.b32.xlu0 %v2300_v30, %s19640_s30  ;;  %v14270_v60 = vpop.permute.xlu0 %2416  ;;  %v2027_v44 = vmul.f32 %v13707_v49, %v13662_v2 }
 0x200   : > { %20120 = vst [vmem:[#allocation118_spill] sm:$0xff] %v14270_v60 }
 0x202   : > { %v14276_v48 = vpop.permute.xlu1 %1377 }
 0x203   : > { %20121 = vst [vmem:[#allocation119_spill] sm:$0xff] %v14276_v48  ;;  %2063 = vrot.lane.b32.xlu1 %v2023_v38, %s19687_s18  ;;  %2327 = vrot.lane.b32.xlu0 %v2291_v43, %s19640_s30  ;;  %v14280_v5 = vpop.permute.xlu0 %1653  ;;  %v2029_v48 = vmul.f32 %v13707_v49, %v13674_v6  ;;  %v20126_v38 = vmov 21  }
 0x204   : > { %20122 = vst [vmem:[#allocation120_spill] sm:$0xff] %v14280_v5  ;;  %v14301_v5 = vld [vmem:[%s20010_s1] sm:$0xff]  ;;  %s20350_s1 = smov 42  }
 0x206   : > { %v14284_v30 = vpop.permute.xlu1 %1379 }
 0x207   : > { %20123 = vst [vmem:[#allocation121_spill] sm:$0xff] %v14284_v30  ;;  %2071 = vrot.lane.b32.xlu1 %v2027_v44, %s19687_s18  ;;  %3104 = vperm.xlu0 %12407, %v14238_v33   ;;  %v14288_v9 = vpop.permute.xlu0 %1661  ;;  %v2430_v44 = vmul.f32 %v14270_v60, %v13551_v28  ;;  %v2434_v30 = vmul.f32 %v13741_v11, %v13566_v34 }
 0x208   : > { %20124 = vst [vmem:[#allocation122_spill] sm:$0xff] %v14288_v9  ;;  %v2025_v9 = vmul.f32 %v13707_v49, %v13585_v42 }
 0x20a   : > { %v14292_v27 = vpop.permute.xlu1 %1383 }
 0x20b   : > { %20125 = vst [vmem:[#allocation123_spill] sm:$0xff] %v14292_v27  ;;  %2075 = vrot.lane.b32.xlu1 %v2029_v48, %s19687_s18  ;;  %12408 = vset.pattern.permute.xlu0 %v20126_v38  ;;  %v14296_v43 = vpop.permute.xlu0 %1665  ;;  %v2156_v38 = vmul.f32 %v13714_v55, %v13566_v34 }
 0x20c   : > { %20127 = vst [vmem:[#allocation124_spill] sm:$0xff] %v14296_v43  ;;  %3252 = vperm.xlu0 %12408, %v14301_v5  }
 0x20e   : > { %v14308_v27 = vpop.permute.xlu1 %1391 }
 0x20f   : > { %20128 = vst [vmem:[#allocation125_spill] sm:$0xff] %v14308_v27  ;;  %2067 = vrot.lane.b32.xlu1 %v2025_v9, %s19687_s18  ;;  %v14311_v48 = vpop.permute.xlu0 %1647  ;;  %v2157_v9 = vmul.f32 %v13714_v55, %v13662_v2  ;;  %s19756_s18 = smov 12  }
 0x210   : > { %20129 = vst [vmem:[#allocation126_spill] sm:$0xff] %v14311_v48  ;;  %2469 = vrot.lane.b32.xlu0 %v2430_v44, %s19649_s17  ;;  %v2436_v44 = vmul.f32 %v13741_v11, %v13551_v28 }
 0x212   : > { %v14316_v43 = vpop.permute.xlu1 %1395 }
 0x213   : > { %20130 = vst [vmem:[#allocation127_spill] sm:$0xff] %v14316_v43  ;;  %2193 = vrot.lane.b32.xlu1 %v2156_v38, %s19679_s19  ;;  %v14321_v49 = vpop.permute.xlu0 %2424  ;;  %v2427_v38 = vmul.f32 %v14270_v60, %v13585_v42 }
 0x214   : > { %20131 = vst [vmem:[#allocation128_spill] sm:$0xff] %v14321_v49  ;;  %2477 = vrot.lane.b32.xlu0 %v2434_v30, %s19649_s17  ;;  %v2159_v30 = vmul.f32 %v13714_v55, %v13674_v6 }
 0x216   : > { %v14326_v48 = vpop.permute.xlu1 %1387 }
 0x217   : > { %20132 = vst [vmem:[#allocation129_spill] sm:$0xff] %v14326_v48  ;;  %2195 = vrot.lane.b32.xlu1 %v2157_v9, %s19679_s19  ;;  %v2163_v9 = vmul.f32 %v14153_v4, %v13662_v2 }
 0x218   : > { %2481 = vrot.lane.b32.xlu0 %v2436_v44, %s19649_s17  ;;  %v14332_v43 = vpop.permute.xlu0 %2556 }
 0x21a   : > { %v14338_v27 = vpop.permute.xlu1 %1513 }
 0x21b   : > { %20133 = vst [vmem:[#allocation130_spill] sm:$0xff] %v14338_v27  ;;  %2199 = vrot.lane.b32.xlu1 %v2159_v30, %s19679_s19  ;;  %v2165_v27 = vmul.f32 %v14153_v4, %v13674_v6 }
 0x21c   : > { %2463 = vrot.lane.b32.xlu0 %v2427_v38, %s19649_s17  ;;  %v14342_v48 = vpop.permute.xlu0 %1789  ;;  %v20138_v38 = vmov 22  }
 0x21d   : > { %20134 = vst [vmem:[#allocation131_spill] sm:$0xff] %v14342_v48 }
 0x21e   : > { %v14346_v44 = vpop.permute.xlu1 %1515 }
 0x21f   : > { %20135 = vst [vmem:[#allocation132_spill] sm:$0xff] %v14346_v44  ;;  %2207 = vrot.lane.b32.xlu1 %v2163_v9, %s19679_s19  ;;  %v2161_v9 = vmul.f32 %v14153_v4, %v13585_v42 }
 0x220   : > { %3260 = vperm.xlu0 %12408, %v14238_v33   ;;  %v14350_v49 = vpop.permute.xlu0 %1797 }
 0x221   : > { %20136 = vst [vmem:[#allocation133_spill] sm:$0xff] %v14350_v49  ;;  %v2566_v49 = vmul.f32 %v13750_v40, %v13551_v28 }
 0x222   : > { %v14354_v55 = vpop.permute.xlu1 %1519 }
 0x223   : > { %20137 = vst [vmem:[#allocation134_spill] sm:$0xff] %v14354_v55  ;;  %2211 = vrot.lane.b32.xlu1 %v2165_v27, %s19679_s19  ;;  %v2292_v27 = vmul.f32 %v13725_v63, %v13566_v34 }
 0x224   : > { %12409 = vset.pattern.permute.xlu0 %v20138_v38  ;;  %v14358_v30 = vpop.permute.xlu0 %1801 }
 0x225   : > { %20139 = vst [vmem:[#allocation135_spill] sm:$0xff] %v14358_v30  ;;  %3407 = vperm.xlu0 %12409, %v14185_v52   ;;  %v2570_v52 = vmul.f32 %v14332_v43, %v13566_v34 }
 0x226   : > { %v14363_v48 = vpop.permute.xlu1 %1527 }
 0x227   : > { %20140 = vst [vmem:[#allocation136_spill] sm:$0xff] %v14363_v48  ;;  %2203 = vrot.lane.b32.xlu1 %v2161_v9, %s19679_s19  ;;  %v2293_v9 = vmul.f32 %v13725_v63, %v13662_v2  ;;  %s19792_s19 = smov 14  }
 0x228   : > { %v14368_v44 = vpop.permute.xlu0 %1783 }
 0x229   : > { %20141 = vst [vmem:[#allocation137_spill] sm:$0xff] %v14368_v44  ;;  %2605 = vrot.lane.b32.xlu0 %v2566_v49, %s19658_s15  ;;  %v2572_v49 = vmul.f32 %v14332_v43, %v13551_v28 }
 0x22a   : > { %v14375_v38 = vpop.permute.xlu1 %1531 }
 0x22b   : > { %20142 = vst [vmem:[#allocation138_spill] sm:$0xff] %v14375_v38  ;;  %2329 = vrot.lane.b32.xlu1 %v2292_v27, %s19640_s30  ;;  %v2295_v27 = vmul.f32 %v13725_v63, %v13674_v6 }
 0x22c   : > { %v14378_v55 = vpop.permute.xlu0 %2560 }
 0x22d   : > { %20143 = vst [vmem:[#allocation139_spill] sm:$0xff] %v14378_v55  ;;  %2613 = vrot.lane.b32.xlu0 %v2570_v52, %s19658_s15  ;;  %v2563_v52 = vmul.f32 %v13750_v40, %v13585_v42 }
 0x22e   : > { %v14385_v44 = vpop.permute.xlu1 %1523 }
 0x22f   : > { %20144 = vst [vmem:[#allocation140_spill] sm:$0xff] %v14385_v44  ;;  %2331 = vrot.lane.b32.xlu1 %v2293_v9, %s19640_s30  ;;  %v2299_v9 = vmul.f32 %v13733_v7, %v13662_v2 }
 0x230   : > { %v14388_v30 = vpop.permute.xlu0 %1925 }
 0x231   : > { %20145 = vst [vmem:[#allocation141_spill] sm:$0xff] %v14388_v30  ;;  %2617 = vrot.lane.b32.xlu0 %v2572_v49, %s19658_s15 }
 0x232   : > { %v14393_v38 = vpop.permute.xlu1 %1649 }
 0x233   : > { %20146 = vst [vmem:[#allocation142_spill] sm:$0xff] %v14393_v38  ;;  %2335 = vrot.lane.b32.xlu1 %v2295_v27, %s19640_s30  ;;  %v2301_v27 = vmul.f32 %v13733_v7, %v13674_v6  ;;  %v20153_v38 = vmov 23  }
 0x234   : > { %v14398_v48 = vpop.permute.xlu0 %1933 }
 0x235   : > { %20147 = vst [vmem:[#allocation143_spill] sm:$0xff] %v14398_v48  ;;  %2599 = vrot.lane.b32.xlu0 %v2563_v52, %s19658_s15  ;;  %v2702_v52 = vmul.f32 %v13759_v58, %v13551_v28 }
 0x236   : > { %v14403_v44 = vpop.permute.xlu1 %1651 }
 0x237   : > { %20148 = vst [vmem:[#allocation144_spill] sm:$0xff] %v14403_v44  ;;  %2343 = vrot.lane.b32.xlu1 %v2299_v9, %s19640_s30  ;;  %v2297_v9 = vmul.f32 %v13733_v7, %v13585_v42 }
 0x238   : > { %v14406_v49 = vpop.permute.xlu0 %1937 }
 0x239   : > { %20149 = vst [vmem:[#allocation145_spill] sm:$0xff] %v14406_v49  ;;  %3411 = vperm.xlu0 %12409, %v14238_v33  }
 0x23a   : > { %v14411_v30 = vpop.permute.xlu1 %1655 }
 0x23b   : > { %20150 = vst [vmem:[#allocation146_spill] sm:$0xff] %v14411_v30  ;;  %2347 = vrot.lane.b32.xlu1 %v2301_v27, %s19640_s30  ;;  %v2706_v27 = vmul.f32 %v13767_v3, %v13566_v34 }
 0x23c   : > { %v14416_v48 = vpop.permute.xlu0 %1919 }
 0x23d   : > { %20151 = vst [vmem:[#allocation147_spill] sm:$0xff] %v14416_v48  ;;  %2741 = vrot.lane.b32.xlu0 %v2702_v52, %s19668_s16  ;;  %v2428_v48 = vmul.f32 %v14270_v60, %v13566_v34 }
 0x23e   : > { %v14421_v49 = vpop.permute.xlu1 %1663  ;;  %12410 = vset.pattern.permute.xlu0 %v20153_v38 }
 0x23f   : > { %20152 = vst [vmem:[#allocation148_spill] sm:$0xff] %v14421_v49  ;;  %2339 = vrot.lane.b32.xlu1 %v2297_v9, %s19640_s30  ;;  %v2708_v49 = vmul.f32 %v13767_v3, %v13551_v28  ;;  %v2429_v9 = vmul.f32 %v14270_v60, %v13662_v2  ;;  %s19685_s30 = smov 41  }
 0x240   : > { %v14427_v30 = vpop.permute.xlu0 %2696 }
 0x241   : > { %20154 = vst [vmem:[#allocation149_spill] sm:$0xff] %v14427_v30  ;;  %2749 = vrot.lane.b32.xlu0 %v2706_v27, %s19668_s16  ;;  %v2699_v27 = vmul.f32 %v13759_v58, %v13585_v42 }
 0x242   : > { %v14432_v52 = vpop.permute.xlu1 %1667 }
 0x243   : > { %20155 = vst [vmem:[#allocation150_spill] sm:$0xff] %v14432_v52  ;;  %2465 = vrot.lane.b32.xlu1 %v2428_v48, %s19649_s17  ;;  %v2431_v52 = vmul.f32 %v14270_v60, %v13674_v6 }
 0x245   : > { %2753 = vrot.lane.b32.xlu0 %v2708_v49, %s19668_s16  ;;  %v14438_v38 = vpop.permute.xlu0 %2824 }
 0x246   : > { %20156 = vst [vmem:[#allocation151_spill] sm:$0xff] %v14438_v38  ;;  %v14442_v44 = vpop.permute.xlu1 %1659 }
 0x247   : > { %20157 = vst [vmem:[#allocation152_spill] sm:$0xff] %v14442_v44  ;;  %2467 = vrot.lane.b32.xlu1 %v2429_v9, %s19649_s17  ;;  %v2435_v9 = vmul.f32 %v13741_v11, %v13662_v2 }
 0x249   : > { %2735 = vrot.lane.b32.xlu0 %v2699_v27, %s19668_s16  ;;  %v14448_v48 = vpop.permute.xlu0 %2061  ;;  %v20162_v27 = vmov 24  }
 0x24a   : > { %20158 = vst [vmem:[#allocation153_spill] sm:$0xff] %v14448_v48  ;;  %v14452_v49 = vpop.permute.xlu1 %1785 }
 0x24b   : > { %20159 = vst [vmem:[#allocation154_spill] sm:$0xff] %v14452_v49  ;;  %2471 = vrot.lane.b32.xlu1 %v2431_v52, %s19649_s17  ;;  %v2437_v49 = vmul.f32 %v13741_v11, %v13674_v6  ;;  %v2838_v52 = vmul.f32 %v14438_v38, %v13551_v28 }
 0x24d   : > { %3562 = vperm.xlu0 %12410, %v14238_v33   ;;  %v14456_v63 = vpop.permute.xlu0 %2069 }
 0x24e   : > { %20160 = vst [vmem:[#allocation155_spill] sm:$0xff] %v14456_v63  ;;  %v14460_v44 = vpop.permute.xlu1 %1787 }
 0x24f   : > { %20161 = vst [vmem:[#allocation156_spill] sm:$0xff] %v14460_v44  ;;  %2479 = vrot.lane.b32.xlu1 %v2435_v9, %s19649_s17  ;;  %v2433_v9 = vmul.f32 %v13741_v11, %v13585_v42  ;;  %v2835_v44 = vmul.f32 %v14438_v38, %v13585_v42 }
 0x251   : > { %12411 = vset.pattern.permute.xlu0 %v20162_v27  ;;  %v14464_v48 = vpop.permute.xlu0 %2073 }
 0x252   : > { %20163 = vst [vmem:[#allocation157_spill] sm:$0xff] %v14464_v48  ;;  %v14468_v60 = vpop.permute.xlu1 %1791  ;;  %3705 = vperm.xlu0 %12411, %v14301_v5   ;;  %v2842_v5 = vmul.f32 %v13780_v22, %v13566_v34 }
 0x253   : > { %20164 = vst [vmem:[#allocation158_spill] sm:$0xff] %v14468_v60  ;;  %2483 = vrot.lane.b32.xlu1 %v2437_v49, %s19649_s17  ;;  %v2564_v49 = vmul.f32 %v13750_v40, %v13566_v34 }
 0x255   : > { %v14474_v63 = vpop.permute.xlu0 %2055 }
 0x256   : > { %20165 = vst [vmem:[#allocation159_spill] sm:$0xff] %v14474_v63  ;;  %v14478_v27 = vpop.permute.xlu1 %1799  ;;  %2877 = vrot.lane.b32.xlu0 %v2838_v52, %s19685_s30  ;;  %v2844_v63 = vmul.f32 %v13780_v22, %v13551_v28  ;;  %v2565_v52 = vmul.f32 %v13750_v40, %v13662_v2 }
 0x257   : > { %20166 = vst [vmem:[#allocation160_spill] sm:$0xff] %v14478_v27  ;;  %2475 = vrot.lane.b32.xlu1 %v2433_v9, %s19649_s17  ;;  %s19799_s17 = smov 40  }
 0x259   : > { %v14484_v60 = vpop.permute.xlu0 %2832 }
 0x25a   : > { %20167 = vst [vmem:[#allocation161_spill] sm:$0xff] %v14484_v60  ;;  %v14488_v48 = vpop.permute.xlu1 %1803  ;;  %2885 = vrot.lane.b32.xlu0 %v2842_v5, %s19685_s30  ;;  %v2567_v5 = vmul.f32 %v13750_v40, %v13674_v6 }
 0x25b   : > { %20168 = vst [vmem:[#allocation162_spill] sm:$0xff] %v14488_v48  ;;  %2601 = vrot.lane.b32.xlu1 %v2564_v49, %s19658_s15 }
 0x25e   : > { %v14496_v9 = vpop.permute.xlu1 %1795  ;;  %2889 = vrot.lane.b32.xlu0 %v2844_v63, %s19685_s30  ;;  %v14499_v27 = vpop.permute.xlu0 %2964  ;;  %v2571_v63 = vmul.f32 %v14332_v43, %v13662_v2 }
 0x25f   : > { %20169 = vst [vmem:[#allocation163_spill] sm:$0xff] %v14496_v9  ;;  %20170 = vst [vmem:[#allocation164_spill] sm:$0xff] %v14499_v27  ;;  %2603 = vrot.lane.b32.xlu1 %v2565_v52, %s19658_s15  ;;  %v2974_v52 = vmul.f32 %v13788_v53, %v13551_v28 }
 0x262   : > { %v14506_v49 = vpop.permute.xlu1 %1921  ;;  %2871 = vrot.lane.b32.xlu0 %v2835_v44, %s19685_s30  ;;  %v14509_v48 = vpop.permute.xlu0 %2197  ;;  %v2573_v44 = vmul.f32 %v14332_v43, %v13674_v6 }
 0x263   : > { %20171 = vst [vmem:[#allocation165_spill] sm:$0xff] %v14506_v49  ;;  %20172 = vst [vmem:[#allocation166_spill] sm:$0xff] %v14509_v48  ;;  %2607 = vrot.lane.b32.xlu1 %v2567_v5, %s19658_s15  ;;  %v2978_v49 = vmul.f32 %v14499_v27, %v13566_v34 }
 0x266   : > { %v14514_v9 = vpop.permute.xlu1 %1923  ;;  %3713 = vperm.xlu0 %12411, %v14238_v33   ;;  %v14517_v4 = vpop.permute.xlu0 %2205 }
 0x267   : > { %20173 = vst [vmem:[#allocation167_spill] sm:$0xff] %v14514_v9  ;;  %20174 = vst [vmem:[#allocation168_spill] sm:$0xff] %v14517_v4  ;;  %2615 = vrot.lane.b32.xlu1 %v2571_v63, %s19658_s15  ;;  %v20177_v4 = vmov 0   ;;  %v2569_v63 = vmul.f32 %v14332_v43, %v13585_v42 }
 0x26a   : > { %v14524_v48 = vpop.permute.xlu1 %1927  ;;  %3013 = vrot.lane.b32.xlu0 %v2974_v52, %s19799_s17  ;;  %v14527_v5 = vpop.permute.xlu0 %2209  ;;  %v2980_v52 = vmul.f32 %v14499_v27, %v13551_v28 }
 0x26b   : > { %20175 = vst [vmem:[#allocation169_spill] sm:$0xff] %v14524_v48  ;;  %20176 = vst [vmem:[#allocation170_spill] sm:$0xff] %v14527_v5  ;;  %2619 = vrot.lane.b32.xlu1 %v2573_v44, %s19658_s15  ;;  %12412 = vset.pattern.permute.xlu0 %v20177_v4  ;;  %v2700_v5 = vmul.f32 %v13759_v58, %v13566_v34 }
 0x26e   : > { %v14535_v9 = vpop.permute.xlu1 %1935  ;;  %3021 = vrot.lane.b32.xlu0 %v2978_v49, %s19799_s17  ;;  %v14538_v48 = vpop.permute.xlu0 %2191  ;;  %v2971_v49 = vmul.f32 %v13788_v53, %v13585_v42 }
 0x26f   : > { %20178 = vst [vmem:[#allocation171_spill] sm:$0xff] %v14535_v9  ;;  %20179 = vst [vmem:[#allocation172_spill] sm:$0xff] %v14538_v48  ;;  %2611 = vrot.lane.b32.xlu1 %v2569_v63, %s19658_s15  ;;  %v2701_v48 = vmul.f32 %v13759_v58, %v13662_v2  ;;  %s19720_s15 = smov 16  }
 0x272   : > { %v14545_v44 = vpop.permute.xlu1 %1939  ;;  %3025 = vrot.lane.b32.xlu0 %v2980_v52, %s19799_s17  ;;  %v14548_v4 = vpop.permute.xlu0 %2968  ;;  %v3113_v52 = vmul.f32 %v13799_v13, %v13566_v34 }
 0x273   : > { %20180 = vst [vmem:[#allocation173_spill] sm:$0xff] %v14545_v44  ;;  %20181 = vst [vmem:[#allocation174_spill] sm:$0xff] %v14548_v4  ;;  %2737 = vrot.lane.b32.xlu1 %v2700_v5, %s19668_s16  ;;  %v2703_v5 = vmul.f32 %v13759_v58, %v13674_v6 }
 0x276   : > { %v14555_v9 = vpop.permute.xlu1 %1931  ;;  %3007 = vrot.lane.b32.xlu0 %v2971_v49, %s19799_s17  ;;  %v14558_v63 = vpop.permute.xlu0 %2333  ;;  %v3115_v49 = vmul.f32 %v13799_v13, %v13551_v28 }
 0x277   : > { %20182 = vst [vmem:[#allocation175_spill] sm:$0xff] %v14555_v9  ;;  %20183 = vst [vmem:[#allocation176_spill] sm:$0xff] %v14558_v63  ;;  %2739 = vrot.lane.b32.xlu1 %v2701_v48, %s19668_s16  ;;  %v2707_v48 = vmul.f32 %v13767_v3, %v13662_v2 }
 0x27a   : > { %v14565_v44 = vpop.permute.xlu1 %2057  ;;  %3156 = vrot.lane.b32.xlu0 %v3113_v52, %s19720_s15  ;;  %v14568_v40 = vpop.permute.xlu0 %2341  ;;  %v3120_v52 = vmul.f32 %v13809_v62, %v13566_v34 }
 0x27b   : > { %20184 = vst [vmem:[#allocation177_spill] sm:$0xff] %v14565_v44  ;;  %20185 = vst [vmem:[#allocation178_spill] sm:$0xff] %v14568_v40  ;;  %2743 = vrot.lane.b32.xlu1 %v2703_v5, %s19668_s16  ;;  %v2709_v5 = vmul.f32 %v13767_v3, %v13674_v6 }
 0x27e   : > { %v14575_v9 = vpop.permute.xlu1 %2059  ;;  %3160 = vrot.lane.b32.xlu0 %v3115_v49, %s19720_s15  ;;  %v14578_v63 = vpop.permute.xlu0 %2345  ;;  %v3122_v49 = vmul.f32 %v13809_v62, %v13551_v28 }
 0x27f   : > { %20186 = vst [vmem:[#allocation179_spill] sm:$0xff] %v14575_v9  ;;  %20187 = vst [vmem:[#allocation180_spill] sm:$0xff] %v14578_v63  ;;  %2751 = vrot.lane.b32.xlu1 %v2707_v48, %s19668_s16  ;;  %v2705_v48 = vmul.f32 %v13767_v3, %v13585_v42  ;;  %v2843_v3 = vmul.f32 %v13780_v22, %v13662_v2 }
 0x282   : > { %v14585_v40 = vpop.permute.xlu1 %2063  ;;  %3170 = vrot.lane.b32.xlu0 %v3120_v52, %s19720_s15  ;;  %v14588_v44 = vpop.permute.xlu0 %2327  ;;  %v3112_v52 = vmul.f32 %v13799_v13, %v13585_v42 }
 0x283   : > { %20188 = vst [vmem:[#allocation181_spill] sm:$0xff] %v14585_v40  ;;  %20189 = vst [vmem:[#allocation182_spill] sm:$0xff] %v14588_v44  ;;  %2755 = vrot.lane.b32.xlu1 %v2709_v5, %s19668_s16  ;;  %v2836_v5 = vmul.f32 %v14438_v38, %v13566_v34 }
 0x286   : > { %v14595_v63 = vpop.permute.xlu1 %2071  ;;  %3174 = vrot.lane.b32.xlu0 %v3122_v49, %s19720_s15  ;;  %v14598_v9 = vpop.permute.xlu0 %3104 }
 0x287   : > { %20190 = vst [vmem:[#allocation183_spill] sm:$0xff] %v14595_v63  ;;  %20191 = vst [vmem:[#allocation184_spill] sm:$0xff] %v14598_v9  ;;  %2747 = vrot.lane.b32.xlu1 %v2705_v48, %s19668_s16  ;;  %v2837_v48 = vmul.f32 %v14438_v38, %v13662_v2  ;;  %s19718_s16 = smov 15  }
 0x28a   : > { %v14605_v44 = vpop.permute.xlu1 %2075  ;;  %3154 = vrot.lane.b32.xlu0 %v3112_v52, %s19720_s15 }
 0x28b   : > { %20192 = vst [vmem:[#allocation185_spill] sm:$0xff] %v14605_v44  ;;  %2873 = vrot.lane.b32.xlu1 %v2836_v5, %s19685_s30  ;;  %v14609_v40 = vpop.permute.xlu0 %3252  ;;  %v2839_v5 = vmul.f32 %v14438_v38, %v13674_v6 }
 0x28c   : > { %20193 = vst [vmem:[#allocation186_spill] sm:$0xff] %v14609_v40  ;;  %v3264_v49 = vmul.f32 %v14609_v40, %v13566_v34  ;;  %v3266_v44 = vmul.f32 %v14609_v40, %v13551_v28 }
 0x28e   : > { %v14615_v63 = vpop.permute.xlu1 %2067  ;;  %3307 = vrot.lane.b32.xlu0 %v3264_v49, %s19718_s16  ;;  %v3271_v49 = vmul.f32 %v13820_v29, %v13566_v34 }
 0x28f   : > { %20194 = vst [vmem:[#allocation187_spill] sm:$0xff] %v14615_v63  ;;  %2875 = vrot.lane.b32.xlu1 %v2837_v48, %s19685_s30  ;;  %v14621_v52 = vpop.permute.xlu0 %2469 }
 0x290   : > { %20195 = vst [vmem:[#allocation188_spill] sm:$0xff] %v14621_v52 }
 0x292   : > { %v14625_v58 = vpop.permute.xlu1 %2193  ;;  %3311 = vrot.lane.b32.xlu0 %v3266_v44, %s19718_s16  ;;  %v3273_v44 = vmul.f32 %v13820_v29, %v13551_v28 }
 0x293   : > { %20196 = vst [vmem:[#allocation189_spill] sm:$0xff] %v14625_v58  ;;  %2879 = vrot.lane.b32.xlu1 %v2839_v5, %s19685_s30  ;;  %v14629_v63 = vpop.permute.xlu0 %2477  ;;  %v2845_v5 = vmul.f32 %v13780_v22, %v13674_v6  ;;  %v3263_v58 = vmul.f32 %v14609_v40, %v13585_v42 }
 0x294   : > { %20197 = vst [vmem:[#allocation190_spill] sm:$0xff] %v14629_v63 }
 0x296   : > { %v14635_v48 = vpop.permute.xlu1 %2195  ;;  %3321 = vrot.lane.b32.xlu0 %v3271_v49, %s19718_s16 }
 0x297   : > { %20198 = vst [vmem:[#allocation191_spill] sm:$0xff] %v14635_v48  ;;  %2887 = vrot.lane.b32.xlu1 %v2843_v3, %s19685_s30  ;;  %v14639_v52 = vpop.permute.xlu0 %2481  ;;  %v2841_v3 = vmul.f32 %v13780_v22, %v13585_v42 }
 0x298   : > { %20199 = vst [vmem:[#allocation192_spill] sm:$0xff] %v14639_v52 }
 0x29a   : > { %v14645_v63 = vpop.permute.xlu1 %2199  ;;  %3325 = vrot.lane.b32.xlu0 %v3273_v44, %s19718_s16  ;;  %v3415_v44 = vmul.f32 %v13831_v14, %v13566_v34 }
 0x29b   : > { %20200 = vst [vmem:[#allocation193_spill] sm:$0xff] %v14645_v63  ;;  %2891 = vrot.lane.b32.xlu1 %v2845_v5, %s19685_s30  ;;  %v14651_v49 = vpop.permute.xlu0 %2463  ;;  %v2972_v63 = vmul.f32 %v13788_v53, %v13566_v34 }
 0x29c   : > { %20201 = vst [vmem:[#allocation194_spill] sm:$0xff] %v14651_v49 }
 0x29e   : > { %v14655_v52 = vpop.permute.xlu1 %2207  ;;  %3305 = vrot.lane.b32.xlu0 %v3263_v58, %s19718_s16  ;;  %v3417_v58 = vmul.f32 %v13831_v14, %v13551_v28 }
 0x29f   : > { %20202 = vst [vmem:[#allocation195_spill] sm:$0xff] %v14655_v52  ;;  %2883 = vrot.lane.b32.xlu1 %v2841_v3, %s19685_s30  ;;  %v14659_v48 = vpop.permute.xlu0 %3260  ;;  %v2973_v3 = vmul.f32 %v13788_v53, %v13662_v2  ;;  %s19763_s30 = smov 13  }
 0x2a0   : > { %20203 = vst [vmem:[#allocation196_spill] sm:$0xff] %v14659_v48 }
 0x2a2   : > { %v14665_v5 = vpop.permute.xlu1 %2211  ;;  %3458 = vrot.lane.b32.xlu0 %v3415_v44, %s19792_s19 }
 0x2a3   : > { %20204 = vst [vmem:[#allocation197_spill] sm:$0xff] %v14665_v5  ;;  %3009 = vrot.lane.b32.xlu1 %v2972_v63, %s19799_s17  ;;  %v2975_v63 = vmul.f32 %v13788_v53, %v13674_v6 }
 0x2a4   : > { %v14669_v49 = vpop.permute.xlu0 %3407 }
 0x2a5   : > { %20205 = vst [vmem:[#allocation198_spill] sm:$0xff] %v14669_v49  ;;  %v3422_v5 = vmul.f32 %v14669_v49, %v13566_v34  ;;  %v3424_v22 = vmul.f32 %v14669_v49, %v13551_v28 }
 0x2a6   : > { %v14675_v52 = vpop.permute.xlu1 %2203  ;;  %3462 = vrot.lane.b32.xlu0 %v3417_v58, %s19792_s19 }
 0x2a7   : > { %20206 = vst [vmem:[#allocation199_spill] sm:$0xff] %v14675_v52  ;;  %3011 = vrot.lane.b32.xlu1 %v2973_v3, %s19799_s17  ;;  %v2979_v52 = vmul.f32 %v14499_v27, %v13662_v2 }
 0x2a8   : > { %v14681_v44 = vpop.permute.xlu0 %2605 }
 0x2a9   : > { %20207 = vst [vmem:[#allocation200_spill] sm:$0xff] %v14681_v44 }
 0x2aa   : > { %v14685_v38 = vpop.permute.xlu1 %2329  ;;  %3472 = vrot.lane.b32.xlu0 %v3422_v5, %s19792_s19  ;;  %v3855_v5 = vld [vmem:[%s19498_s2] sm:$0xff] }
 0x2ab   : > { %20208 = vst [vmem:[#allocation201_spill] sm:$0xff] %v14685_v38  ;;  %3015 = vrot.lane.b32.xlu1 %v2975_v63, %s19799_s17  ;;  %v2981_v63 = vmul.f32 %v14499_v27, %v13674_v6 }
 0x2ac   : > { %v14691_v58 = vpop.permute.xlu0 %2613 }
 0x2ad   : > { %20209 = vst [vmem:[#allocation202_spill] sm:$0xff] %v14691_v58  ;;  %v3421_v58 = vmul.f32 %v14669_v49, %v13585_v42 }
 0x2ae   : > { %v14695_v3 = vpop.permute.xlu1 %2331  ;;  %3476 = vrot.lane.b32.xlu0 %v3424_v22, %s19792_s19 }
 0x2af   : > { %20210 = vst [vmem:[#allocation203_spill] sm:$0xff] %v14695_v3  ;;  %3023 = vrot.lane.b32.xlu1 %v2979_v52, %s19799_s17  ;;  %v2977_v52 = vmul.f32 %v14499_v27, %v13585_v42 }
 0x2b0   : > { %v14702_v44 = vpop.permute.xlu0 %2617 }
 0x2b1   : > { %20211 = vst [vmem:[#allocation204_spill] sm:$0xff] %v14702_v44 }
 0x2b2   : > { %v14706_v38 = vpop.permute.xlu1 %2335  ;;  %3860 = vperm.xlu0 %12412, %v3855_v5   ;;  %v3567_v5 = vmul.f32 %v13839_v45, %v13662_v2 }
 0x2b3   : > { %20212 = vst [vmem:[#allocation205_spill] sm:$0xff] %v14706_v38  ;;  %3027 = vrot.lane.b32.xlu1 %v2981_v63, %s19799_s17  ;;  %v3114_v38 = vmul.f32 %v13799_v13, %v13662_v2 }
 0x2b4   : > { %v14711_v22 = vpop.permute.xlu0 %2599 }
 0x2b5   : > { %20213 = vst [vmem:[#allocation206_spill] sm:$0xff] %v14711_v22 }
 0x2b6   : > { %v14715_v3 = vpop.permute.xlu1 %2343  ;;  %3470 = vrot.lane.b32.xlu0 %v3421_v58, %s19792_s19  ;;  %v3569_v58 = vmul.f32 %v13839_v45, %v13674_v6 }
 0x2b7   : > { %20214 = vst [vmem:[#allocation207_spill] sm:$0xff] %v14715_v3  ;;  %3019 = vrot.lane.b32.xlu1 %v2977_v52, %s19799_s17  ;;  %v3116_v52 = vmul.f32 %v13799_v13, %v13674_v6  ;;  %s20330_s17 = smov 44  }
 0x2b8   : > { %v14719_v44 = vpop.permute.xlu0 %3411 }
 0x2ba   : > { %v14725_v63 = vpop.permute.xlu1 %2347  ;;  %3611 = vrot.lane.b32.xlu0 %v3567_v5, %s19763_s30  ;;  %v3574_v5 = vmul.f32 %v13847_v26, %v13662_v2 }
 0x2bb   : > { %20215 = vst [vmem:[#allocation208_spill] sm:$0xff] %v14725_v63  ;;  %3158 = vrot.lane.b32.xlu1 %v3114_v38, %s19720_s15  ;;  %v3121_v38 = vmul.f32 %v13809_v62, %v13662_v2 }
 0x2bc   : > { %v14729_v22 = vpop.permute.xlu0 %2741 }
 0x2bd   : > { %20216 = vst [vmem:[#allocation209_spill] sm:$0xff] %v14729_v22 }
 0x2be   : > { %v14735_v27 = vpop.permute.xlu1 %2339  ;;  %3615 = vrot.lane.b32.xlu0 %v3569_v58, %s19763_s30  ;;  %v3576_v58 = vmul.f32 %v13847_v26, %v13674_v6 }
 0x2bf   : > { %20217 = vst [vmem:[#allocation210_spill] sm:$0xff] %v14735_v27  ;;  %3162 = vrot.lane.b32.xlu1 %v3116_v52, %s19720_s15  ;;  %v3123_v52 = vmul.f32 %v13809_v62, %v13674_v6 }
 0x2c0   : > { %v14739_v63 = vpop.permute.xlu0 %2749 }
 0x2c1   : > { %20218 = vst [vmem:[#allocation211_spill] sm:$0xff] %v14739_v63 }
 0x2c2   : > { %v14745_v22 = vpop.permute.xlu1 %2465  ;;  %3625 = vrot.lane.b32.xlu0 %v3574_v5, %s19763_s30  ;;  %v3572_v5 = vmul.f32 %v13847_v26, %v13585_v42 }
 0x2c3   : > { %20219 = vst [vmem:[#allocation212_spill] sm:$0xff] %v14745_v22  ;;  %3172 = vrot.lane.b32.xlu1 %v3121_v38, %s19720_s15  ;;  %v3119_v38 = vmul.f32 %v13809_v62, %v13585_v42 }
 0x2c4   : > { %v14749_v3 = vpop.permute.xlu0 %2753 }
 0x2c5   : > { %20220 = vst [vmem:[#allocation213_spill] sm:$0xff] %v14749_v3 }
 0x2c6   : > { %v14755_v63 = vpop.permute.xlu1 %2467  ;;  %3629 = vrot.lane.b32.xlu0 %v3576_v58, %s19763_s30  ;;  %v3265_v58 = vmul.f32 %v14609_v40, %v13662_v2 }
 0x2c7   : > { %20221 = vst [vmem:[#allocation214_spill] sm:$0xff] %v14755_v63  ;;  %3176 = vrot.lane.b32.xlu1 %v3123_v52, %s19720_s15  ;;  %v3267_v63 = vmul.f32 %v14609_v40, %v13674_v6  ;;  %v3725_v40 = vmul.f32 %v13860_v39, %v13662_v2 }
 0x2c8   : > { %v14759_v27 = vpop.permute.xlu0 %2735 }
 0x2c9   : > { %20222 = vst [vmem:[#allocation215_spill] sm:$0xff] %v14759_v27 }
 0x2ca   : > { %v14765_v3 = vpop.permute.xlu1 %2471  ;;  %3621 = vrot.lane.b32.xlu0 %v3572_v5, %s19763_s30 }
 0x2cb   : > { %20223 = vst [vmem:[#allocation216_spill] sm:$0xff] %v14765_v3  ;;  %3168 = vrot.lane.b32.xlu1 %v3119_v38, %s19720_s15  ;;  %s20266_s15 = smov 99  }
 0x2cc   : > { %v14769_v22 = vpop.permute.xlu0 %3562 }
 0x2ce   : > { %v14773_v52 = vpop.permute.xlu1 %2479 }
 0x2cf   : > { %20224 = vst [vmem:[#allocation217_spill] sm:$0xff] %v14773_v52  ;;  %3309 = vrot.lane.b32.xlu1 %v3265_v58, %s19718_s16  ;;  %v3272_v58 = vmul.f32 %v13820_v29, %v13662_v2 }
 0x2d1   : > { %v14776_v27 = vpop.permute.xlu0 %3705 }
 0x2d2   : > { %20225 = vst [vmem:[#allocation218_spill] sm:$0xff] %v14776_v27  ;;  %v14780_v62 = vpop.permute.xlu1 %2483  ;;  %v3718_v5 = vmul.f32 %v14776_v27, %v13662_v2  ;;  %v3720_v38 = vmul.f32 %v14776_v27, %v13674_v6 }
 0x2d3   : > { %20226 = vst [vmem:[#allocation219_spill] sm:$0xff] %v14780_v62  ;;  %3313 = vrot.lane.b32.xlu1 %v3267_v63, %s19718_s16  ;;  %v3274_v63 = vmul.f32 %v13820_v29, %v13674_v6 }
 0x2d4   : > { %3762 = vrot.lane.b32.xlu0 %v3718_v5, %s19756_s18 }
 0x2d5   : > { %v14788_v3 = vpop.permute.xlu0 %2877 }
 0x2d6   : > { %20227 = vst [vmem:[#allocation220_spill] sm:$0xff] %v14788_v3  ;;  %v14792_v52 = vpop.permute.xlu1 %2475 }
 0x2d7   : > { %20228 = vst [vmem:[#allocation221_spill] sm:$0xff] %v14792_v52  ;;  %3323 = vrot.lane.b32.xlu1 %v3272_v58, %s19718_s16  ;;  %v3270_v58 = vmul.f32 %v13820_v29, %v13585_v42 }
 0x2d8   : > { %3766 = vrot.lane.b32.xlu0 %v3720_v38, %s19756_s18 }
 0x2d9   : > { %v14796_v62 = vpop.permute.xlu0 %2885 }
 0x2da   : > { %20229 = vst [vmem:[#allocation222_spill] sm:$0xff] %v14796_v62  ;;  %v14800_v5 = vpop.permute.xlu1 %2601  ;;  %v3727_v62 = vmul.f32 %v13860_v39, %v13674_v6 }
 0x2db   : > { %20230 = vst [vmem:[#allocation223_spill] sm:$0xff] %v14800_v5  ;;  %3327 = vrot.lane.b32.xlu1 %v3274_v63, %s19718_s16  ;;  %v3416_v63 = vmul.f32 %v13831_v14, %v13662_v2 }
 0x2dc   : > { %3776 = vrot.lane.b32.xlu0 %v3725_v40, %s19756_s18 }
 0x2dd   : > { %v14806_v3 = vpop.permute.xlu0 %2889 }
 0x2de   : > { %20231 = vst [vmem:[#allocation224_spill] sm:$0xff] %v14806_v3  ;;  %v14810_v38 = vpop.permute.xlu1 %2603  ;;  %v3723_v3 = vmul.f32 %v13860_v39, %v13585_v42 }
 0x2df   : > { %20232 = vst [vmem:[#allocation225_spill] sm:$0xff] %v14810_v38  ;;  %3319 = vrot.lane.b32.xlu1 %v3270_v58, %s19718_s16  ;;  %v3418_v58 = vmul.f32 %v13831_v14, %v13674_v6  ;;  %v538_v38 = vmul.f32 %v13870_v21, %v13551_v28  ;;  %s20271_s16 = smov 98  }
 0x2e0   : > { %3780 = vrot.lane.b32.xlu0 %v3727_v62, %s19756_s18 }
 0x2e1   : > { %v14816_v52 = vpop.permute.xlu0 %2871 }
 0x2e2   : > { %20233 = vst [vmem:[#allocation226_spill] sm:$0xff] %v14816_v52  ;;  %v14820_v40 = vpop.permute.xlu1 %2607  ;;  %v536_v52 = vmul.f32 %v13870_v21, %v13566_v34 }
 0x2e3   : > { %20234 = vst [vmem:[#allocation227_spill] sm:$0xff] %v14820_v40  ;;  %3460 = vrot.lane.b32.xlu1 %v3416_v63, %s19792_s19  ;;  %v3423_v63 = vmul.f32 %v14669_v49, %v13662_v2 }
 0x2e4   : > { %3772 = vrot.lane.b32.xlu0 %v3723_v3, %s19756_s18 }
 0x2e5   : > { %v14826_v5 = vpop.permute.xlu0 %3713 }
 0x2e6   : > { %20235 = vst [vmem:[#allocation228_spill] sm:$0xff] %v14826_v5  ;;  %v14830_v62 = vpop.permute.xlu1 %2615 }
 0x2e7   : > { %20236 = vst [vmem:[#allocation229_spill] sm:$0xff] %v14830_v62  ;;  %3464 = vrot.lane.b32.xlu1 %v3418_v58, %s19792_s19  ;;  %v3425_v58 = vmul.f32 %v14669_v49, %v13674_v6  ;;  %v675_v49 = vmul.f32 %v13642_v59, %v13674_v6 }
 0x2e8   : > { %585 = vrot.lane.b32.xlu0 %v536_v52, %s19769_s23 }
 0x2e9   : > { %v14836_v40 = vpop.permute.xlu0 %3013 }
 0x2ea   : > { %20237 = vst [vmem:[#allocation230_spill] sm:$0xff] %v14836_v40  ;;  %v14840_v3 = vpop.permute.xlu1 %2619  ;;  %v535_v40 = vmul.f32 %v13870_v21, %v13585_v42 }
 0x2eb   : > { %20238 = vst [vmem:[#allocation231_spill] sm:$0xff] %v14840_v3  ;;  %3474 = vrot.lane.b32.xlu1 %v3423_v63, %s19792_s19  ;;  %v3856_v63 = vld [vmem:[%s19498_s2 + $0x8] sm:$0xff] }
 0x2ec   : > { %589 = vrot.lane.b32.xlu0 %v538_v38, %s19769_s23 }
 0x2ed   : > { %v14846_v62 = vpop.permute.xlu0 %3021 }
 0x2ee   : > { %20239 = vst [vmem:[#allocation232_spill] sm:$0xff] %v14846_v62  ;;  %v14850_v52 = vpop.permute.xlu1 %2611  ;;  %v673_v62 = vmul.f32 %v13642_v59, %v13662_v2 }
 0x2ef   : > { %20240 = vst [vmem:[#allocation233_spill] sm:$0xff] %v14850_v52  ;;  %3478 = vrot.lane.b32.xlu1 %v3425_v58, %s19792_s19  ;;  %v3414_v58 = vmul.f32 %v13831_v14, %v13585_v42 }
 0x2f0   : > { %583 = vrot.lane.b32.xlu0 %v535_v40, %s19769_s23 }
 0x2f1   : > { %v14859_v3 = vpop.permute.xlu0 %3025 }
 0x2f2   : > { %20241 = vst [vmem:[#allocation234_spill] sm:$0xff] %v14859_v3  ;;  %v14861_v38 = vpop.permute.xlu1 %2737 }
 0x2f3   : > { %20242 = vst [vmem:[#allocation235_spill] sm:$0xff] %v14861_v38  ;;  %3865 = vperm.xlu1 %12413, %v3856_v63   ;;  %v3566_v63 = vmul.f32 %v13839_v45, %v13566_v34 }
 0x2f4   : > { %723 = vrot.lane.b32.xlu0 %v673_v62, %s19773_s26 }
 0x2f5   : > { %v14866_v52 = vpop.permute.xlu0 %3007 }
 0x2f6   : > { %20243 = vst [vmem:[#allocation236_spill] sm:$0xff] %v14866_v52  ;;  %v14870_v40 = vpop.permute.xlu1 %2739  ;;  %v808_v52 = vmul.f32 %v13775_v8, %v13566_v34 }
 0x2f7   : > { %20244 = vst [vmem:[#allocation237_spill] sm:$0xff] %v14870_v40  ;;  %3456 = vrot.lane.b32.xlu1 %v3414_v58, %s19792_s19  ;;  %v3568_v58 = vmul.f32 %v13839_v45, %v13551_v28  ;;  %v947_v40 = vmul.f32 %v13902_v51, %v13674_v6  ;;  %s20321_s19 = smov 68  }
 0x2f8   : > { %727 = vrot.lane.b32.xlu0 %v675_v49, %s19773_s26 }
 0x2f9   : > { %v14876_v3 = vpop.permute.xlu0 %3156 }
 0x2fa   : > { %20245 = vst [vmem:[#allocation238_spill] sm:$0xff] %v14876_v3  ;;  %v14880_v62 = vpop.permute.xlu1 %2743  ;;  %v810_v3 = vmul.f32 %v13775_v8, %v13551_v28 }
 0x2fb   : > { %20246 = vst [vmem:[#allocation239_spill] sm:$0xff] %v14880_v62  ;;  %3609 = vrot.lane.b32.xlu1 %v3566_v63, %s19763_s30  ;;  %v3573_v63 = vmul.f32 %v13847_v26, %v13566_v34 }
 0x2fc   : > { %857 = vrot.lane.b32.xlu0 %v808_v52, %s19780_s20 }
 0x2fd   : > { %v14886_v38 = vpop.permute.xlu0 %3160 }
 0x2fe   : > { %20247 = vst [vmem:[#allocation240_spill] sm:$0xff] %v14886_v38  ;;  %v14890_v49 = vpop.permute.xlu1 %2751  ;;  %v807_v38 = vmul.f32 %v13775_v8, %v13585_v42 }
 0x2ff   : > { %20248 = vst [vmem:[#allocation241_spill] sm:$0xff] %v14890_v49  ;;  %3613 = vrot.lane.b32.xlu1 %v3568_v58, %s19763_s30 }
 0x300   : > { %861 = vrot.lane.b32.xlu0 %v810_v3, %s19780_s20  ;;  %v3575_v3 = vmul.f32 %v13847_v26, %v13551_v28 }
 0x301   : > { %v14896_v62 = vpop.permute.xlu0 %3170 }
 0x302   : > { %20249 = vst [vmem:[#allocation242_spill] sm:$0xff] %v14896_v62  ;;  %v14900_v52 = vpop.permute.xlu1 %2755  ;;  %v945_v62 = vmul.f32 %v13902_v51, %v13662_v2 }
 0x303   : > { %20250 = vst [vmem:[#allocation243_spill] sm:$0xff] %v14900_v52  ;;  %3623 = vrot.lane.b32.xlu1 %v3573_v63, %s19763_s30  ;;  %v467_v52 = vsub.s32 5, %v13539_v24 }
 0x304   : > { %855 = vrot.lane.b32.xlu0 %v807_v38, %s19780_s20  ;;  %v3565_v38 = vmul.f32 %v13839_v45, %v13585_v42 }
 0x305   : > { %v14906_v49 = vpop.permute.xlu0 %3174 }
 0x306   : > { %20251 = vst [vmem:[#allocation244_spill] sm:$0xff] %v14906_v49  ;;  %v14910_v58 = vpop.permute.xlu1 %2747 }
 0x307   : > { %20252 = vst [vmem:[#allocation245_spill] sm:$0xff] %v14910_v58  ;;  %3627 = vrot.lane.b32.xlu1 %v3575_v3, %s19763_s30  ;;  %v3717_v58 = vmul.f32 %v14776_v27, %v13566_v34 }
 0x308   : > { %995 = vrot.lane.b32.xlu0 %v945_v62, %s19785_s28  ;;  %v14930_v62 = vld [vmem:[%s13537_s29] sm:$0xff]  ;;  %s20259_s29 = smov 100  }
 0x309   : > { %v14917_v63 = vpop.permute.xlu0 %3154  ;;  %v14933_v3 = vrot.slane %v14930_v62, %v467_v52  ;;  %v1080_v52 = vmul.f32 %v13915_v61, %v13566_v34 }
 0x30a   : > { %20253 = vst [vmem:[#allocation246_spill] sm:$0xff] %v14917_v63  ;;  %v14921_v49 = vpop.permute.xlu1 %2873 }
 0x30b   : > { %20254 = vst [vmem:[#allocation247_spill] sm:$0xff] %v14921_v49  ;;  %3607 = vrot.lane.b32.xlu1 %v3565_v38, %s19763_s30  ;;  %20255 = vst [vmem:[#allocation248_spill] sm:$0xff] %v14933_v3  ;;  %v528_v49 = vmul.f32 %v13557_v32, %v14933_v3  ;;  %v3724_v32 = vmul.f32 %v13860_v39, %v13566_v34  ;;  %s20285_s30 = smov 96  }
 0x30c   : > { %999 = vrot.lane.b32.xlu0 %v947_v40, %s19785_s28  ;;  %v3719_v40 = vmul.f32 %v14776_v27, %v13551_v28 }
 0x30d   : > { %v14935_v63 = vpop.permute.xlu0 %3307 }
 0x30e   : > { %20256 = vst [vmem:[#allocation249_spill] sm:$0xff] %v14935_v63  ;;  %v14937_v5 = vpop.permute.xlu1 %2875 }
 0x30f   : > { %3760 = vrot.lane.b32.xlu1 %v3717_v58, %s19756_s18  ;;  %v1082_v58 = vmul.f32 %v13915_v61, %v13551_v28 }
 0x310   : > { %569 = vrot.lane.b32.xlu0 %v528_v49, %s19769_s23 }
 0x311   : > { %v14943_v38 = vpop.permute.xlu0 %3311 }
 0x312   : > { %20257 = vst [vmem:[#allocation250_spill] sm:$0xff] %v14943_v38  ;;  %v14947_v26 = vpop.permute.xlu1 %2879 }
 0x313   : > { %20258 = vst [vmem:[#allocation251_spill] sm:$0xff] %v14947_v26  ;;  %3764 = vrot.lane.b32.xlu1 %v3719_v40, %s19756_s18  ;;  %v3726_v40 = vmul.f32 %v13860_v39, %v13551_v28 }
 0x314   : > { %1129 = vrot.lane.b32.xlu0 %v1080_v52, %s20259_s29 }
 0x315   : > { %v14953_v63 = vpop.permute.xlu0 %3321 }
 0x316   : > { %20260 = vst [vmem:[#allocation252_spill] sm:$0xff] %v14953_v63  ;;  %v14957_v49 = vpop.permute.xlu1 %2887  ;;  %v1079_v63 = vmul.f32 %v13915_v61, %v13585_v42 }
 0x317   : > { %3774 = vrot.lane.b32.xlu1 %v3724_v32, %s19756_s18  ;;  %v3716_v32 = vmul.f32 %v14776_v27, %v13585_v42 }
 0x318   : > { %1133 = vrot.lane.b32.xlu0 %v1082_v58, %s20259_s29 }
 0x319   : > { %v14963_v26 = vpop.permute.xlu0 %3325 }
 0x31a   : > { %20261 = vst [vmem:[#allocation253_spill] sm:$0xff] %v14963_v26  ;;  %v14967_v52 = vpop.permute.xlu1 %2891  ;;  %v670_v26 = vmul.f32 %v13568_v35, %v14933_v3  ;;  %v537_v35 = vmul.f32 %v13870_v21, %v13662_v2 }
 0x31b   : > { %20262 = vst [vmem:[#allocation254_spill] sm:$0xff] %v14967_v52  ;;  %3778 = vrot.lane.b32.xlu1 %v3726_v40, %s19756_s18 }
 0x31c   : > { %1127 = vrot.lane.b32.xlu0 %v1079_v63, %s20259_s29  ;;  %v1217_v63 = vmul.f32 %v13793_v12, %v13662_v2 }
 0x31d   : > { %v14973_v38 = vpop.permute.xlu0 %3305 }
 0x31e   : > { %20263 = vst [vmem:[#allocation255_spill] sm:$0xff] %v14973_v38  ;;  %v14977_v58 = vpop.permute.xlu1 %2883 }
 0x31f   : > { %20264 = vst [vmem:[#allocation256_spill] sm:$0xff] %v14977_v58  ;;  %3758 = vrot.lane.b32.xlu1 %v3716_v32, %s19756_s18  ;;  %v800_v58 = vmul.f32 %v13653_v0, %v14933_v3  ;;  %v674_v0 = vmul.f32 %v13642_v59, %v13551_v28  ;;  %s20279_s18 = smov 97  }
 0x320   : > { %717 = vrot.lane.b32.xlu0 %v670_v26, %s19773_s26  ;;  %v1219_v26 = vmul.f32 %v13793_v12, %v13674_v6 }
 0x321   : > { %v14983_v39 = vpop.permute.xlu0 %3458 }
 0x322   : > { %20265 = vst [vmem:[#allocation257_spill] sm:$0xff] %v14983_v39  ;;  %v14985_v52 = vpop.permute.xlu1 %3009 }
 0x323   : > { %441 = vperm.xlu1 %12413, %v14238_v33   ;;  %v539_v33 = vmul.f32 %v13870_v21, %v13674_v6 }
 0x324   : > { %1267 = vrot.lane.b32.xlu0 %v1217_v63, %s20266_s15 }
 0x325   : > { %v14991_v40 = vpop.permute.xlu0 %3462 }
 0x326   : > { %20267 = vst [vmem:[#allocation258_spill] sm:$0xff] %v14991_v40  ;;  %v14995_v38 = vpop.permute.xlu1 %3011 }
 0x327   : > { %587 = vrot.lane.b32.xlu1 %v537_v35, %s19769_s23  ;;  %v672_v35 = vmul.f32 %v13642_v59, %v13566_v34 }
 0x328   : > { %1271 = vrot.lane.b32.xlu0 %v1219_v26, %s20266_s15 }
 0x329   : > { %v15001_v32 = vpop.permute.xlu0 %3472 }
 0x32a   : > { %20268 = vst [vmem:[#allocation259_spill] sm:$0xff] %v15001_v32  ;;  %v15005_v63 = vpop.permute.xlu1 %3015  ;;  %v1352_v32 = vmul.f32 %v13868_v23, %v13566_v34 }
 0x32b   : > { %20269 = vst [vmem:[#allocation260_spill] sm:$0xff] %v15005_v63  ;;  %591 = vrot.lane.b32.xlu1 %v539_v33, %s19769_s23  ;;  %v1354_v33 = vmul.f32 %v13868_v23, %v13551_v28 }
 0x32c   : > { %841 = vrot.lane.b32.xlu0 %v800_v58, %s19780_s20 }
 0x32d   : > { %v15011_v27 = vpop.permute.xlu0 %3476 }
 0x32e   : > { %20270 = vst [vmem:[#allocation261_spill] sm:$0xff] %v15011_v27  ;;  %v15015_v26 = vpop.permute.xlu1 %3023 }
 0x32f   : > { %721 = vrot.lane.b32.xlu1 %v672_v35, %s19773_s26  ;;  %v671_v35 = vmul.f32 %v13642_v59, %v13585_v42 }
 0x330   : > { %1401 = vrot.lane.b32.xlu0 %v1352_v32, %s20271_s16 }
 0x331   : > { %v15021_v63 = vpop.permute.xlu0 %3860 }
 0x332   : > { %20272 = vst [vmem:[#allocation262_spill] sm:$0xff] %v15021_v63  ;;  %v15025_v58 = vpop.permute.xlu1 %3027  ;;  %v1351_v63 = vmul.f32 %v13868_v23, %v13585_v42 }
 0x333   : > { %20273 = vst [vmem:[#allocation263_spill] sm:$0xff] %v15025_v58  ;;  %725 = vrot.lane.b32.xlu1 %v674_v0, %s19773_s26  ;;  %v809_v0 = vmul.f32 %v13775_v8, %v13662_v2 }
 0x334   : > { %1405 = vrot.lane.b32.xlu0 %v1354_v33, %s20271_s16 }
 0x335   : > { %v15031_v27 = vpop.permute.xlu0 %3470 }
 0x336   : > { %20274 = vst [vmem:[#allocation264_spill] sm:$0xff] %v15031_v27  ;;  %v15035_v32 = vpop.permute.xlu1 %3019  ;;  %v942_v27 = vmul.f32 %v13632_v56, %v14933_v3  ;;  %v944_v56 = vmul.f32 %v13902_v51, %v13566_v34 }
 0x337   : > { %20275 = vst [vmem:[#allocation265_spill] sm:$0xff] %v15035_v32  ;;  %719 = vrot.lane.b32.xlu1 %v671_v35, %s19773_s26  ;;  %v811_v35 = vmul.f32 %v13775_v8, %v13674_v6 }
 0x338   : > { %1399 = vrot.lane.b32.xlu0 %v1351_v63, %s20271_s16 }
 0x339   : > { %v15041_v39 = vpop.permute.xlu0 %3611 }
 0x33a   : > { %20276 = vst [vmem:[#allocation266_spill] sm:$0xff] %v15041_v39  ;;  %v15045_v33 = vpop.permute.xlu1 %3158  ;;  %v1489_v39 = vmul.f32 %v13917_v20, %v13662_v2 }
 0x33b   : > { %859 = vrot.lane.b32.xlu1 %v809_v0, %s19780_s20  ;;  %v1491_v0 = vmul.f32 %v13917_v20, %v13674_v6 }
 0x33c   : > { %989 = vrot.lane.b32.xlu0 %v942_v27, %s19785_s28 }
 0x33d   : > { %v15051_v32 = vpop.permute.xlu0 %3615 }
 0x33e   : > { %20277 = vst [vmem:[#allocation267_spill] sm:$0xff] %v15051_v32  ;;  %v15055_v63 = vpop.permute.xlu1 %3162 }
 0x33f   : > { %20278 = vst [vmem:[#allocation268_spill] sm:$0xff] %v15055_v63  ;;  %863 = vrot.lane.b32.xlu1 %v811_v35, %s19780_s20  ;;  %v946_v35 = vmul.f32 %v13902_v51, %v13551_v28  ;;  %v1072_v63 = vmul.f32 %v13602_v47, %v14933_v3  ;;  %v534_v47 = vmul.f32 %v13570_v36, %v14933_v3 }
 0x340   : > { %1539 = vrot.lane.b32.xlu0 %v1489_v39, %s20279_s18 }
 0x341   : > { %v15061_v40 = vpop.permute.xlu0 %3625 }
 0x342   : > { %20280 = vst [vmem:[#allocation269_spill] sm:$0xff] %v15061_v40  ;;  %v15065_v27 = vpop.permute.xlu1 %3172 }
 0x343   : > { %993 = vrot.lane.b32.xlu1 %v944_v56, %s19785_s28  ;;  %v943_v56 = vmul.f32 %v13902_v51, %v13585_v42 }
 0x344   : > { %1543 = vrot.lane.b32.xlu0 %v1491_v0, %s20279_s18 }
 0x345   : > { %v15071_v32 = vpop.permute.xlu0 %3629 }
 0x346   : > { %20281 = vst [vmem:[#allocation270_spill] sm:$0xff] %v15071_v32  ;;  %v15075_v39 = vpop.permute.xlu1 %3176  ;;  %v1624_v32 = vmul.f32 %v13975_v18, %v13566_v34 }
 0x347   : > { %20282 = vst [vmem:[#allocation271_spill] sm:$0xff] %v15075_v39  ;;  %997 = vrot.lane.b32.xlu1 %v946_v35, %s19785_s28  ;;  %v1626_v35 = vmul.f32 %v13975_v18, %v13551_v28 }
 0x348   : > { %1113 = vrot.lane.b32.xlu0 %v1072_v63, %s20259_s29 }
 0x349   : > { %v15081_v40 = vpop.permute.xlu0 %3621 }
 0x34a   : > { %20283 = vst [vmem:[#allocation272_spill] sm:$0xff] %v15081_v40  ;;  %v15085_v0 = vpop.permute.xlu1 %3168 }
 0x34b   : > { %20284 = vst [vmem:[#allocation273_spill] sm:$0xff] %v15085_v0  ;;  %991 = vrot.lane.b32.xlu1 %v943_v56, %s19785_s28  ;;  %v1081_v56 = vmul.f32 %v13915_v61, %v13662_v2  ;;  %v1623_v0 = vmul.f32 %v13975_v18, %v13585_v42 }
 0x34c   : > { %1673 = vrot.lane.b32.xlu0 %v1624_v32, %s20285_s30 }
 0x34d   : > { %v15091_v39 = vpop.permute.xlu0 %3762 }
 0x34e   : > { %20286 = vst [vmem:[#allocation274_spill] sm:$0xff] %v15091_v39  ;;  %v15095_v63 = vpop.permute.xlu1 %3309 }
 0x34f   : > { %581 = vrot.lane.b32.xlu1 %v534_v47, %s19769_s23  ;;  %v1083_v47 = vmul.f32 %v13915_v61, %v13674_v6  ;;  %s20292_s23 = smov 72  }
 0x350   : > { %1677 = vrot.lane.b32.xlu0 %v1626_v35, %s20285_s30 }
 0x351   : > { %v15101_v40 = vpop.permute.xlu0 %3766 }
 0x352   : > { %20287 = vst [vmem:[#allocation275_spill] sm:$0xff] %v15101_v40  ;;  %v15105_v32 = vpop.permute.xlu1 %3313  ;;  %v1214_v40 = vmul.f32 %v13627_v54, %v14933_v3  ;;  %v1216_v54 = vmul.f32 %v13793_v12, %v13566_v34 }
 0x353   : > { %20288 = vst [vmem:[#allocation276_spill] sm:$0xff] %v15105_v32  ;;  %1131 = vrot.lane.b32.xlu1 %v1081_v56, %s20259_s29  ;;  %v664_v56 = vmul.f32 %v13555_v31, %v14933_v3 }
 0x354   : > { %1671 = vrot.lane.b32.xlu0 %v1623_v0, %s20285_s30 }
 0x355   : > { %v15111_v36 = vpop.permute.xlu0 %3776 }
 0x356   : > { %20289 = vst [vmem:[#allocation277_spill] sm:$0xff] %v15111_v36  ;;  %v15115_v35 = vpop.permute.xlu1 %3323  ;;  %v1761_v36 = vmul.f32 %v14032_v10, %v13662_v2 }
 0x357   : > { %1135 = vrot.lane.b32.xlu1 %v1083_v47, %s20259_s29  ;;  %v1763_v47 = vmul.f32 %v14032_v10, %v13674_v6 }
 0x358   : > { %1261 = vrot.lane.b32.xlu0 %v1214_v40, %s20266_s15 }
 0x359   : > { %v15121_v32 = vpop.permute.xlu0 %3780 }
 0x35a   : > { %20290 = vst [vmem:[#allocation278_spill] sm:$0xff] %v15121_v32  ;;  %v15125_v0 = vpop.permute.xlu1 %3327 }
 0x35b   : > { %20291 = vst [vmem:[#allocation279_spill] sm:$0xff] %v15125_v0  ;;  %705 = vrot.lane.b32.xlu1 %v664_v56, %s19773_s26  ;;  %v1218_v56 = vmul.f32 %v13793_v12, %v13551_v28  ;;  %s20298_s26 = smov 71  }
 0x35c   : > { %1811 = vrot.lane.b32.xlu0 %v1761_v36, %s20292_s23 }
 0x35d   : > { %v15131_v39 = vpop.permute.xlu0 %3772 }
 0x35e   : > { %20293 = vst [vmem:[#allocation280_spill] sm:$0xff] %v15131_v39  ;;  %v15135_v40 = vpop.permute.xlu1 %3319  ;;  %v1344_v39 = vmul.f32 %v13636_v57, %v14933_v3  ;;  %v806_v57 = vmul.f32 %v13580_v41, %v14933_v3 }
 0x35f   : > { %20294 = vst [vmem:[#allocation281_spill] sm:$0xff] %v15135_v40  ;;  %1265 = vrot.lane.b32.xlu1 %v1216_v54, %s20266_s15  ;;  %v1215_v54 = vmul.f32 %v13793_v12, %v13585_v42 }
 0x360   : > { %1815 = vrot.lane.b32.xlu0 %v1763_v47, %s20292_s23 }
 0x361   : > { %v15141_v31 = vpop.permute.xlu0 %585 }
 0x362   : > { %20295 = vst [vmem:[#allocation282_spill] sm:$0xff] %v15141_v31  ;;  %v15145_v36 = vpop.permute.xlu1 %3460  ;;  %v1896_v31 = vmul.f32 %v14081_v37, %v13566_v34 }
 0x363   : > { %1269 = vrot.lane.b32.xlu1 %v1218_v56, %s20266_s15  ;;  %v1898_v56 = vmul.f32 %v14081_v37, %v13551_v28 }
 0x364   : > { %1385 = vrot.lane.b32.xlu0 %v1344_v39, %s20271_s16 }
 0x365   : > { %v15151_v40 = vpop.permute.xlu0 %589 }
 0x366   : > { %20296 = vst [vmem:[#allocation283_spill] sm:$0xff] %v15151_v40  ;;  %v15155_v47 = vpop.permute.xlu1 %3464 }
 0x367   : > { %20297 = vst [vmem:[#allocation284_spill] sm:$0xff] %v15155_v47  ;;  %1263 = vrot.lane.b32.xlu1 %v1215_v54, %s20266_s15  ;;  %v1353_v54 = vmul.f32 %v13868_v23, %v13662_v2 }
 0x368   : > { %1945 = vrot.lane.b32.xlu0 %v1896_v31, %s20298_s26 }
 0x369   : > { %v15161_v32 = vpop.permute.xlu0 %583 }
 0x36a   : > { %20299 = vst [vmem:[#allocation285_spill] sm:$0xff] %v15161_v32  ;;  %v15165_v39 = vpop.permute.xlu1 %3474  ;;  %v1895_v32 = vmul.f32 %v14081_v37, %v13585_v42 }
 0x36b   : > { %853 = vrot.lane.b32.xlu1 %v806_v57, %s19780_s20  ;;  %v1355_v57 = vmul.f32 %v13868_v23, %v13674_v6  ;;  %s20306_s20 = smov 70  }
 0x36c   : > { %1949 = vrot.lane.b32.xlu0 %v1898_v56, %s20298_s26 }
 0x36d   : > { %v15171_v40 = vpop.permute.xlu0 %723 }
 0x36e   : > { %20300 = vst [vmem:[#allocation286_spill] sm:$0xff] %v15171_v40  ;;  %v15175_v31 = vpop.permute.xlu1 %3478  ;;  %v1486_v40 = vmul.f32 %v13655_v1, %v14933_v3  ;;  %v1488_v1 = vmul.f32 %v13917_v20, %v13566_v34 }
 0x36f   : > { %20301 = vst [vmem:[#allocation287_spill] sm:$0xff] %v15175_v31  ;;  %1403 = vrot.lane.b32.xlu1 %v1353_v54, %s20271_s16  ;;  %v936_v54 = vmul.f32 %v13597_v46, %v14933_v3 }
 0x370   : > { %1943 = vrot.lane.b32.xlu0 %v1895_v32, %s20298_s26 }
 0x371   : > { %v15181_v41 = vpop.permute.xlu0 %727 }
 0x372   : > { %20302 = vst [vmem:[#allocation288_spill] sm:$0xff] %v15181_v41  ;;  %v15185_v56 = vpop.permute.xlu1 %3865  ;;  %v2033_v41 = vmul.f32 %v14138_v19, %v13662_v2 }
 0x373   : > { %20303 = vst [vmem:[#allocation289_spill] sm:$0xff] %v15185_v56  ;;  %1407 = vrot.lane.b32.xlu1 %v1355_v57, %s20271_s16  ;;  %v2035_v57 = vmul.f32 %v14138_v19, %v13674_v6 }
 0x374   : > { %1533 = vrot.lane.b32.xlu0 %v1486_v40, %s20279_s18 }
 0x375   : > { %v15191_v47 = vpop.permute.xlu0 %857 }
 0x376   : > { %20304 = vst [vmem:[#allocation290_spill] sm:$0xff] %v15191_v47  ;;  %v15195_v32 = vpop.permute.xlu1 %3456 }
 0x377   : > { %20305 = vst [vmem:[#allocation291_spill] sm:$0xff] %v15195_v32  ;;  %977 = vrot.lane.b32.xlu1 %v936_v54, %s19785_s28  ;;  %v1490_v54 = vmul.f32 %v13917_v20, %v13551_v28  ;;  %s20311_s28 = smov 69  }
 0x378   : > { %2083 = vrot.lane.b32.xlu0 %v2033_v41, %s20306_s20 }
 0x379   : > { %v15201_v56 = vpop.permute.xlu0 %861 }
 0x37a   : > { %20307 = vst [vmem:[#allocation292_spill] sm:$0xff] %v15201_v56  ;;  %v15205_v40 = vpop.permute.xlu1 %3609  ;;  %v1616_v56 = vmul.f32 %v13929_v15, %v14933_v3  ;;  %v1078_v15 = vmul.f32 %v13613_v50, %v14933_v3 }
 0x37b   : > { %1537 = vrot.lane.b32.xlu1 %v1488_v1, %s20279_s18  ;;  %v1487_v1 = vmul.f32 %v13917_v20, %v13585_v42 }
 0x37c   : > { %2087 = vrot.lane.b32.xlu0 %v2035_v57, %s20306_s20 }
 0x37d   : > { %v15211_v46 = vpop.permute.xlu0 %855 }
 0x37e   : > { %20308 = vst [vmem:[#allocation293_spill] sm:$0xff] %v15211_v46  ;;  %v15215_v41 = vpop.permute.xlu1 %3613  ;;  %v2168_v46 = vmul.f32 %v14204_v16, %v13566_v34 }
 0x37f   : > { %1541 = vrot.lane.b32.xlu1 %v1490_v54, %s20279_s18  ;;  %v2170_v54 = vmul.f32 %v14204_v16, %v13551_v28 }
 0x380   : > { %1657 = vrot.lane.b32.xlu0 %v1616_v56, %s20285_s30 }
 0x381   : > { %v15221_v47 = vpop.permute.xlu0 %995 }
 0x382   : > { %20309 = vst [vmem:[#allocation294_spill] sm:$0xff] %v15221_v47  ;;  %v15225_v57 = vpop.permute.xlu1 %3623 }
 0x383   : > { %20310 = vst [vmem:[#allocation295_spill] sm:$0xff] %v15225_v57  ;;  %1535 = vrot.lane.b32.xlu1 %v1487_v1, %s20279_s18  ;;  %v1625_v1 = vmul.f32 %v13975_v18, %v13662_v2 }
 0x384   : > { %2217 = vrot.lane.b32.xlu0 %v2168_v46, %s20311_s28 }
 0x385   : > { %v15231_v32 = vpop.permute.xlu0 %999 }
 0x386   : > { %20312 = vst [vmem:[#allocation296_spill] sm:$0xff] %v15231_v32  ;;  %v15235_v56 = vpop.permute.xlu1 %3627  ;;  %v2167_v32 = vmul.f32 %v14204_v16, %v13585_v42 }
 0x387   : > { %20313 = vst [vmem:[#allocation297_spill] sm:$0xff] %v15235_v56  ;;  %1125 = vrot.lane.b32.xlu1 %v1078_v15, %s20259_s29  ;;  %v1627_v15 = vmul.f32 %v13975_v18, %v13674_v6 }
 0x388   : > { %2221 = vrot.lane.b32.xlu0 %v2170_v54, %s20311_s28 }
 0x389   : > { %v15241_v47 = vpop.permute.xlu0 %569 }
 0x38a   : > { %20314 = vst [vmem:[#allocation298_spill] sm:$0xff] %v15241_v47  ;;  %v15245_v46 = vpop.permute.xlu1 %3607  ;;  %v1758_v47 = vmul.f32 %v13986_v17, %v14933_v3  ;;  %v1760_v17 = vmul.f32 %v14032_v10, %v13566_v34 }
 0x38b   : > { %20315 = vst [vmem:[#allocation299_spill] sm:$0xff] %v15245_v46  ;;  %1675 = vrot.lane.b32.xlu1 %v1625_v1, %s20285_s30  ;;  %v20319_v1 = vld [vmem:[#allocation33_spill] sm:$0xff] }
 0x38c   : > { %2215 = vrot.lane.b32.xlu0 %v2167_v32, %s20311_s28  ;;  %v1208_v57 = vmul.f32 %v20319_v1, %v14933_v3 }
 0x38d   : > { %v15251_v50 = vpop.permute.xlu0 %1129 }
 0x38e   : > { %20316 = vst [vmem:[#allocation300_spill] sm:$0xff] %v15251_v50  ;;  %v15255_v54 = vpop.permute.xlu1 %3760  ;;  %v2305_v50 = vmul.f32 %v14258_v25, %v13662_v2 }
 0x38f   : > { %20317 = vst [vmem:[#allocation301_spill] sm:$0xff] %v15255_v54  ;;  %1679 = vrot.lane.b32.xlu1 %v1627_v15, %s20285_s30  ;;  %v2307_v15 = vmul.f32 %v14258_v25, %v13674_v6 }
 0x390   : > { %1805 = vrot.lane.b32.xlu0 %v1758_v47, %s20292_s23 }
 0x391   : > { %v15261_v46 = vpop.permute.xlu0 %1133 }
 0x392   : > { %20318 = vst [vmem:[#allocation302_spill] sm:$0xff] %v15261_v46  ;;  %v15265_v32 = vpop.permute.xlu1 %3764  ;;  %v20326_v46 = vld [vmem:[#allocation24_spill] sm:$0xff] }
 0x393   : > { %20320 = vst [vmem:[#allocation33_spill] sm:$0xff] %v15265_v32  ;;  %1249 = vrot.lane.b32.xlu1 %v1208_v57, %s20266_s15  ;;  %v1762_v57 = vmul.f32 %v14032_v10, %v13551_v28 }
 0x394   : > { %2355 = vrot.lane.b32.xlu0 %v2305_v50, %s20321_s19 }
 0x395   : > { %v15271_v18 = vpop.permute.xlu0 %1127 }
 0x396   : > { %20322 = vst [vmem:[#allocation303_spill] sm:$0xff] %v15271_v18  ;;  %v15275_v47 = vpop.permute.xlu1 %3774  ;;  %v1888_v18 = vmul.f32 %v20326_v46, %v14933_v3  ;;  %v20332_v46 = vld [vmem:[#allocation34_spill] sm:$0xff] }
 0x397   : > { %20323 = vst [vmem:[#allocation304_spill] sm:$0xff] %v15275_v47  ;;  %1809 = vrot.lane.b32.xlu1 %v1760_v17, %s20292_s23  ;;  %v1759_v17 = vmul.f32 %v14032_v10, %v13585_v42 }
 0x398   : > { %2359 = vrot.lane.b32.xlu0 %v2307_v15, %s20321_s19 }
 0x399   : > { %v15281_v1 = vpop.permute.xlu0 %717 }
 0x39a   : > { %20324 = vst [vmem:[#allocation305_spill] sm:$0xff] %v15281_v1  ;;  %v15285_v50 = vpop.permute.xlu1 %3778  ;;  %v20329_v1 = vld [vmem:[#allocation128_spill] sm:$0xff] }
 0x39b   : > { %20325 = vst [vmem:[#allocation306_spill] sm:$0xff] %v15285_v50  ;;  %1813 = vrot.lane.b32.xlu1 %v1762_v57, %s20292_s23  ;;  %v2440_v54 = vmul.f32 %v20329_v1, %v13566_v34  ;;  %v1350_v57 = vmul.f32 %v20332_v46, %v14933_v3 }
 0x39c   : > { %1929 = vrot.lane.b32.xlu0 %v1888_v18, %s20298_s26 }
 0x39d   : > { %v15291_v47 = vpop.permute.xlu0 %1267 }
 0x39e   : > { %20327 = vst [vmem:[#allocation24_spill] sm:$0xff] %v15291_v47  ;;  %v15295_v15 = vpop.permute.xlu1 %3758  ;;  %v2442_v47 = vmul.f32 %v20329_v1, %v13551_v28 }
 0x39f   : > { %20328 = vst [vmem:[#allocation307_spill] sm:$0xff] %v15295_v15  ;;  %1807 = vrot.lane.b32.xlu1 %v1759_v17, %s20292_s23  ;;  %v1897_v17 = vmul.f32 %v14081_v37, %v13662_v2 }
 0x3a0   : > { %2489 = vrot.lane.b32.xlu0 %v2440_v54, %s20330_s17 }
 0x3a1   : > { %v15301_v50 = vpop.permute.xlu0 %1271 }
 0x3a2   : > { %20331 = vst [vmem:[#allocation308_spill] sm:$0xff] %v15301_v50  ;;  %v15305_v18 = vpop.permute.xlu1 %441  ;;  %v2439_v50 = vmul.f32 %v20329_v1, %v13585_v42 }
 0x3a3   : > { %20333 = vst [vmem:[#allocation34_spill] sm:$0xff] %v15305_v18  ;;  %1397 = vrot.lane.b32.xlu1 %v1350_v57, %s20271_s16  ;;  %v1899_v57 = vmul.f32 %v14081_v37, %v13674_v6 }
 0x3a4   : > { %2493 = vrot.lane.b32.xlu0 %v2442_v47, %s20330_s17 }
 0x3a5   : > { %v15311_v15 = vpop.permute.xlu0 %841 }
 0x3a6   : > { %20334 = vst [vmem:[#allocation309_spill] sm:$0xff] %v15311_v15  ;;  %v15315_v54 = vpop.permute.xlu1 %587  ;;  %v20338_v15 = vld [vmem:[#allocation26_spill] sm:$0xff] }
 0x3a7   : > { %20335 = vst [vmem:[#allocation310_spill] sm:$0xff] %v15315_v54  ;;  %1947 = vrot.lane.b32.xlu1 %v1897_v17, %s20298_s26  ;;  %v2030_v18 = vmul.f32 %v20338_v15, %v14933_v3  ;;  %v20340_v17 = vld [vmem:[#allocation20_spill] sm:$0xff]  ;;  %v2032_v15 = vmul.f32 %v14138_v19, %v13566_v34 }
 0x3a8   : > { %2487 = vrot.lane.b32.xlu0 %v2439_v50, %s20330_s17  ;;  %v1480_v56 = vmul.f32 %v20340_v17, %v14933_v3 }
 0x3a9   : > { %v15321_v46 = vpop.permute.xlu0 %1401 }
 0x3aa   : > { %20336 = vst [vmem:[#allocation311_spill] sm:$0xff] %v15321_v46  ;;  %v15325_v47 = vpop.permute.xlu1 %591  ;;  %v2577_v46 = vmul.f32 %v14378_v55, %v13662_v2 }
 0x3ab   : > { %20337 = vst [vmem:[#allocation312_spill] sm:$0xff] %v15325_v47  ;;  %1951 = vrot.lane.b32.xlu1 %v1899_v57, %s20298_s26  ;;  %v2579_v57 = vmul.f32 %v14378_v55, %v13674_v6 }
 0x3ac   : > { %2077 = vrot.lane.b32.xlu0 %v2030_v18, %s20306_s20 }
 0x3ad   : > { %v15331_v54 = vpop.permute.xlu0 %1405 }
 0x3ae   : > { %20339 = vst [vmem:[#allocation26_spill] sm:$0xff] %v15331_v54  ;;  %v15335_v50 = vpop.permute.xlu1 %721  ;;  %v20347_v54 = vld [vmem:[#allocation27_spill] sm:$0xff] }
 0x3af   : > { %20341 = vst [vmem:[#allocation20_spill] sm:$0xff] %v15335_v50  ;;  %1521 = vrot.lane.b32.xlu1 %v1480_v56, %s20279_s18  ;;  %v2034_v56 = vmul.f32 %v14138_v19, %v13551_v28 }
 0x3b0   : > { %2627 = vrot.lane.b32.xlu0 %v2577_v46, %s20342_s0 }
 0x3b1   : > { %v15341_v47 = vpop.permute.xlu0 %1399 }
 0x3b2   : > { %20343 = vst [vmem:[#allocation313_spill] sm:$0xff] %v15341_v47  ;;  %v15345_v18 = vpop.permute.xlu1 %725  ;;  %v2160_v47 = vmul.f32 %v20347_v54, %v14933_v3  ;;  %v20352_v54 = vld [vmem:[#allocation21_spill] sm:$0xff] }
 0x3b3   : > { %20344 = vst [vmem:[#allocation314_spill] sm:$0xff] %v15345_v18  ;;  %2081 = vrot.lane.b32.xlu1 %v2032_v15, %s20306_s20  ;;  %v2031_v15 = vmul.f32 %v14138_v19, %v13585_v42  ;;  %v20431_v19 = vld [vmem:[#allocation63_spill] sm:$0xff] }
 0x3b4   : > { %2631 = vrot.lane.b32.xlu0 %v2579_v57, %s20342_s0 }
 0x3b5   : > { %v15351_v17 = vpop.permute.xlu0 %989 }
 0x3b6   : > { %20345 = vst [vmem:[#allocation315_spill] sm:$0xff] %v15351_v17  ;;  %v15355_v46 = vpop.permute.xlu1 %719  ;;  %v2712_v17 = vmul.f32 %v14427_v30, %v13566_v34 }
 0x3b7   : > { %20346 = vst [vmem:[#allocation316_spill] sm:$0xff] %v15355_v46  ;;  %2085 = vrot.lane.b32.xlu1 %v2034_v56, %s20306_s20  ;;  %v1622_v56 = vmul.f32 %v20352_v54, %v14933_v3 }
 0x3b8   : > { %2201 = vrot.lane.b32.xlu0 %v2160_v47, %s20311_s28 }
 0x3b9   : > { %v15361_v18 = vpop.permute.xlu0 %1539 }
 0x3ba   : > { %20348 = vst [vmem:[#allocation27_spill] sm:$0xff] %v15361_v18  ;;  %v15365_v57 = vpop.permute.xlu1 %859  ;;  %v2714_v18 = vmul.f32 %v14427_v30, %v13551_v28 }
 0x3bb   : > { %20349 = vst [vmem:[#allocation317_spill] sm:$0xff] %v15365_v57  ;;  %2079 = vrot.lane.b32.xlu1 %v2031_v15, %s20306_s20  ;;  %v2169_v15 = vmul.f32 %v14204_v16, %v13662_v2 }
 0x3bc   : > { %2761 = vrot.lane.b32.xlu0 %v2712_v17, %s20350_s1 }
 0x3bd   : > { %v15371_v46 = vpop.permute.xlu0 %1543 }
 0x3be   : > { %20351 = vst [vmem:[#allocation318_spill] sm:$0xff] %v15371_v46  ;;  %v15375_v47 = vpop.permute.xlu1 %863  ;;  %v2711_v46 = vmul.f32 %v14427_v30, %v13585_v42 }
 0x3bf   : > { %20353 = vst [vmem:[#allocation21_spill] sm:$0xff] %v15375_v47  ;;  %1669 = vrot.lane.b32.xlu1 %v1622_v56, %s20285_s30  ;;  %v2171_v56 = vmul.f32 %v14204_v16, %v13674_v6 }
 0x3c0   : > { %2765 = vrot.lane.b32.xlu0 %v2714_v18, %s20350_s1 }
 0x3c1   : > { %v15381_v57 = vpop.permute.xlu0 %1113 }
 0x3c2   : > { %20354 = vst [vmem:[#allocation319_spill] sm:$0xff] %v15381_v57  ;;  %v15385_v17 = vpop.permute.xlu1 %993  ;;  %v2302_v57 = vmul.f32 %v13733_v7, %v14933_v3  ;;  %v2304_v7 = vmul.f32 %v14258_v25, %v13566_v34 }
 0x3c3   : > { %20355 = vst [vmem:[#allocation320_spill] sm:$0xff] %v15385_v17  ;;  %2219 = vrot.lane.b32.xlu1 %v2169_v15, %s20311_s28  ;;  %v20359_v15 = vld [vmem:[#allocation23_spill] sm:$0xff] }
 0x3c4   : > { %2759 = vrot.lane.b32.xlu0 %v2711_v46, %s20350_s1  ;;  %v1752_v47 = vmul.f32 %v20359_v15, %v14933_v3 }
 0x3c5   : > { %v15391_v54 = vpop.permute.xlu0 %1673 }
 0x3c6   : > { %20356 = vst [vmem:[#allocation321_spill] sm:$0xff] %v15391_v54  ;;  %v15395_v18 = vpop.permute.xlu1 %997  ;;  %v2849_v54 = vmul.f32 %v14484_v60, %v13662_v2 }
 0x3c7   : > { %20357 = vst [vmem:[#allocation322_spill] sm:$0xff] %v15395_v18  ;;  %2223 = vrot.lane.b32.xlu1 %v2171_v56, %s20311_s28  ;;  %v2851_v56 = vmul.f32 %v14484_v60, %v13674_v6 }
 0x3c8   : > { %2349 = vrot.lane.b32.xlu0 %v2302_v57, %s20321_s19 }
 0x3c9   : > { %v15401_v17 = vpop.permute.xlu0 %1677 }
 0x3ca   : > { %20358 = vst [vmem:[#allocation323_spill] sm:$0xff] %v15401_v17  ;;  %v15405_v46 = vpop.permute.xlu1 %991  ;;  %v2847_v17 = vmul.f32 %v14484_v60, %v13585_v42 }
 0x3cb   : > { %20360 = vst [vmem:[#allocation23_spill] sm:$0xff] %v15405_v46  ;;  %1793 = vrot.lane.b32.xlu1 %v1752_v47, %s20292_s23  ;;  %v2306_v47 = vmul.f32 %v14258_v25, %v13551_v28  ;;  %v20424_v46 = vld [vmem:[#allocation46_spill] sm:$0xff] }
 0x3cc   : > { %2899 = vrot.lane.b32.xlu0 %v2849_v54, %s20361_s6  ;;  %v477_v50 = vmul.f32 %v13662_v2, %v20424_v46 }
 0x3cd   : > { %v15411_v18 = vpop.permute.xlu0 %1671 }
 0x3ce   : > { %20362 = vst [vmem:[#allocation324_spill] sm:$0xff] %v15411_v18  ;;  %v15415_v57 = vpop.permute.xlu1 %581 }
 0x3cf   : > { %20363 = vst [vmem:[#allocation325_spill] sm:$0xff] %v15415_v57  ;;  %2353 = vrot.lane.b32.xlu1 %v2304_v7, %s20321_s19  ;;  %v2303_v7 = vmul.f32 %v14258_v25, %v13585_v42 }
 0x3d0   : > { %2903 = vrot.lane.b32.xlu0 %v2851_v56, %s20361_s6 }
 0x3d1   : > { %v15421_v15 = vpop.permute.xlu0 %1261 }
 0x3d2   : > { %20364 = vst [vmem:[#allocation326_spill] sm:$0xff] %v15421_v15  ;;  %v15425_v54 = vpop.permute.xlu1 %1131  ;;  %v2438_v15 = vmul.f32 %v13741_v11, %v14933_v3  ;;  %v2441_v11 = vmul.f32 %v20329_v1, %v13662_v2 }
 0x3d3   : > { %20365 = vst [vmem:[#allocation327_spill] sm:$0xff] %v15425_v54  ;;  %2357 = vrot.lane.b32.xlu1 %v2306_v47, %s20321_s19  ;;  %v20369_v47 = vld [vmem:[#allocation25_spill] sm:$0xff] }
 0x3d4   : > { %2895 = vrot.lane.b32.xlu0 %v2847_v17, %s20361_s6  ;;  %v1894_v57 = vmul.f32 %v20369_v47, %v14933_v3 }
 0x3d5   : > { %v15431_v18 = vpop.permute.xlu0 %1811 }
 0x3d6   : > { %20366 = vst [vmem:[#allocation328_spill] sm:$0xff] %v15431_v18  ;;  %v15435_v56 = vpop.permute.xlu1 %1135  ;;  %v2985_v18 = vmul.f32 %v14548_v4, %v13662_v2 }
 0x3d7   : > { %20367 = vst [vmem:[#allocation329_spill] sm:$0xff] %v15435_v56  ;;  %2351 = vrot.lane.b32.xlu1 %v2303_v7, %s20321_s19  ;;  %v2987_v7 = vmul.f32 %v14548_v4, %v13674_v6 }
 0x3d8   : > { %2485 = vrot.lane.b32.xlu0 %v2438_v15, %s20330_s17 }
 0x3d9   : > { %v15441_v54 = vpop.permute.xlu0 %1815 }
 0x3da   : > { %20368 = vst [vmem:[#allocation330_spill] sm:$0xff] %v15441_v54  ;;  %v15445_v17 = vpop.permute.xlu1 %705  ;;  %v2983_v54 = vmul.f32 %v14548_v4, %v13585_v42 }
 0x3db   : > { %20370 = vst [vmem:[#allocation25_spill] sm:$0xff] %v15445_v17  ;;  %1941 = vrot.lane.b32.xlu1 %v1894_v57, %s20298_s26  ;;  %v2443_v57 = vmul.f32 %v20329_v1, %v13674_v6  ;;  %v20427_v1 = vld [vmem:[#allocation56_spill] sm:$0xff] }
 0x3dc   : > { %3035 = vrot.lane.b32.xlu0 %v2985_v18, %s20371_s27 }
 0x3dd   : > { %v15451_v56 = vpop.permute.xlu0 %1385 }
 0x3de   : > { %20372 = vst [vmem:[#allocation331_spill] sm:$0xff] %v15451_v56  ;;  %v15455_v15 = vpop.permute.xlu1 %1265 }
 0x3df   : > { %20373 = vst [vmem:[#allocation332_spill] sm:$0xff] %v15455_v15  ;;  %2491 = vrot.lane.b32.xlu1 %v2441_v11, %s20330_s17  ;;  %v20377_v11 = vld [vmem:[#allocation83_spill] sm:$0xff] }
 0x3e0   : > { %3039 = vrot.lane.b32.xlu0 %v2987_v7, %s20371_s27  ;;  %v2024_v15 = vmul.f32 %v20377_v11, %v14933_v3 }
 0x3e1   : > { %v15461_v47 = vpop.permute.xlu0 %1945 }
 0x3e2   : > { %20374 = vst [vmem:[#allocation333_spill] sm:$0xff] %v15461_v47  ;;  %v15465_v18 = vpop.permute.xlu1 %1269  ;;  %v2574_v47 = vmul.f32 %v14332_v43, %v14933_v3  ;;  %v2578_v43 = vmul.f32 %v14378_v55, %v13551_v28 }
 0x3e3   : > { %20375 = vst [vmem:[#allocation334_spill] sm:$0xff] %v15465_v18  ;;  %2495 = vrot.lane.b32.xlu1 %v2443_v57, %s20330_s17  ;;  %v2576_v57 = vmul.f32 %v14378_v55, %v13566_v34 }
 0x3e4   : > { %3031 = vrot.lane.b32.xlu0 %v2983_v54, %s20371_s27 }
 0x3e5   : > { %v15471_v56 = vpop.permute.xlu0 %1949 }
 0x3e6   : > { %20376 = vst [vmem:[#allocation335_spill] sm:$0xff] %v15471_v56  ;;  %v15475_v7 = vpop.permute.xlu1 %1263  ;;  %v3128_v56 = vmul.f32 %v14598_v9, %v13662_v2 }
 0x3e7   : > { %20378 = vst [vmem:[#allocation83_spill] sm:$0xff] %v15475_v7  ;;  %2065 = vrot.lane.b32.xlu1 %v2024_v15, %s20306_s20 }
 0x3e8   : > { %2621 = vrot.lane.b32.xlu0 %v2574_v47, %s20342_s0  ;;  %v3130_v47 = vmul.f32 %v14598_v9, %v13674_v6 }
 0x3e9   : > { %v15481_v18 = vpop.permute.xlu0 %1943 }
 0x3ea   : > { %20379 = vst [vmem:[#allocation336_spill] sm:$0xff] %v15481_v18  ;;  %v15485_v54 = vpop.permute.xlu1 %853 }
 0x3eb   : > { %20380 = vst [vmem:[#allocation337_spill] sm:$0xff] %v15485_v54  ;;  %2625 = vrot.lane.b32.xlu1 %v2576_v57, %s20342_s0  ;;  %v2575_v57 = vmul.f32 %v14378_v55, %v13585_v42  ;;  %v20430_v55 = vld [vmem:[#allocation58_spill] sm:$0xff] }
 0x3ec   : > { %3186 = vrot.lane.b32.xlu0 %v3128_v56, %s20381_s14 }
 0x3ed   : > { %v15491_v11 = vpop.permute.xlu0 %1533 }
 0x3ee   : > { %20382 = vst [vmem:[#allocation338_spill] sm:$0xff] %v15491_v11  ;;  %v15495_v15 = vpop.permute.xlu1 %1403  ;;  %v3126_v11 = vmul.f32 %v14598_v9, %v13585_v42 }
 0x3ef   : > { %20383 = vst [vmem:[#allocation339_spill] sm:$0xff] %v15495_v15  ;;  %2629 = vrot.lane.b32.xlu1 %v2578_v43, %s20342_s0  ;;  %v20387_v43 = vld [vmem:[#allocation96_spill] sm:$0xff] }
 0x3f0   : > { %3190 = vrot.lane.b32.xlu0 %v3130_v47, %s20381_s14  ;;  %v2166_v54 = vmul.f32 %v20387_v43, %v14933_v3 }
 0x3f1   : > { %v15501_v18 = vpop.permute.xlu0 %2083 }
 0x3f2   : > { %20384 = vst [vmem:[#allocation340_spill] sm:$0xff] %v15501_v18  ;;  %v15505_v56 = vpop.permute.xlu1 %1407  ;;  %v20389_v18 = vld [vmem:[#allocation31_spill] sm:$0xff] }
 0x3f3   : > { %20385 = vst [vmem:[#allocation341_spill] sm:$0xff] %v15505_v56  ;;  %2623 = vrot.lane.b32.xlu1 %v2575_v57, %s20342_s0  ;;  %v2710_v7 = vmul.f32 %v20389_v18, %v14933_v3  ;;  %v2713_v57 = vmul.f32 %v14427_v30, %v13662_v2  ;;  %v2715_v18 = vmul.f32 %v14427_v30, %v13674_v6  ;;  %v20425_v30 = vld [vmem:[#allocation36_spill] sm:$0xff] }
 0x3f4   : > { %3182 = vrot.lane.b32.xlu0 %v3126_v11, %s20381_s14 }
 0x3f5   : > { %v15511_v15 = vpop.permute.xlu0 %2087 }
 0x3f6   : > { %20386 = vst [vmem:[#allocation342_spill] sm:$0xff] %v15511_v15  ;;  %v15515_v47 = vpop.permute.xlu1 %977  ;;  %v3279_v15 = vmul.f32 %v14659_v48, %v13662_v2 }
 0x3f7   : > { %20388 = vst [vmem:[#allocation96_spill] sm:$0xff] %v15515_v47  ;;  %2213 = vrot.lane.b32.xlu1 %v2166_v54, %s20311_s28  ;;  %v3281_v54 = vmul.f32 %v14659_v48, %v13674_v6 }
 0x3f8   : > { %2757 = vrot.lane.b32.xlu0 %v2710_v7, %s20350_s1 }
 0x3f9   : > { %v15521_v56 = vpop.permute.xlu0 %1657 }
 0x3fa   : > { %20390 = vst [vmem:[#allocation31_spill] sm:$0xff] %v15521_v56  ;;  %v15525_v11 = vpop.permute.xlu1 %1537 }
 0x3fb   : > { %20391 = vst [vmem:[#allocation343_spill] sm:$0xff] %v15525_v11  ;;  %2763 = vrot.lane.b32.xlu1 %v2713_v57, %s20350_s1  ;;  %v20396_v57 = vld [vmem:[#allocation28_spill] sm:$0xff] }
 0x3fc   : > { %3337 = vrot.lane.b32.xlu0 %v3279_v15, %s20392_s21  ;;  %v2296_v11 = vmul.f32 %v20396_v57, %v14933_v3 }
 0x3fd   : > { %v15531_v43 = vpop.permute.xlu0 %2217 }
 0x3fe   : > { %20393 = vst [vmem:[#allocation344_spill] sm:$0xff] %v15531_v43  ;;  %v15535_v7 = vpop.permute.xlu1 %1541  ;;  %v3277_v43 = vmul.f32 %v14659_v48, %v13585_v42 }
 0x3ff   : > { %20394 = vst [vmem:[#allocation345_spill] sm:$0xff] %v15535_v7  ;;  %2767 = vrot.lane.b32.xlu1 %v2715_v18, %s20350_s1  ;;  %v2848_v18 = vmul.f32 %v14484_v60, %v13566_v34 }
 0x400   : > { %3341 = vrot.lane.b32.xlu0 %v3281_v54, %s20392_s21 }
 0x401   : > { %v15541_v56 = vpop.permute.xlu0 %2221 }
 0x402   : > { %20395 = vst [vmem:[#allocation346_spill] sm:$0xff] %v15541_v56  ;;  %v15545_v15 = vpop.permute.xlu1 %1535  ;;  %v20400_v56 = vld [vmem:[#allocation32_spill] sm:$0xff] }
 0x403   : > { %20397 = vst [vmem:[#allocation28_spill] sm:$0xff] %v15545_v15  ;;  %2337 = vrot.lane.b32.xlu1 %v2296_v11, %s20321_s19  ;;  %v2846_v47 = vmul.f32 %v20400_v56, %v14933_v3  ;;  %v2850_v11 = vmul.f32 %v14484_v60, %v13551_v28  ;;  %v540_v56 = vmul.f32 %v13870_v21, %v14933_v3  ;;  %v20423_v15 = vld [vmem:[#allocation42_spill] sm:$0xff] }
 0x404   : > { %3333 = vrot.lane.b32.xlu0 %v3277_v43, %s20392_s21  ;;  %v15664_v17 = vmul.f32 %v20423_v15, %v14933_v3 }
 0x405   : > { %v15551_v7 = vpop.permute.xlu0 %2215 }
 0x406   : > { %20398 = vst [vmem:[#allocation347_spill] sm:$0xff] %v15551_v7  ;;  %v15555_v54 = vpop.permute.xlu1 %1125  ;;  %v3430_v7 = vmul.f32 %v14719_v44, %v13662_v2 }
 0x407   : > { %20399 = vst [vmem:[#allocation348_spill] sm:$0xff] %v15555_v54  ;;  %2897 = vrot.lane.b32.xlu1 %v2848_v18, %s20361_s6  ;;  %v3432_v18 = vmul.f32 %v14719_v44, %v13674_v6 }
 0x408   : > { %2893 = vrot.lane.b32.xlu0 %v2846_v47, %s20361_s6 }
 0x409   : > { %v15561_v57 = vpop.permute.xlu0 %1805 }
 0x40a   : > { %20401 = vst [vmem:[#allocation32_spill] sm:$0xff] %v15561_v57  ;;  %v15565_v43 = vpop.permute.xlu1 %1675 }
 0x40b   : > { %20402 = vst [vmem:[#allocation349_spill] sm:$0xff] %v15565_v43  ;;  %2901 = vrot.lane.b32.xlu1 %v2850_v11, %s20361_s6  ;;  %v20408_v11 = vld [vmem:[#allocation118_spill] sm:$0xff] }
 0x40c   : > { %3488 = vrot.lane.b32.xlu0 %v3430_v7, %s20403_s24  ;;  %v2432_v43 = vmul.f32 %v20408_v11, %v14933_v3 }
 0x40d   : > { %v15571_v54 = vpop.permute.xlu0 %2355 }
 0x40e   : > { %20404 = vst [vmem:[#allocation350_spill] sm:$0xff] %v15571_v54  ;;  %v15575_v47 = vpop.permute.xlu1 %1679  ;;  %v1084_v54 = vmul.f32 %v13915_v61, %v14933_v3  ;;  %v3109_v61 = vsub.s32 6, %v13539_v24  ;;  %v1220_v24 = vmul.f32 %v13793_v12, %v14933_v3  ;;  %v20420_v12 = vld [vmem:[#allocation35_spill] sm:$0xff] }
 0x40f   : > { %20405 = vst [vmem:[#allocation351_spill] sm:$0xff] %v15575_v47  ;;  %593 = vrot.lane.b32.xlu1 %v540_v56, %s20406_s12  ;;  %v2984_v56 = vmul.f32 %v14548_v4, %v13566_v34  ;;  %v15644_v47 = vmul.f32 %v13820_v29, %v14933_v3  ;;  %v20435_v29 = vld [vmem:[#allocation49_spill] sm:$0xff] }
 0x410   : > { %3492 = vrot.lane.b32.xlu0 %v3432_v18, %s20403_s24 }
 0x411   : > { %v15581_v57 = vpop.permute.xlu0 %2359 }
 0x412   : > { %20407 = vst [vmem:[#allocation352_spill] sm:$0xff] %v15581_v57  ;;  %v15585_v7 = vpop.permute.xlu1 %1249  ;;  %v2976_v57 = vmul.f32 %v13788_v53, %v14933_v3  ;;  %v676_v53 = vmul.f32 %v13642_v59, %v14933_v3  ;;  %v3582_v59 = vmul.f32 %v14769_v22, %v13551_v28 }
 0x413   : > { %20409 = vst [vmem:[#allocation118_spill] sm:$0xff] %v15585_v7  ;;  %2473 = vrot.lane.b32.xlu1 %v2432_v43, %s20330_s17 }
 0x414   : > { %1137 = vrot.lane.b32.xlu0 %v1084_v54, %s20259_s29  ;;  %v2986_v54 = vmul.f32 %v14548_v4, %v13551_v28  ;;  %v476_v4 = vmul.f32 %v13566_v34, %v20424_v46  ;;  %v20432_v46 = vld [vmem:[#allocation62_spill] sm:$0xff] }
 0x415   : > { %v15591_v21 = vpop.permute.xlu0 %1929 }
 0x416   : > { %20410 = vst [vmem:[#allocation353_spill] sm:$0xff] %v15591_v21  ;;  %v15595_v18 = vpop.permute.xlu1 %1809  ;;  %v3580_v21 = vmul.f32 %v14769_v22, %v13566_v34 }
 0x417   : > { %20411 = vst [vmem:[#allocation354_spill] sm:$0xff] %v15595_v18  ;;  %3033 = vrot.lane.b32.xlu1 %v2984_v56, %s20371_s27  ;;  %v15660_v18 = vmul.f32 %v13839_v45, %v14933_v3  ;;  %v20429_v45 = vld [vmem:[#allocation48_spill] sm:$0xff] }
 0x418   : > { %3017 = vrot.lane.b32.xlu0 %v2976_v57, %s20371_s27  ;;  %v15615_v57 = vrot.slane %v14930_v62, %v3109_v61  ;;  %v20417_v62 = vld [vmem:[#allocation29_spill] sm:$0xff]  ;;  %v20418_v61 = vld [vmem:[#allocation30_spill] sm:$0xff]  ;;  %v483_v15 = vmul.f32 %v13662_v2, %v20429_v45  ;;  %v484_v60 = vmul.f32 %v13551_v28, %v20429_v45 }
 0x419   : > { %v15602_v11 = vpop.permute.xlu0 %2489  ;;  %v15633_v7 = vmul.f32 %v20418_v61, %v14933_v3  ;;  %v20421_v61 = vld [vmem:[#allocation52_spill] sm:$0xff]  ;;  %v20437_v45 = vld [vmem:[#allocation69_spill] sm:$0xff] }
 0x41a   : > { %20412 = vst [vmem:[#allocation355_spill] sm:$0xff] %v15602_v11  ;;  %v15606_v43 = vpop.permute.xlu1 %1813  ;;  %v15623_v11 = vmul.f32 %v13775_v8, %v14933_v3  ;;  %v3117_v8 = vmul.f32 %v13799_v13, %v14933_v3 }
 0x41b   : > { %20413 = vst [vmem:[#allocation356_spill] sm:$0xff] %v15606_v43  ;;  %3037 = vrot.lane.b32.xlu1 %v2986_v54, %s20371_s27 }
 0x41c   : > { %3637 = vrot.lane.b32.xlu0 %v3580_v21, %s20414_s13  ;;  %v2568_v21 = vmul.f32 %v20417_v62, %v14933_v3  ;;  %v15648_v62 = vmul.f32 %v13831_v14, %v15615_v57  ;;  %v20434_v14 = vld [vmem:[#allocation45_spill] sm:$0xff] }
 0x41d   : > { %v15617_v56 = vpop.permute.xlu0 %2493 }
 0x41e   : > { %20415 = vst [vmem:[#allocation357_spill] sm:$0xff] %v15617_v56  ;;  %v15625_v54 = vpop.permute.xlu1 %1807  ;;  %v15640_v56 = vmul.f32 %v20420_v12, %v14933_v3 }
 0x41f   : > { %20416 = vst [vmem:[#allocation358_spill] sm:$0xff] %v15625_v54  ;;  %729 = vrot.lane.b32.xlu1 %v676_v53, %s20419_s25  ;;  %v20422_v54 = vld [vmem:[#allocation51_spill] sm:$0xff]  ;;  %v15656_v53 = vmul.f32 %v13868_v23, %v14933_v3  ;;  %v20426_v23 = vld [vmem:[#allocation41_spill] sm:$0xff] }
 0x420   : > { %v597_v43 = vsel %vm595_vm0, %v20422_v54, %v20421_v61  ;;  %3641 = vrot.lane.b32.xlu0 %v3582_v59, %s20414_s13  ;;  %v598_v59 = vsel %vm595_vm0, %v20421_v61, %v20425_v30  ;;  %v603_v16 = vsel %vm595_vm0, %v20427_v1, %v20426_v23  ;;  %v604_v25 = vsel %vm595_vm0, %v20426_v23, %v20430_v55  ;;  %v20436_v54 = vld [vmem:[#allocation67_spill] sm:$0xff] }
 0x421   : > { %v15676_v37 = vpop.permute.xlu0 %2487  ;;  %v733_v61 = vsel %vm731_vm1, %v20432_v46, %v20431_v19  ;;  %v630_v1 = vadd.f32 %v597_v43, %v476_v4  ;;  %v739_v12 = vsel %vm731_vm1, %v20436_v54, %v20435_v29  ;;  %v15699_v23 = vmul.f32 %v13902_v51, %v14933_v3  ;;  %v20438_v54 = vld [vmem:[#allocation74_spill] sm:$0xff] }
 0x422   : > { %20428 = vst [vmem:[#allocation29_spill] sm:$0xff] %v15676_v37  ;;  %v15688_v30 = vpop.permute.xlu1 %1397  ;;  %v734_v37 = vsel %vm731_vm1, %v20431_v19, %v20434_v14  ;;  %v631_v55 = vadd.f32 %v598_v59, %v477_v50  ;;  %v637_v46 = vadd.f32 %v603_v16, %v483_v15  ;;  %v740_v4 = vsel %vm731_vm1, %v20435_v29, %v20437_v45  ;;  %v20441_v15 = vld [vmem:[#allocation53_spill] sm:$0xff]  ;;  %v20443_v59 = vld [vmem:[#allocation78_spill] sm:$0xff]  ;;  %v20448_v45 = vld [vmem:[#allocation64_spill] sm:$0xff] }
 0x423   : > { %20433 = vst [vmem:[#allocation30_spill] sm:$0xff] %v15688_v30  ;;  %2609 = vrot.lane.b32.xlu1 %v2568_v21, %s20342_s0  ;;  %v15707_v19 = vmul.f32 %v13917_v20, %v14933_v3  ;;  %v638_v43 = vadd.f32 %v604_v25, %v484_v60  ;;  %v766_v30 = vadd.f32 %v733_v61, %v630_v1  ;;  %v20439_v21 = vld [vmem:[#allocation72_spill] sm:$0xff]  ;;  %v20442_v20 = vld [vmem:[#allocation57_spill] sm:$0xff] }
 0x424   : > { %1273 = vrot.lane.b32.xlu0 %v1220_v24, %s20266_s15  ;;  %v869_v14 = vsel %vm867_vm2, %v20439_v21, %v20438_v54  ;;  %v3127_v16 = vmul.f32 %v14598_v9, %v13566_v34  ;;  %v767_v50 = vadd.f32 %v734_v37, %v631_v55  ;;  %v773_v29 = vadd.f32 %v739_v12, %v637_v46  ;;  %v20445_v61 = vld [vmem:[#allocation80_spill] sm:$0xff]  ;;  %v20446_v46 = vld [vmem:[#allocation86_spill] sm:$0xff]  ;;  %v20455_v21 = vld [vmem:[#allocation73_spill] sm:$0xff]  ;;  %s20472_s15 = smov 125  }
 0x425   : > { %v15712_v51 = vpop.permute.xlu0 %2077  ;;  %v870_v24 = vsel %vm867_vm2, %v20438_v54, %v20441_v15  ;;  %v875_v25 = vsel %vm867_vm2, %v20443_v59, %v20442_v20  ;;  %v774_v1 = vadd.f32 %v740_v4, %v638_v43  ;;  %v15730_v37 = vmul.f32 %v14032_v10, %v14933_v3  ;;  %v20447_v54 = vld [vmem:[#allocation84_spill] sm:$0xff]  ;;  %v20453_v15 = vld [vmem:[#allocation97_spill] sm:$0xff] }
 0x426   : > { %20440 = vst [vmem:[#allocation52_spill] sm:$0xff] %v15712_v51  ;;  %v15722_v60 = vpop.permute.xlu1 %1947  ;;  %v876_v51 = vsel %vm867_vm2, %v20442_v20, %v20445_v61  ;;  %v902_v55 = vadd.f32 %v869_v14, %v766_v30  ;;  %v1005_v12 = vsel %vm19949_vm3, %v20447_v54, %v20446_v46  ;;  %v1006_v4 = vsel %vm19949_vm3, %v20446_v46, %v20448_v45  ;;  %v20449_v43 = vld [vmem:[#allocation68_spill] sm:$0xff]  ;;  %v20454_v46 = vld [vmem:[#allocation95_spill] sm:$0xff] }
 0x427   : > { %20444 = vst [vmem:[#allocation41_spill] sm:$0xff] %v15722_v60  ;;  %3184 = vrot.lane.b32.xlu1 %v3127_v16, %s20381_s14  ;;  %v20450_v60 = vld [vmem:[#allocation90_spill] sm:$0xff]  ;;  %v903_v16 = vadd.f32 %v870_v24, %v767_v50  ;;  %v909_v61 = vadd.f32 %v875_v25, %v773_v29  ;;  %v20451_v59 = vld [vmem:[#allocation92_spill] sm:$0xff]  ;;  %v3129_v30 = vmul.f32 %v14598_v9, %v13551_v28  ;;  %v20456_v50 = vld [vmem:[#allocation77_spill] sm:$0xff] }
 0x428   : > { %v1011_v20 = vsel %vm19949_vm3, %v20450_v60, %v20449_v43  ;;  %3164 = vrot.lane.b32.xlu0 %v3117_v8, %s20381_s14  ;;  %v1012_v14 = vsel %vm19949_vm3, %v20449_v43, %v20451_v59  ;;  %v910_v54 = vadd.f32 %v876_v51, %v774_v1  ;;  %v1141_v45 = vsel %vm1139_vm4, %v20454_v46, %v20453_v15  ;;  %v20457_v29 = vld [vmem:[#allocation101_spill] sm:$0xff]  ;;  %v20459_v1 = vld [vmem:[#allocation103_spill] sm:$0xff] }
 0x429   : > { %v15745_v10 = vpop.permute.xlu0 %2627  ;;  %v1142_v8 = vsel %vm1139_vm4, %v20453_v15, %v20455_v21  ;;  %v1147_v24 = vsel %vm1139_vm4, %v20457_v29, %v20456_v50  ;;  %v1038_v43 = vadd.f32 %v1005_v12, %v902_v55  ;;  %v1045_v59 = vadd.f32 %v1011_v20, %v909_v61  ;;  %v20460_v46 = vld [vmem:[#allocation109_spill] sm:$0xff]  ;;  %v20461_v60 = vld [vmem:[#allocation107_spill] sm:$0xff]  ;;  %v20482_v29 = vld [vmem:[#allocation136_spill] sm:$0xff] }
 0x42a   : > { %20452 = vst [vmem:[#allocation63_spill] sm:$0xff] %v15745_v10  ;;  %v15758_v25 = vpop.permute.xlu1 %1951  ;;  %v1039_v10 = vadd.f32 %v1006_v4, %v903_v16  ;;  %v1046_v51 = vadd.f32 %v1012_v14, %v910_v54  ;;  %v1148_v9 = vsel %vm1139_vm4, %v20456_v50, %v20459_v1  ;;  %v1277_v15 = vsel %vm19945_vm5, %v20461_v60, %v20460_v46  ;;  %v20462_v61 = vld [vmem:[#allocation85_spill] sm:$0xff]  ;;  %v20468_v60 = vld [vmem:[#allocation119_spill] sm:$0xff] }
 0x42b   : > { %20458 = vst [vmem:[#allocation49_spill] sm:$0xff] %v15758_v25  ;;  %3188 = vrot.lane.b32.xlu1 %v3129_v30, %s20381_s14  ;;  %v1174_v25 = vadd.f32 %v1141_v45, %v1038_v43  ;;  %v1181_v12 = vadd.f32 %v1147_v24, %v1045_v59  ;;  %v1278_v4 = vsel %vm19945_vm5, %v20460_v46, %v20462_v61  ;;  %v20464_v20 = vld [vmem:[#allocation89_spill] sm:$0xff]  ;;  %v20466_v30 = vld [vmem:[#allocation115_spill] sm:$0xff]  ;;  %v20470_v59 = vld [vmem:[#allocation228_spill] sm:$0xff] }
 0x42c   : > { %3178 = vrot.lane.b32.xlu0 %v15640_v56, %s20381_s14  ;;  %v1175_v55 = vadd.f32 %v1142_v8, %v1039_v10  ;;  %v20465_v16 = vld [vmem:[#allocation113_spill] sm:$0xff]  ;;  %v1284_v50 = vsel %vm19945_vm5, %v20464_v20, %v20466_v30  ;;  %v3731_v10 = vmul.f32 %v20470_v59, %v13566_v34  ;;  %v1182_v46 = vadd.f32 %v1148_v9, %v1046_v51  ;;  %v20471_v24 = vld [vmem:[#allocation98_spill] sm:$0xff]  ;;  %v20476_v61 = vld [vmem:[#allocation132_spill] sm:$0xff] }
 0x42d   : > { %v15772_v54 = vpop.permute.xlu0 %2631  ;;  %v1283_v14 = vsel %vm19945_vm5, %v20465_v16, %v20464_v20  ;;  %v20467_v1 = vld [vmem:[#allocation121_spill] sm:$0xff]  ;;  %v1310_v8 = vadd.f32 %v1277_v15, %v1174_v25  ;;  %v20475_v16 = vld [vmem:[#allocation127_spill] sm:$0xff]  ;;  %v20477_v9 = vld [vmem:[#allocation130_spill] sm:$0xff] }
 0x42e   : > { %20463 = vst [vmem:[#allocation74_spill] sm:$0xff] %v15772_v54  ;;  %v1413_v45 = vsel %vm19950_vm6, %v20468_v60, %v20467_v1  ;;  %v15783_v56 = vpop.permute.xlu1 %1521  ;;  %v1414_v43 = vsel %vm19950_vm6, %v20467_v1, %v20471_v24  ;;  %v1311_v20 = vadd.f32 %v1278_v4, %v1175_v55  ;;  %v20473_v54 = vld [vmem:[#allocation102_spill] sm:$0xff]  ;;  %v20474_v30 = vld [vmem:[#allocation125_spill] sm:$0xff]  ;;  %v1549_v25 = vsel %vm19944_vm7, %v20477_v9, %v20476_v61  ;;  %v20479_v24 = vld [vmem:[#allocation108_spill] sm:$0xff] }
 0x42f   : > { %20469 = vst [vmem:[#allocation57_spill] sm:$0xff] %v15783_v56  ;;  %865 = vrot.lane.b32.xlu1 %v15623_v11, %s20472_s15  ;;  %v1419_v60 = vsel %vm19950_vm6, %v20474_v30, %v20473_v54  ;;  %v1420_v56 = vsel %vm19950_vm6, %v20473_v54, %v20475_v16  ;;  %v1317_v51 = vadd.f32 %v1283_v14, %v1181_v12  ;;  %v20481_v30 = vld [vmem:[#allocation112_spill] sm:$0xff]  ;;  %v20483_v16 = vld [vmem:[#allocation138_spill] sm:$0xff] }
 0x430   : > { %3788 = vrot.lane.b32.xlu0 %v3731_v10, %s20478_s22  ;;  %v1318_v1 = vadd.f32 %v1284_v50, %v1182_v46  ;;  %v1446_v15 = vadd.f32 %v1413_v45, %v1310_v8  ;;  %v1550_v11 = vsel %vm19944_vm7, %v20476_v61, %v20479_v24  ;;  %v1447_v4 = vadd.f32 %v1414_v43, %v1311_v20  ;;  %v20485_v45 = vld [vmem:[#allocation144_spill] sm:$0xff]  ;;  %v20486_v46 = vld [vmem:[#allocation142_spill] sm:$0xff] }
 0x431   : > { %v15805_v55 = vpop.permute.xlu0 %2201  ;;  %v1555_v54 = vsel %vm19944_vm7, %v20482_v29, %v20481_v30  ;;  %v1556_v9 = vsel %vm19944_vm7, %v20481_v30, %v20483_v16  ;;  %v3733_v12 = vmul.f32 %v20470_v59, %v13551_v28  ;;  %v1453_v14 = vadd.f32 %v1419_v60, %v1317_v51  ;;  %v20487_v20 = vld [vmem:[#allocation120_spill] sm:$0xff]  ;;  %v20490_v29 = vld [vmem:[#allocation150_spill] sm:$0xff] }
 0x432   : > { %20480 = vst [vmem:[#allocation86_spill] sm:$0xff] %v15805_v55  ;;  %v15813_v10 = vpop.permute.xlu1 %2081  ;;  %v1454_v50 = vadd.f32 %v1420_v56, %v1318_v1  ;;  %v1582_v61 = vadd.f32 %v1549_v25, %v1446_v15  ;;  %v1685_v8 = vsel %vm19946_vm8, %v20486_v46, %v20485_v45  ;;  %v1583_v43 = vadd.f32 %v1550_v11, %v1447_v4  ;;  %v20488_v55 = vld [vmem:[#allocation124_spill] sm:$0xff]  ;;  %v20492_v1 = vld [vmem:[#allocation154_spill] sm:$0xff] }
 0x433   : > { %20484 = vst [vmem:[#allocation68_spill] sm:$0xff] %v15813_v10  ;;  %2745 = vrot.lane.b32.xlu1 %v15633_v7, %s20350_s1  ;;  %v1686_v30 = vsel %vm19946_vm8, %v20485_v45, %v20487_v20  ;;  %v20489_v10 = vld [vmem:[#allocation148_spill] sm:$0xff]  ;;  %v1692_v60 = vsel %vm19946_vm8, %v20488_v55, %v20490_v29  ;;  %v1589_v56 = vadd.f32 %v1555_v54, %v1453_v14  ;;  %v20494_v45 = vld [vmem:[#allocation131_spill] sm:$0xff]  ;;  %v20514_v20 = vld [vmem:[#allocation185_spill] sm:$0xff] }
 0x434   : > { %v1691_v16 = vsel %vm19946_vm8, %v20489_v10, %v20488_v55  ;;  %3792 = vrot.lane.b32.xlu0 %v3733_v12, %s20478_s22  ;;  %v1590_v25 = vadd.f32 %v1556_v9, %v1454_v50  ;;  %v20491_v51 = vld [vmem:[#allocation156_spill] sm:$0xff]  ;;  %v3278_v11 = vmul.f32 %v14659_v48, %v13566_v34  ;;  %v1718_v4 = vadd.f32 %v1685_v8, %v1582_v61  ;;  %v20496_v14 = vld [vmem:[#allocation135_spill] sm:$0xff] }
 0x435   : > { %v1821_v7 = vsel %vm19904_vm9, %v20492_v1, %v20491_v51  ;;  %v15835_v15 = vpop.permute.xlu0 %2761  ;;  %v1822_v10 = vsel %vm19904_vm9, %v20491_v51, %v20494_v45  ;;  %v1719_v54 = vadd.f32 %v1686_v30, %v1583_v43  ;;  %v1725_v9 = vadd.f32 %v1691_v16, %v1589_v56  ;;  %v20497_v50 = vld [vmem:[#allocation160_spill] sm:$0xff]  ;;  %v20498_v1 = vld [vmem:[#allocation162_spill] sm:$0xff]  ;;  %v20499_v8 = vld [vmem:[#allocation167_spill] sm:$0xff] }
 0x436   : > { %20493 = vst [vmem:[#allocation97_spill] sm:$0xff] %v15835_v15  ;;  %v15842_v55 = vpop.permute.xlu1 %2085  ;;  %v1726_v12 = vadd.f32 %v1692_v60, %v1590_v25  ;;  %v1827_v29 = vsel %vm19904_vm9, %v20497_v50, %v20496_v14  ;;  %v1854_v15 = vadd.f32 %v1821_v7, %v1718_v4  ;;  %v1828_v61 = vsel %vm19904_vm9, %v20496_v14, %v20498_v1  ;;  %v20500_v51 = vld [vmem:[#allocation165_spill] sm:$0xff]  ;;  %v20501_v16 = vld [vmem:[#allocation151_spill] sm:$0xff] }
 0x437   : > { %20495 = vst [vmem:[#allocation73_spill] sm:$0xff] %v15842_v55  ;;  %3335 = vrot.lane.b32.xlu1 %v3278_v11, %s20392_s21  ;;  %v1957_v45 = vsel %vm19901_vm10, %v20500_v51, %v20499_v8  ;;  %v2840_v43 = vmul.f32 %v20501_v16, %v14933_v3  ;;  %v1855_v30 = vadd.f32 %v1822_v10, %v1719_v54  ;;  %v20502_v60 = vld [vmem:[#allocation141_spill] sm:$0xff]  ;;  %v20504_v7 = vld [vmem:[#allocation171_spill] sm:$0xff]  ;;  %v20508_v54 = vld [vmem:[#allocation186_spill] sm:$0xff]  ;;  %vm3196_vm9 = vcmask 130048  }
 0x438   : > { %1409 = vrot.lane.b32.xlu0 %v15656_v53, %s20271_s16  ;;  %v1958_v56 = vsel %vm19901_vm10, %v20499_v8, %v20502_v60  ;;  %v20503_v25 = vld [vmem:[#allocation145_spill] sm:$0xff]  ;;  %v3280_v14 = vmul.f32 %v14659_v48, %v13551_v28  ;;  %v1861_v55 = vadd.f32 %v1827_v29, %v1725_v9  ;;  %v3268_v8 = vmul.f32 %v20508_v54, %v14933_v3  ;;  %v20509_v51 = vld [vmem:[#allocation179_spill] sm:$0xff]  ;;  %s20526_s16 = smov 124  }
 0x439   : > { %v1963_v11 = vsel %vm19901_vm10, %v20504_v7, %v20503_v25  ;;  %v15864_v4 = vpop.permute.xlu0 %2765  ;;  %v20506_v1 = vld [vmem:[#allocation173_spill] sm:$0xff]  ;;  %v1862_v16 = vadd.f32 %v1828_v61, %v1726_v12  ;;  %v1990_v60 = vadd.f32 %v1957_v45, %v1854_v15  ;;  %v1991_v9 = vadd.f32 %v1958_v56, %v1855_v30  ;;  %v20513_v48 = vld [vmem:[#allocation183_spill] sm:$0xff] }
 0x43a   : > { %20505 = vst [vmem:[#allocation77_spill] sm:$0xff] %v15864_v4  ;;  %v1964_v53 = vsel %vm19901_vm10, %v20503_v25, %v20506_v1  ;;  %v15871_v10 = vpop.permute.xlu1 %2079  ;;  %v20510_v7 = vld [vmem:[#allocation177_spill] sm:$0xff]  ;;  %v1997_v25 = vadd.f32 %v1963_v11, %v1861_v55  ;;  %v20515_v12 = vld [vmem:[#allocation191_spill] sm:$0xff]  ;;  %vm19912_vm10 = vcmask 343040  }
 0x43b   : > { %20507 = vst [vmem:[#allocation109_spill] sm:$0xff] %v15871_v10  ;;  %v2093_v4 = vsel %vm19903_vm11, %v20510_v7, %v20509_v51  ;;  %v20511_v50 = vld [vmem:[#allocation153_spill] sm:$0xff]  ;;  %3339 = vrot.lane.b32.xlu1 %v3280_v14, %s20392_s21  ;;  %v1998_v45 = vadd.f32 %v1964_v53, %v1862_v16  ;;  %v20519_v14 = vld [vmem:[#allocation170_spill] sm:$0xff] }
 0x43c   : > { %v2094_v29 = vsel %vm19903_vm11, %v20509_v51, %v20511_v50  ;;  %v20512_v1 = vld [vmem:[#allocation157_spill] sm:$0xff]  ;;  %3315 = vrot.lane.b32.xlu0 %v3268_v8, %s20392_s21  ;;  %v20517_v51 = vld [vmem:[#allocation166_spill] sm:$0xff]  ;;  %v2126_v56 = vadd.f32 %v2093_v4, %v1990_v60  ;;  %v20523_v50 = vld [vmem:[#allocation203_spill] sm:$0xff] }
 0x43d   : > { %v2099_v10 = vsel %vm19903_vm11, %v20513_v48, %v20512_v1  ;;  %v2100_v15 = vsel %vm19903_vm11, %v20512_v1, %v20514_v20  ;;  %v20516_v61 = vld [vmem:[#allocation189_spill] sm:$0xff]  ;;  %v2230_v30 = vsel %vm19902_vm12, %v20515_v12, %v20517_v51  ;;  %v15895_v55 = vpop.permute.xlu0 %2759  ;;  %v2127_v11 = vadd.f32 %v2094_v29, %v1991_v9  ;;  %v20520_v48 = vld [vmem:[#allocation195_spill] sm:$0xff]  ;;  %v20525_v51 = vld [vmem:[#allocation176_spill] sm:$0xff] }
 0x43e   : > { %v2229_v7 = vsel %vm19902_vm12, %v20516_v61, %v20515_v12  ;;  %20518 = vst [vmem:[#allocation89_spill] sm:$0xff] %v15895_v55  ;;  %v2235_v1 = vsel %vm19902_vm12, %v20520_v48, %v20519_v14  ;;  %v20521_v20 = vld [vmem:[#allocation197_spill] sm:$0xff]  ;;  %v15903_v8 = vpop.permute.xlu1 %1669  ;;  %v2133_v16 = vadd.f32 %v2099_v10, %v1997_v25  ;;  %v2134_v61 = vadd.f32 %v2100_v15, %v1998_v45  ;;  %v20527_v9 = vld [vmem:[#allocation180_spill] sm:$0xff]  ;;  %v20528_v55 = vld [vmem:[#allocation207_spill] sm:$0xff] }
 0x43f   : > { %v2236_v53 = vsel %vm19902_vm12, %v20519_v14, %v20521_v20  ;;  %20522 = vst [vmem:[#allocation121_spill] sm:$0xff] %v15903_v8  ;;  %v20524_v54 = vld [vmem:[#allocation201_spill] sm:$0xff]  ;;  %v2366_v60 = vsel %vm19907_vm13, %v20523_v50, %v20525_v51  ;;  %1001 = vrot.lane.b32.xlu1 %v15699_v23, %s20526_s16  ;;  %v2262_v4 = vadd.f32 %v2229_v7, %v2126_v56  ;;  %vm2907_vm12 = vcmask 334848   ;;  %v20529_v15 = vld [vmem:[#allocation188_spill] sm:$0xff]  ;;  %v20530_v45 = vld [vmem:[#allocation214_spill] sm:$0xff] }
 0x440   : > { %v2365_v12 = vsel %vm19907_vm13, %v20524_v54, %v20523_v50  ;;  %v2263_v29 = vadd.f32 %v2230_v30, %v2127_v11  ;;  %v2371_v14 = vsel %vm19907_vm13, %v20528_v55, %v20527_v9  ;;  %3329 = vrot.lane.b32.xlu0 %v15644_v47, %s20392_s21  ;;  %v2269_v10 = vadd.f32 %v2235_v1, %v2133_v16  ;;  %v20532_v30 = vld [vmem:[#allocation208_spill] sm:$0xff]  ;;  %v20534_v47 = vld [vmem:[#allocation198_spill] sm:$0xff]  ;;  %v20547_v55 = vld [vmem:[#allocation231_spill] sm:$0xff] }
 0x441   : > { %v2270_v25 = vadd.f32 %v2236_v53, %v2134_v61  ;;  %v2502_v20 = vsel %vm19909_vm14, %v20530_v45, %v20529_v15  ;;  %vm3043_vm11 = vcmask 326656   ;;  %v15921_v50 = vpop.permute.xlu0 %2349  ;;  %v2398_v23 = vadd.f32 %v2365_v12, %v2262_v4  ;;  %v20535_v53 = vld [vmem:[#allocation212_spill] sm:$0xff]  ;;  %v20537_v15 = vld [vmem:[#allocation217_spill] sm:$0xff] }
 0x442   : > { %20531 = vst [vmem:[#allocation228_spill] sm:$0xff] %v15921_v50  ;;  %v2399_v7 = vadd.f32 %v2366_v60, %v2263_v29  ;;  %v2372_v56 = vsel %vm19907_vm13, %v20527_v9, %v20532_v30  ;;  %v15926_v11 = vpop.permute.xlu1 %2219  ;;  %v3427_v1 = vmul.f32 %v20534_v47, %v15615_v57  ;;  %v2405_v61 = vadd.f32 %v2371_v14, %v2269_v10  ;;  %v20536_v8 = vld [vmem:[#allocation192_spill] sm:$0xff]  ;;  %v20539_v4 = vld [vmem:[#allocation225_spill] sm:$0xff]  ;;  %v20540_v30 = vld [vmem:[#allocation219_spill] sm:$0xff] }
 0x443   : > { %20533 = vst [vmem:[#allocation102_spill] sm:$0xff] %v15926_v11  ;;  %v2501_v16 = vsel %vm19909_vm14, %v20535_v53, %v20530_v45  ;;  %v2507_v12 = vsel %vm19909_vm14, %v20537_v15, %v20536_v8  ;;  %v20538_v60 = vld [vmem:[#allocation200_spill] sm:$0xff]  ;;  %2881 = vrot.lane.b32.xlu1 %v2840_v43, %s20361_s6  ;;  %v2508_v50 = vsel %vm19909_vm14, %v20536_v8, %v20540_v30  ;;  %vm3347_vm13 = vcmask 121856   ;;  %v20541_v11 = vld [vmem:[#allocation223_spill] sm:$0xff]  ;;  %v20544_v8 = vld [vmem:[#allocation209_spill] sm:$0xff] }
 0x444   : > { %v2638_v29 = vsel %vm19911_vm15, %v20539_v4, %v20538_v60  ;;  %v2535_v9 = vadd.f32 %v2502_v20, %v2399_v7  ;;  %1545 = vrot.lane.b32.xlu0 %v15707_v19, %s20279_s18  ;;  %v3429_v14 = vmul.f32 %v14719_v44, %v13566_v34  ;;  %v3431_v10 = vmul.f32 %v14719_v44, %v13551_v28  ;;  %v20542_v20 = vld [vmem:[#allocation204_spill] sm:$0xff]  ;;  %v20543_v7 = vld [vmem:[#allocation229_spill] sm:$0xff] }
 0x445   : > { %v2406_v45 = vadd.f32 %v2372_v56, %v2270_v25  ;;  %v2637_v43 = vsel %vm19911_vm15, %v20541_v11, %v20539_v4  ;;  %v2643_v60 = vsel %vm19911_vm15, %v20543_v7, %v20542_v20  ;;  %v20545_v30 = vld [vmem:[#allocation237_spill] sm:$0xff]  ;;  %v15958_v19 = vpop.permute.xlu0 %2899  ;;  %v2534_v15 = vadd.f32 %v2501_v16, %v2398_v23  ;;  %v20549_v11 = vld [vmem:[#allocation235_spill] sm:$0xff] }
 0x446   : > { %v2774_v47 = vsel %vm19912_vm10, %v20545_v30, %v20544_v8  ;;  %20546 = vst [vmem:[#allocation132_spill] sm:$0xff] %v15958_v19  ;;  %v2541_v53 = vadd.f32 %v2507_v12, %v2405_v61  ;;  %v2671_v51 = vadd.f32 %v2638_v29, %v2535_v9  ;;  %v2644_v25 = vsel %vm19911_vm15, %v20542_v20, %v20547_v55  ;;  %v15963_v56 = vpop.permute.xlu1 %2223  ;;  %v20550_v54 = vld [vmem:[#allocation213_spill] sm:$0xff]  ;;  %v20552_v19 = vld [vmem:[#allocation220_spill] sm:$0xff]  ;;  %v20553_v29 = vld [vmem:[#allocation243_spill] sm:$0xff] }
 0x447   : > { %vm3498_vm14 = vcmask 113664   ;;  %20548 = vst [vmem:[#allocation108_spill] sm:$0xff] %v15963_v56  ;;  %v2542_v4 = vadd.f32 %v2508_v50, %v2406_v45  ;;  %v2773_v7 = vsel %vm19912_vm10, %v20549_v11, %v20545_v30  ;;  %v20551_v48 = vld [vmem:[#allocation241_spill] sm:$0xff]  ;;  %v2910_v23 = vsel %vm2907_vm12, %v14937_v5, %v20552_v19  ;;  %3486 = vrot.lane.b32.xlu1 %v3429_v14, %s20403_s24  ;;  %v20554_v45 = vld [vmem:[#allocation247_spill] sm:$0xff]  ;;  %v20555_v55 = vld [vmem:[#allocation230_spill] sm:$0xff] }
 0x448   : > { %v2779_v8 = vsel %vm19912_vm10, %v20551_v48, %v20550_v54  ;;  %v2670_v61 = vadd.f32 %v2637_v43, %v2534_v15  ;;  %v2677_v16 = vadd.f32 %v2643_v60, %v2541_v53  ;;  %v2807_v12 = vadd.f32 %v2774_v47, %v2671_v51  ;;  %3468 = vrot.lane.b32.xlu0 %v15648_v62, %s20403_s24  ;;  %v20558_v14 = vld [vmem:[#allocation224_spill] sm:$0xff]  ;;  %v20559_v43 = vld [vmem:[#allocation254_spill] sm:$0xff] }
 0x449   : > { %v3428_v50 = vmul.f32 %v14719_v44, %v13585_v42  ;;  %v2678_v30 = vadd.f32 %v2644_v25, %v2542_v4  ;;  %v2780_v9 = vsel %vm19912_vm10, %v20550_v54, %v20553_v29  ;;  %v2909_v20 = vsel %vm2907_vm12, %v20554_v45, %v14937_v5  ;;  %v15988_v51 = vpop.permute.xlu0 %2903  ;;  %v20560_v4 = vld [vmem:[#allocation240_spill] sm:$0xff] }
 0x44a   : > { %v3046_v15 = vsel %vm3043_vm11, %v14995_v38, %v20555_v55  ;;  %20556 = vst [vmem:[#allocation112_spill] sm:$0xff] %v15988_v51  ;;  %v2806_v47 = vadd.f32 %v2773_v7, %v2670_v61  ;;  %v2813_v62 = vadd.f32 %v2779_v8, %v2677_v16  ;;  %v2943_v53 = vadd.f32 %v2910_v23, %v2807_v12  ;;  %v15990_v60 = vpop.permute.xlu1 %1793  ;;  %v3857_v16 = vld [vmem:[%s19498_s2 + $0x10] sm:$0xf]  ;;  %v20561_v12 = vld [vmem:[#allocation234_spill] sm:$0xff]  ;;  %v20568_v51 = vld [vmem:[#allocation249_spill] sm:$0xff] }
 0x44b   : > { %vm3649_vm15 = vcmask 105472   ;;  %20557 = vst [vmem:[#allocation144_spill] sm:$0xff] %v15990_v60  ;;  %v2915_v54 = vsel %vm2907_vm12, %v14957_v49, %v20558_v14  ;;  %v2916_v5 = vsel %vm2907_vm12, %v20558_v14, %v20559_v43  ;;  %v3045_v25 = vsel %vm3043_vm11, %v14985_v52, %v14995_v38  ;;  %3490 = vrot.lane.b32.xlu1 %v3431_v10, %s20403_s24  ;;  %v20562_v10 = vld [vmem:[#allocation238_spill] sm:$0xff]  ;;  %v20566_v60 = vld [vmem:[#allocation244_spill] sm:$0xff] }
 0x44c   : > { %v3199_v7 = vsel %vm3196_vm9, %v15045_v33, %v20560_v4  ;;  %v2814_v8 = vadd.f32 %v2780_v9, %v2678_v30  ;;  %v2942_v23 = vadd.f32 %v2909_v20, %v2806_v47  ;;  %v3079_v61 = vadd.f32 %v3046_v15, %v2943_v53  ;;  %3482 = vrot.lane.b32.xlu0 %v3427_v1, %s20403_s24  ;;  %v20563_v9 = vld [vmem:[#allocation250_spill] sm:$0xff] }
 0x44d   : > { %vm3800_vm10 = vcmask 97280   ;;  %v3051_v38 = vsel %vm3043_vm11, %v15015_v26, %v20561_v12  ;;  %v3052_v14 = vsel %vm3043_vm11, %v20561_v12, %v15025_v58  ;;  %v3198_v30 = vsel %vm3196_vm9, %v20562_v10, %v15045_v33  ;;  %v16021_v20 = vpop.permute.xlu0 %2895  ;;  %v20567_v58 = vld [vmem:[#allocation271_spill] sm:$0xff] }
 0x44e   : > { %v3350_v1 = vsel %vm3347_vm13, %v15095_v63, %v20563_v9  ;;  %20564 = vst [vmem:[#allocation142_spill] sm:$0xff] %v16021_v20  ;;  %v2949_v15 = vadd.f32 %v2915_v54, %v2813_v62  ;;  %v2950_v47 = vadd.f32 %v2916_v5, %v2814_v8  ;;  %v3078_v53 = vadd.f32 %v3045_v25, %v2942_v23  ;;  %v16023_v29 = vpop.permute.xlu1 %2353  ;;  %v20569_v9 = vld [vmem:[#allocation258_spill] sm:$0xff]  ;;  %v20570_v8 = vld [vmem:[#allocation253_spill] sm:$0xff] }
 0x44f   : > { %v3235_v43 = vadd.f32 %v3199_v7, %v3079_v61  ;;  %20565 = vst [vmem:[#allocation124_spill] sm:$0xff] %v16023_v29  ;;  %v3205_v12 = vsel %vm3196_vm9, %v15065_v27, %v20566_v60  ;;  %v3206_v33 = vsel %vm3196_vm9, %v20566_v60, %v20567_v58  ;;  %v3349_v56 = vsel %vm3347_vm13, %v20568_v51, %v15095_v63  ;;  %v20571_v23 = vld [vmem:[#allocation257_spill] sm:$0xff] }
 0x450   : > { %v3501_v62 = vsel %vm3498_vm14, %v15145_v36, %v20569_v9  ;;  %3870 = vperm.xlu1 %12413, %v3857_v16   ;;  %v3085_v54 = vadd.f32 %v3051_v38, %v2949_v15  ;;  %v3086_v5 = vadd.f32 %v3052_v14, %v2950_v47  ;;  %v3234_v25 = vadd.f32 %v3198_v30, %v3078_v53  ;;  %v20572_v16 = vld [vmem:[#allocation266_spill] sm:$0xff]  ;;  %v20575_v47 = vld [vmem:[#allocation261_spill] sm:$0xff] }
 0x451   : > { %v3386_v7 = vadd.f32 %v3350_v1, %v3235_v43  ;;  %3617 = vrot.lane.b32.xlu0 %v15660_v18, %s20414_s13  ;;  %v3356_v60 = vsel %vm3347_vm13, %v15115_v35, %v20570_v8  ;;  %v3357_v63 = vsel %vm3347_vm13, %v20570_v8, %v15125_v0  ;;  %v3500_v61 = vsel %vm3498_vm14, %v20571_v23, %v15145_v36  ;;  %v16051_v43 = vpop.permute.xlu0 %2485  ;;  %v20576_v0 = vld [vmem:[#allocation274_spill] sm:$0xff] }
 0x452   : > { %v3652_v38 = vsel %vm3649_vm15, %v20572_v16, %v15215_v41  ;;  %20573 = vst [vmem:[#allocation156_spill] sm:$0xff] %v16051_v43  ;;  %v3241_v14 = vadd.f32 %v3205_v12, %v3085_v54  ;;  %v3242_v18 = vadd.f32 %v3206_v33, %v3086_v5  ;;  %v3385_v30 = vadd.f32 %v3349_v56, %v3234_v25  ;;  %v16053_v15 = vpop.permute.xlu1 %2357  ;;  %v20577_v5 = vld [vmem:[#allocation297_spill] sm:$0xff] }
 0x453   : > { %v3537_v1 = vadd.f32 %v3501_v62, %v3386_v7  ;;  %20574 = vst [vmem:[#allocation135_spill] sm:$0xff] %v16053_v15  ;;  %v3507_v53 = vsel %vm3498_vm14, %v15165_v39, %v20575_v47  ;;  %v3508_v36 = vsel %vm3498_vm14, %v20575_v47, %v15175_v31  ;;  %v3651_v8 = vsel %vm3649_vm15, %v15205_v40, %v20572_v16  ;;  %v20578_v25 = vld [vmem:[#allocation269_spill] sm:$0xff]  ;;  %v20579_v47 = vld [vmem:[#allocation270_spill] sm:$0xff] }
 0x454   : > { %v3803_v12 = vsel %vm3800_vm10, %v20576_v0, %v15265_v32  ;;  %3484 = vrot.lane.b32.xlu1 %v3428_v50, %s20403_s24  ;;  %v3392_v56 = vadd.f32 %v3356_v60, %v3241_v14  ;;  %v3393_v33 = vadd.f32 %v3357_v63, %v3242_v18  ;;  %v3536_v62 = vadd.f32 %v3500_v61, %v3385_v30  ;;  %v20580_v31 = vld [vmem:[#allocation301_spill] sm:$0xff]  ;;  %v20582_v60 = vld [vmem:[#allocation164_spill] sm:$0xff]  ;;  %v20584_v30 = vld [vmem:[#allocation306_spill] sm:$0xff] }
 0x455   : > { %v3688_v54 = vadd.f32 %v3652_v38, %v3537_v1  ;;  %3631 = vrot.lane.b32.xlu0 %v15664_v17, %s20414_s13  ;;  %v3658_v7 = vsel %vm3649_vm15, %v20578_v25, %v20577_v5  ;;  %v3659_v16 = vsel %vm3649_vm15, %v20577_v5, %v20579_v47  ;;  %v3802_v58 = vsel %vm3800_vm10, %v20580_v31, %v20576_v0  ;;  %v16079_v50 = vpop.permute.xlu0 %3035  ;;  %v20585_v1 = vld [vmem:[#allocation277_spill] sm:$0xff]  ;;  %v20586_v5 = vld [vmem:[#allocation278_spill] sm:$0xff] }
 0x456   : > { %20581 = vst [vmem:[#allocation167_spill] sm:$0xff] %v16079_v50  ;;  %v2982_v63 = vmul.f32 %v20582_v60, %v14933_v3  ;;  %v3543_v61 = vadd.f32 %v3507_v53, %v3392_v56  ;;  %v3544_v38 = vadd.f32 %v3508_v36, %v3393_v33  ;;  %v3687_v17 = vadd.f32 %v3651_v8, %v3536_v62  ;;  %v16083_v18 = vpop.permute.xlu1 %2351  ;;  %v20588_v8 = vld [vmem:[#allocation262_spill] sm:$0xff] }
 0x457   : > { %v3839_v14 = vadd.f32 %v3803_v12, %v3688_v54  ;;  %20583 = vst [vmem:[#allocation151_spill] sm:$0xff] %v16083_v18  ;;  %v3809_v43 = vsel %vm3800_vm10, %v20585_v1, %v20584_v30  ;;  %v3810_v47 = vsel %vm3800_vm10, %v20584_v30, %v20586_v5  ;;  %v3581_v36 = vmul.f32 %v14769_v22, %v13662_v2  ;;  %v20591_v54 = vld [vmem:[#allocation218_spill] sm:$0xff]  ;;  %v20600_v30 = vld [vmem:[#allocation51_spill] sm:$0xff] }
 0x458   : > { %3029 = vrot.lane.b32.xlu1 %v2982_v63, %s20371_s27  ;;  %v3694_v0 = vadd.f32 %v3658_v7, %v3543_v61  ;;  %v3695_v20 = vadd.f32 %v3659_v16, %v3544_v38  ;;  %v3838_v50 = vadd.f32 %v3802_v58, %v3687_v17  ;;  %v3722_v7 = vmul.f32 %v20591_v54, %v15615_v57  ;;  %v20599_v17 = vld [vmem:[#allocation35_spill] sm:$0xff] }
 0x459   : > { %1817 = vrot.lane.b32.xlu0 %v15730_v37, %s20292_s23  ;;  %v16094_v53 = vpop.permute.xlu0 %3039  ;;  %v16099_v12 = vadd.f32 %v20588_v8, %v3839_v14  ;;  %v3583_v16 = vmul.f32 %v14769_v22, %v13674_v6  ;;  %v3118_v38 = vmul.f32 %v15615_v57, %v13799_v13  ;;  %v3125_v14 = vmul.f32 %v15615_v57, %v20599_v17  ;;  %v20604_v13 = vld [vmem:[#allocation46_spill] sm:$0xff]  ;;  %v20628_v54 = vld [vmem:[#allocation55_spill] sm:$0xff]  ;;  %s13311_s23 = smov 90  }
 0x45a   : > { %20587 = vst [vmem:[#allocation145_spill] sm:$0xff] %v16094_v53  ;;  %v3845_v56 = vadd.f32 %v3809_v43, %v3694_v0  ;;  %v3846_v33 = vadd.f32 %v3810_v47, %v3695_v20  ;;  %v16101_v62 = vpop.permute.xlu1 %1941  ;;  %v16107_v58 = vadd.f32 %v20588_v8, %v3838_v50  ;;  %v20594_v20 = vld [vmem:[#allocation289_spill] sm:$0xff]  ;;  %v20598_v50 = vld [vmem:[#allocation44_spill] sm:$0xff]  ;;  %v20601_v0 = vld [vmem:[#allocation43_spill] sm:$0xff]  ;;  %v475_v5 = vmul.f32 %v13585_v42, %v20604_v13 }
 0x45b   : > { %20589 = vst [vmem:[#allocation179_spill] sm:$0xff] %v16099_v12  ;;  %20590 = vst [vmem:[#allocation157_spill] sm:$0xff] %v16101_v62  ;;  %v3729_v61 = vmul.f32 %v20598_v50, %v15615_v57  ;;  %v20605_v17 = vld [vmem:[#allocation54_spill] sm:$0xff]  ;;  %v20606_v62 = vld [vmem:[#allocation36_spill] sm:$0xff]  ;;  %v20613_v29 = vmax.f32 %v16099_v12, 0.0 }
 0x45c   : > { %3639 = vrot.lane.b32.xlu1 %v3581_v36, %s20414_s13  ;;  %20592 = vst [vmem:[#allocation191_spill] sm:$0xff] %v16107_v58  ;;  %v16116_v47 = vadd.f32 %v20594_v20, %v3845_v56  ;;  %v16119_v60 = vadd.f32 %v20594_v20, %v3846_v33  ;;  %v596_v36 = vsel %vm595_vm0, %v20601_v0, %v20600_v30  ;;  %v20602_v33 = vld [vmem:[#allocation37_spill] sm:$0xff]  ;;  %v20607_v30 = vld [vmem:[#allocation56_spill] sm:$0xff]  ;;  %v20608_v0 = vld [vmem:[#allocation39_spill] sm:$0xff] }
 0x45d   : > { %3770 = vrot.lane.b32.xlu0 %v3722_v7, %s20478_s22  ;;  %v16110_v37 = vpop.permute.xlu0 %3031  ;;  %v16137_v7 = vmul.f32 %v20602_v33, %v15615_v57  ;;  %v602_v56 = vsel %vm595_vm0, %v20608_v0, %v20607_v30  ;;  %v3579_v33 = vmul.f32 %v14769_v22, %v13585_v42  ;;  %v20610_v53 = vld [vmem:[#allocation60_spill] sm:$0xff]  ;;  %v20621_v12 = vld [vmem:[#allocation71_spill] sm:$0xff] }
 0x45e   : > { %20593 = vst [vmem:[#allocation170_spill] sm:$0xff] %v16110_v37  ;;  %20595 = vst [vmem:[#allocation203_spill] sm:$0xff] %v16116_v47  ;;  %v16121_v63 = vpop.permute.xlu1 %2491  ;;  %v599_v37 = vsel %vm595_vm0, %v20606_v62, %v20605_v17  ;;  %v20612_v62 = vmax.f32 %v16107_v58, 0.0  ;;  %v629_v17 = vadd.f32 %v596_v36, %v475_v5  ;;  %v20614_v8 = vld [vmem:[#allocation48_spill] sm:$0xff]  ;;  %v20617_v58 = vld [vmem:[#allocation65_spill] sm:$0xff] }
 0x45f   : > { %20596 = vst [vmem:[#allocation180_spill] sm:$0xff] %v16119_v60  ;;  %20597 = vst [vmem:[#allocation214_spill] sm:$0xff] %v16121_v63  ;;  %v482_v50 = vmul.f32 %v13566_v34, %v20614_v8  ;;  %v20616_v63 = vld [vmem:[#allocation50_spill] sm:$0xff]  ;;  %v20619_v5 = vld [vmem:[#allocation67_spill] sm:$0xff] }
 0x460   : > { %3643 = vrot.lane.b32.xlu1 %v3583_v16, %s20414_s13  ;;  %v20603_v16 = vld [vmem:[#allocation38_spill] sm:$0xff]  ;;  %v12414_v30 = vpack.i.bf16 %v20613_v29, %v20612_v62  ;;  %v20620_v36 = vld [vmem:[#allocation47_spill] sm:$0xff] }
 0x461   : > { %3784 = vrot.lane.b32.xlu0 %v3729_v61, %s20478_s22  ;;  %v16141_v43 = vmul.f32 %v20603_v16, %v14933_v3  ;;  %v16151_v61 = vpop.permute.xlu0 %2621  ;;  %v601_v16 = vsel %vm595_vm0, %v20610_v53, %v20608_v0  ;;  %v481_v53 = vmul.f32 %v13585_v42, %v20614_v8  ;;  %v20615_v0 = vld [vmem:[#allocation62_spill] sm:$0xff]  ;;  %v738_v62 = vsel %vm731_vm1, %v20620_v36, %v20619_v5  ;;  %v20623_v20 = vld [vmem:[#allocation59_spill] sm:$0xff] }
 0x462   : > { %20609 = vst [vmem:[#allocation192_spill] sm:$0xff] %v16151_v61  ;;  %v16160_v15 = vpop.permute.xlu1 %2495  ;;  %v478_v61 = vmul.f32 %v13551_v28, %v20604_v13  ;;  %v732_v18 = vsel %vm731_vm1, %v20616_v63, %v20615_v0  ;;  %v737_v28 = vsel %vm731_vm1, %v20621_v12, %v20620_v36  ;;  %v20622_v13 = vld [vmem:[#allocation72_spill] sm:$0xff]  ;;  %v20627_v5 = vld [vmem:[#allocation78_spill] sm:$0xff] }
 0x463   : > { %20611 = vst [vmem:[#allocation225_spill] sm:$0xff] %v16160_v15  ;;  %v20618_v15 = vld [vmem:[#allocation45_spill] sm:$0xff]  ;;  %v635_v8 = vadd.f32 %v601_v16, %v481_v53  ;;  %v868_v63 = vsel %vm867_vm2, %v20623_v20, %v20622_v13  ;;  %v874_v32 = vsel %vm867_vm2, %v20628_v54, %v20627_v5  ;;  %v20629_v12 = vld [vmem:[#allocation82_spill] sm:$0xff]  ;;  %v20632_v20 = vmax.f32 %v16119_v60, 0.0 }
 0x464   : > { %3635 = vrot.lane.b32.xlu1 %v3579_v33, %s20414_s13  ;;  %v735_v29 = vsel %vm731_vm1, %v20618_v15, %v20617_v58  ;;  %v632_v34 = vadd.f32 %v599_v37, %v478_v61  ;;  %v636_v33 = vadd.f32 %v602_v56, %v482_v50  ;;  %v20625_v15 = vld [vmem:[#allocation76_spill] sm:$0xff]  ;;  %v20626_v58 = vld [vmem:[#allocation53_spill] sm:$0xff]  ;;  %v873_v37 = vsel %vm867_vm2, %v20629_v12, %v20628_v54  ;;  %v20634_v36 = vld [vmem:[#allocation70_spill] sm:$0xff] }
 0x465   : > { %12415 = vrot.lane.b32.xlu0 %v12414_v30, %s20406_s12  ;;  %v16189_v0 = vpop.permute.xlu0 %3186  ;;  %v871_v31 = vsel %vm867_vm2, %v20626_v58, %v20625_v15  ;;  %v20631_v56 = vmax.f32 %v16116_v47, 0.0  ;;  %v765_v61 = vadd.f32 %v732_v18, %v629_v17  ;;  %v771_v53 = vadd.f32 %v737_v28, %v635_v8  ;;  %v20633_v58 = vld [vmem:[#allocation84_spill] sm:$0xff]  ;;  %v20637_v12 = vld [vmem:[#allocation90_spill] sm:$0xff]  ;;  %v20653_v60 = vld [vmem:[#allocation113_spill] sm:$0xff] }
 0x466   : > { %20624 = vst [vmem:[#allocation204_spill] sm:$0xff] %v16189_v0  ;;  %v16200_v50 = vpop.permute.xlu1 %2065  ;;  %v768_v16 = vadd.f32 %v735_v29, %v632_v34  ;;  %v772_v30 = vadd.f32 %v738_v62, %v636_v33  ;;  %v1004_v5 = vsel %vm19949_vm3, %v20634_v36, %v20633_v58  ;;  %v20635_v0 = vld [vmem:[#allocation88_spill] sm:$0xff]  ;;  %v20641_v29 = vld [vmem:[#allocation95_spill] sm:$0xff]  ;;  %v20644_v58 = vld [vmem:[#allocation101_spill] sm:$0xff] }
 0x467   : > { %20630 = vst [vmem:[#allocation237_spill] sm:$0xff] %v16200_v50  ;;  %v12424_v13 = vpack.i.bf16 %v20632_v20, %v20631_v56  ;;  %v20636_v15 = vld [vmem:[#allocation64_spill] sm:$0xff]  ;;  %v20638_v50 = vld [vmem:[#allocation66_spill] sm:$0xff]  ;;  %v901_v28 = vadd.f32 %v868_v63, %v765_v61  ;;  %v20642_v62 = vld [vmem:[#allocation79_spill] sm:$0xff] }
 0x468   : > { %3166 = vrot.lane.b32.xlu1 %v3118_v38, %s20381_s14  ;;  %v1007_v54 = vsel %vm19949_vm3, %v20636_v15, %v20635_v0  ;;  %v1010_v47 = vsel %vm19949_vm3, %v20638_v50, %v20637_v12  ;;  %v20639_v56 = vld [vmem:[#allocation94_spill] sm:$0xff]  ;;  %v904_v18 = vadd.f32 %v871_v31, %v768_v16  ;;  %v908_v8 = vadd.f32 %v874_v32, %v772_v30  ;;  %v20643_v15 = vld [vmem:[#allocation99_spill] sm:$0xff]  ;;  %v20647_v31 = vld [vmem:[#allocation93_spill] sm:$0xff] }
 0x469   : > { %v1009_v34 = vsel %vm19949_vm3, %v20639_v56, %v20638_v50  ;;  %12425 = vrot.lane.b32.xlu0 %v12424_v13, %s20406_s12  ;;  %v907_v38 = vadd.f32 %v873_v37, %v771_v53  ;;  %v16220_v17 = vpop.permute.xlu0 %3190  ;;  %v1140_v33 = vsel %vm1139_vm4, %v20642_v62, %v20641_v29  ;;  %v1143_v20 = vsel %vm1139_vm4, %v20455_v21, %v20643_v15  ;;  %v20645_v36 = vld [vmem:[#allocation75_spill] sm:$0xff]  ;;  %v20648_v16 = vld [vmem:[#allocation105_spill] sm:$0xff] }
 0x46a   : > { %20640 = vst [vmem:[#allocation235_spill] sm:$0xff] %v16220_v17  ;;  %v1146_v50 = vsel %vm1139_vm4, %v20645_v36, %v20644_v58  ;;  %v16231_v12 = vpop.permute.xlu1 %2625  ;;  %v2036_v32 = vmul.f32 %v20647_v31, %v14933_v3  ;;  %v1037_v63 = vadd.f32 %v1004_v5, %v901_v28  ;;  %v1040_v37 = vadd.f32 %v1007_v54, %v904_v18  ;;  %v20649_v21 = vld [vmem:[#allocation107_spill] sm:$0xff]  ;;  %v20652_v62 = vld [vmem:[#allocation85_spill] sm:$0xff] }
 0x46b   : > { %20646 = vst [vmem:[#allocation213_spill] sm:$0xff] %v16231_v12  ;;  %v1044_v13 = vadd.f32 %v1010_v47, %v908_v8  ;;  %v1043_v61 = vadd.f32 %v1009_v34, %v907_v38  ;;  %v1145_v30 = vsel %vm1139_vm4, %v20648_v16, %v20645_v36  ;;  %v20650_v53 = vld [vmem:[#allocation91_spill] sm:$0xff]  ;;  %v3732_v28 = vmul.f32 %v20470_v59, %v13662_v2  ;;  %v20656_v18 = vld [vmem:[#allocation117_spill] sm:$0xff]  ;;  %v20658_v36 = vld [vmem:[#allocation104_spill] sm:$0xff] }
 0x46c   : > { %3180 = vrot.lane.b32.xlu1 %v3125_v14, %s20381_s14  ;;  %v1276_v56 = vsel %vm19945_vm5, %v20650_v53, %v20649_v21  ;;  %v20651_v29 = vld [vmem:[#allocation111_spill] sm:$0xff]  ;;  %v1173_v47 = vadd.f32 %v1140_v33, %v1037_v63  ;;  %v1176_v14 = vadd.f32 %v1143_v20, %v1040_v37  ;;  %v20662_v20 = vld [vmem:[#allocation116_spill] sm:$0xff]  ;;  %v20725_v12 = vld [vmem:[#allocation166_spill] sm:$0xff] }
 0x46d   : > { %v1279_v58 = vsel %vm19945_vm5, %v20652_v62, %v20651_v29  ;;  %v20654_v31 = vld [vmem:[#allocation87_spill] sm:$0xff]  ;;  %2089 = vrot.lane.b32.xlu0 %v2036_v32, %s20306_s20  ;;  %v1180_v54 = vadd.f32 %v1146_v50, %v1044_v13  ;;  %v16249_v34 = vpop.permute.xlu0 %3182  ;;  %v2308_v50 = vmul.f32 %v20662_v20, %v14933_v3  ;;  %v1179_v63 = vadd.f32 %v1145_v30, %v1043_v61  ;;  %v20663_v62 = vld [vmem:[#allocation125_spill] sm:$0xff]  ;;  %s13314_s20 = smov 80  }
 0x46e   : > { %v1282_v5 = vsel %vm19945_vm5, %v20654_v31, %v20653_v60  ;;  %20655 = vst [vmem:[#allocation241_spill] sm:$0xff] %v16249_v34  ;;  %v1281_v8 = vsel %vm19945_vm5, %v20656_v18, %v20654_v31  ;;  %v20657_v38 = vld [vmem:[#allocation119_spill] sm:$0xff]  ;;  %v20660_v60 = vld [vmem:[#allocation98_spill] sm:$0xff]  ;;  %v16262_v33 = vpop.permute.xlu1 %2629  ;;  %v1309_v37 = vadd.f32 %v1276_v56, %v1173_v47  ;;  %v1312_v13 = vadd.f32 %v1279_v58, %v1176_v14  ;;  %v20664_v31 = vld [vmem:[#allocation100_spill] sm:$0xff] }
 0x46f   : > { %v1412_v16 = vsel %vm19950_vm6, %v20658_v36, %v20657_v38  ;;  %v20659_v21 = vld [vmem:[#allocation123_spill] sm:$0xff]  ;;  %20661 = vst [vmem:[#allocation220_spill] sm:$0xff] %v16262_v33  ;;  %v1316_v53 = vadd.f32 %v1282_v5, %v1180_v54  ;;  %v1418_v18 = vsel %vm19950_vm6, %v20664_v31, %v20663_v62  ;;  %v20665_v38 = vld [vmem:[#allocation129_spill] sm:$0xff]  ;;  %v20667_v34 = vld [vmem:[#allocation114_spill] sm:$0xff]  ;;  %v1315_v30 = vadd.f32 %v1281_v8, %v1179_v63 }
 0x470   : > { %v1415_v32 = vsel %vm19950_vm6, %v20660_v60, %v20659_v21  ;;  %3790 = vrot.lane.b32.xlu1 %v3732_v28, %s20478_s22  ;;  %v1417_v36 = vsel %vm19950_vm6, %v20665_v38, %v20664_v31  ;;  %v20666_v60 = vld [vmem:[#allocation130_spill] sm:$0xff]  ;;  %v1445_v56 = vadd.f32 %v1412_v16, %v1309_v37  ;;  %v3734_v47 = vmul.f32 %v20470_v59, %v13674_v6  ;;  %v20670_v14 = vld [vmem:[#allocation136_spill] sm:$0xff]  ;;  %v20675_v16 = vld [vmem:[#allocation139_spill] sm:$0xff] }
 0x471   : > { %v1548_v17 = vsel %vm19944_vm7, %v20667_v34, %v20666_v60  ;;  %v20668_v33 = vld [vmem:[#allocation134_spill] sm:$0xff]  ;;  %2361 = vrot.lane.b32.xlu0 %v2308_v50, %s20321_s19  ;;  %v1448_v58 = vadd.f32 %v1415_v32, %v1312_v13  ;;  %v16280_v5 = vpop.permute.xlu0 %2757  ;;  %v20672_v34 = vld [vmem:[#allocation140_spill] sm:$0xff]  ;;  %v2580_v32 = vmul.f32 %v20675_v16, %v14933_v3  ;;  %v1452_v63 = vadd.f32 %v1418_v18, %v1316_v53  ;;  %v20682_v16 = vld [vmem:[#allocation137_spill] sm:$0xff]  ;;  %s13317_s19 = smov 77  }
 0x472   : > { %v1551_v61 = vsel %vm19944_vm7, %v20479_v24, %v20668_v33  ;;  %20669 = vst [vmem:[#allocation247_spill] sm:$0xff] %v16280_v5  ;;  %v20671_v54 = vld [vmem:[#allocation110_spill] sm:$0xff]  ;;  %v16293_v8 = vpop.permute.xlu1 %2623  ;;  %v1451_v37 = vadd.f32 %v1417_v36, %v1315_v30  ;;  %v1581_v13 = vadd.f32 %v1548_v17, %v1445_v56  ;;  %v20677_v38 = vld [vmem:[#allocation120_spill] sm:$0xff]  ;;  %v3730_v30 = vmul.f32 %v20470_v59, %v13585_v42  ;;  %v20727_v29 = vld [vmem:[#allocation195_spill] sm:$0xff] }
 0x473   : > { %v1554_v28 = vsel %vm19944_vm7, %v20671_v54, %v20670_v14  ;;  %v1553_v20 = vsel %vm19944_vm7, %v20672_v34, %v20671_v54  ;;  %v20673_v24 = vld [vmem:[#allocation126_spill] sm:$0xff]  ;;  %20674 = vst [vmem:[#allocation230_spill] sm:$0xff] %v16293_v8  ;;  %v1584_v62 = vadd.f32 %v1551_v61, %v1448_v58  ;;  %v20678_v14 = vld [vmem:[#allocation148_spill] sm:$0xff]  ;;  %vm20683_vm7 = vcmask 588800   ;;  %v20686_v58 = vld [vmem:[#allocation131_spill] sm:$0xff] }
 0x474   : > { %v1684_v50 = vsel %vm19946_vm8, %v20673_v24, %v20486_v46  ;;  %3794 = vrot.lane.b32.xlu1 %v3734_v47, %s20478_s22  ;;  %v20676_v31 = vld [vmem:[#allocation146_spill] sm:$0xff]  ;;  %v20680_v46 = vld [vmem:[#allocation152_spill] sm:$0xff]  ;;  %v1588_v17 = vadd.f32 %v1554_v28, %v1452_v63  ;;  %v1587_v18 = vadd.f32 %v1553_v20, %v1451_v37  ;;  %vm20687_vm5 = vmmov %vm20683_vm7 }
 0x475   : > { %v1687_v60 = vsel %vm19946_vm8, %v20677_v38, %v20676_v31  ;;  %v20679_v54 = vld [vmem:[#allocation122_spill] sm:$0xff]  ;;  %2633 = vrot.lane.b32.xlu0 %v2580_v32, %s20342_s0  ;;  %v1717_v36 = vadd.f32 %v1684_v50, %v1581_v13  ;;  %v16311_v61 = vpop.permute.xlu0 %3337  ;;  %v20688_v38 = vld [vmem:[#allocation160_spill] sm:$0xff]  ;;  %v20693_v20 = vld [vmem:[#allocation61_spill] sm:$0xff] }
 0x476   : > { %v1690_v34 = vsel %vm19946_vm8, %v20679_v54, %v20678_v14  ;;  %v1689_v24 = vsel %vm19946_vm8, %v20680_v46, %v20679_v54  ;;  %v20681_v5 = vld [vmem:[#allocation154_spill] sm:$0xff]  ;;  %20684 = vst [vmem:[#allocation224_spill] sm:$0xff] %v16311_v61  ;;  %v20689_v14 = vld [vmem:[#allocation133_spill] sm:$0xff]  ;;  %vm20690_vm8 = vmmov %vm20687_vm5  ;;  %v16321_v46 = vpop.permute.xlu1 %2213  ;;  %v16327_v50 = vmul.f32 %v20693_v20, %v14933_v3  ;;  %v1720_v32 = vadd.f32 %v1687_v60, %v1584_v62 }
 0x477   : > { %v1820_v53 = vsel %vm20683_vm7, %v20682_v16, %v20681_v5  ;;  %v20685_v56 = vld [vmem:[#allocation158_spill] sm:$0xff]  ;;  %v1826_v54 = vsel %vm20690_vm8, %v20689_v14, %v20688_v38  ;;  %20691 = vst [vmem:[#allocation240_spill] sm:$0xff] %v16321_v46  ;;  %v20692_v5 = vld [vmem:[#allocation161_spill] sm:$0xff]  ;;  %v1724_v63 = vadd.f32 %v1690_v34, %v1588_v17  ;;  %v1723_v37 = vadd.f32 %v1689_v24, %v1587_v18  ;;  %v20694_v16 = vld [vmem:[#allocation163_spill] sm:$0xff] }
 0x478   : > { %v1823_v47 = vsel %vm20687_vm5, %v20686_v58, %v20685_v56  ;;  %v2852_v28 = vmul.f32 %v20692_v5, %v14933_v3  ;;  %v1853_v13 = vadd.f32 %v1820_v53, %v1717_v36  ;;  %3786 = vrot.lane.b32.xlu1 %v3730_v30, %s20478_s22  ;;  %v1825_v58 = vsel %vm20687_vm5, %v20694_v16, %v20689_v14  ;;  %v20695_v38 = vld [vmem:[#allocation165_spill] sm:$0xff]  ;;  %v20696_v56 = vld [vmem:[#allocation147_spill] sm:$0xff]  ;;  %v20707_v18 = vld [vmem:[#allocation186_spill] sm:$0xff] }
 0x479   : > { %vm20697_vm7 = vcmask 580608   ;;  %v20698_v61 = vld [vmem:[#allocation169_spill] sm:$0xff]  ;;  %v20701_v20 = vld [vmem:[#allocation171_spill] sm:$0xff]  ;;  %v1856_v60 = vadd.f32 %v1823_v47, %v1720_v32  ;;  %v1860_v34 = vadd.f32 %v1826_v54, %v1724_v63  ;;  %v16346_v17 = vpop.permute.xlu0 %3341  ;;  %v3269_v36 = vmul.f32 %v20707_v18, %v15615_v57  ;;  %v20728_v31 = vld [vmem:[#allocation168_spill] sm:$0xff] }
 0x47a   : > { %v1956_v46 = vsel %vm20697_vm7, %v20696_v56, %v20695_v38  ;;  %v20699_v5 = vld [vmem:[#allocation141_spill] sm:$0xff]  ;;  %vm20700_vm8 = vmmov %vm20697_vm7  ;;  %v20702_v8 = vld [vmem:[#allocation143_spill] sm:$0xff]  ;;  %2905 = vrot.lane.b32.xlu0 %v2852_v28, %s20361_s6  ;;  %20706 = vst [vmem:[#allocation234_spill] sm:$0xff] %v16346_v17  ;;  %vm20710_vm5 = vcmask 572416   ;;  %v16359_v32 = vpop.permute.xlu1 %2763  ;;  %s13300_s6 = smov 116  }
 0x47b   : > { %v1959_v33 = vsel %vm20700_vm8, %v20699_v5, %v20698_v61  ;;  %vm20703_vm3 = vmmov %vm20697_vm7  ;;  %v20704_v24 = vld [vmem:[#allocation175_spill] sm:$0xff]  ;;  %v20708_v30 = vld [vmem:[#allocation177_spill] sm:$0xff]  ;;  %20717 = vst [vmem:[#allocation238_spill] sm:$0xff] %v16359_v32  ;;  %vm20723_vm8 = vcmask 564224  }
 0x47c   : > { %v1962_v62 = vsel %vm20703_vm3, %v20702_v8, %v20701_v20  ;;  %vm20705_vm6 = vmmov %vm20703_vm3  ;;  %v20709_v56 = vld [vmem:[#allocation159_spill] sm:$0xff]  ;;  %v20711_v16 = vld [vmem:[#allocation181_spill] sm:$0xff]  ;;  %v1859_v20 = vadd.f32 %v1825_v58, %v1723_v37  ;;  %v1992_v18 = vadd.f32 %v1959_v33, %v1856_v60  ;;  %3317 = vrot.lane.b32.xlu1 %v3269_v36, %s20392_s21 }
 0x47d   : > { %v1961_v53 = vsel %vm20705_vm6, %v20704_v24, %v20702_v8  ;;  %v2092_v14 = vsel %vm20710_vm5, %v20709_v56, %v20708_v30  ;;  %v20712_v38 = vld [vmem:[#allocation153_spill] sm:$0xff]  ;;  %vm20713_vm3 = vmmov %vm20710_vm5  ;;  %v20714_v28 = vld [vmem:[#allocation183_spill] sm:$0xff]  ;;  %v1989_v24 = vadd.f32 %v1956_v46, %v1853_v13  ;;  %v1996_v61 = vadd.f32 %v1962_v62, %v1860_v34  ;;  %v16377_v62 = vpop.permute.xlu0 %3333 }
 0x47e   : > { %v2095_v5 = vsel %vm20713_vm3, %v20712_v38, %v20711_v16  ;;  %v20715_v47 = vld [vmem:[#allocation155_spill] sm:$0xff]  ;;  %vm20716_vm7 = vmmov %vm20713_vm3  ;;  %v20718_v8 = vld [vmem:[#allocation184_spill] sm:$0xff]  ;;  %v1995_v33 = vadd.f32 %v1961_v53, %v1859_v20 }
 0x47f   : > { %v2098_v54 = vsel %vm20716_vm7, %v20715_v47, %v20714_v28  ;;  %v3131_v63 = vmul.f32 %v20718_v8, %v14933_v3  ;;  %v20719_v30 = vld [vmem:[#allocation187_spill] sm:$0xff]  ;;  %vm20720_vm6 = vmmov %vm20713_vm3  ;;  %v20721_v38 = vld [vmem:[#allocation189_spill] sm:$0xff]  ;;  %v2125_v37 = vadd.f32 %v2092_v14, %v1989_v24  ;;  %v2128_v13 = vadd.f32 %v2095_v5, %v1992_v18 }
 0x480   : > { %v2097_v56 = vsel %vm20720_vm6, %v20719_v30, %v20715_v47  ;;  %v20722_v16 = vld [vmem:[#allocation172_spill] sm:$0xff]  ;;  %v20724_v28 = vld [vmem:[#allocation193_spill] sm:$0xff]  ;;  %vm20726_vm5 = vmmov %vm20723_vm8  ;;  %v2132_v58 = vadd.f32 %v2098_v54, %v1996_v61  ;;  %vm20734_vm6 = vcmask 556032   ;;  %3331 = vrot.lane.b32.xlu1 %v16137_v7, %s20392_s21 }
 0x481   : > { %v2228_v17 = vsel %vm20723_vm8, %v20722_v16, %v20721_v38  ;;  %v2231_v32 = vsel %vm20726_vm5, %v20725_v12, %v20724_v28  ;;  %vm20729_vm3 = vmmov %vm20726_vm5  ;;  %3192 = vrot.lane.b32.xlu0 %v3131_v63, %s20381_s14  ;;  %v20730_v60 = vld [vmem:[#allocation199_spill] sm:$0xff]  ;;  %v20732_v36 = vld [vmem:[#allocation201_spill] sm:$0xff]  ;;  %v16388_v38 = vpop.permute.xlu1 %2767  ;;  %v2131_v61 = vadd.f32 %v2097_v56, %v1995_v33  ;;  %v16407_v33 = vpop.permute.xlu0 %2893 }
 0x482   : > { %v2234_v46 = vsel %vm20729_vm3, %v20728_v31, %v20727_v29  ;;  %vm20731_vm7 = vmmov %vm20729_vm3  ;;  %v20733_v16 = vld [vmem:[#allocation182_spill] sm:$0xff]  ;;  %v20735_v47 = vld [vmem:[#allocation207_spill] sm:$0xff]  ;;  %v2261_v5 = vadd.f32 %v2228_v17, %v2125_v37  ;;  %v2264_v54 = vadd.f32 %v2231_v32, %v2128_v13  ;;  %20750 = vst [vmem:[#allocation244_spill] sm:$0xff] %v16407_v33 }
 0x483   : > { %v2233_v34 = vsel %vm20731_vm7, %v20730_v60, %v20728_v31  ;;  %v2364_v12 = vsel %vm20734_vm6, %v20733_v16, %v20732_v36  ;;  %v20736_v30 = vld [vmem:[#allocation178_spill] sm:$0xff]  ;;  %vm20737_vm8 = vmmov %vm20734_vm6  ;;  %v20738_v53 = vld [vmem:[#allocation196_spill] sm:$0xff]  ;;  %v2268_v63 = vadd.f32 %v2234_v46, %v2132_v58  ;;  %vm20746_vm7 = vcmask 359424  }
 0x484   : > { %v2370_v29 = vsel %vm20737_vm8, %v20736_v30, %v20735_v47  ;;  %v3282_v14 = vmul.f32 %v20738_v53, %v14933_v3  ;;  %v20739_v31 = vld [vmem:[#allocation205_spill] sm:$0xff]  ;;  %v20740_v20 = vld [vmem:[#allocation176_spill] sm:$0xff]  ;;  %vm20741_vm5 = vmmov %vm20734_vm6  ;;  %v2267_v32 = vadd.f32 %v2233_v34, %v2131_v61  ;;  %v2397_v7 = vadd.f32 %v2364_v12, %v2261_v5  ;;  %3466 = vrot.lane.b32.xlu1 %v16141_v43, %s20403_s24 }
 0x485   : > { %v2367_v24 = vsel %vm20741_vm5, %v20740_v20, %v20739_v31  ;;  %v20742_v18 = vld [vmem:[#allocation210_spill] sm:$0xff]  ;;  %vm20743_vm3 = vmmov %vm20741_vm5  ;;  %v20744_v36 = vld [vmem:[#allocation212_spill] sm:$0xff]  ;;  %v2404_v46 = vadd.f32 %v2370_v29, %v2268_v63  ;;  %vm20757_vm5 = vcmask 351232   ;;  %v16420_v34 = vpop.permute.xlu1 %2337  ;;  %v3433_v12 = vmul.f32 %v14719_v44, %v14933_v3 }
 0x486   : > { %v2369_v60 = vsel %vm20743_vm3, %v20742_v18, %v20736_v30  ;;  %v20745_v16 = vld [vmem:[#allocation194_spill] sm:$0xff]  ;;  %v20747_v28 = vld [vmem:[#allocation217_spill] sm:$0xff]  ;;  %vm20749_vm6 = vmmov %vm20746_vm7  ;;  %3343 = vrot.lane.b32.xlu0 %v3282_v14, %s20392_s21  ;;  %20761 = vst [vmem:[#allocation249_spill] sm:$0xff] %v16420_v34  ;;  %v2400_v29 = vadd.f32 %v2367_v24, %v2264_v54 }
 0x487   : > { %v2500_v47 = vsel %vm20746_vm7, %v20745_v16, %v20744_v36  ;;  %v20748_v56 = vld [vmem:[#allocation190_spill] sm:$0xff]  ;;  %v20752_v58 = vld [vmem:[#allocation216_spill] sm:$0xff]  ;;  %vm20754_vm8 = vmmov %vm20749_vm6  ;;  %v2403_v61 = vadd.f32 %v2369_v60, %v2267_v32 }
 0x488   : > { %v2506_v17 = vsel %vm20749_vm6, %v20748_v56, %v20747_v28  ;;  %v20751_v37 = vld [vmem:[#allocation198_spill] sm:$0xff]  ;;  %v20753_v30 = vld [vmem:[#allocation188_spill] sm:$0xff]  ;;  %v20755_v18 = vld [vmem:[#allocation223_spill] sm:$0xff]  ;;  %v2533_v5 = vadd.f32 %v2500_v47, %v2397_v7 }
 0x489   : > { %v3426_v13 = vmul.f32 %v20751_v37, %v14933_v3  ;;  %v2503_v20 = vsel %vm20754_vm8, %v20753_v30, %v20752_v58  ;;  %v20756_v36 = vld [vmem:[#allocation206_spill] sm:$0xff]  ;;  %v20758_v31 = vld [vmem:[#allocation229_spill] sm:$0xff]  ;;  %vm20760_vm3 = vmmov %vm20757_vm5  ;;  %v2540_v63 = vadd.f32 %v2506_v17, %v2404_v46  ;;  %vm20768_vm8 = vcmask 343040   ;;  %v16439_v17 = vpop.permute.xlu0 %3488 }
 0x48a   : > { %v2636_v16 = vsel %vm20757_vm5, %v20756_v36, %v20755_v18  ;;  %v20759_v28 = vld [vmem:[#allocation202_spill] sm:$0xff]  ;;  %v20762_v37 = vld [vmem:[#allocation221_spill] sm:$0xff]  ;;  %vm20763_vm7 = vmmov %vm20749_vm6  ;;  %3494 = vrot.lane.b32.xlu0 %v3433_v12, %s20403_s24  ;;  %v2536_v60 = vadd.f32 %v2503_v20, %v2400_v29 }
 0x48b   : > { %v2642_v14 = vsel %vm20760_vm3, %v20759_v28, %v20758_v31  ;;  %v2505_v30 = vsel %vm20763_vm7, %v20762_v37, %v20748_v56  ;;  %v20764_v18 = vld [vmem:[#allocation227_spill] sm:$0xff]  ;;  %v20765_v36 = vld [vmem:[#allocation200_spill] sm:$0xff]  ;;  %vm20766_vm6 = vmmov %vm20760_vm3  ;;  %v2669_v43 = vadd.f32 %v2636_v16, %v2533_v5  ;;  %v3584_v56 = vmul.f32 %v14769_v22, %v14933_v3  ;;  %3480 = vrot.lane.b32.xlu1 %v3426_v13, %s20403_s24 }
 0x48c   : > { %v2639_v31 = vsel %vm20766_vm6, %v20765_v36, %v20764_v18  ;;  %v20767_v33 = vld [vmem:[#allocation215_spill] sm:$0xff]  ;;  %vm20770_vm5 = vmmov %vm20768_vm8  ;;  %v2676_v47 = vadd.f32 %v2642_v14, %v2540_v63  ;;  %v20771_v32 = vld [vmem:[#allocation233_spill] sm:$0xff]  ;;  %v16455_v14 = vpop.permute.xlu1 %2897  ;;  %v2539_v29 = vadd.f32 %v2505_v30, %v2403_v61 }
 0x48d   : > { %v2772_v58 = vsel %vm20768_vm8, %v20767_v33, %v20549_v11  ;;  %v20769_v54 = vld [vmem:[#allocation211_spill] sm:$0xff]  ;;  %v2641_v7 = vsel %vm20760_vm3, %v20771_v32, %v20759_v28  ;;  %v20773_v11 = vld [vmem:[#allocation209_spill] sm:$0xff]  ;;  %vm20774_vm7 = vmmov %vm20770_vm5  ;;  %v2672_v5 = vadd.f32 %v2639_v31, %v2536_v60  ;;  %vm20862_vm8 = vcmask 801792  }
 0x48e   : > { %v2778_v24 = vsel %vm20770_vm5, %v20769_v54, %v20551_v48  ;;  %v20772_v46 = vld [vmem:[#allocation239_spill] sm:$0xff]  ;;  %v20775_v48 = vld [vmem:[#allocation226_spill] sm:$0xff]  ;;  %v2805_v63 = vadd.f32 %v2772_v58, %v2669_v43  ;;  %v20777_v28 = vld [vmem:[#allocation245_spill] sm:$0xff]  ;;  %3645 = vrot.lane.b32.xlu0 %v3584_v56, %s20414_s13  ;;  %v2675_v58 = vadd.f32 %v2641_v7, %v2539_v29  ;;  %v3735_v56 = vmul.f32 %v20470_v59, %v14933_v3 }
 0x48f   : > { %v2775_v33 = vsel %vm20774_vm7, %v20773_v11, %v20772_v46  ;;  %v2908_v12 = vsel %vm2907_vm12, %v20775_v48, %v20554_v45  ;;  %v20776_v20 = vld [vmem:[#allocation222_spill] sm:$0xff]  ;;  %v2812_v37 = vadd.f32 %v2778_v24, %v2676_v47  ;;  %vm20778_vm6 = vmmov %vm20770_vm5  ;;  %v20779_v32 = vld [vmem:[#allocation251_spill] sm:$0xff]  ;;  %v16480_v47 = vpop.permute.xlu0 %3492  ;;  %1681 = vrot.lane.b32.xlu1 %v16327_v50, %s20285_s30  ;;  %vm20867_vm5 = vcmask 1014784  }
 0x490   : > { %v2914_v16 = vsel %vm2907_vm12, %v20776_v20, %v14957_v49  ;;  %v2777_v36 = vsel %vm20778_vm6, %v20777_v28, %v20769_v54  ;;  %v2911_v45 = vsel %vm2907_vm12, %v20552_v19, %v20779_v32  ;;  %v20780_v11 = vld [vmem:[#allocation236_spill] sm:$0xff]  ;;  %v2808_v13 = vadd.f32 %v2775_v33, %v2672_v5  ;;  %v20857_v46 = vld [vmem:[#allocation314_spill] sm:$0xff]  ;;  %v20861_v18 = vld [vmem:[#allocation313_spill] sm:$0xff] }
 0x491   : > { %v3044_v49 = vsel %vm3043_vm11, %v20780_v11, %v14985_v52  ;;  %v20781_v48 = vld [vmem:[#allocation232_spill] sm:$0xff]  ;;  %v2941_v30 = vadd.f32 %v2908_v12, %v2805_v63  ;;  %v2948_v31 = vadd.f32 %v2914_v16, %v2812_v37  ;;  %v20784_v52 = vld [vmem:[#allocation242_spill] sm:$0xff]  ;;  %v2811_v7 = vadd.f32 %v2777_v36, %v2675_v58  ;;  %vm20872_vm3 = vmmov %vm20867_vm5 }
 0x492   : > { %v3050_v61 = vsel %vm3043_vm11, %v20781_v48, %v15015_v26  ;;  %v20782_v54 = vld [vmem:[#allocation256_spill] sm:$0xff]  ;;  %v3204_v43 = vsel %vm3196_vm9, %v20784_v52, %v15065_v27  ;;  %v16482_v26 = vpop.permute.xlu1 %2901  ;;  %v2944_v33 = vadd.f32 %v2911_v45, %v2808_v13  ;;  %3796 = vrot.lane.b32.xlu0 %v3735_v56, %s20478_s22  ;;  %v20789_v11 = vld [vmem:[#allocation246_spill] sm:$0xff]  ;;  %v20793_v13 = vld [vmem:[#allocation259_spill] sm:$0xff] }
 0x493   : > { %v2913_v24 = vsel %vm2907_vm12, %v20782_v54, %v20776_v20  ;;  %v20783_v60 = vld [vmem:[#allocation260_spill] sm:$0xff]  ;;  %v3077_v12 = vadd.f32 %v3044_v49, %v2941_v30  ;;  %v3084_v16 = vadd.f32 %v3050_v61, %v2948_v31  ;;  %v3197_v49 = vsel %vm3196_vm9, %v20789_v11, %v20562_v10  ;;  %v20792_v58 = vld [vmem:[#allocation250_spill] sm:$0xff]  ;;  %v20795_v10 = vld [vmem:[#allocation255_spill] sm:$0xff] }
 0x494   : > { %v3047_v19 = vsel %vm3043_vm11, %v20555_v55, %v20783_v60  ;;  %v20785_v55 = vld [vmem:[#allocation265_spill] sm:$0xff]  ;;  %v20786_v29 = vld [vmem:[#allocation268_spill] sm:$0xff]  ;;  %v2947_v37 = vadd.f32 %v2913_v24, %v2811_v7  ;;  %v3506_v30 = vsel %vm3498_vm14, %v20793_v13, %v15165_v39  ;;  %vm20874_vm7 = vmmov %vm20872_vm3 }
 0x495   : > { %v3049_v20 = vsel %vm3043_vm11, %v20785_v55, %v20781_v48  ;;  %v3200_v27 = vsel %vm3196_vm9, %v20560_v4, %v20786_v29  ;;  %v20787_v5 = vld [vmem:[#allocation252_spill] sm:$0xff]  ;;  %v3080_v28 = vadd.f32 %v3047_v19, %v2944_v33  ;;  %v3240_v36 = vadd.f32 %v3204_v43, %v3084_v16  ;;  %v20790_v48 = vld [vmem:[#allocation273_spill] sm:$0xff]  ;;  %v20798_v16 = vld [vmem:[#allocation295_spill] sm:$0xff]  ;;  %v16527_v55 = vpop.permute.xlu0 %1137 }
 0x496   : > { %v3355_v63 = vsel %vm3347_vm13, %v20787_v5, %v15115_v35  ;;  %v20788_v45 = vld [vmem:[#allocation40_spill] sm:$0xff]  ;;  %v3203_v4 = vsel %vm3196_vm9, %v20790_v48, %v20784_v52  ;;  %v16512_v31 = vpop.permute.xlu1 %593  ;;  %v3233_v54 = vadd.f32 %v3197_v49, %v3077_v12  ;;  %v3083_v24 = vadd.f32 %v3049_v20, %v2947_v37  ;;  %v20796_v56 = vld [vmem:[#allocation281_spill] sm:$0xff]  ;;  %20799 = vst [vmem:[#allocation253_spill] sm:$0xff] %v16527_v55  ;;  %v20800_v37 = vld [vmem:[#allocation42_spill] sm:$0xff] }
 0x497   : > { %v3571_v50 = vmul.f32 %v20788_v45, %v15615_v57  ;;  %v20791_v61 = vld [vmem:[#allocation276_spill] sm:$0xff]  ;;  %20794 = vst [vmem:[#allocation258_spill] sm:$0xff] %v16512_v31  ;;  %v3236_v19 = vadd.f32 %v3200_v27, %v3080_v28  ;;  %v3391_v43 = vadd.f32 %v3355_v63, %v3240_v36  ;;  %v3348_v52 = vsel %vm3347_vm13, %v20795_v10, %v20568_v51  ;;  %v20801_v28 = vld [vmem:[#allocation291_spill] sm:$0xff]  ;;  %v20855_v55 = vld [vmem:[#allocation309_spill] sm:$0xff] }
 0x498   : > { %v3351_v35 = vsel %vm3347_vm13, %v20792_v58, %v20791_v61  ;;  %v3354_v7 = vsel %vm3347_vm13, %v20796_v56, %v20787_v5  ;;  %v20797_v33 = vld [vmem:[#allocation284_spill] sm:$0xff]  ;;  %v3657_v12 = vsel %vm3649_vm15, %v20798_v16, %v20578_v25  ;;  %v3239_v20 = vadd.f32 %v3203_v4, %v3083_v24  ;;  %v20802_v36 = vld [vmem:[#allocation267_spill] sm:$0xff]  ;;  %vm20876_vm6 = vmmov %vm20872_vm3 }
 0x499   : > { %3619 = vrot.lane.b32.xlu1 %v3571_v50, %s20414_s13  ;;  %v3502_v39 = vsel %vm3498_vm14, %v20569_v9, %v20797_v33  ;;  %v3387_v27 = vadd.f32 %v3351_v35, %v3236_v19  ;;  %v3542_v63 = vadd.f32 %v3506_v30, %v3391_v43  ;;  %v3578_v51 = vmul.f32 %v20800_v37, %v15615_v57  ;;  %v20803_v45 = vld [vmem:[#allocation304_spill] sm:$0xff]  ;;  %v20805_v58 = vld [vmem:[#allocation299_spill] sm:$0xff]  ;;  %v20807_v30 = vld [vmem:[#allocation33_spill] sm:$0xff] }
 0x49a   : > { %v3499_v5 = vsel %vm3498_vm14, %v20801_v28, %v20571_v23  ;;  %v3653_v9 = vsel %vm3649_vm15, %v15215_v41, %v20802_v36  ;;  %v3808_v25 = vsel %vm3800_vm10, %v20803_v45, %v20585_v1  ;;  %v16540_v50 = vpop.permute.xlu1 %2473  ;;  %v3390_v11 = vadd.f32 %v3354_v7, %v3239_v20  ;;  %v20806_v35 = vld [vmem:[#allocation275_spill] sm:$0xff]  ;;  %v20808_v1 = vld [vmem:[#allocation218_spill] sm:$0xff]  ;;  %v20809_v56 = vld [vmem:[#allocation264_spill] sm:$0xff]  ;;  %v16560_v20 = vpop.permute.xlu0 %3017 }
 0x49b   : > { %20804 = vst [vmem:[#allocation257_spill] sm:$0xff] %v16540_v50  ;;  %v3538_v49 = vadd.f32 %v3502_v39, %v3387_v27  ;;  %v3384_v48 = vadd.f32 %v3348_v52, %v3233_v54  ;;  %v3693_v4 = vadd.f32 %v3657_v12, %v3542_v63  ;;  %v3650_v23 = vsel %vm3649_vm15, %v20805_v58, %v15205_v40  ;;  %v20810_v52 = vld [vmem:[#allocation272_spill] sm:$0xff]  ;;  %v20811_v39 = vld [vmem:[#allocation301_spill] sm:$0xff]  ;;  %v20812_v40 = vld [vmem:[#allocation307_spill] sm:$0xff] }
 0x49c   : > { %v3804_v41 = vsel %vm3800_vm10, %v20807_v30, %v20806_v35  ;;  %v3721_v10 = vmul.f32 %v20808_v1, %v14933_v3  ;;  %v3505_v54 = vsel %vm3498_vm14, %v20809_v56, %v20793_v13  ;;  %v3656_v7 = vsel %vm3649_vm15, %v20810_v52, %v20798_v16  ;;  %20813 = vst [vmem:[#allocation266_spill] sm:$0xff] %v16560_v20  ;;  %v20814_v28 = vld [vmem:[#allocation280_spill] sm:$0xff]  ;;  %v20818_v58 = vld [vmem:[#allocation262_spill] sm:$0xff]  ;;  %v20846_v61 = vld [vmem:[#allocation19_spill] sm:$0xff] }
 0x49d   : > { %3633 = vrot.lane.b32.xlu1 %v3578_v51, %s20414_s13  ;;  %v3535_v24 = vadd.f32 %v3499_v5, %v3384_v48  ;;  %v3689_v19 = vadd.f32 %v3653_v9, %v3538_v49  ;;  %v3844_v43 = vadd.f32 %v3808_v25, %v3693_v4  ;;  %v3801_v12 = vsel %vm3800_vm10, %v20812_v40, %v20811_v39  ;;  %v20815_v9 = vld [vmem:[#allocation289_spill] sm:$0xff]  ;;  %v20817_v49 = vld [vmem:[#allocation44_spill] sm:$0xff]  ;;  %v20843_v35 = vld [vmem:[#allocation310_spill] sm:$0xff] }
 0x49e   : > { %v16562_v27 = vpop.permute.xlu1 %3033  ;;  %v3541_v63 = vadd.f32 %v3505_v54, %v3390_v11  ;;  %v3807_v13 = vsel %vm3800_vm10, %v20814_v28, %v20803_v45  ;;  %v3728_v48 = vmul.f32 %v20817_v49, %v14933_v3  ;;  %v16579_v30 = vpop.permute.xlu0 %3637  ;;  %v20844_v36 = vld [vmem:[#allocation20_spill] sm:$0xff]  ;;  %v20854_v20 = vld [vmem:[#allocation69_spill] sm:$0xff] }
 0x49f   : > { %v3686_v37 = vadd.f32 %v3650_v23, %v3535_v24  ;;  %v3840_v51 = vadd.f32 %v3804_v41, %v3689_v19  ;;  %v16569_v16 = vadd.f32 %v20815_v9, %v3844_v43  ;;  %v20821_v24 = vld [vmem:[#allocation81_spill] sm:$0xff]  ;;  %v20845_v33 = vld [vmem:[#allocation316_spill] sm:$0xff] }
 0x4a0   : > { %v3692_v5 = vadd.f32 %v3656_v7, %v3541_v63  ;;  %v1900_v19 = vmul.f32 %v20821_v24, %v14933_v3  ;;  %v20847_v29 = vld [vmem:[#allocation300_spill] sm:$0xff] }
 0x4a1   : > { %3768 = vrot.lane.b32.xlu1 %v3721_v10, %s20478_s22  ;;  %20816 = vst [vmem:[#allocation261_spill] sm:$0xff] %v16569_v16  ;;  %v3837_v25 = vadd.f32 %v3801_v12, %v3686_v37  ;;  %v16576_v11 = vadd.f32 %v20818_v58, %v3840_v51  ;;  %v19958_v45 = vmax.f32 %v16569_v16, 0.0  ;;  %v20826_v37 = vld [vmem:[#allocation106_spill] sm:$0xff]  ;;  %v20850_v60 = vld [vmem:[#allocation312_spill] sm:$0xff] }
 0x4a2   : > { %v16573_v4 = vpop.permute.xlu1 %3037  ;;  %v3843_v23 = vadd.f32 %v3807_v13, %v3692_v5  ;;  %v16599_v52 = vpop.permute.xlu0 %3641  ;;  %v2172_v51 = vmul.f32 %v20826_v37, %v14933_v3  ;;  %v20827_v13 = vld [vmem:[#allocation128_spill] sm:$0xff]  ;;  %v20833_v37 = vld [vmem:[#allocation34_spill] sm:$0xff] }
 0x4a3   : > { %20819 = vst [vmem:[#allocation274_spill] sm:$0xff] %v16576_v11  ;;  %v16583_v41 = vadd.f32 %v20818_v58, %v3837_v25  ;;  %v19955_v1 = vmax.f32 %v16576_v11, 0.0  ;;  %v2444_v5 = vmul.f32 %v20827_v13, %v14933_v3  ;;  %v20834_v13 = vld [vmem:[#allocation48_spill] sm:$0xff]  ;;  %v20841_v16 = vld [vmem:[#allocation290_spill] sm:$0xff]  ;;  %v20842_v58 = vld [vmem:[#allocation293_spill] sm:$0xff] }
 0x4a4   : > { %v16591_v10 = vadd.f32 %v20815_v9, %v3843_v23  ;;  %v20840_v9 = vld [vmem:[#allocation285_spill] sm:$0xff]  ;;  %v20856_v32 = vld [vmem:[#allocation76_spill] sm:$0xff] }
 0x4a5   : > { %3782 = vrot.lane.b32.xlu1 %v3728_v48, %s20478_s22  ;;  %20820 = vst [vmem:[#allocation297_spill] sm:$0xff] %v16583_v41  ;;  %v19956_v56 = vmax.f32 %v16583_v41, 0.0  ;;  %v12419_v54 = vpack.i.bf16 %v19958_v45, %v19955_v1  ;;  %v20830_v48 = vld [vmem:[#allocation149_spill] sm:$0xff]  ;;  %v485_v1 = vmul.f32 %v13674_v6, %v20834_v13  ;;  %v20838_v45 = vld [vmem:[#allocation174_spill] sm:$0xff]  ;;  %v20898_v34 = vld [vmem:[#allocation24_spill] sm:$0xff] }
 0x4a6   : > { %v16587_v43 = vpop.permute.xlu1 %729  ;;  %20823 = vst [vmem:[#allocation164_spill] sm:$0xff] %v16591_v10  ;;  %v19957_v39 = vmax.f32 %v16591_v10, 0.0  ;;  %v16612_v63 = vpop.permute.xlu0 %1273  ;;  %v2716_v23 = vmul.f32 %v20830_v48, %v14933_v3  ;;  %v20837_v48 = vld [vmem:[#allocation54_spill] sm:$0xff]  ;;  %v2988_v11 = vmul.f32 %v20838_v45, %v14933_v3  ;;  %v16656_v10 = vmul.f32 %v14719_v44, %v15615_v57 }
 0x4a7   : > { %20822 = vst [vmem:[#allocation269_spill] sm:$0xff] %v16587_v43  ;;  %20825 = vst [vmem:[#allocation277_spill] sm:$0xff] %v16612_v63  ;;  %v20839_v45 = vld [vmem:[#allocation282_spill] sm:$0xff]  ;;  %v20849_v63 = vld [vmem:[#allocation283_spill] sm:$0xff] }
 0x4a8   : > { %v12429_v40 = vpack.i.bf16 %v19957_v39, %v19956_v56  ;;  %v20836_v56 = vld [vmem:[#allocation298_spill] sm:$0xff]  ;;  %v607_v44 = vsel %vm595_vm0, %v20839_v45, %v20843_v35  ;;  %v20864_v43 = vld [vmem:[#allocation21_spill] sm:$0xff] }
 0x4a9   : > { %1953 = vrot.lane.b32.xlu1 %v1900_v19, %s20298_s26  ;;  %v20832_v19 = vld [vmem:[#allocation46_spill] sm:$0xff]  ;;  %v600_v39 = vsel %vm595_vm0, %v20837_v48, %v20836_v56  ;;  %v16660_v48 = vmul.f32 %v14769_v22, %v15615_v57  ;;  %v742_v22 = vsel %vm731_vm1, %v20845_v33, %v20844_v36  ;;  %v609_v33 = vsel %vm595_vm0, %v20849_v63, %v20850_v60  ;;  %s13313_s26 = smov 88  }
 0x4aa   : > { %v16601_v7 = vpop.permute.xlu1 %2609  ;;  %v16621_v25 = vpop.permute.xlu0 %3164  ;;  %v20873_v60 = vld [vmem:[#allocation322_spill] sm:$0xff] }
 0x4ab   : > { %20824 = vst [vmem:[#allocation306_spill] sm:$0xff] %v16601_v7  ;;  %20828 = vst [vmem:[#allocation35_spill] sm:$0xff] %v16621_v25  ;;  %v20848_v25 = vld [vmem:[#allocation303_spill] sm:$0xff]  ;;  %v20863_v7 = vld [vmem:[#allocation292_spill] sm:$0xff] }
 0x4ad   : > { %12420 = vrot.lane.b32.xlu1 %v12419_v54, %s20406_s12  ;;  %v479_v54 = vmul.f32 %v13674_v6, %v20832_v19  ;;  %v20991_v6 = vld [vmem:[#allocation357_spill] sm:$0xff] }
 0x4ae   : > { %v16609_v12 = vpop.permute.xlu1 %3184 }
 0x4b1   : > { %12430 = vrot.lane.b32.xlu1 %v12429_v40, %s20406_s12  ;;  %v480_v40 = vmul.f32 %v14933_v3, %v20832_v19  ;;  %v3132_v19 = vmul.f32 %v15615_v57, %v20718_v8  ;;  %v606_v8 = vsel %vm595_vm0, %v20840_v9, %v20839_v45  ;;  %v488_v9 = vmul.f32 %v20846_v61, %v20833_v37 }
 0x4b2   : > { %v16616_v28 = vpop.permute.xlu1 %3188  ;;  %v608_v45 = vsel %vm595_vm0, %v20843_v35, %v20849_v63  ;;  %v489_v61 = vmul.f32 %v13662_v2, %v20833_v37  ;;  %v20853_v35 = vld [vmem:[#allocation305_spill] sm:$0xff] }
 0x4b3   : > { %v741_v63 = vsel %vm731_vm1, %v20854_v20, %v20853_v35 }
 0x4b5   : > { %2225 = vrot.lane.b32.xlu1 %v2172_v51, %s20311_s28  ;;  %v487_v51 = vmul.f32 %v13585_v42, %v20833_v37  ;;  %v3283_v42 = vmul.f32 %v20738_v53, %v15615_v57  ;;  %v878_v53 = vsel %vm867_vm2, %v20842_v58, %v20841_v16  ;;  %v1150_v58 = vsel %vm1139_vm4, %v20848_v25, %v20847_v29  ;;  %s13315_s28 = smov 79  }
 0x4b6   : > { %v16623_v49 = vpop.permute.xlu1 %865 }
 0x4b7   : > { %20829 = vst [vmem:[#allocation51_spill] sm:$0xff] %v16623_v49  ;;  %v20860_v49 = vld [vmem:[#allocation311_spill] sm:$0xff] }
 0x4b9   : > { %2497 = vrot.lane.b32.xlu1 %v2444_v5, %s20330_s17  ;;  %v16639_v5 = vpop.permute.xlu0 %3178  ;;  %s13316_s17 = smov 78  }
 0x4ba   : > { %v16628_v24 = vpop.permute.xlu1 %2745  ;;  %20835 = vst [vmem:[#allocation37_spill] sm:$0xff] %v16639_v5  ;;  %v641_v5 = vadd.f32 %v606_v8, %v487_v51 }
 0x4bb   : > { %20831 = vst [vmem:[#allocation43_spill] sm:$0xff] %v16628_v24  ;;  %v20859_v24 = vld [vmem:[#allocation317_spill] sm:$0xff] }
 0x4bc   : > { %v777_v25 = vadd.f32 %v742_v22, %v641_v5  ;;  %v643_v22 = vadd.f32 %v608_v45, %v489_v61  ;;  %v879_v20 = vsel %vm867_vm2, %v20841_v16, %v20859_v24  ;;  %v20866_v45 = vld [vmem:[#allocation23_spill] sm:$0xff] }
 0x4bd   : > { %2769 = vrot.lane.b32.xlu1 %v2716_v23, %s20350_s1  ;;  %v486_v23 = vmul.f32 %v14933_v3, %v20834_v13  ;;  %v16664_v13 = vmul.f32 %v20470_v59, %v15615_v57  ;;  %v633_v57 = vadd.f32 %v600_v39, %v479_v54  ;;  %v634_v59 = vadd.f32 %v20836_v56, %v480_v40  ;;  %v20852_v54 = vld [vmem:[#allocation18_spill] sm:$0xff]  ;;  %v16698_v51 = vpop.permute.xlu0 %3788 }
 0x4be   : > { %v16650_v41 = vpop.permute.xlu1 %3335  ;;  %v642_v39 = vadd.f32 %v607_v44, %v488_v9  ;;  %v490_v40 = vmul.f32 %v20852_v54, %v20833_v37  ;;  %v20858_v44 = vld [vmem:[#allocation288_spill] sm:$0xff]  ;;  %v913_v16 = vadd.f32 %v878_v53, %v777_v25  ;;  %v20871_v3 = vld [vmem:[#allocation294_spill] sm:$0xff] }
 0x4bf   : > { %v745_v5 = vsel %vm731_vm1, %v20857_v46, %v20858_v44 }
 0x4c0   : > { %v644_v9 = vadd.f32 %v609_v33, %v490_v40  ;;  %v20869_v40 = vld [vmem:[#allocation58_spill] sm:$0xff] }
 0x4c1   : > { %3041 = vrot.lane.b32.xlu1 %v2988_v11, %s20371_s27  ;;  %v20851_v11 = vld [vmem:[#allocation286_spill] sm:$0xff]  ;;  %s13308_s27 = smov 101  }
 0x4c2   : > { %v743_v56 = vsel %vm731_vm1, %v20844_v36, %v20851_v11  ;;  %v16700_v8 = vpop.permute.xlu1 %3339  ;;  %v872_v36 = vsel %vm867_vm2, %v20856_v32, %v20855_v55  ;;  %v744_v2 = vsel %vm731_vm1, %v20851_v11, %v20857_v46  ;;  %v16721_v32 = vsel %vm20862_vm8, %v20861_v18, %v20860_v49  ;;  %vm20879_vm8 = vmmov %vm20872_vm3 }
 0x4c3   : > { %v778_v54 = vadd.f32 %v743_v56, %v642_v39  ;;  %v880_v11 = vsel %vm867_vm2, %v20859_v24, %v20863_v7  ;;  %v881_v46 = vsel %vm867_vm2, %v20863_v7, %v20864_v43  ;;  %v779_v56 = vadd.f32 %v744_v2, %v643_v22  ;;  %v20868_v39 = vld [vmem:[#allocation325_spill] sm:$0xff]  ;;  %v20875_v43 = vld [vmem:[#allocation296_spill] sm:$0xff] }
 0x4c4   : > { %v780_v61 = vadd.f32 %v745_v5, %v644_v9  ;;  %v605_v18 = vsel %vm595_vm0, %v20869_v40, %v20868_v39  ;;  %v1016_v7 = vsel %vm20874_vm7, %v20871_v3, %v20873_v60  ;;  %v1017_v2 = vsel %vm20876_vm6, %v20873_v60, %v20875_v43  ;;  %v16748_v9 = vpop.permute.xlu0 %3792  ;;  %v20881_v60 = vld [vmem:[#allocation25_spill] sm:$0xff] }
 0x4c5   : > { %3194 = vrot.lane.b32.xlu1 %v3132_v19, %s20381_s14  ;;  %v20865_v19 = vld [vmem:[#allocation320_spill] sm:$0xff]  ;;  %v914_v50 = vadd.f32 %v879_v20, %v778_v54  ;;  %v915_v53 = vadd.f32 %v880_v11, %v779_v56  ;;  %v640_v22 = vadd.f32 %v20868_v39, %v486_v23  ;;  %v20877_v54 = vld [vmem:[#allocation315_spill] sm:$0xff]  ;;  %v639_v40 = vadd.f32 %v605_v18, %v485_v1  ;;  %v20882_v43 = vld [vmem:[#allocation65_spill] sm:$0xff]  ;;  %s13310_s14 = smov 91  }
 0x4c6   : > { %v1014_v33 = vsel %vm20867_vm5, %v20866_v45, %v20865_v19  ;;  %v16735_v44 = vpop.permute.xlu1 %1001  ;;  %v1015_v24 = vsel %vm20872_vm3, %v20865_v19, %v20871_v3  ;;  %v916_v25 = vadd.f32 %v881_v46, %v780_v61  ;;  %v20878_v20 = vld [vmem:[#allocation92_spill] sm:$0xff]  ;;  %v20880_v45 = vld [vmem:[#allocation319_spill] sm:$0xff]  ;;  %vm20887_vm5 = vcmask 785408  }
 0x4c7   : > { %20870 = vst [vmem:[#allocation38_spill] sm:$0xff] %v16735_v44  ;;  %v1049_v5 = vadd.f32 %v1014_v33, %v913_v16  ;;  %v1013_v19 = vsel %vm20879_vm8, %v20878_v20, %v20877_v54  ;;  %v16756_v3 = vsel %vm1139_vm4, %v20643_v15, %v20880_v45  ;;  %v1050_v11 = vadd.f32 %v1015_v24, %v914_v50  ;;  %v20883_v23 = vld [vmem:[#allocation327_spill] sm:$0xff]  ;;  %v20885_v16 = vld [vmem:[#allocation321_spill] sm:$0xff]  ;;  %v20886_v39 = vld [vmem:[#allocation324_spill] sm:$0xff] }
 0x4c8   : > { %v1051_v46 = vadd.f32 %v1016_v7, %v915_v53  ;;  %v1052_v33 = vadd.f32 %v1017_v2, %v916_v25  ;;  %v1151_v56 = vsel %vm1139_vm4, %v20847_v29, %v20883_v23  ;;  %v16769_v20 = vsel %vm20887_vm5, %v20886_v39, %v20885_v16  ;;  %v20888_v15 = vld [vmem:[#allocation302_spill] sm:$0xff]  ;;  %v20889_v50 = vld [vmem:[#allocation332_spill] sm:$0xff]  ;;  %v20890_v18 = vld [vmem:[#allocation83_spill] sm:$0xff] }
 0x4c9   : > { %3345 = vrot.lane.b32.xlu1 %v3283_v42, %s20392_s21  ;;  %v736_v42 = vsel %vm731_vm1, %v20882_v43, %v20881_v60  ;;  %v1152_v1 = vsel %vm1139_vm4, %v20883_v23, %v20888_v15  ;;  %v770_v43 = vadd.f32 %v20881_v60, %v634_v59  ;;  %vm20891_vm3 = vcmask 809984   ;;  %v20892_v29 = vld [vmem:[#allocation329_spill] sm:$0xff]  ;;  %v20893_v39 = vld [vmem:[#allocation326_spill] sm:$0xff]  ;;  %s13303_s21 = smov 113  }
 0x4ca   : > { %v16764_v61 = vpop.permute.xlu1 %2881  ;;  %v1286_v24 = vsel %vm20891_vm3, %v20890_v18, %v20889_v50  ;;  %v1153_v7 = vsel %vm1139_vm4, %v20888_v15, %v20892_v29  ;;  %v769_v2 = vadd.f32 %v736_v42, %v633_v57  ;;  %v1185_v53 = vadd.f32 %v1150_v58, %v1049_v5  ;;  %vm20895_vm7 = vmmov %vm20891_vm3  ;;  %v20896_v44 = vld [vmem:[#allocation337_spill] sm:$0xff]  ;;  %v20897_v18 = vld [vmem:[#allocation80_spill] sm:$0xff]  ;;  %v16798_v5 = vpop.permute.xlu0 %1409 }
 0x4cb   : > { %20884 = vst [vmem:[#allocation36_spill] sm:$0xff] %v16764_v61  ;;  %v776_v25 = vadd.f32 %v20853_v35, %v640_v22  ;;  %v20894_v61 = vld [vmem:[#allocation115_spill] sm:$0xff]  ;;  %v1186_v59 = vadd.f32 %v1151_v56, %v1050_v11  ;;  %v775_v60 = vadd.f32 %v741_v63, %v639_v40  ;;  %v877_v31 = vsel %vm867_vm2, %v20897_v18, %v20896_v44  ;;  %vm20899_vm6 = vmmov %vm20891_vm3  ;;  %v20900_v57 = vld [vmem:[#allocation334_spill] sm:$0xff] }
 0x4cc   : > { %v16787_v23 = vsel %vm20895_vm7, %v20894_v61, %v20893_v39  ;;  %v1287_v15 = vsel %vm20899_vm6, %v20889_v50, %v20898_v34  ;;  %vm20901_vm8 = vmmov %vm20891_vm3  ;;  %v1321_v35 = vadd.f32 %v1286_v24, %v1185_v53  ;;  %20902 = vst [vmem:[#allocation56_spill] sm:$0xff] %v16798_v5  ;;  %v1188_v42 = vadd.f32 %v1153_v7, %v1052_v33  ;;  %v20903_v63 = vld [vmem:[#allocation308_spill] sm:$0xff]  ;;  %v20905_v56 = vld [vmem:[#allocation331_spill] sm:$0xff] }
 0x4cd   : > { %3496 = vrot.lane.b32.xlu1 %v16656_v10, %s20403_s24  ;;  %v1187_v10 = vadd.f32 %v1152_v1, %v1051_v46  ;;  %v1288_v58 = vsel %vm20901_vm8, %v20898_v34, %v20900_v57  ;;  %vm20904_vm5 = vmmov %vm20891_vm3  ;;  %v912_v11 = vadd.f32 %v20896_v44, %v776_v25  ;;  %v906_v46 = vadd.f32 %v20855_v55, %v770_v43  ;;  %v20907_v50 = vld [vmem:[#allocation96_spill] sm:$0xff]  ;;  %v20909_v53 = vld [vmem:[#allocation339_spill] sm:$0xff]  ;;  %s13307_s24 = smov 102  }
 0x4ce   : > { %v16800_v22 = vpop.permute.xlu1 %3486  ;;  %v1289_v40 = vsel %vm20904_vm5, %v20900_v57, %v20903_v63  ;;  %vm20906_vm3 = vcmask 801792   ;;  %v911_v61 = vadd.f32 %v877_v31, %v775_v60  ;;  %v905_v1 = vadd.f32 %v872_v36, %v769_v2  ;;  %v20911_v44 = vld [vmem:[#allocation26_spill] sm:$0xff]  ;;  %v20913_v25 = vld [vmem:[#allocation333_spill] sm:$0xff]  ;;  %v20917_v18 = vld [vmem:[#allocation343_spill] sm:$0xff] }
 0x4cf   : > { %v16812_v34 = vsel %vm20906_vm3, %v20659_v21, %v20905_v56  ;;  %vm20908_vm7 = vcmask 1014784   ;;  %v1322_v24 = vadd.f32 %v1287_v15, %v1186_v59  ;;  %v1323_v7 = vadd.f32 %v1288_v58, %v1187_v10  ;;  %vm20910_vm6 = vmmov %vm20906_vm3  ;;  %v20914_v21 = vld [vmem:[#allocation336_spill] sm:$0xff]  ;;  %v20916_v59 = vld [vmem:[#allocation341_spill] sm:$0xff] }
 0x4d0   : > { %v1008_v33 = vsel %vm20908_vm7, %v20635_v0, %v20907_v50  ;;  %v1423_v55 = vsel %vm20910_vm6, %v20860_v49, %v20909_v53  ;;  %vm20912_vm8 = vmmov %vm20906_vm3  ;;  %v1324_v43 = vadd.f32 %v1289_v40, %v1188_v42  ;;  %vm20915_vm5 = vcmask 580608   ;;  %v20918_v10 = vld [vmem:[#allocation28_spill] sm:$0xff]  ;;  %v20920_v58 = vld [vmem:[#allocation338_spill] sm:$0xff] }
 0x4d1   : > { %3647 = vrot.lane.b32.xlu1 %v16660_v48, %s20414_s13  ;;  %v1424_v48 = vsel %vm20912_vm8, %v20909_v53, %v20911_v44  ;;  %v16826_v31 = vsel %vm20915_vm5, %v20914_v21, %v20913_v25  ;;  %v1042_v36 = vadd.f32 %v20907_v50, %v906_v46  ;;  %v1457_v0 = vadd.f32 %v16721_v32, %v1321_v35  ;;  %v20921_v42 = vld [vmem:[#allocation138_spill] sm:$0xff]  ;;  %v16846_v50 = vpop.permute.xlu0 %3315  ;;  %v20926_v53 = vld [vmem:[#allocation345_spill] sm:$0xff]  ;;  %v20931_v21 = vld [vmem:[#allocation103_spill] sm:$0xff]  ;;  %s13309_s13 = smov 92  }
 0x4d2   : > { %v16830_v2 = vpop.permute.xlu1 %3490  ;;  %v1425_v49 = vsel %vm20906_vm3, %v20911_v44, %v20916_v59  ;;  %v1041_v60 = vadd.f32 %v1008_v33, %v905_v1  ;;  %vm20919_vm7 = vcmask 793600   ;;  %v1048_v57 = vadd.f32 %v20877_v54, %v912_v11  ;;  %20923 = vst [vmem:[#allocation39_spill] sm:$0xff] %v16846_v50  ;;  %v20924_v1 = vld [vmem:[#allocation27_spill] sm:$0xff]  ;;  %v20928_v11 = vld [vmem:[#allocation318_spill] sm:$0xff]  ;;  %v20930_v44 = vld [vmem:[#allocation348_spill] sm:$0xff] }
 0x4d3   : > { %v1558_v15 = vsel %vm20919_vm7, %v20918_v10, %v20917_v18  ;;  %vm20922_vm6 = vmmov %vm20919_vm7  ;;  %v1458_v35 = vadd.f32 %v1423_v55, %v1322_v24  ;;  %v1459_v40 = vadd.f32 %v1424_v48, %v1323_v7  ;;  %v1047_v46 = vadd.f32 %v1013_v19, %v911_v61  ;;  %v20932_v19 = vld [vmem:[#allocation31_spill] sm:$0xff]  ;;  %v20933_v61 = vld [vmem:[#allocation146_spill] sm:$0xff] }
 0x4d4   : > { %v16844_v32 = vsel %vm20922_vm6, %v20921_v42, %v20920_v58  ;;  %vm20925_vm8 = vmmov %vm20922_vm6  ;;  %v1149_v24 = vsel %vm1139_vm4, %v20931_v21, %v20930_v44  ;;  %v1460_v7 = vadd.f32 %v1425_v49, %v1324_v43  ;;  %vm20934_vm7 = vcmask 785408   ;;  %v20942_v59 = vld [vmem:[#allocation328_spill] sm:$0xff]  ;;  %v20972_v63 = vld [vmem:[#allocation102_spill] sm:$0xff] }
 0x4d5   : > { %3798 = vrot.lane.b32.xlu1 %v16664_v13, %s20478_s22  ;;  %v1559_v33 = vsel %vm20925_vm8, %v20917_v18, %v20924_v1  ;;  %vm20927_vm5 = vmmov %vm20922_vm6  ;;  %v16863_v55 = vsel %vm20934_vm7, %v20933_v61, %v20932_v19  ;;  %v1593_v48 = vadd.f32 %v1558_v15, %v1457_v0  ;;  %v1178_v18 = vadd.f32 %v20880_v45, %v1042_v36  ;;  %v20939_v15 = vld [vmem:[#allocation344_spill] sm:$0xff]  ;;  %v20940_v45 = vld [vmem:[#allocation347_spill] sm:$0xff]  ;;  %s13306_s22 = smov 103  }
 0x4d6   : > { %v1560_v54 = vsel %vm20927_vm5, %v20924_v1, %v20926_v53  ;;  %vm20929_vm3 = vmmov %vm20927_vm5  ;;  %v16866_v10 = vpop.permute.xlu1 %3870  ;;  %v1184_v42 = vadd.f32 %v20930_v44, %v1048_v57  ;;  %v20935_v1 = vld [vmem:[#allocation349_spill] sm:$0xff]  ;;  %v1177_v49 = vadd.f32 %v16756_v3, %v1041_v60  ;;  %v1594_v21 = vadd.f32 %v1559_v33, %v1458_v35  ;;  %v20943_v57 = vld [vmem:[#allocation354_spill] sm:$0xff] }
 0x4d7   : > { %v1561_v13 = vsel %vm20929_vm3, %v20926_v53, %v20928_v11  ;;  %vm20936_vm6 = vmmov %vm20934_vm7  ;;  %v20937_v11 = vld [vmem:[#allocation323_spill] sm:$0xff]  ;;  %v1595_v61 = vadd.f32 %v1560_v54, %v1459_v40  ;;  %v1183_v0 = vadd.f32 %v1149_v24, %v1047_v46  ;;  %vm20941_vm5 = vcmask 564224   ;;  %v20945_v5 = vld [vmem:[#allocation356_spill] sm:$0xff]  ;;  %v16892_v54 = vpop.permute.xlu0 %3329 }
 0x4d8   : > { %v1695_v53 = vsel %vm20936_vm6, %v20885_v16, %v20935_v1  ;;  %vm20938_vm8 = vmmov %vm20936_vm6  ;;  %v1596_v50 = vadd.f32 %v1561_v13, %v1460_v7  ;;  %v2238_v36 = vsel %vm20941_vm5, %v20940_v45, %v20939_v15  ;;  %vm20944_vm3 = vcmask 588800   ;;  %v20949_v40 = vld [vmem:[#allocation351_spill] sm:$0xff]  ;;  %20950 = vst [vmem:[#allocation60_spill] sm:$0xff] %v16892_v54  ;;  %v20951_v24 = vld [vmem:[#allocation32_spill] sm:$0xff] }
 0x4d9   : > { %v1696_v43 = vsel %vm20938_vm8, %v20935_v1, %v20937_v11  ;;  %v1831_v44 = vsel %vm20944_vm3, %v20943_v57, %v20942_v59  ;;  %vm20946_vm7 = vmmov %vm20944_vm3  ;;  %v20947_v1 = vld [vmem:[#allocation358_spill] sm:$0xff]  ;;  %v1730_v60 = vadd.f32 %v1695_v53, %v1594_v21  ;;  %v1697_v46 = vsel %vm20938_vm8, %v20937_v11, %v20949_v40  ;;  %v20954_v53 = vld [vmem:[#allocation41_spill] sm:$0xff] }
 0x4da   : > { %v1832_v16 = vsel %vm20946_vm7, %v20942_v59, %v20945_v5  ;;  %vm20948_vm6 = vmmov %vm20944_vm3  ;;  %v1731_v35 = vadd.f32 %v1696_v43, %v1595_v61  ;;  %v1729_v33 = vadd.f32 %v16769_v20, %v1593_v48  ;;  %v16894_v13 = vpop.permute.xlu1 %3484  ;;  %v20952_v7 = vld [vmem:[#allocation162_spill] sm:$0xff]  ;;  %v16902_v45 = vadd.f32 %v20893_v39, %v1184_v42  ;;  %v20956_v21 = vld [vmem:[#allocation335_spill] sm:$0xff] }
 0x4db   : > { %v1830_v3 = vsel %vm20948_vm6, %v20947_v1, %v20943_v57  ;;  %vm20953_vm5 = vmmov %vm20944_vm3  ;;  %vm20955_vm3 = vcmask 580608   ;;  %v1866_v11 = vadd.f32 %v1831_v44, %v1730_v60  ;;  %v1319_v57 = vadd.f32 %v16787_v23, %v1183_v0  ;;  %v12529_v1 = vld [vmem:[%s19499_s3 + $0x4] ss:$8 sps:$4 sm:$0xff]   ;;  %v12531_v39 = vld [vmem:[%s19499_s3] ss:$8 sps:$4 sm:$0xff]  }
 0x4dc   : > { %v16899_v59 = vsel %vm20953_vm5, %v20952_v7, %v20951_v24  ;;  %v1967_v43 = vsel %vm20955_vm3, %v20913_v25, %v20954_v53  ;;  %vm20957_vm7 = vmmov %vm20955_vm3  ;;  %v1867_v48 = vadd.f32 %v1832_v16, %v1731_v35  ;;  %v1865_v61 = vadd.f32 %v1830_v3, %v1729_v33  ;;  %v20958_v7 = vld [vmem:[#allocation330_spill] sm:$0xff]  ;;  %v20960_v40 = vld [vmem:[#allocation340_spill] sm:$0xff]  ;;  %4634 = vmatprep.subr.bf16.mxu0 %v12529_v1  ;;  %v16947_v1 = vpop.permute.xlu0 %1545 }
 0x4dd   : > { %v1968_v20 = vsel %vm20957_vm7, %v20954_v53, %v20956_v21  ;;  %v1732_v42 = vadd.f32 %v1697_v46, %v1596_v50  ;;  %vm20959_vm6 = vmmov %vm20953_vm5  ;;  %v20961_v53 = vld [vmem:[#allocation68_spill] sm:$0xff]  ;;  %vm20962_vm8 = vcmask 572416   ;;  %v20963_v16 = vld [vmem:[#allocation73_spill] sm:$0xff]  ;;  %vm20967_vm3 = vcmask 809984   ;;  %4635 = vmatpush1.bf16.msra.mxu0 %v12531_v39  ;;  %20976 = vst [vmem:[#allocation50_spill] sm:$0xff] %v16947_v1 }
 0x4de   : > { %v1833_v25 = vsel %vm20959_vm6, %v20945_v5, %v20958_v7  ;;  %v2103_v44 = vsel %vm20962_vm8, %v20961_v53, %v20960_v40  ;;  %vm20964_vm5 = vmmov %vm20962_vm8  ;;  %v20965_v0 = vld [vmem:[#allocation118_spill] sm:$0xff]  ;;  %v20966_v3 = vld [vmem:[#allocation111_spill] sm:$0xff]  ;;  %v2002_v50 = vadd.f32 %v1967_v43, %v1866_v11  ;;  %v2003_v46 = vadd.f32 %v1968_v20, %v1867_v48  ;;  %v16932_v33 = vpop.permute.xlu1 %3029 }
 0x4df   : > { %v2104_v23 = vsel %vm20964_vm5, %v20960_v40, %v20963_v16  ;;  %v1280_v60 = vsel %vm20967_vm3, %v20966_v3, %v20965_v0  ;;  %v16930_v35 = vadd.f32 %v20965_v0, %v1178_v18  ;;  %20968 = vst [vmem:[#allocation62_spill] sm:$0xff] %v16932_v33  ;;  %v20969_v5 = vld [vmem:[#allocation49_spill] sm:$0xff]  ;;  %vm20971_vm6 = vmmov %vm20964_vm5  ;;  %vm20973_vm8 = vcmask 564224   ;;  %v20974_v29 = vld [vmem:[#allocation346_spill] sm:$0xff] }
 0x4e0   : > { %v1969_v7 = vsel %vm20957_vm7, %v20956_v21, %v20969_v5  ;;  %v20970_v54 = vld [vmem:[#allocation109_spill] sm:$0xff]  ;;  %v2239_v3 = vsel %vm20973_vm8, %v20939_v15, %v20972_v63  ;;  %vm20975_vm5 = vmmov %vm20973_vm8  ;;  %v1868_v43 = vadd.f32 %v1833_v25, %v1732_v42  ;;  %v2138_v20 = vadd.f32 %v2103_v44, %v2002_v50  ;;  %v20977_v21 = vld [vmem:[#allocation30_spill] sm:$0xff] }
 0x4e1   : > { %v2102_v40 = vsel %vm20971_vm6, %v20970_v54, %v20961_v53  ;;  %v2240_v18 = vsel %vm20975_vm5, %v20972_v63, %v20974_v29  ;;  %v2139_v11 = vadd.f32 %v2104_v23, %v2003_v46  ;;  %v2001_v48 = vadd.f32 %v16826_v31, %v1865_v61  ;;  %v20978_v0 = vld [vmem:[#allocation127_spill] sm:$0xff]  ;;  %v20980_v53 = vld [vmem:[#allocation342_spill] sm:$0xff]  ;;  %vm20981_vm7 = vmmov %vm20971_vm6 }
 0x4e2   : > { %vm20979_vm3 = vcmask 801792   ;;  %v2105_v15 = vsel %vm20981_vm7, %v20963_v16, %v20980_v53  ;;  %v20982_v5 = vld [vmem:[#allocation350_spill] sm:$0xff]  ;;  %v20983_v33 = vld [vmem:[#allocation124_spill] sm:$0xff]  ;;  %vm20984_vm6 = vcmask 556032   ;;  %v20985_v39 = vld [vmem:[#allocation135_spill] sm:$0xff]  ;;  %v2004_v25 = vadd.f32 %v1969_v7, %v1868_v43  ;;  %v16961_v23 = vpop.permute.xlu1 %3639 }
 0x4e3   : > { %v1421_v54 = vsel %vm20979_vm3, %v20978_v0, %v20977_v21  ;;  %v2375_v63 = vsel %vm20984_vm6, %v20983_v33, %v20982_v5  ;;  %vm20986_vm8 = vmmov %vm20984_vm6  ;;  %v2137_v31 = vadd.f32 %v2102_v40, %v2001_v48  ;;  %v2274_v61 = vadd.f32 %v2239_v3, %v2138_v20  ;;  %v20987_v46 = vld [vmem:[#allocation108_spill] sm:$0xff]  ;;  %v20988_v16 = vld [vmem:[#allocation214_spill] sm:$0xff] }
 0x4e4   : > { %v2376_v42 = vsel %vm20986_vm8, %v20982_v5, %v20985_v39  ;;  %v2275_v44 = vadd.f32 %v2240_v18, %v2139_v11  ;;  %v1313_v50 = vadd.f32 %v1280_v60, %v1177_v49  ;;  %v2241_v0 = vsel %vm20975_vm5, %v20974_v29, %v20987_v46  ;;  %v20989_v53 = vld [vmem:[#allocation355_spill] sm:$0xff]  ;;  %v20993_v18 = vld [vmem:[#allocation352_spill] sm:$0xff]  ;;  %vm20995_vm8 = vmmov %vm20984_vm6 }
 0x4e5   : > { %vm20990_vm3 = vcmask 359424   ;;  %v1455_v5 = vadd.f32 %v1421_v54, %v1319_v57  ;;  %v2140_v7 = vadd.f32 %v2105_v15, %v2004_v25  ;;  %v2410_v40 = vadd.f32 %v2375_v63, %v2274_v61  ;;  %v20994_v60 = vld [vmem:[#allocation151_spill] sm:$0xff]  ;;  %v20997_v20 = vld [vmem:[#allocation213_spill] sm:$0xff]  ;;  %v20999_v48 = vld [vmem:[#allocation220_spill] sm:$0xff] }
 0x4e6   : > { %v2511_v1 = vsel %vm20990_vm3, %v20989_v53, %v20988_v16  ;;  %vm20992_vm7 = vmmov %vm20990_vm3  ;;  %v2411_v3 = vadd.f32 %v2376_v42, %v2275_v44  ;;  %v2377_v49 = vsel %vm20984_vm6, %v20985_v39, %v20993_v18  ;;  %v2374_v29 = vsel %vm20995_vm8, %v20994_v60, %v20983_v33  ;;  %v20996_v43 = vld [vmem:[#allocation63_spill] sm:$0xff]  ;;  %v16984_v42 = vpop.permute.xlu0 %3468  ;;  %v16986_v25 = vpop.permute.xlu1 %3643  ;;  %v21001_v61 = vld [vmem:[#allocation225_spill] sm:$0xff] }
 0x4e7   : > { %v2512_v37 = vsel %vm20992_vm7, %v20988_v16, %v20991_v6  ;;  %vm20998_vm5 = vcmask 351232   ;;  %v2276_v57 = vadd.f32 %v2241_v0, %v2140_v7  ;;  %v2273_v54 = vadd.f32 %v2238_v36, %v2137_v31  ;;  %v21002_v44 = vld [vmem:[#allocation238_spill] sm:$0xff]  ;;  %v21003_v60 = vld [vmem:[#allocation97_spill] sm:$0xff] }
 0x4e8   : > { %v2647_v11 = vsel %vm20998_vm5, %v20997_v20, %v20996_v43  ;;  %vm21000_vm3 = vmmov %vm20998_vm5  ;;  %v2546_v15 = vadd.f32 %v2511_v1, %v2410_v40  ;;  %v2547_v63 = vadd.f32 %v2512_v37, %v2411_v3  ;;  %v1449_v39 = vadd.f32 %v16812_v34, %v1313_v50  ;;  %v21005_v46 = vld [vmem:[#allocation77_spill] sm:$0xff]  ;;  %v21009_v50 = vld [vmem:[#allocation74_spill] sm:$0xff] }
 0x4e9   : > { %v2648_v16 = vsel %vm21000_vm3, %v20996_v43, %v20999_v48  ;;  %v2513_v33 = vsel %vm20992_vm7, %v20991_v6, %v21001_v61  ;;  %vm21004_vm6 = vcmask 343040   ;;  %v2412_v1 = vadd.f32 %v2377_v49, %v2276_v57  ;;  %v21007_v7 = vld [vmem:[#allocation29_spill] sm:$0xff]  ;;  %vm21008_vm5 = vmmov %vm20992_vm7  ;;  %v21010_v40 = vld [vmem:[#allocation132_spill] sm:$0xff] }
 0x4ea   : > { %v2783_v18 = vsel %vm21004_vm6, %v21003_v60, %v21002_v44  ;;  %vm21006_vm8 = vmmov %vm21004_vm6  ;;  %v2409_v37 = vadd.f32 %v2374_v29, %v2273_v54  ;;  %v2682_v31 = vadd.f32 %v2647_v11, %v2546_v15  ;;  %v2683_v0 = vadd.f32 %v2648_v16, %v2547_v63  ;;  %v17011_v57 = vpop.permute.xlu1 %3635  ;;  %v21013_v15 = vld [vmem:[#allocation167_spill] sm:$0xff] }
 0x4eb   : > { %v2784_v36 = vsel %vm21006_vm8, %v21002_v44, %v21005_v46  ;;  %v2510_v34 = vsel %vm21008_vm5, %v21007_v7, %v20989_v53  ;;  %v2649_v6 = vsel %vm21000_vm3, %v20999_v48, %v21009_v50  ;;  %v2919_v3 = vsel %vm2907_vm12, %v16455_v14, %v21010_v40  ;;  %v21011_v53 = vld [vmem:[#allocation230_spill] sm:$0xff]  ;;  %vm21012_vm7 = vmmov %vm21000_vm3  ;;  %v21018_v7 = vld [vmem:[#allocation204_spill] sm:$0xff] }
 0x4ec   : > { %v2920_v43 = vsel %vm2907_vm12, %v21010_v40, %v16482_v26  ;;  %v1591_v49 = vadd.f32 %v16844_v32, %v1455_v5  ;;  %v2548_v29 = vadd.f32 %v2513_v33, %v2412_v1  ;;  %v2818_v11 = vadd.f32 %v2783_v18, %v2682_v31  ;;  %v21014_v1 = vld [vmem:[#allocation57_spill] sm:$0xff]  ;;  %vm21020_vm5 = vmmov %vm21004_vm6 }
 0x4ed   : > { %v2819_v16 = vadd.f32 %v2784_v36, %v2683_v0  ;;  %v2646_v54 = vsel %vm21012_vm7, %v21011_v53, %v20997_v20  ;;  %v2785_v48 = vsel %vm21004_vm6, %v21005_v46, %v16388_v38  ;;  %v3055_v63 = vsel %vm3043_vm11, %v16562_v27, %v21013_v15  ;;  %v17025_v36 = vpop.permute.xlu0 %3482  ;;  %v21015_v20 = vld [vmem:[#allocation134_spill] sm:$0xff]  ;;  %v21017_v0 = vld [vmem:[#allocation112_spill] sm:$0xff]  ;;  %v21021_v53 = vld [vmem:[#allocation145_spill] sm:$0xff] }
 0x4ee   : > { %v3056_v32 = vsel %vm3043_vm11, %v21013_v15, %v16573_v4  ;;  %v2684_v5 = vadd.f32 %v2649_v6, %v2548_v29  ;;  %v2545_v18 = vadd.f32 %v2510_v34, %v2409_v37  ;;  %v2954_v33 = vadd.f32 %v2919_v3, %v2818_v11  ;;  %v17039_v29 = vpop.permute.xlu1 %3166  ;;  %v21019_v11 = vld [vmem:[#allocation89_spill] sm:$0xff]  ;;  %v21022_v15 = vld [vmem:[#allocation224_spill] sm:$0xff] }
 0x4ef   : > { %v2955_v44 = vadd.f32 %v2920_v43, %v2819_v16  ;;  %vm21016_vm8 = vcmask 793600   ;;  %v2921_v46 = vsel %vm2907_vm12, %v16482_v26, %v21017_v0  ;;  %v3210_v40 = vsel %vm3196_vm9, %v16609_v12, %v21018_v7 }
 0x4f0   : > { %v1552_v31 = vsel %vm21016_vm8, %v21015_v20, %v21014_v1  ;;  %v3211_v37 = vsel %vm3196_vm9, %v21018_v7, %v16616_v28  ;;  %v2681_v34 = vadd.f32 %v2646_v54, %v2545_v18  ;;  %v2820_v6 = vadd.f32 %v2785_v48, %v2684_v5  ;;  %v21023_v48 = vld [vmem:[#allocation121_spill] sm:$0xff] }
 0x4f1   : > { %v3090_v3 = vadd.f32 %v3055_v63, %v2954_v33  ;;  %v3091_v43 = vadd.f32 %v3056_v32, %v2955_v44  ;;  %v2782_v16 = vsel %vm21020_vm5, %v21019_v11, %v21003_v60  ;;  %v3057_v26 = vsel %vm3043_vm11, %v16573_v4, %v21021_v53  ;;  %v21024_v63 = vld [vmem:[#allocation150_spill] sm:$0xff]  ;;  %v21027_v4 = vld [vmem:[#allocation235_spill] sm:$0xff] }
 0x4f2   : > { %v3361_v20 = vsel %vm3347_vm13, %v16650_v41, %v21022_v15  ;;  %v3362_v54 = vsel %vm3347_vm13, %v21022_v15, %v16700_v8  ;;  %vm21025_vm3 = vcmask 785408   ;;  %v2956_v5 = vadd.f32 %v2921_v46, %v2820_v6  ;;  %v21026_v60 = vld [vmem:[#allocation142_spill] sm:$0xff]  ;;  %v17068_v6 = vpop.permute.xlu0 %3617 }
 0x4f3   : > { %v1693_v32 = vsel %vm21025_vm3, %v21024_v63, %v21023_v48  ;;  %v3246_v18 = vadd.f32 %v3210_v40, %v3090_v3  ;;  %v3247_v33 = vadd.f32 %v3211_v37, %v3091_v43  ;;  %v2918_v44 = vsel %vm2907_vm12, %v21026_v60, %v16455_v14  ;;  %v17070_v3 = vpop.permute.xlu1 %3180  ;;  %v21028_v14 = vld [vmem:[#allocation170_spill] sm:$0xff] }
 0x4f4   : > { %v3212_v7 = vsel %vm3196_vm9, %v16616_v28, %v21027_v4  ;;  %v3512_v11 = vsel %vm3498_vm14, %v16800_v22, %v16439_v17  ;;  %v3513_v15 = vsel %vm3498_vm14, %v16439_v17, %v16830_v2  ;;  %v2817_v63 = vadd.f32 %v2782_v16, %v2681_v34  ;;  %v21029_v43 = vld [vmem:[#allocation234_spill] sm:$0xff] }
 0x4f5   : > { %v3092_v46 = vadd.f32 %v3057_v26, %v2956_v5  ;;  %v3397_v40 = vadd.f32 %v3361_v20, %v3246_v18  ;;  %v3398_v37 = vadd.f32 %v3362_v54, %v3247_v33  ;;  %v3054_v28 = vsel %vm3043_vm11, %v21028_v14, %v16562_v27  ;;  %v21030_v27 = vld [vmem:[#allocation241_spill] sm:$0xff] }
 0x4f6   : > { %v3363_v60 = vsel %vm3347_vm13, %v16700_v8, %v21029_v43  ;;  %v3663_v17 = vsel %vm3649_vm15, %v16579_v30, %v16961_v23  ;;  %v3664_v34 = vsel %vm3649_vm15, %v16961_v23, %v16599_v52  ;;  %v2953_v16 = vadd.f32 %v2918_v44, %v2817_v63  ;;  %v12532_v14 = vld [vmem:[%s19499_s3 + $0x14] ss:$8 sps:$4 sm:$0xff]  }
 0x4f7   : > { %v3248_v26 = vadd.f32 %v3212_v7, %v3092_v46  ;;  %v3548_v20 = vadd.f32 %v3512_v11, %v3397_v40  ;;  %v3549_v54 = vadd.f32 %v3513_v15, %v3398_v37  ;;  %v1585_v5 = vadd.f32 %v1552_v31, %v1449_v39  ;;  %v3791_v11 = vpop.permute.xlu1 %3790  ;;  %v12534_v39 = vld [vmem:[%s19499_s3 + $0x10] ss:$8 sps:$4 sm:$0xff]   ;;  %4636 = vmatprep.subr.bf16.mxu0 %v12532_v14  ;;  %v17109_v46 = vpop.permute.xlu0 %3631 }
 0x4f8   : > { %v1727_v18 = vadd.f32 %v1693_v32, %v1591_v49  ;;  %v3209_v33 = vsel %vm3196_vm9, %v21030_v27, %v16609_v12  ;;  %v3514_v8 = vsel %vm3498_vm14, %v16830_v2, %v16480_v47  ;;  %v3089_v43 = vadd.f32 %v3054_v28, %v2953_v16  ;;  %v12535_v12 = vld [vmem:[%s19499_s3 + $0x24] ss:$8 sps:$4 sm:$0xff]   ;;  %4637 = vmatpush1.bf16.msra.mxu0 %v12534_v39 }
 0x4f9   : > { %v3399_v23 = vadd.f32 %v3363_v60, %v3248_v26  ;;  %v3699_v44 = vadd.f32 %v3663_v17, %v3548_v20  ;;  %v3700_v7 = vadd.f32 %v3664_v34, %v3549_v54  ;;  %v3360_v2 = vsel %vm3347_vm13, %v16377_v62, %v16650_v41  ;;  %v12537_v62 = vld [vmem:[%s19499_s3 + $0x20] ss:$8 sps:$4 sm:$0xff]   ;;  %4638 = vmatprep.subr.bf16.mxu0 %v12535_v12 }
 0x4fa   : > { %v3665_v49 = vsel %vm3649_vm15, %v16599_v52, %v16986_v25  ;;  %v3814_v31 = vsel %vm3800_vm10, %v16698_v51, %v3791_v11  ;;  %v3815_v32 = vsel %vm3800_vm10, %v3791_v11, %v16748_v9  ;;  %v3245_v15 = vadd.f32 %v3209_v33, %v3089_v43  ;;  %v21035_v20 = vld [vmem:[#allocation173_spill] sm:$0xff] }
 0x4fb   : > { %v3550_v63 = vadd.f32 %v3514_v8, %v3399_v23  ;;  %v3850_v40 = vadd.f32 %v3814_v31, %v3699_v44  ;;  %v3851_v37 = vadd.f32 %v3815_v32, %v3700_v7  ;;  %v1456_v41 = vadd.f32 %v20977_v21, %v16902_v45  ;;  %v17127_v26 = vpop.permute.xlu1 %3794  ;;  %v21031_v45 = vld [vmem:[#allocation144_spill] sm:$0xff]  ;;  %v21032_v21 = vld [vmem:[#allocation158_spill] sm:$0xff]  ;;  %v17149_v44 = vpop.permute.xlu0 %1817  ;;  %v21037_v32 = vld [vmem:[#allocation353_spill] sm:$0xff] }
 0x4fc   : > { %v1721_v52 = vadd.f32 %v16863_v55, %v1585_v5  ;;  %v1863_v28 = vadd.f32 %v16899_v59, %v1727_v18  ;;  %v3511_v43 = vsel %vm3498_vm14, %v16894_v13, %v16800_v22  ;;  %v3396_v60 = vadd.f32 %v3360_v2, %v3245_v15  ;;  %v21034_v59 = vld [vmem:[#allocation157_spill] sm:$0xff]  ;;  %4639 = vmatpush1.bf16.msra.mxu0 %v12537_v62 }
 0x4fd   : > { %v3701_v17 = vadd.f32 %v3665_v49, %v3550_v63  ;;  %v17122_v34 = vadd.f32 %v16866_v10, %v3850_v40  ;;  %v17125_v16 = vadd.f32 %v16866_v10, %v3851_v37  ;;  %vm21033_vm7 = vcmask 588800   ;;  %v12543_v31 = vld [vmem:[%s19499_s3 + $0x40] ss:$8 sps:$4 sm:$0xff]  }
 0x4fe   : > { %v1824_v55 = vsel %vm21033_vm7, %v21032_v21, %v21031_v45  ;;  %vm21036_vm6 = vcmask 580608   ;;  %v3662_v22 = vsel %vm3649_vm15, %v17011_v57, %v16579_v30  ;;  %v3816_v13 = vsel %vm3800_vm10, %v16748_v9, %v17127_v26  ;;  %v12538_v30 = vld [vmem:[%s19499_s3 + $0x34] ss:$8 sps:$4 sm:$0xff]  }
 0x4ff   : > { %v1965_v54 = vsel %vm21036_vm6, %v21035_v20, %v21034_v59  ;;  %v3547_v5 = vadd.f32 %v3511_v43, %v3396_v60  ;;  %v3904_v18 = vmax.f32 %v17122_v34, 0.0  ;;  %v3905_v27 = vmax.f32 %v17125_v16, 0.0  ;;  %v3787_v7 = vpop.permute.xlu1 %3786  ;;  %4640 = vmatprep.subr.bf16.mxu0 %v12538_v30  ;;  %v21038_v15 = vld [vmem:[#allocation169_spill] sm:$0xff]  ;;  %vm21039_vm8 = vmmov %vm21036_vm6 }
 0x500   : > { %v3852_v33 = vadd.f32 %v3816_v13, %v3701_v17  ;;  %v1450_v8 = vadd.f32 %v20905_v56, %v16930_v35  ;;  %v1592_v14 = vadd.f32 %v20920_v58, %v1456_v41  ;;  %v1857_v57 = vadd.f32 %v1824_v55, %v1721_v52  ;;  %v12540_v56 = vld [vmem:[%s19499_s3 + $0x30] ss:$8 sps:$4 sm:$0xff]   ;;  %v12541_v58 = vld [vmem:[%s19499_s3 + $0x44] ss:$8 sps:$4 sm:$0xff]   ;;  %v12544_v55 = vld [vmem:[%s19499_s3 + $0x54] ss:$8 sps:$4 sm:$0xff]  }
 0x501   : > { %v1999_v23 = vadd.f32 %v1965_v54, %v1863_v28  ;;  %v3698_v9 = vadd.f32 %v3662_v22, %v3547_v5  ;;  %v12434_v11 = vpack.i.bf16 %v3905_v27, %v3904_v18  ;;  %v3813_v12 = vsel %vm3800_vm10, %v3787_v7, %v16698_v51  ;;  %4641 = vmatpush1.bf16.msra.mxu0 %v12540_v56  ;;  %v21041_v63 = vld [vmem:[#allocation185_spill] sm:$0xff]  ;;  %v21046_v41 = vld [vmem:[#allocation240_spill] sm:$0xff]  ;;  %v17194_v5 = vpop.permute.xlu0 %3770  ;;  %v21051_v56 = vld [vmem:[#allocation86_spill] sm:$0xff] }
 0x502   : > { %v1586_v35 = vadd.f32 %v21014_v1, %v1450_v8  ;;  %v1728_v39 = vadd.f32 %v21023_v48, %v1592_v14  ;;  %v17166_v2 = vadd.f32 %v16866_v10, %v3852_v33  ;;  %v1960_v1 = vsel %vm21039_vm8, %v21038_v15, %v21037_v32  ;;  %v21040_v48 = vld [vmem:[#allocation52_spill] sm:$0xff]  ;;  %v21043_v40 = vld [vmem:[#allocation237_spill] sm:$0xff]  ;;  %4642 = vmatprep.subr.bf16.mxu0 %v12541_v58  ;;  %v21060_v15 = vld [vmem:[#allocation258_spill] sm:$0xff] }
 0x503   : > { %v3849_v49 = vadd.f32 %v3813_v12, %v3698_v9  ;;  %12435 = vrot.lane.b32.xlu0 %v12434_v11, %s20406_s12  ;;  %vm21042_vm5 = vcmask 572416   ;;  %v21044_v37 = vld [vmem:[#allocation181_spill] sm:$0xff]  ;;  %vm21048_vm7 = vcmask 564224   ;;  %v1993_v43 = vadd.f32 %v1960_v1, %v1857_v57  ;;  %v17187_v21 = vpop.permute.xlu1 %3317  ;;  %v12546_v14 = vld [vmem:[%s19499_s3 + $0x50] ss:$8 sps:$4 sm:$0xff]  }
 0x504   : > { %v2101_v51 = vsel %vm21042_vm5, %v21041_v63, %v21040_v48  ;;  %vm21045_vm3 = vmmov %vm21042_vm5  ;;  %v21047_v52 = vld [vmem:[#allocation197_spill] sm:$0xff]  ;;  %v1722_v20 = vadd.f32 %v20932_v19, %v1586_v35  ;;  %v1864_v54 = vadd.f32 %v20951_v24, %v1728_v39  ;;  %v19987_v33 = vmax.f32 %v17166_v2, 0.0  ;;  %v21049_v24 = vld [vmem:[#allocation34_spill] sm:$0xff] }
 0x505   : > { %v2096_v62 = vsel %vm21045_vm3, %v21044_v37, %v21043_v40  ;;  %v2237_v28 = vsel %vm21048_vm7, %v21047_v52, %v21046_v41  ;;  %v2135_v60 = vadd.f32 %v2101_v51, %v1999_v23  ;;  %v17185_v17 = vadd.f32 %v16866_v10, %v3849_v49  ;;  %4643 = vmatpush1.bf16.msra.mxu0 %v12543_v31  ;;  %v12547_v19 = vld [vmem:[%s19499_s3 + $0x64] ss:$8 sps:$4 sm:$0xff]   ;;  %vm21053_vm6 = vmmov %vm21048_vm7  ;;  %v21055_v35 = vld [vmem:[#allocation208_spill] sm:$0xff] }
 0x506   : > { %v2129_v22 = vadd.f32 %v2096_v62, %v1993_v43  ;;  %v1858_v30 = vadd.f32 %v21031_v45, %v1722_v20  ;;  %v2000_v57 = vadd.f32 %v21034_v59, %v1864_v54  ;;  %4644 = vmatprep.subr.bf16.mxu0 %v12544_v55  ;;  %v21050_v23 = vld [vmem:[#allocation22_spill] sm:$0xff]  ;;  %v21052_v58 = vld [vmem:[#allocation193_spill] sm:$0xff]  ;;  %v21054_v59 = vld [vmem:[#allocation228_spill] sm:$0xff]  ;;  %vm21056_vm8 = vcmask 556032  }
 0x507   : > { %v2271_v13 = vadd.f32 %v2237_v28, %v2135_v60  ;;  %v3903_v8 = vmax.f32 %v17185_v17, 0.0  ;;  %v491_v9 = vmul.f32 %v21050_v23, %v21049_v24  ;;  %v17212_v11 = vpop.permute.xlu1 %3331  ;;  %v2232_v45 = vsel %vm21053_vm6, %v21052_v58, %v21051_v56  ;;  %v21057_v12 = vld [vmem:[#allocation249_spill] sm:$0xff]  ;;  %vm21059_vm5 = vmmov %vm21056_vm8  ;;  %v21061_v1 = vld [vmem:[#allocation312_spill] sm:$0xff] }
 0x508   : > { %v2373_v39 = vsel %vm21056_vm8, %v21055_v35, %v21054_v59  ;;  %v21058_v49 = vld [vmem:[#allocation205_spill] sm:$0xff]  ;;  %v610_v63 = vsel %vm595_vm0, %v21061_v1, %v21060_v15  ;;  %v2265_v37 = vadd.f32 %v2232_v45, %v2129_v22  ;;  %v21062_v62 = vld [vmem:[#allocation248_spill] sm:$0xff]  ;;  %v1994_v43 = vadd.f32 %v21037_v32, %v1858_v30 }
 0x509   : > { %v12439_v7 = vpack.i.bf16 %v3903_v8, %v19987_v33  ;;  %v2368_v31 = vsel %vm21059_vm5, %v21058_v49, %v21057_v12  ;;  %v2407_v51 = vadd.f32 %v2373_v39, %v2271_v13  ;;  %v492_v52 = vmul.f32 %v21062_v62, %v21049_v24  ;;  %4645 = vmatpush1.bf16.msra.mxu0 %v12546_v14  ;;  %v12549_v28 = vld [vmem:[%s19499_s3 + $0x60] ss:$8 sps:$4 sm:$0xff]   ;;  %v21064_v20 = vld [vmem:[#allocation216_spill] sm:$0xff]  ;;  %v21072_v49 = vld [vmem:[#allocation227_spill] sm:$0xff] }
 0x50a   : > { %v2136_v60 = vadd.f32 %v21040_v48, %v2000_v57  ;;  %v21063_v55 = vld [vmem:[#allocation257_spill] sm:$0xff]  ;;  %vm21065_vm3 = vcmask 359424   ;;  %v21067_v22 = vld [vmem:[#allocation288_spill] sm:$0xff]  ;;  %4646 = vmatprep.subr.bf16.mxu0 %v12547_v19  ;;  %v2401_v32 = vadd.f32 %v2368_v31, %v2265_v37  ;;  %v645_v30 = vadd.f32 %v610_v63, %v491_v9  ;;  %v17247_v57 = vpop.permute.xlu0 %3784  ;;  %v21071_v39 = vld [vmem:[#allocation306_spill] sm:$0xff] }
 0x50b   : > { %12440 = vrot.lane.b32.xlu1 %v12439_v7, %s20406_s12  ;;  %v2504_v54 = vsel %vm21065_vm3, %v21064_v20, %v21063_v55  ;;  %v21066_v13 = vld [vmem:[#allocation269_spill] sm:$0xff]  ;;  %v21068_v24 = vld [vmem:[#allocation156_spill] sm:$0xff]  ;;  %v21069_v7 = vld [vmem:[#allocation219_spill] sm:$0xff]  ;;  %v646_v48 = vadd.f32 %v21060_v15, %v492_v52  ;;  %v17249_v45 = vpop.permute.xlu1 %3466  ;;  %v2130_v35 = vadd.f32 %v21043_v40, %v1994_v43  ;;  %vm21078_vm6 = vcmask 343040  }
 0x50c   : > { %v746_v23 = vsel %vm731_vm1, %v21067_v22, %v21066_v13  ;;  %v12550_v14 = vld [vmem:[%s19499_s3 + $0x74] ss:$8 sps:$4 sm:$0xff]   ;;  %vm21070_vm7 = vmmov %vm21065_vm3  ;;  %v2272_v19 = vadd.f32 %v21046_v41, %v2136_v60  ;;  %vm21073_vm1 = vcmask 351232   ;;  %v2537_v9 = vadd.f32 %v2504_v54, %v2401_v32  ;;  %v12552_v40 = vld [vmem:[%s19499_s3 + $0x70] ss:$8 sps:$4 sm:$0xff]  }
 0x50d   : > { %v2509_v58 = vsel %vm21070_vm7, %v21069_v7, %v21068_v24  ;;  %v2640_v1 = vsel %vm21073_vm1, %v21072_v49, %v21071_v39  ;;  %v21074_v62 = vld [vmem:[#allocation51_spill] sm:$0xff]  ;;  %v21075_v20 = vld [vmem:[#allocation21_spill] sm:$0xff]  ;;  %v781_v63 = vadd.f32 %v746_v23, %v645_v30  ;;  %v782_v15 = vadd.f32 %v21066_v13, %v646_v48  ;;  %4647 = vmatpush1.bf16.msra.mxu0 %v12549_v28  ;;  %v21079_v43 = vld [vmem:[#allocation38_spill] sm:$0xff] }
 0x50e   : > { %v882_v22 = vsel %vm867_vm2, %v21075_v20, %v21074_v62  ;;  %v2543_v31 = vadd.f32 %v2509_v58, %v2407_v51  ;;  %v21076_v37 = vld [vmem:[#allocation43_spill] sm:$0xff]  ;;  %v21080_v60 = vld [vmem:[#allocation296_spill] sm:$0xff]  ;;  %vm21081_vm8 = vcmask 1014784   ;;  %4648 = vmatprep.subr.bf16.mxu0 %v12550_v14  ;;  %v2673_v54 = vadd.f32 %v2640_v1, %v2537_v9  ;;  %vm21084_vm2 = vmmov %vm21073_vm1 }
 0x50f   : > { %v21077_v41 = vld [vmem:[#allocation239_spill] sm:$0xff]  ;;  %v1018_v7 = vsel %vm21081_vm8, %v21080_v60, %v21079_v43  ;;  %v917_v13 = vadd.f32 %v882_v22, %v781_v63  ;;  %v918_v28 = vadd.f32 %v21074_v62, %v782_v15  ;;  %v17273_v23 = vpop.permute.xlu1 %3480  ;;  %v21082_v58 = vld [vmem:[#allocation192_spill] sm:$0xff]  ;;  %v2408_v48 = vadd.f32 %v21054_v59, %v2272_v19  ;;  %v17284_v62 = vpop.permute.xlu0 %12415  ;;  %v12555_v9 = vld [vmem:[%s19499_s3 + $0x80] ss:$8 sps:$4 sm:$0xff]  }
 0x510   : > { %v2776_v52 = vsel %vm21078_vm6, %v21077_v41, %v21076_v37  ;;  %v12553_v51 = vld [vmem:[%s19499_s3 + $0x84] ss:$8 sps:$4 sm:$0xff]   ;;  %v2266_v49 = vadd.f32 %v21051_v56, %v2130_v35  ;;  %v21085_v20 = vld [vmem:[#allocation36_spill] sm:$0xff]  ;;  %vm21089_vm5 = vmmov %vm21078_vm6  ;;  %vm21098_vm3 = vcmask 809984   ;;  %vm21105_vm7 = vcmask 801792  }
 0x511   : > { %v21083_v32 = vld [vmem:[#allocation231_spill] sm:$0xff]  ;;  %v2809_v33 = vadd.f32 %v2776_v52, %v2673_v54  ;;  %v1053_v1 = vadd.f32 %v1018_v7, %v917_v13  ;;  %v1054_v22 = vadd.f32 %v21079_v43, %v918_v28  ;;  %4649 = vmatpush1.bf16.msra.mxu0 %v12552_v40  ;;  %v2544_v40 = vadd.f32 %v21068_v24, %v2408_v48  ;;  %v21090_v52 = vld [vmem:[#allocation253_spill] sm:$0xff]  ;;  %v21092_v28 = vld [vmem:[#allocation244_spill] sm:$0xff] }
 0x512   : > { %v2645_v30 = vsel %vm21084_vm2, %v21083_v32, %v21082_v58  ;;  %v21086_v14 = vld [vmem:[#allocation251_spill] sm:$0xff]  ;;  %v2402_v59 = vadd.f32 %v21057_v12, %v2266_v49  ;;  %4650 = vmatprep.subr.bf16.mxu0 %v12553_v51  ;;  %v21091_v43 = vld [vmem:[#allocation329_spill] sm:$0xff]  ;;  %v21093_v32 = vld [vmem:[#allocation254_spill] sm:$0xff]  ;;  %vm21115_vm1 = vcmask 793600   ;;  %vm21120_vm6 = vcmask 785408  }
 0x513   : > { %v2912_v41 = vsel %vm2907_vm12, %v21086_v14, %v21085_v20  ;;  %v2679_v60 = vadd.f32 %v2645_v30, %v2543_v31  ;;  %v12556_v56 = vld [vmem:[%s19499_s3 + $0x94] ss:$8 sps:$4 sm:$0xff]   ;;  %v17293_v19 = vpop.permute.xlu1 %1681  ;;  %v1154_v7 = vsel %vm1139_vm4, %v21091_v43, %v21090_v52  ;;  %v1190_v13 = vadd.f32 %v21090_v52, %v1054_v22  ;;  %v21094_v24 = vld [vmem:[#allocation266_spill] sm:$0xff] }
 0x514   : > { %v2945_v35 = vadd.f32 %v2912_v41, %v2809_v33  ;;  %v21087_v31 = vld [vmem:[#allocation247_spill] sm:$0xff]  ;;  %v2538_v12 = vadd.f32 %v21063_v55, %v2402_v59  ;;  %v1189_v54 = vadd.f32 %v1154_v7, %v1053_v1  ;;  %v2917_v30 = vsel %vm2907_vm12, %v21093_v32, %v21092_v28  ;;  %v21095_v48 = vld [vmem:[#allocation260_spill] sm:$0xff]  ;;  %v21099_v52 = vld [vmem:[#allocation62_spill] sm:$0xff] }
 0x515   : > { %v21088_v63 = vld [vmem:[#allocation243_spill] sm:$0xff]  ;;  %4651 = vmatpush1.bf16.msra.mxu0 %v12555_v9  ;;  %v3048_v49 = vsel %vm3043_vm11, %v21095_v48, %v21094_v24  ;;  %v2680_v22 = vadd.f32 %v21082_v58, %v2544_v40  ;;  %v21096_v9 = vld [vmem:[#allocation277_spill] sm:$0xff]  ;;  %v21097_v59 = vld [vmem:[#allocation308_spill] sm:$0xff]  ;;  %vm21123_vm8 = vcmask 588800   ;;  %vm21127_vm2 = vcmask 580608  }
 0x516   : > { %v2781_v15 = vsel %vm21089_vm5, %v21088_v63, %v21087_v31  ;;  %v12558_v33 = vld [vmem:[%s19499_s3 + $0x90] ss:$8 sps:$4 sm:$0xff]   ;;  %v2674_v14 = vadd.f32 %v21071_v39, %v2538_v12  ;;  %4652 = vmatprep.subr.bf16.mxu0 %v12556_v56  ;;  %v12559_v55 = vld [vmem:[%s19499_s3 + $0xa4] ss:$8 sps:$4 sm:$0xff]   ;;  %v3081_v41 = vadd.f32 %v3048_v49, %v2945_v35  ;;  %v1290_v63 = vsel %vm21098_vm3, %v21097_v59, %v21096_v9  ;;  %v12561_v35 = vld [vmem:[%s19499_s3 + $0xa0] ss:$8 sps:$4 sm:$0xff]  }
 0x517   : > { %v2815_v51 = vadd.f32 %v2781_v15, %v2679_v60  ;;  %v17317_v60 = vpop.permute.xlu0 %12425  ;;  %v3620_v1 = vpop.permute.xlu1 %3619  ;;  %v21100_v43 = vld [vmem:[#allocation263_spill] sm:$0xff]  ;;  %v1325_v7 = vadd.f32 %v1290_v63, %v1189_v54  ;;  %v1326_v12 = vadd.f32 %v21096_v9, %v1190_v13  ;;  %v21102_v40 = vld [vmem:[#allocation268_spill] sm:$0xff]  ;;  %v2816_v13 = vadd.f32 %v21087_v31, %v2680_v22  ;;  %v21104_v49 = vld [vmem:[#allocation341_spill] sm:$0xff] }
 0x518   : > { %v2810_v15 = vadd.f32 %v21076_v37, %v2674_v14  ;;  %v3053_v39 = vsel %vm3043_vm11, %v21100_v43, %v21099_v52  ;;  %v21101_v58 = vld [vmem:[#allocation35_spill] sm:$0xff]  ;;  %v21106_v63 = vld [vmem:[#allocation37_spill] sm:$0xff]  ;;  %v21109_v43 = vld [vmem:[#allocation276_spill] sm:$0xff]  ;;  %vm21138_vm5 = vcmask 572416   ;;  %vm21144_vm3 = vcmask 564224  }
 0x519   : > { %v2951_v56 = vadd.f32 %v2917_v30, %v2815_v51  ;;  %4653 = vmatpush1.bf16.msra.mxu0 %v12558_v33  ;;  %v3201_v32 = vsel %vm3196_vm9, %v21102_v40, %v21101_v58  ;;  %v12562_v37 = vld [vmem:[%s19499_s3 + $0xb4] ss:$8 sps:$4 sm:$0xff]  }
 0x51a   : > { %v2946_v48 = vadd.f32 %v21085_v20, %v2810_v15  ;;  %4654 = vmatprep.subr.bf16.mxu0 %v12559_v55  ;;  %v3237_v54 = vadd.f32 %v3201_v32, %v3081_v41  ;;  %v21103_v33 = vld [vmem:[#allocation56_spill] sm:$0xff]  ;;  %v3202_v20 = vsel %vm3196_vm9, %v21101_v58, %v17039_v29  ;;  %v21107_v31 = vld [vmem:[#allocation271_spill] sm:$0xff] }
 0x51b   : > { %v3087_v51 = vadd.f32 %v3053_v39, %v2951_v56  ;;  %v17338_v30 = vpop.permute.xlu1 %3633  ;;  %v1426_v14 = vsel %vm21105_vm7, %v21104_v49, %v21103_v33  ;;  %v17344_v9 = vpop.permute.xlu0 %2089  ;;  %v1462_v59 = vadd.f32 %v21103_v33, %v1326_v12  ;;  %v12564_v41 = vld [vmem:[%s19499_s3 + $0xb0] ss:$8 sps:$4 sm:$0xff]   ;;  %v3207_v22 = vsel %vm3196_vm9, %v21107_v31, %v21106_v63  ;;  %v12565_v12 = vld [vmem:[%s19499_s3 + $0xc4] ss:$8 sps:$4 sm:$0xff]  }
 0x51c   : > { %v1461_v55 = vadd.f32 %v1426_v14, %v1325_v7  ;;  %v21108_v15 = vld [vmem:[#allocation39_spill] sm:$0xff]  ;;  %v3082_v56 = vadd.f32 %v21094_v24, %v2946_v48  ;;  %v21110_v29 = vld [vmem:[#allocation284_spill] sm:$0xff]  ;;  %v2952_v33 = vadd.f32 %v21092_v28, %v2816_v13  ;;  %v21113_v14 = vld [vmem:[#allocation50_spill] sm:$0xff]  ;;  %vm21146_vm7 = vcmask 556032  }
 0x51d   : > { %4655 = vmatpush1.bf16.msra.mxu0 %v12561_v35  ;;  %v3352_v39 = vsel %vm3347_vm13, %v21109_v43, %v21108_v15  ;;  %v3503_v7 = vsel %vm3498_vm14, %v21110_v29, %v17249_v45  ;;  %v3243_v35 = vadd.f32 %v3207_v22, %v3087_v51  ;;  %v3353_v58 = vsel %vm3347_vm13, %v21108_v15, %v17187_v21  ;;  %v21111_v49 = vld [vmem:[#allocation60_spill] sm:$0xff]  ;;  %v21112_v24 = vld [vmem:[#allocation279_spill] sm:$0xff]  ;;  %v21114_v31 = vld [vmem:[#allocation318_spill] sm:$0xff] }
 0x51e   : > { %4656 = vmatprep.subr.bf16.mxu0 %v12562_v37  ;;  %v3388_v40 = vadd.f32 %v3352_v39, %v3237_v54  ;;  %v3358_v48 = vsel %vm3347_vm13, %v21112_v24, %v21111_v49  ;;  %v1562_v37 = vsel %vm21115_vm1, %v21114_v31, %v21113_v14  ;;  %v3238_v43 = vadd.f32 %v3202_v20, %v3082_v56  ;;  %v12567_v28 = vld [vmem:[%s19499_s3 + $0xc0] ss:$8 sps:$4 sm:$0xff]   ;;  %v21116_v54 = vld [vmem:[#allocation267_spill] sm:$0xff] }
 0x51f   : > { %v3769_v32 = vpop.permute.xlu1 %3768  ;;  %v3504_v51 = vsel %vm3498_vm14, %v17249_v45, %v16984_v42  ;;  %v1597_v29 = vadd.f32 %v1562_v37, %v1461_v55  ;;  %v1598_v21 = vadd.f32 %v21113_v14, %v1462_v59  ;;  %v3654_v13 = vsel %vm3649_vm15, %v21116_v54, %v17068_v6  ;;  %v12568_v45 = vld [vmem:[%s19499_s3 + $0xd4] ss:$8 sps:$4 sm:$0xff]   ;;  %v12570_v31 = vld [vmem:[%s19499_s3 + $0xd0] ss:$8 sps:$4 sm:$0xff]  }
 0x520   : > { %v3539_v22 = vadd.f32 %v3503_v7, %v3388_v40  ;;  %v3088_v15 = vadd.f32 %v21099_v52, %v2952_v33  ;;  %v3208_v20 = vsel %vm3196_vm9, %v21106_v63, %v17070_v3  ;;  %v3389_v42 = vadd.f32 %v3353_v58, %v3238_v43  ;;  %v21117_v7 = vld [vmem:[#allocation287_spill] sm:$0xff] }
 0x521   : > { %4657 = vmatpush1.bf16.msra.mxu0 %v12564_v41  ;;  %v12418_v55 = vunpack.i.h.bf16 %v17284_v62  ;;  %v12417_v59 = vunpack.i.l.bf16 %v17284_v62  ;;  %v17395_v41 = vpop.permute.xlu0 %2361  ;;  %v3394_v39 = vadd.f32 %v3358_v48, %v3243_v35  ;;  %v3655_v52 = vsel %vm3649_vm15, %v17068_v6, %v3620_v1  ;;  %v21118_v58 = vld [vmem:[#allocation275_spill] sm:$0xff] }
 0x522   : > { %4658 = vmatprep.subr.bf16.mxu0 %v12565_v12  ;;  %v3359_v3 = vsel %vm3347_vm13, %v21111_v49, %v17212_v11  ;;  %v3540_v63 = vadd.f32 %v3504_v51, %v3389_v42  ;;  %v3509_v12 = vsel %vm3498_vm14, %v21117_v7, %v17273_v23  ;;  %v3805_v40 = vsel %vm3800_vm10, %v21118_v58, %v3769_v32  ;;  %v21119_v49 = vld [vmem:[#allocation351_spill] sm:$0xff]  ;;  %v12573_v58 = vld [vmem:[%s19499_s3 + $0xe0] ss:$8 sps:$4 sm:$0xff]  }
 0x523   : > { %v3783_v56 = vpop.permute.xlu1 %3782  ;;  %v12428_v33 = vunpack.i.h.bf16 %v17317_v60  ;;  %v3244_v24 = vadd.f32 %v3208_v20, %v3088_v15  ;;  %v3690_v35 = vadd.f32 %v3654_v13, %v3539_v22  ;;  %v3806_v6 = vsel %vm3800_vm10, %v3769_v32, %v17194_v5  ;;  %v12571_v5 = vld [vmem:[%s19499_s3 + $0xe4] ss:$8 sps:$4 sm:$0xff]  }
 0x524   : > { %v12427_v1 = vunpack.i.l.bf16 %v17317_v60  ;;  %v3510_v11 = vsel %vm3498_vm14, %v17273_v23, %v17025_v36  ;;  %v1698_v48 = vsel %vm21120_vm6, %v21119_v49, %v17293_v19  ;;  %v3691_v14 = vadd.f32 %v3655_v52, %v3540_v63  ;;  %v21122_v13 = vld [vmem:[#allocation330_spill] sm:$0xff] }
 0x525   : > { %4659 = vmatpush1.bf16.msra.mxu0 %v12567_v28  ;;  %v3395_v32 = vadd.f32 %v3359_v3, %v3244_v24  ;;  %v3545_v37 = vadd.f32 %v3509_v12, %v3394_v39  ;;  %v1734_v43 = vadd.f32 %v17293_v19, %v1598_v21  ;;  %v3841_v51 = vadd.f32 %v3805_v40, %v3690_v35  ;;  %v21121_v28 = vld [vmem:[#allocation270_spill] sm:$0xff]  ;;  %v17433_v20 = vpop.permute.xlu0 %2633  ;;  %v21126_v24 = vld [vmem:[#allocation49_spill] sm:$0xff] }
 0x526   : > { %4660 = vmatprep.subr.bf16.mxu0 %v12568_v45  ;;  %v3661_v23 = vsel %vm3649_vm15, %v17109_v46, %v17338_v30  ;;  %v3842_v22 = vadd.f32 %v3806_v6, %v3691_v14  ;;  %v3660_v54 = vsel %vm3649_vm15, %v21121_v28, %v17109_v46  ;;  %v1834_v15 = vsel %vm21123_vm8, %v21122_v13, %v17149_v44  ;;  %v21124_v21 = vld [vmem:[#allocation278_spill] sm:$0xff] }
 0x527   : > { %v1954_v36 = vpop.permute.xlu1 %1953  ;;  %v3546_v42 = vadd.f32 %v3510_v11, %v3395_v32  ;;  %v1733_v45 = vadd.f32 %v1698_v48, %v1597_v29  ;;  %v3964_v19 = vsel %vm595_vm0, %v12417_v59, %v12418_v55  ;;  %v3970_v30 = vsel %vm595_vm0, %v12427_v1, %v12428_v33  ;;  %v21125_v3 = vld [vmem:[#allocation262_spill] sm:$0xff]  ;;  %v21128_v48 = vld [vmem:[#allocation191_spill] sm:$0xff] }
 0x528   : > { %v3811_v46 = vsel %vm3800_vm10, %v21124_v21, %v3783_v56  ;;  %v3812_v39 = vsel %vm3800_vm10, %v3783_v56, %v17247_v57  ;;  %v17446_v63 = vadd.f32 %v21125_v3, %v3841_v51  ;;  %v3696_v29 = vadd.f32 %v3660_v54, %v3545_v37  ;;  %v21132_v54 = vld [vmem:[#allocation179_spill] sm:$0xff] }
 0x529   : > { %4661 = vmatpush1.bf16.msra.mxu0 %v12570_v31  ;;  %v3697_v52 = vadd.f32 %v3661_v23, %v3546_v42  ;;  %v1870_v7 = vadd.f32 %v17149_v44, %v1734_v43  ;;  %v17455_v40 = vadd.f32 %v21125_v3, %v3842_v22  ;;  %v1970_v57 = vsel %vm21127_vm2, %v21126_v24, %v1954_v36  ;;  %v12574_v44 = vld [vmem:[%s19499_s3 + $0xf4] ss:$8 sps:$4 sm:$0xff]   ;;  %v17476_v22 = vpop.permute.xlu0 %2905 }
 0x52a   : > { %4662 = vmatprep.subr.bf16.mxu0 %v12571_v5  ;;  %v3847_v6 = vadd.f32 %v3811_v46, %v3696_v29  ;;  %v1869_v49 = vadd.f32 %v1834_v15, %v1733_v45  ;;  %v21129_v14 = vmax.f32 %v21128_v48, 0.0  ;;  %v21130_v43 = vld [vmem:[#allocation203_spill] sm:$0xff]  ;;  %v21133_v13 = vmax.f32 %v21132_v54, 0.0  ;;  %v21134_v42 = vld [vmem:[#allocation261_spill] sm:$0xff] }
 0x52b   : > { %v17449_v12 = vpop.permute.xlu1 %12420  ;;  %v3848_v11 = vadd.f32 %v3812_v39, %v3697_v52  ;;  %v2006_v5 = vadd.f32 %v1954_v36, %v1870_v7  ;;  %v21131_v51 = vmax.f32 %v21130_v43, 0.0  ;;  %v21135_v45 = vmax.f32 %v21134_v42, 0.0  ;;  %v21136_v39 = vld [vmem:[#allocation289_spill] sm:$0xff] }
 0x52c   : > { %v12423_v56 = vunpack.i.h.bf16 %v17449_v12  ;;  %v12422_v35 = vunpack.i.l.bf16 %v17449_v12  ;;  %v17466_v31 = vmax.f32 %v21129_v14, %v3964_v19  ;;  %v2005_v28 = vadd.f32 %v1970_v57, %v1869_v49  ;;  %v21139_v49 = vld [vmem:[#allocation164_spill] sm:$0xff]  ;;  %v21141_v14 = vld [vmem:[#allocation297_spill] sm:$0xff] }
 0x52d   : > { %4663 = vmatpush1.bf16.msra.mxu0 %v12573_v58  ;;  %v17474_v23 = vmax.f32 %v21131_v51, %v3970_v30  ;;  %v3896_v30 = vmax.f32 %v17455_v40, 0.0  ;;  %v17492_v52 = vadd.f32 %v21136_v39, %v3847_v6  ;;  %v17495_v3 = vadd.f32 %v21136_v39, %v3848_v11  ;;  %v21137_v58 = vld [vmem:[#allocation342_spill] sm:$0xff]  ;;  %v21143_v51 = vld [vmem:[#allocation108_spill] sm:$0xff] }
 0x52e   : > { %v3965_v32 = vsel %vm595_vm0, %v12418_v55, %v12422_v35  ;;  %v3969_v37 = vsel %vm595_vm0, %v12423_v56, %v12427_v1  ;;  %4664 = vmatprep.subr.bf16.mxu0 %v12574_v44  ;;  %v12576_v55 = vld [vmem:[%s19499_s3 + $0xf0] ss:$8 sps:$4 sm:$0xff]   ;;  %v3895_v1 = vmax.f32 %v17446_v63, 0.0  ;;  %v2106_v24 = vsel %vm21138_vm5, %v21137_v58, %v17344_v9  ;;  %v12588_v40 = vld [vmem:[%s19499_s3 + $0x134] ss:$8 sps:$4 sm:$0xff]  }
 0x52f   : > { %v17480_v15 = vmax.f32 %v21133_v13, %v3965_v32  ;;  %v17484_v36 = vmax.f32 %v21135_v45, %v3969_v37  ;;  %v12431_v19 = vpop.permute.xlu1 %12430  ;;  %v2142_v11 = vadd.f32 %v17344_v9, %v2006_v5  ;;  %v21140_v44 = vmax.f32 %v21139_v49, 0.0  ;;  %v3193_v5 = vpop.permute.xlu0 %3192 }
 0x530   : > { %v12433_v21 = vunpack.i.h.bf16 %v12431_v19  ;;  %v12432_v46 = vunpack.i.l.bf16 %v12431_v19  ;;  %v21142_v32 = vmax.f32 %v21141_v14, 0.0  ;;  %v2141_v43 = vadd.f32 %v2106_v24, %v2005_v28  ;;  %v21145_v28 = vld [vmem:[#allocation352_spill] sm:$0xff] }
 0x531   : > { %v12444_v29 = vpack.i.bf16 %v17480_v15, %v17466_v31  ;;  %v12449_v7 = vpack.i.bf16 %v17474_v23, %v17484_v36  ;;  %4665 = vmatpush1.bf16.msra.mxu0 %v12576_v55  ;;  %v12459_v9 = vpack.i.bf16 %v3896_v30, %v3895_v1  ;;  %v3901_v54 = vmax.f32 %v17492_v52, 0.0 }
 0x532   : > { %v3968_v57 = vsel %vm595_vm0, %v12433_v21, %v12423_v56  ;;  %v3963_v6 = vsel %vm595_vm0, %v12432_v46, %v12417_v59  ;;  %v3902_v13 = vmax.f32 %v17495_v3, 0.0  ;;  %v2378_v19 = vsel %vm21146_vm7, %v21145_v28, %v17395_v41 }
 0x533   : > { %v17511_v48 = vmax.f32 %v21140_v44, %v3968_v57  ;;  %v17515_v37 = vmax.f32 %v21142_v32, %v3963_v6  ;;  %12445 = vrot.lane.b32.xlu0 %v12444_v29, %s20259_s29  ;;  %12450 = vrot.lane.b32.xlu1 %v12449_v7, %s20259_s29  ;;  %v2226_v56 = vpop.permute.xlu1 %2225  ;;  %vm21147_vm1 = vcmask 359424   ;;  %vm21148_vm6 = vcmask 351232   ;;  %v3344_v24 = vpop.permute.xlu0 %3343 }
 0x534   : > { %v2242_v62 = vsel %vm21144_vm3, %v21143_v51, %v2226_v56  ;;  %v2278_v59 = vadd.f32 %v2226_v56, %v2142_v11  ;;  %v12464_v7 = vpack.i.bf16 %v3902_v13, %v3901_v54  ;;  %v2650_v58 = vsel %vm21148_vm6, %v21009_v50, %v17433_v20 }
 0x535   : > { %v2277_v42 = vadd.f32 %v2242_v62, %v2141_v43  ;;  %v12454_v45 = vpack.i.bf16 %v17511_v48, %v17515_v37  ;;  %vm21149_vm8 = vcmask 343040   ;;  %v2922_v49 = vsel %vm2907_vm12, %v21017_v0, %v17476_v22 }
 0x536   : > { %v2414_v21 = vadd.f32 %v17395_v41, %v2278_v59  ;;  %v3213_v51 = vsel %vm3196_vm9, %v21027_v4, %v3193_v5  ;;  %vm6689_vm12 = vcmask 744448   ;;  %vm7185_vm2 = vcmask 654336  }
 0x537   : > { %12460 = vrot.lane.b32.xlu1 %v12459_v9, %s20406_s12  ;;  %v2413_v55 = vadd.f32 %v2378_v19, %v2277_v42  ;;  %v2498_v46 = vpop.permute.xlu1 %2497  ;;  %12455 = vrot.lane.b32.xlu0 %v12454_v45, %s20259_s29  ;;  %v3495_v43 = vpop.permute.xlu0 %3494  ;;  %v21150_v9 = vld [vmem:[#allocation234_spill] sm:$0xff]  ;;  %vm7309_vm5 = vcmask 646144   ;;  %vm7433_vm3 = vcmask 637952   ;;  %vm7557_vm7 = vcmask 629760  }
 0x538   : > { %v2514_v39 = vsel %vm21147_vm1, %v21001_v61, %v2498_v46  ;;  %v2550_v57 = vadd.f32 %v2498_v46, %v2414_v21  ;;  %v3364_v42 = vsel %vm3347_vm13, %v21150_v9, %v3344_v24  ;;  %v3515_v19 = vsel %vm3498_vm14, %v16480_v47, %v3495_v43 }
 0x539   : > { %v2549_v29 = vadd.f32 %v2514_v39, %v2413_v55  ;;  %vm7681_vm1 = vcmask 621568   ;;  %vm8143_vm6 = vcmask 678912  }
 0x53a   : > { %v2686_v44 = vadd.f32 %v17433_v20, %v2550_v57 }
 0x53b   : > { %v2685_v6 = vadd.f32 %v2650_v58, %v2549_v29  ;;  %v2770_v41 = vpop.permute.xlu1 %2769  ;;  %12465 = vrot.lane.b32.xlu0 %v12464_v7, %s20406_s12  ;;  %v3646_v0 = vpop.permute.xlu0 %3645 }
 0x53c   : > { %v2786_v11 = vsel %vm21149_vm8, %v16388_v38, %v2770_v41  ;;  %v2822_v62 = vadd.f32 %v2770_v41, %v2686_v44  ;;  %v3666_v4 = vsel %vm3649_vm15, %v16986_v25, %v3646_v0  ;;  %vm8580_vm8 = vcmask 408576  }
 0x53d   : > { %v2821_v61 = vadd.f32 %v2786_v11, %v2685_v6 }
 0x53e   : > { %v2958_v20 = vadd.f32 %v17476_v22, %v2822_v62 }
 0x53f   : > { %v2957_v14 = vadd.f32 %v2922_v49, %v2821_v61  ;;  %v3042_v32 = vpop.permute.xlu1 %3041  ;;  %v3797_v29 = vpop.permute.xlu0 %3796 }
 0x540   : > { %v3058_v50 = vsel %vm3043_vm11, %v21021_v53, %v3042_v32  ;;  %v3094_v21 = vadd.f32 %v3042_v32, %v2958_v20  ;;  %v3817_v47 = vsel %vm3800_vm10, %v17127_v26, %v3797_v29  ;;  %vm4831_vm11 = vcmask 162816  }
 0x541   : > { %v3093_v56 = vadd.f32 %v3058_v50, %v2957_v14 }
 0x543   : > { %v3249_v59 = vadd.f32 %v3213_v51, %v3093_v56  ;;  %v3195_v38 = vpop.permute.xlu1 %3194 }
 0x544   : > { %v3214_v55 = vsel %vm3196_vm9, %v3193_v5, %v3195_v38  ;;  %vm4625_vm9 = vcmask 1041408  }
 0x545   : > { %v3400_v45 = vadd.f32 %v3364_v42, %v3249_v59  ;;  %v3250_v58 = vadd.f32 %v3214_v55, %v3094_v21 }
 0x547   : > { %v3346_v28 = vpop.permute.xlu1 %3345  ;;  %v3551_v53 = vadd.f32 %v3515_v19, %v3400_v45 }
 0x548   : > { %v3365_v39 = vsel %vm3347_vm13, %v3344_v24, %v3346_v28  ;;  %vm6813_vm13 = vcmask 736256  }
 0x549   : > { %v3702_v7 = vadd.f32 %v3666_v4, %v3551_v53  ;;  %v3401_v22 = vadd.f32 %v3365_v39, %v3250_v58 }
 0x54b   : > { %v3497_v46 = vpop.permute.xlu1 %3496  ;;  %v3853_v11 = vadd.f32 %v3817_v47, %v3702_v7 }
 0x54c   : > { %v3516_v57 = vsel %vm3498_vm14, %v3495_v43, %v3497_v46  ;;  %v12579_v43 = vld [vmem:[%s19499_s3 + $0x104] ss:$8 sps:$4 sm:$0xff]   ;;  %vm6937_vm14 = vcmask 728064  }
 0x54d   : > { %v3552_v5 = vadd.f32 %v3516_v57, %v3401_v22  ;;  %v17570_v24 = vadd.f32 %v16866_v10, %v3853_v11  ;;  %4685 = vmatprep.subr.bf16.mxu0 %v12579_v43  ;;  %v21151_v11 = vld [vmem:[#allocation274_spill] sm:$0xff] }
 0x54f   : > { %v3648_v6 = vpop.permute.xlu1 %3647  ;;  %v3907_v32 = vmax.f32 %v17570_v24, 0.0  ;;  %v12612_v24 = vld [vmem:[%s19499_s3 + $0x1b4] ss:$8 sps:$4 sm:$0xff]  }
 0x550   : > { %v3667_v41 = vsel %vm3649_vm15, %v3646_v0, %v3648_v6  ;;  %vm7061_vm15 = vcmask 719872  }
 0x551   : > { %v3703_v61 = vadd.f32 %v3667_v41, %v3552_v5 }
 0x553   : > { %v3799_v49 = vpop.permute.xlu1 %3798 }
 0x554   : > { %v3818_v25 = vsel %vm3800_vm10, %v3797_v29, %v3799_v49  ;;  %vm4617_vm10 = vcmask 23552  }
 0x555   : > { %v3854_v44 = vadd.f32 %v3818_v25, %v3703_v61  ;;  %v21152_v61 = vmax.f32 %v21151_v11, 0.0 }
 0x557   : > { %v17573_v14 = vadd.f32 %v16866_v10, %v3854_v44 }
 0x559   : > { %v3908_v50 = vmax.f32 %v17573_v14, 0.0  ;;  %v12613_v14 = vld [vmem:[%s19499_s3 + $0x1c0] ss:$8 sps:$4 sm:$0xff]  }
 0x55b   : > { %v12469_v26 = vpack.i.bf16 %v3908_v50, %v3907_v32 }
 0x55d   : > { %12470 = vrot.lane.b32.xlu1 %v12469_v26, %s20406_s12 }
 0x575   : > { %v12436_v56 = vpop.permute.xlu0 %12435 }
 0x576   : > { %v12438_v51 = vunpack.i.h.bf16 %v12436_v56  ;;  %v12437_v10 = vunpack.i.l.bf16 %v12436_v56 }
 0x578   : > { %v3974_v59 = vsel %vm595_vm0, %v12437_v10, %v12438_v51 }
 0x579   : > { %v17594_v42 = vmax.f32 %v3904_v18, %v3974_v59 }
 0x57d   : > { %v17585_v62 = vpop.permute.xlu1 %12440 }
 0x57e   : > { %v12442_v38 = vunpack.i.l.bf16 %v17585_v62  ;;  %v12443_v20 = vunpack.i.h.bf16 %v17585_v62  ;;  %v12609_v62 = vld [vmem:[%s19499_s3 + $0x1a4] ss:$8 sps:$4 sm:$0xff]  }
 0x580   : > { %v3975_v9 = vsel %vm595_vm0, %v12438_v51, %v12442_v38  ;;  %v3973_v21 = vsel %vm595_vm0, %v12443_v20, %v12437_v10  ;;  %v12582_v51 = vld [vmem:[%s19499_s3 + $0x114] ss:$8 sps:$4 sm:$0xff]   ;;  %v12589_v20 = vld [vmem:[%s19499_s3 + $0x140] ss:$8 sps:$4 sm:$0xff]  }
 0x581   : > { %v17598_v45 = vmax.f32 %v3905_v27, %v3975_v9  ;;  %v17627_v5 = vmax.f32 %v3903_v8, %v3973_v21  ;;  %v12577_v8 = vld [vmem:[%s19499_s3 + $0x100] ss:$8 sps:$4 sm:$0xff]   ;;  %v21153_v10 = vld [vmem:[#allocation180_spill] sm:$0xff] }
 0x582   : > { %v21154_v59 = vmax.f32 %v21153_v10, 0.0  ;;  %v12600_v21 = vld [vmem:[%s19499_s3 + $0x174] ss:$8 sps:$4 sm:$0xff]  }
 0x583   : > { %v12474_v0 = vpack.i.bf16 %v17598_v45, %v17594_v42 }
 0x585   : > { %12475 = vrot.lane.b32.xlu0 %v12474_v0, %s20259_s29  ;;  %v12585_v0 = vld [vmem:[%s19499_s3 + $0x124] ss:$8 sps:$4 sm:$0xff]  }
 0x5a5   : > { %v17604_v28 = vpop.permute.xlu0 %12445  ;;  %v17606_v19 = vpop.permute.xlu1 %12450 }
 0x5a6   : > { %v12448_v53 = vunpack.i.h.bf16 %v17604_v28  ;;  %v12447_v34 = vunpack.i.l.bf16 %v17604_v28  ;;  %v12453_v18 = vunpack.i.h.bf16 %v17606_v19  ;;  %v12452_v16 = vunpack.i.l.bf16 %v17606_v19  ;;  %v12628_v28 = vld [vmem:[%s19499_s3 + $0x210] ss:$8 sps:$4 sm:$0xff]  }
 0x5a8   : > { %v4069_v27 = vsel %vm1139_vm4, %v12447_v34, %v12448_v53  ;;  %v4074_v55 = vsel %vm1139_vm4, %v12452_v16, %v12453_v18 }
 0x5a9   : > { %v12461_v46 = vpop.permute.xlu1 %12460  ;;  %v12456_v4 = vpop.permute.xlu0 %12455  ;;  %v4102_v39 = vmax.f32 %v17466_v31, %v4069_v27  ;;  %v4108_v29 = vmax.f32 %v17484_v36, %v4074_v55  ;;  %v12597_v27 = vld [vmem:[%s19499_s3 + $0x164] ss:$8 sps:$4 sm:$0xff]   ;;  %v12595_v55 = vld [vmem:[%s19499_s3 + $0x160] ss:$8 sps:$4 sm:$0xff]  }
 0x5aa   : > { %v12463_v7 = vunpack.i.h.bf16 %v12461_v46  ;;  %v12462_v58 = vunpack.i.l.bf16 %v12461_v46  ;;  %v12458_v57 = vunpack.i.h.bf16 %v12456_v4  ;;  %v12457_v22 = vunpack.i.l.bf16 %v12456_v4  ;;  %v12598_v46 = vld [vmem:[%s19499_s3 + $0x170] ss:$8 sps:$4 sm:$0xff]   ;;  %v12603_v4 = vld [vmem:[%s19499_s3 + $0x184] ss:$8 sps:$4 sm:$0xff]  }
 0x5ab   : > { %v4120_v6 = vpack.c.bf16 %v4108_v29, %v4102_v39  ;;  %v12601_v29 = vld [vmem:[%s19499_s3 + $0x180] ss:$8 sps:$4 sm:$0xff]  }
 0x5ac   : > { %v3966_v47 = vsel %vm595_vm0, %v12422_v35, %v12462_v58  ;;  %v4073_v41 = vsel %vm1139_vm4, %v12458_v57, %v12452_v16  ;;  %v4068_v36 = vsel %vm1139_vm4, %v12457_v22, %v12447_v34  ;;  %v3967_v12 = vsel %vm595_vm0, %v12462_v58, %v12463_v7  ;;  %v12594_v34 = vld [vmem:[%s19499_s3 + $0x154] ss:$8 sps:$4 sm:$0xff]   ;;  %v12592_v16 = vld [vmem:[%s19499_s3 + $0x150] ss:$8 sps:$4 sm:$0xff]  }
 0x5ad   : > { %v17631_v31 = vmax.f32 %v21152_v61, %v3966_v47  ;;  %4666 = vmatprep.mubr.bf16.mxu0 %v4120_v6  ;;  %v12466_v49 = vpop.permute.xlu0 %12465  ;;  %v4107_v25 = vmax.f32 %v17511_v48, %v4073_v41  ;;  %v4101_v26 = vmax.f32 %v17515_v37, %v4068_v36  ;;  %v17651_v37 = vmax.f32 %v3895_v1, %v3967_v12  ;;  %v12580_v1 = vld [vmem:[%s19499_s3 + $0x110] ss:$8 sps:$4 sm:$0xff]   ;;  %v12606_v57 = vld [vmem:[%s19499_s3 + $0x194] ss:$8 sps:$4 sm:$0xff]   ;;  %v12621_v12 = vld [vmem:[%s19499_s3 + $0x1e4] ss:$8 sps:$4 sm:$0xff]  }
 0x5ae   : > { %v12468_v44 = vunpack.i.h.bf16 %v12466_v49  ;;  %v12467_v35 = vunpack.i.l.bf16 %v12466_v49  ;;  %v17676_v3 = vmax.f32 %v3896_v30, %v12463_v7  ;;  %v12586_v30 = vld [vmem:[%s19499_s3 + $0x130] ss:$8 sps:$4 sm:$0xff]   ;;  %v21155_v47 = vmax.f32 %v17166_v2, 0.0  ;;  %v12607_v2 = vld [vmem:[%s19499_s3 + $0x1a0] ss:$8 sps:$4 sm:$0xff]  }
 0x5af   : > { %v12479_v17 = vpack.i.bf16 %v17631_v31, %v17627_v5  ;;  %v4119_v48 = vpack.c.bf16 %v4107_v25, %v4101_v26  ;;  %v12604_v61 = vld [vmem:[%s19499_s3 + $0x190] ss:$8 sps:$4 sm:$0xff]   ;;  %v12615_v49 = vld [vmem:[%s19499_s3 + $0x1c4] ss:$8 sps:$4 sm:$0xff]  }
 0x5b0   : > { %v3971_v43 = vsel %vm595_vm0, %v12428_v33, %v12467_v35  ;;  %v3972_v56 = vsel %vm595_vm0, %v12467_v35, %v12468_v44  ;;  %v17660_v60 = vmax.f32 %v3902_v13, %v12468_v44  ;;  %v12591_v13 = vld [vmem:[%s19499_s3 + $0x144] ss:$8 sps:$4 sm:$0xff]   ;;  %v12610_v36 = vld [vmem:[%s19499_s3 + $0x1b0] ss:$8 sps:$4 sm:$0xff]   ;;  %v12619_v44 = vld [vmem:[%s19499_s3 + $0x1e0] ss:$8 sps:$4 sm:$0xff]  }
 0x5b1   : > { %v17655_v9 = vmax.f32 %v21154_v59, %v3971_v43  ;;  %12480 = vrot.lane.b32.xlu1 %v12479_v17, %s20259_s29  ;;  %4667 = vmatmul.mubr.bf16.vlgmr.msra.gmra.mrb[0].mxu0 %v4119_v48  ;;  %v17664_v33 = vmax.f32 %v3901_v54, %v3972_v56  ;;  %v12583_v54 = vld [vmem:[%s19499_s3 + $0x120] ss:$8 sps:$4 sm:$0xff]   ;;  %v12616_v25 = vld [vmem:[%s19499_s3 + $0x1d0] ss:$8 sps:$4 sm:$0xff]   ;;  %v12624_v35 = vld [vmem:[%s19499_s3 + $0x1f4] ss:$8 sps:$4 sm:$0xff]  }
 0x5b2   : > { %4686 = vmatpush1.bf16.msra.mxu0 %v12577_v8  ;;  %v12494_v52 = vpack.i.bf16 %v17660_v60, %v17676_v3  ;;  %v12622_v26 = vld [vmem:[%s19499_s3 + $0x1f0] ss:$8 sps:$4 sm:$0xff]   ;;  %v12627_v17 = vld [vmem:[%s19499_s3 + $0x204] ss:$8 sps:$4 sm:$0xff]  }
 0x5b3   : > { %v12484_v63 = vpack.i.bf16 %v17655_v9, %v17651_v37  ;;  %4687 = vmatprep.subr.bf16.mxu0 %v12582_v51 }
 0x5b5   : > { %4052 = vrot.lane.b32.xlu1 %v17664_v33, %s20259_s29  ;;  %12485 = vrot.lane.b32.xlu0 %v12484_v63, %s20259_s29 }
 0x5b6   : > { %4688 = vmatpush1.bf16.msra.mxu0 %v12580_v1 }
 0x5b7   : > { %4689 = vmatprep.subr.bf16.mxu0 %v12585_v0 }
 0x5b9   : > { %12495 = vrot.lane.b32.xlu1 %v12494_v52, %s20259_s29 }
 0x5ba   : > { %4690 = vmatpush1.bf16.msra.mxu0 %v12583_v54 }
 0x5bb   : > { %4691 = vmatprep.subr.bf16.mxu0 %v12588_v40 }
 0x5be   : > { %4692 = vmatpush1.bf16.msra.mxu0 %v12586_v30 }
 0x5bf   : > { %4693 = vmatprep.subr.bf16.mxu0 %v12591_v13 }
 0x5c2   : > { %4694 = vmatpush1.bf16.msra.mxu0 %v12589_v20 }
 0x5c3   : > { %4695 = vmatprep.subr.bf16.mxu0 %v12594_v34 }
 0x5c6   : > { %4696 = vmatpush1.bf16.msra.mxu0 %v12592_v16 }
 0x5c7   : > { %4697 = vmatprep.subr.bf16.mxu0 %v12597_v27 }
 0x5ca   : > { %4698 = vmatpush1.bf16.msra.mxu0 %v12595_v55 }
 0x5cb   : > { %4699 = vmatprep.subr.bf16.mxu0 %v12600_v21 }
 0x5ce   : > { %4700 = vmatpush1.bf16.msra.mxu0 %v12598_v46  ;;  %v12625_v46 = vld [vmem:[%s19499_s3 + $0x200] ss:$8 sps:$4 sm:$0xff]  }
 0x5cf   : > { %v12471_v39 = vpop.permute.xlu1 %12470  ;;  %4701 = vmatprep.subr.bf16.mxu0 %v12603_v4 }
 0x5d0   : > { %v12473_v7 = vunpack.i.h.bf16 %v12471_v39  ;;  %v12472_v58 = vunpack.i.l.bf16 %v12471_v39  ;;  %v12639_v39 = vld [vmem:[%s19499_s3 + $0x244] ss:$8 sps:$4 sm:$0xff]  }
 0x5d2   : > { %v3976_v22 = vsel %vm595_vm0, %v12442_v38, %v12472_v58  ;;  %v3977_v6 = vsel %vm595_vm0, %v12472_v58, %v12473_v7  ;;  %4702 = vmatpush1.bf16.msra.mxu0 %v12601_v29  ;;  %v12637_v29 = vld [vmem:[%s19499_s3 + $0x240] ss:$8 sps:$4 sm:$0xff]   ;;  %vm4624_vm0 = vcmask 1040384   ;;  %v12640_v58 = vld [vmem:[%s19499_s3 + $0x250] ss:$8 sps:$4 sm:$0xff]  }
 0x5d3   : > { %v17732_v41 = vmax.f32 %v21155_v47, %v3976_v22  ;;  %v17736_v11 = vmax.f32 %v3907_v32, %v3977_v6  ;;  %4703 = vmatprep.subr.bf16.mxu0 %v12606_v57  ;;  %v17755_v32 = vmax.f32 %v3908_v50, %v12473_v7  ;;  %v12618_v50 = vld [vmem:[%s19499_s3 + $0x1d4] ss:$8 sps:$4 sm:$0xff]   ;;  %v12645_v57 = vld [vmem:[%s19499_s3 + $0x264] ss:$8 sps:$4 sm:$0xff]   ;;  %v13299_v47 = vmov 65535  }
 0x5d4   : > { %v12642_v7 = vld [vmem:[%s19499_s3 + $0x254] ss:$8 sps:$4 sm:$0xff]   ;;  %v4211_v22 = vld [vmem:[%s19499_s3 + $0x280] sm:$0x33] }
 0x5d5   : > { %v12489_v38 = vpack.i.bf16 %v17736_v11, %v17732_v41 }
 0x5d6   : > { %4704 = vmatpush1.bf16.msra.mxu0 %v12604_v61  ;;  %v4626_v61 = vsel %vm4624_vm0, 4294967295, %v13299_v47 }
 0x5d7   : > { %12490 = vrot.lane.b32.xlu0 %v12489_v38, %s20259_s29  ;;  %4705 = vmatprep.subr.bf16.mxu0 %v12609_v62  ;;  %v12643_v62 = vld [vmem:[%s19499_s3 + $0x260] ss:$8 sps:$4 sm:$0xff]   ;;  %v10858_v38 = vcombine.high %v4211_v22, %v4211_v22 }
 0x5da   : > { %4706 = vmatpush1.bf16.msra.mxu0 %v12607_v2 }
 0x5db   : > { %4066 = vrot.lane.b32.xlu0 %v17755_v32, %s20259_s29  ;;  %4707 = vmatprep.subr.bf16.mxu0 %v12612_v24 }
 0x5de   : > { %4708 = vmatpush1.bf16.msra.mxu0 %v12610_v36 }
 0x5df   : > { %4709 = vmatprep.subr.bf16.mxu0 %v12615_v49  ;;  %v12648_v49 = vld [vmem:[%s19499_s3 + $0x274] ss:$8 sps:$4 sm:$0xff]  }
 0x5e2   : > { %4710 = vmatpush1.bf16.msra.mxu0 %v12613_v14  ;;  %v17867_v14 = vsel %vm4625_vm9, %v4626_v61, 0  ;;  %v7774_v61 = vld [vmem:[%s19501_s5 + $0x18] sm:$0xff] }
 0x5e3   : > { %4711 = vmatprep.subr.bf16.mxu0 %v12618_v50 }
 0x5e6   : > { %4712 = vmatpush1.bf16.msra.mxu0 %v12616_v25 }
 0x5e7   : > { %4713 = vmatprep.subr.bf16.mxu0 %v12621_v12 }
 0x5ea   : > { %4714 = vmatpush1.bf16.msra.mxu0 %v12619_v44 }
 0x5eb   : > { %4715 = vmatprep.subr.bf16.mxu0 %v12624_v35  ;;  %v12646_v35 = vld [vmem:[%s19499_s3 + $0x270] ss:$8 sps:$4 sm:$0xff]  }
 0x5ee   : > { %4716 = vmatpush1.bf16.msra.mxu0 %v12622_v26  ;;  %v10857_v26 = vcombine.low %v4211_v22, %v4211_v22  ;;  %v12657_v22 = vld [vmem:[%s19500_s4 + $0x10] sm:$0xff]  }
 0x5ef   : > { %4736 = vmatprep.subr.bf16.mxu0 %v12627_v17  ;;  %v4632_v17 = vand.u32 %v10858_v38, %v17867_v14  ;;  %v7777_v38 = vld [vmem:[%s19501_s5 + $0x30] sm:$0x3] }
 0x5f7   : > { %v17789_v8 = vpop.permute.xlu0 %12475 }
 0x5f8   : > { %v12478_v43 = vunpack.i.h.bf16 %v17789_v8  ;;  %v12477_v56 = vunpack.i.l.bf16 %v17789_v8 }
 0x5fa   : > { %v4079_v48 = vsel %vm1139_vm4, %v12477_v56, %v12478_v43 }
 0x5fb   : > { %v4114_v51 = vmax.f32 %v17594_v42, %v4079_v48 }
 0x5fd   : > { %v4126_v10 = vpack.c.bf16 %v4114_v51, %v4114_v51 }
 0x5ff   : > { %4676 = vmatprep.mubr.bf16.mxu0 %v4126_v10 }
 0x623   : > { %v12481_v59 = vpop.permute.xlu1 %12480 }
 0x624   : > { %v12482_v63 = vunpack.i.l.bf16 %v12481_v59  ;;  %v12483_v54 = vunpack.i.h.bf16 %v12481_v59 }
 0x626   : > { %v4078_v1 = vsel %vm1139_vm4, %v12482_v63, %v12477_v56  ;;  %v4070_v55 = vsel %vm1139_vm4, %v12448_v53, %v12483_v54  ;;  %v12636_v53 = vld [vmem:[%s19499_s3 + $0x234] ss:$8 sps:$4 sm:$0xff]  }
 0x627   : > { %v17798_v0 = vpop.permute.xlu0 %12485  ;;  %v4113_v52 = vmax.f32 %v17627_v5, %v4078_v1  ;;  %v17803_v13 = vpop.permute.xlu1 %4052 }
 0x628   : > { %v12488_v40 = vunpack.i.h.bf16 %v17798_v0  ;;  %v12487_v30 = vunpack.i.l.bf16 %v17798_v0 }
 0x629   : > { %v4125_v20 = vpack.c.bf16 %v4113_v52, %v4113_v52 }
 0x62a   : > { %v4075_v42 = vsel %vm1139_vm4, %v12453_v18, %v12488_v40  ;;  %v4076_v34 = vsel %vm1139_vm4, %v12488_v40, %v17803_v13  ;;  %v4071_v16 = vsel %vm1139_vm4, %v12483_v54, %v12487_v30  ;;  %v4103_v18 = vmax.f32 %v17480_v15, %v4070_v55  ;;  %v12631_v15 = vld [vmem:[%s19499_s3 + $0x220] ss:$8 sps:$4 sm:$0xff]  }
 0x62b   : > { %4677 = vmatmul.mubr.bf16.gmra.mrb[4].mxu0 %v4125_v20  ;;  %v4104_v5 = vmax.f32 %v17631_v31, %v4071_v16  ;;  %v4110_v27 = vmax.f32 %v17655_v9, %v4076_v34  ;;  %v4109_v19 = vmax.f32 %v17474_v23, %v4075_v42  ;;  %v12630_v31 = vld [vmem:[%s19499_s3 + $0x214] ss:$8 sps:$4 sm:$0xff]   ;;  %v12633_v23 = vld [vmem:[%s19499_s3 + $0x224] ss:$8 sps:$4 sm:$0xff]   ;;  %v12634_v9 = vld [vmem:[%s19499_s3 + $0x230] ss:$8 sps:$4 sm:$0xff]   ;;  %v12496_v6 = vpop.permute.xlu1 %12495 }
 0x62c   : > { %v12498_v2 = vunpack.i.h.bf16 %v12496_v6  ;;  %v12497_v24 = vunpack.i.l.bf16 %v12496_v6  ;;  %v21156_v20 = vmov 0   ;;  %v7775_v6 = vld [vmem:[%s19501_s5 + $0x20] sm:$0xff] }
 0x62d   : > { %v4122_v21 = vpack.c.bf16 %v4110_v27, %v4104_v5  ;;  %v4121_v4 = vpack.c.bf16 %v4109_v19, %v4103_v18 }
 0x62e   : > { %v4112_v56 = vmax.f32 %v17660_v60, %v12498_v2  ;;  %v4106_v48 = vmax.f32 %v17676_v3, %v12497_v24  ;;  %v4077_v63 = vsel %vm1139_vm4, %v17803_v13, %v12498_v2  ;;  %v4072_v60 = vsel %vm1139_vm4, %v12487_v30, %v12497_v24  ;;  %v12658_v2 = vld [vmem:[%s19500_s4 + $0x18] ss:$0 sps:$4 sm:$0x11]  }
 0x62f   : > { %4717 = vmatprep.mubr.bf16.mxu0 %v4122_v21 }
 0x630   : > { %v4124_v1 = vpack.c.bf16 %v4112_v56, %v4106_v48  ;;  %v12664_v56 = vld [vmem:[%s19500_s4 + $0x5c] sm:$0xff]   ;;  %v12665_v48 = vld [vmem:[%s19500_s4 + $0x64] sm:$0xff]  }
 0x633   : > { %4718 = vmatmul.mubr.bf16.vlgmr.msra.gmra.mrb[0].mxu0 %v4121_v4 }
 0x634   : > { %4737 = vmatpush1.bf16.msra.mxu0 %v12625_v46 }
 0x635   : > { %4738 = vmatprep.subr.bf16.mxu0 %v12630_v31 }
 0x638   : > { %4739 = vmatpush1.bf16.msra.mxu0 %v12628_v28  ;;  %v12652_v28 = vld [vmem:[%s19500_s4 + $0x24] sm:$0xff]  }
 0x639   : > { %4740 = vmatprep.subr.bf16.mxu0 %v12633_v23  ;;  %v12653_v23 = vld [vmem:[%s19500_s4 + $0x2c] sm:$0xff]  }
 0x63c   : > { %4741 = vmatpush1.bf16.msra.mxu0 %v12631_v15 }
 0x63d   : > { %4742 = vmatprep.subr.bf16.mxu0 %v12636_v53  ;;  %v12654_v53 = vld [vmem:[%s19500_s4 + $0x34] ss:$0 sps:$4 sm:$0x11]  }
 0x640   : > { %4743 = vmatpush1.bf16.msra.mxu0 %v12634_v9 }
 0x641   : > { %4744 = vmatprep.subr.bf16.mxu0 %v12639_v39  ;;  %v12655_v39 = vld [vmem:[%s19500_s4] sm:$0xff]  }
 0x644   : > { %4745 = vmatpush1.bf16.msra.mxu0 %v12637_v29  ;;  %v7771_v29 = vld [vmem:[%s19501_s5] sm:$0xff] }
 0x645   : > { %4746 = vmatprep.subr.bf16.mxu0 %v12642_v7  ;;  %v7773_v7 = vld [vmem:[%s19501_s5 + $0x10] sm:$0xff] }
 0x648   : > { %4747 = vmatpush1.bf16.msra.mxu0 %v12640_v58  ;;  %v12656_v58 = vld [vmem:[%s19500_s4 + $0x8] sm:$0xff]  }
 0x649   : > { %v12491_v36 = vpop.permute.xlu0 %12490  ;;  %4748 = vmatprep.subr.bf16.mxu0 %v12645_v57  ;;  %v7772_v57 = vld [vmem:[%s19501_s5 + $0x8] sm:$0xff] }
 0x64a   : > { %v12493_v50 = vunpack.i.h.bf16 %v12491_v36  ;;  %v12492_v25 = vunpack.i.l.bf16 %v12491_v36  ;;  %v12659_v36 = vld [vmem:[%s19500_s4 + $0x38] sm:$0xff]  }
 0x64c   : > { %4749 = vmatpush1.bf16.msra.mxu0 %v12643_v62  ;;  %v4081_v12 = vsel %vm1139_vm4, %v12492_v25, %v12493_v50  ;;  %v4080_v44 = vsel %vm1139_vm4, %v12478_v43, %v12492_v25  ;;  %v4629_v43 = vand.u32 %v10857_v26, %v17867_v14  ;;  %v12661_v25 = vld [vmem:[%s19500_s4 + $0x48] sm:$0xff]  }
 0x64d   : > { %v4116_v51 = vmax.f32 %v17732_v41, %v4081_v12  ;;  %v4115_v10 = vmax.f32 %v17598_v45, %v4080_v44  ;;  %4750 = vmatprep.subr.bf16.mxu0 %v12648_v49  ;;  %v4067_v3 = vpop.permute.xlu0 %4066  ;;  %v4111_v45 = vmax.f32 %v17664_v33, %v4077_v63  ;;  %v4105_v41 = vmax.f32 %v17651_v37, %v4072_v60  ;;  %v12651_v37 = vld [vmem:[%s19500_s4 + $0x1c] sm:$0xff]   ;;  %v7776_v49 = vld [vmem:[%s19501_s5 + $0x28] sm:$0xff] }
 0x64e   : > { %v4118_v52 = vmax.f32 %v17755_v32, %v4067_v3  ;;  %v4082_v40 = vsel %vm1139_vm4, %v12493_v50, %v4067_v3  ;;  %11745 = vmatprep.mubr.msk.bf16.mxu1 %vm4831_vm11, %v12651_v37  ;;  %v12660_v50 = vld [vmem:[%s19500_s4 + $0x40] sm:$0xff]   ;;  %v12668_v63 = vld [vmem:[%s19500_s4 + $0x78] sm:$0xff]   ;;  %v12675_v37 = vld [vmem:[%s19500_s4 + $0xa8] sm:$0xff]   ;;  %vm6565_vm4 = vcmask 752640  }
 0x64f   : > { %v4128_v59 = vpack.c.bf16 %v4116_v51, %v4116_v51  ;;  %v4127_v8 = vpack.c.bf16 %v4115_v10, %v4115_v10  ;;  %v4123_v54 = vpack.c.bf16 %v4111_v45, %v4105_v41  ;;  %v4117_v30 = vmax.f32 %v17736_v11, %v4082_v40  ;;  %v12669_v60 = vld [vmem:[%s19500_s4 + $0x80] sm:$0xff]   ;;  %v12670_v45 = vld [vmem:[%s19500_s4 + $0x88] ss:$0 sps:$4 sm:$0x11]  }
 0x650   : > { %4751 = vmatpush1.bf16.msra.mxu0 %v12646_v35  ;;  %v4130_v0 = vpack.c.bf16 %v4118_v52, %v4118_v52  ;;  %v12662_v35 = vld [vmem:[%s19500_s4 + $0x50] ss:$0 sps:$4 sm:$0x11]   ;;  %v12673_v40 = vld [vmem:[%s19500_s4 + $0x9c] sm:$0xff]  }
 0x651   : > { %4727 = vmatprep.mubr.bf16.mxu0 %v4128_v59  ;;  %4752 = vmatprep.subr.bf16.mxu0 %v4632_v17  ;;  %v4129_v13 = vpack.c.bf16 %v4117_v30, %v4117_v30  ;;  %v12663_v17 = vld [vmem:[%s19500_s4 + $0x54] sm:$0xff]   ;;  %v12666_v59 = vld [vmem:[%s19500_s4 + $0x6c] ss:$0 sps:$4 sm:$0x11]  }
 0x652   : > { %4728 = vmatmul.mubr.bf16.gmra.mrb[4].mxu0 %v4127_v8  ;;  %v12671_v52 = vld [vmem:[%s19500_s4 + $0x8c] sm:$0xff]  }
 0x653   : > { %10859 = vmatprep.mubr.msk.bf16.mxu0 %vm4617_vm10, %v4124_v1 }
 0x654   : > { %4753 = vmatpush1.bf16.msra.mxu0 %v4629_v43  ;;  %v12667_v43 = vld [vmem:[%s19500_s4 + $0x70] sm:$0xff]  }
 0x65a   : > { %4769 = vmatmul.mubr.bf16.vlgmr.msra.gmra.mrb[0].mxu0 %v4123_v54  ;;  %v12672_v54 = vld [vmem:[%s19500_s4 + $0x94] sm:$0xff]  }
 0x65b   : > { %10860 = vmatprep.mubr.msk.bf16.mxu0 %vm4617_vm10, %v4130_v0  ;;  %vm13321_vm10 = vmmov 0  }
 0x662   : > { %4779 = vmatmul.mubr.bf16.gmra.mrb[4].mxu0 %v4129_v13  ;;  %v12674_v13 = vld [vmem:[%s19500_s4 + $0xa4] ss:$0 sps:$4 sm:$0x11]  }
 0x663   : > { %8209 = vmatprep.mubr.bf16.mxu0 %v21156_v20 }
 0x72d   : > { %v4770_v42 = vpop.f32.mrb[0].mxu0 }
 0x72e   : > { %v4772_v33 = vpop.f32.mrb[1].mxu0 }
 0x72f   : > { %v4774_v32 = vpop.f32.mrb[2].mxu0 }
 0x730   : > { %v17899_v34 = vpack.c.bf16 %v4774_v32, %v4770_v42  ;;  %v4776_v16 = vpop.f32.mrb[3].mxu0  ;;  %v12677_v32 = vld [vmem:[%s19500_s4 + $0xb8] sm:$0xff]  }
 0x731   : > { %v17901_v5 = vpack.c.bf16 %v4776_v16, %v4772_v33  ;;  %v12676_v33 = vld [vmem:[%s19500_s4 + $0xb0] sm:$0xff]  }
 0x732   : > { %4826 = vrot.lane.b32.xlu1 %v17899_v34, %s20406_s12 }
 0x735   : > { %v4780_v11 = vpop.f32.mrb[4].mxu0 }
 0x736   : > { %v17905_v27 = vpack.c.bf16 %v4780_v11, %v4780_v11  ;;  %5034 = vrot.lane.b32.xlu1 %v17899_v34, %s20419_s25  ;;  %v4782_v55 = vpop.f32.mrb[5].mxu0 }
 0x737   : > { %v4784_v19 = vpop.f32.mrb[6].mxu0  ;;  %v17948_v18 = vpack.c.bf16 %v4782_v55, %v4782_v55  ;;  %v12680_v55 = vld [vmem:[%s19500_s4 + $0xcc] sm:$0xff]  }
 0x738   : > { %4828 = vrot.lane.b32.xlu0 %v17905_v27, %s20406_s12  ;;  %v4785_v21 = vpop.f32.mrb[7].mxu0  ;;  %v4942_v15 = vsel %vm4625_vm9, %v17905_v27, 0  ;;  %v12681_v19 = vld [vmem:[%s19500_s4 + $0xd4] sm:$0xff]  }
 0x73a   : > { %5151 = vrot.lane.b32.xlu1 %v17899_v34, %s20472_s15 }
 0x73c   : > { %5036 = vrot.lane.b32.xlu0 %v17905_v27, %s20419_s25  ;;  %s13302_s25 = smov 114  }
 0x73e   : > { %5268 = vrot.lane.b32.xlu1 %v17899_v34, %s20526_s16 }
 0x740   : > { %5153 = vrot.lane.b32.xlu0 %v17905_v27, %s20472_s15  ;;  %s13304_s15 = smov 112  }
 0x742   : > { %5385 = vrot.lane.b32.xlu1 %v17899_v34, %s13300_s6 }
 0x744   : > { %5270 = vrot.lane.b32.xlu0 %v17905_v27, %s20526_s16  ;;  %s13305_s16 = smov 104  }
 0x746   : > { %5502 = vrot.lane.b32.xlu1 %v17899_v34, %s13301_s11 }
 0x748   : > { %5387 = vrot.lane.b32.xlu0 %v17905_v27, %s13300_s6 }
 0x74a   : > { %5619 = vrot.lane.b32.xlu1 %v17899_v34, %s13302_s25 }
 0x74c   : > { %5504 = vrot.lane.b32.xlu0 %v17905_v27, %s13301_s11  ;;  %s13318_s11 = smov 76  }
 0x74e   : > { %5736 = vrot.lane.b32.xlu1 %v17899_v34, %s13303_s21 }
 0x750   : > { %5621 = vrot.lane.b32.xlu0 %v17905_v27, %s13302_s25 }
 0x752   : > { %5853 = vrot.lane.b32.xlu1 %v17899_v34, %s13304_s15 }
 0x754   : > { %5738 = vrot.lane.b32.xlu0 %v17905_v27, %s13303_s21  ;;  %s13322_s21 = smov [#allocation5]  }
 0x756   : > { %5970 = vrot.lane.b32.xlu1 %v17899_v34, %s13305_s16 }
 0x758   : > { %5855 = vrot.lane.b32.xlu0 %v17905_v27, %s13304_s15  ;;  %s13183_s15 = sshll.u32 %s13322_s21, 4  ;;  %s13184_s15 = int_to_ptr.vmem [resolvable:$false] %s13183_s15 }
 0x75a   : > { %6087 = vrot.lane.b32.xlu1 %v17899_v34, %s13306_s22 }
 0x75c   : > { %5972 = vrot.lane.b32.xlu0 %v17905_v27, %s13305_s16  ;;  %s13185_s16 = scalar_lea.vmem %s13184_s15, 32 }
 0x75e   : > { %6204 = vrot.lane.b32.xlu1 %v17899_v34, %s13307_s24 }
 0x760   : > { %6089 = vrot.lane.b32.xlu0 %v17905_v27, %s13306_s22 }
 0x762   : > { %6321 = vrot.lane.b32.xlu1 %v17899_v34, %s13308_s27 }
 0x764   : > { %6206 = vrot.lane.b32.xlu0 %v17905_v27, %s13307_s24 }
 0x766   : > { %6438 = vrot.lane.b32.xlu1 %v17899_v34, %s20259_s29 }
 0x768   : > { %6323 = vrot.lane.b32.xlu0 %v17905_v27, %s13308_s27 }
 0x76a   : > { %6557 = vrot.lane.b32.xlu1 %v17899_v34, %s13309_s13 }
 0x76c   : > { %6440 = vrot.lane.b32.xlu0 %v17905_v27, %s20259_s29  ;;  %s13312_s29 = smov 89  }
 0x76e   : > { %6561 = vrot.lane.b32.xlu1 %v17905_v27, %s13309_s13 }
 0x770   : > { %6559 = vrot.lane.b32.xlu0 %v17901_v5, %s13309_s13 }
 0x772   : > { %6681 = vrot.lane.b32.xlu1 %v17899_v34, %s13310_s14 }
 0x774   : > { %6563 = vrot.lane.b32.xlu0 %v17948_v18, %s13309_s13 }
 0x776   : > { %6685 = vrot.lane.b32.xlu1 %v17905_v27, %s13310_s14 }
 0x778   : > { %6683 = vrot.lane.b32.xlu0 %v17901_v5, %s13310_s14 }
 0x77a   : > { %6805 = vrot.lane.b32.xlu1 %v17899_v34, %s13311_s23 }
 0x77c   : > { %6687 = vrot.lane.b32.xlu0 %v17948_v18, %s13310_s14 }
 0x77e   : > { %6809 = vrot.lane.b32.xlu1 %v17905_v27, %s13311_s23 }
 0x780   : > { %6807 = vrot.lane.b32.xlu0 %v17901_v5, %s13311_s23 }
 0x782   : > { %6929 = vrot.lane.b32.xlu1 %v17899_v34, %s13312_s29 }
 0x784   : > { %6811 = vrot.lane.b32.xlu0 %v17948_v18, %s13311_s23 }
 0x786   : > { %6933 = vrot.lane.b32.xlu1 %v17905_v27, %s13312_s29 }
 0x788   : > { %6931 = vrot.lane.b32.xlu0 %v17901_v5, %s13312_s29 }
 0x78a   : > { %7053 = vrot.lane.b32.xlu1 %v17899_v34, %s13313_s26 }
 0x78c   : > { %6935 = vrot.lane.b32.xlu0 %v17948_v18, %s13312_s29  ;;  %s21162_s29 = sld [smem:[#allocation362_spill]] }
 0x78e   : > { %7057 = vrot.lane.b32.xlu1 %v17905_v27, %s13313_s26 }
 0x790   : > { %7055 = vrot.lane.b32.xlu0 %v17901_v5, %s13313_s26 }
 0x792   : > { %7177 = vrot.lane.b32.xlu1 %v17899_v34, %s13314_s20 }
 0x794   : > { %7059 = vrot.lane.b32.xlu0 %v17948_v18, %s13313_s26  ;;  %s21163_s26 = sld [smem:[#allocation9_spill]] }
 0x796   : > { %7181 = vrot.lane.b32.xlu1 %v17905_v27, %s13314_s20 }
 0x798   : > { %7179 = vrot.lane.b32.xlu0 %v17901_v5, %s13314_s20 }
 0x79a   : > { %7301 = vrot.lane.b32.xlu1 %v17899_v34, %s13315_s28 }
 0x79c   : > { %7183 = vrot.lane.b32.xlu0 %v17948_v18, %s13314_s20  ;;  %s21164_s20 = sld [smem:[#allocation12_spill]] }
 0x79e   : > { %7305 = vrot.lane.b32.xlu1 %v17905_v27, %s13315_s28 }
 0x7a0   : > { %7303 = vrot.lane.b32.xlu0 %v17901_v5, %s13315_s28 }
 0x7a2   : > { %7425 = vrot.lane.b32.xlu1 %v17899_v34, %s13316_s17 }
 0x7a4   : > { %v4827_v46 = vpop.permute.xlu1 %4826  ;;  %7307 = vrot.lane.b32.xlu0 %v17948_v18, %s13315_s28  ;;  %s21165_s28 = sld [smem:[#allocation15_spill]] }
 0x7a5   : > { %11741 = vmatprep.subr.bf16.mxu1 %v4827_v46 }
 0x7a6   : > { %11742 = vmatpush3.bf16.msra.mxu1 %v4827_v46  ;;  %7429 = vrot.lane.b32.xlu1 %v17905_v27, %s13316_s17  ;;  %v12682_v46 = vld [vmem:[%s19500_s4 + $0xdc] ss:$0 sps:$4 sm:$0x11]  }
 0x7a8   : > { %7427 = vrot.lane.b32.xlu0 %v17901_v5, %s13316_s17  ;;  %v5035_v9 = vpop.permute.xlu1 %5034 }
 0x7aa   : > { %7549 = vrot.lane.b32.xlu1 %v17899_v34, %s13317_s19  ;;  %v4829_v4 = vpop.permute.xlu0 %4828  ;;  %p21167_p9 = scmp.ne.s32.totalorder %s21165_s28, 0 }
 0x7ab   : > { %12211 = vmatprep.subr.msk.bf16.mxu1 %vm4625_vm9, %v4829_v4  ;;  %v4845_v31 = vsel %vm4625_vm9, %v4829_v4, 0 }
 0x7ac   : > { %11744 = vmatpush3.bf16.msra.mxu1 %v4845_v31  ;;  %7431 = vrot.lane.b32.xlu0 %v17948_v18, %s13316_s17  ;;  %v5152_v24 = vpop.permute.xlu1 %5151  ;;  %v12683_v31 = vld [vmem:[%s19500_s4 + $0xe0] sm:$0xff]   ;;  %s417_s17 = sand.u32 1, %s21163_s26  }
 0x7ad   : > { %11753 = vmatprep.subr.bf16.mxu1 %v17899_v34  ;;  %s418_s30 = scalar_lea.vmem [#allocation5], %s417_s17 }
 0x7ae   : > { %7553 = vrot.lane.b32.xlu1 %v17905_v27, %s13317_s19  ;;  %v5037_v47 = vpop.permute.xlu0 %5036  ;;  %s10704_s18 = sshll.u32 %s418_s30, 4  ;;  %s19455_s18 = int_to_ptr.vmem [resolvable:$true] %s10704_s18 }
 0x7af   : > { %11746 = vmatmul.mubr.msk.bf16.vlgmr.msra.gmra.mrb[0].mxu1 %vm4831_vm11, %v12652_v28  ;;  %v5052_v62 = vsel %vm4625_vm9, %v5037_v47, 0  ;;  %v12684_v28 = vld [vmem:[%s19500_s4 + $0xe8] sm:$0xff]   ;;  %s13179_s25 = scalar_lea.vmem %s19455_s18, 16  ;;  %p13186_p2 = scmp.lt.s32.totalorder %s19455_s18, %s13184_s15 }
 0x7b0   : > { %11754 = vmatpush3.bf16.msra.mxu1 %v17899_v34  ;;  %7551 = vrot.lane.b32.xlu0 %v17901_v5, %s13317_s19  ;;  %v5269_v26 = vpop.permute.xlu1 %5268  ;;  %p13180_p6 = scmp.ne.s32.totalorder %s19455_s18, %s13179_s25  ;;  %p13187_p3 = scmp.lt.s32.totalorder %s13185_s16, %s13179_s25 }
 0x7b1   : > { %12212 = vmatprep.subr.msk.bf16.mxu1 %vm4625_vm9, %v17905_v27  ;;  %11749 = vmatprep.mubr.msk.bf16.mxu1 %vm4831_vm11, %v12653_v23  ;;  %v12685_v23 = vld [vmem:[%s19500_s4 + $0xf0] sm:$0xff]  }
 0x7b2   : > { %7673 = vrot.lane.b32.xlu1 %v17899_v34, %s13318_s11  ;;  %v5154_v12 = vpop.permute.xlu0 %5153  ;;  %p13181_p10 = pnand %p13180_p6, %p21167_p9  ;;  %p13188_p4 = por %p13187_p3, %p13186_p2 }
 0x7b3   : > { %v5169_v44 = vsel %vm4625_vm9, %v5154_v12, 0 }
 0x7b4   : > { %11756 = vmatpush3.bf16.msra.mxu1 %v4942_v15  ;;  %7555 = vrot.lane.b32.xlu0 %v17948_v18, %s13317_s19  ;;  %v5386_v8 = vpop.permute.xlu1 %5385  ;;  %s11529_s19 = sshll.u32 %s21164_s20, 4  ;;  %p13182_p12 = pneg %p13181_p10 }
 0x7b5   : > { %11765 = vmatprep.subr.bf16.mxu1 %v5035_v9 }
 0x7b6   : > { %7677 = vrot.lane.b32.xlu1 %v17905_v27, %s13318_s11  ;;  %v5271_v51 = vpop.permute.xlu0 %5270  ;;  %v12679_v27 = vld [vmem:[%s19500_s4 + $0xc4] sm:$0xff]   ;;  %p13189_p7 = pnand %p13188_p4, %p13182_p12 }
 0x7b7   : > { %11750 = vmatmul.mubr.msk.bf16.gmra.mrb[4].mxu1 %vm4831_vm11, %v12654_v53  ;;  %v5286_v10 = vsel %vm4625_vm9, %v5271_v51, 0 }
 0x7b8   : > { %7675 = vrot.lane.b32.xlu0 %v17901_v5, %s13318_s11  ;;  %11757 = vmatprep.mubr.msk.bf16.mxu1 %vm4831_vm11, %v12655_v39  ;;  %v5503_v41 = vpop.permute.xlu1 %5502  ;;  %v12678_v5 = vld [vmem:[%s19500_s4 + $0xc0] ss:$0 sps:$4 sm:$0x11]  }
 0x7ba   : > { %7780 = vperm.xlu1 %12413, %v7771_v29   ;;  %v5388_v1 = vpop.permute.xlu0 %5387  ;;  %v12687_v29 = vld [vmem:[%s19500_s4 + $0xfc] sm:$0xff]  }
 0x7bb   : > { %v5403_v3 = vsel %vm4625_vm9, %v5388_v1, 0 }
 0x7bc   : > { %7679 = vrot.lane.b32.xlu0 %v17948_v18, %s13318_s11  ;;  %v5620_v42 = vpop.permute.xlu1 %5619  ;;  %s10692_s11 = scalar_lea.sflag [#allocation4], %s417_s17 }
 0x7be   : > { %7790 = vperm.xlu1 %12413, %v7773_v7   ;;  %v5505_v0 = vpop.permute.xlu0 %5504  ;;  %v12688_v7 = vld [vmem:[%s19500_s4 + $0x104] sm:$0xff]  }
 0x7bf   : > { %11758 = vmatmul.mubr.msk.bf16.vlgmr.msra.gmra.mrb[0].mxu1 %vm4831_vm11, %v12656_v58  ;;  %v5520_v30 = vsel %vm4625_vm9, %v5505_v0, 0  ;;  %v12689_v58 = vld [vmem:[%s19500_s4 + $0x10c] sm:$0xff]  }
 0x7c0   : > { %11766 = vmatpush3.bf16.msra.mxu1 %v5035_v9  ;;  %7785 = vperm.xlu0 %12412, %v7772_v57   ;;  %v5737_v11 = vpop.permute.xlu1 %5736  ;;  %v12686_v9 = vld [vmem:[%s19500_s4 + $0xf8] ss:$0 sps:$4 sm:$0x11]  }
 0x7c1   : > { %12213 = vmatprep.subr.msk.bf16.mxu1 %vm4625_vm9, %v5037_v47  ;;  %11761 = vmatprep.mubr.msk.bf16.mxu1 %vm4831_vm11, %v12657_v22 }
 0x7c2   : > { %7800 = vperm.xlu1 %12413, %v7775_v6   ;;  %v5622_v34 = vpop.permute.xlu0 %5621  ;;  %v12690_v6 = vld [vmem:[%s19500_s4 + $0x114] ss:$0 sps:$4 sm:$0x11]  }
 0x7c3   : > { %v5637_v16 = vsel %vm4625_vm9, %v5622_v34, 0 }
 0x7c4   : > { %11768 = vmatpush3.bf16.msra.mxu1 %v5052_v62  ;;  %7795 = vperm.xlu0 %12412, %v7774_v61   ;;  %v5854_v4 = vpop.permute.xlu1 %5853  ;;  %v12691_v61 = vld [vmem:[%s19500_s4 + $0x118] sm:$0xff]   ;;  %v12692_v62 = vld [vmem:[%s19500_s4 + $0x120] sm:$0xff]  }
 0x7c5   : > { %11777 = vmatprep.subr.bf16.mxu1 %v5152_v24 }
 0x7c6   : > { %7810 = vperm.xlu1 %12413, %v7777_v38   ;;  %v5739_v21 = vpop.permute.xlu0 %5738  ;;  %v12693_v38 = vld [vmem:[%s19500_s4 + $0x128] sm:$0xff]  }
 0x7c7   : > { %11762 = vmatmul.mubr.msk.bf16.gmra.mrb[8].mxu1 %vm4831_vm11, %v12658_v2  ;;  %v5754_v18 = vsel %vm4625_vm9, %v5739_v21, 0 }
 0x7c8   : > { %7805 = vperm.xlu0 %12412, %v7776_v49   ;;  %11769 = vmatprep.mubr.msk.bf16.mxu1 %vm4831_vm11, %v12659_v36  ;;  %v5971_v39 = vpop.permute.xlu1 %5970  ;;  %v12694_v36 = vld [vmem:[%s19500_s4 + $0x130] ss:$0 sps:$4 sm:$0x11]  }
 0x7ca   : > { %v5856_v15 = vpop.permute.xlu0 %5855 }
 0x7cb   : > { %v5871_v53 = vsel %vm4625_vm9, %v5856_v15, 0 }
 0x7cc   : > { %v6088_v47 = vpop.permute.xlu1 %6087 }
 0x7ce   : > { %v5973_v57 = vpop.permute.xlu0 %5972 }
 0x7cf   : > { %11770 = vmatmul.mubr.msk.bf16.vlgmr.msra.gmra.mrb[0].mxu1 %vm4831_vm11, %v12660_v50  ;;  %v5988_v22 = vsel %vm4625_vm9, %v5973_v57, 0  ;;  %v12695_v50 = vld [vmem:[%s19500_s4 + $0x134] sm:$0xff]  }
 0x7d0   : > { %11778 = vmatpush3.bf16.msra.mxu1 %v5152_v24  ;;  %11773 = vmatprep.mubr.msk.bf16.mxu1 %vm4831_vm11, %v12661_v25  ;;  %v6205_v49 = vpop.permute.xlu1 %6204  ;;  %v12696_v25 = vld [vmem:[%s19500_s4 + $0x13c] sm:$0xff]  }
 0x7d1   : > { %12214 = vmatprep.subr.msk.bf16.mxu1 %vm4625_vm9, %v5154_v12  ;;  %v12697_v12 = vld [vmem:[%s19500_s4 + $0x144] sm:$0xff]  }
 0x7d2   : > { %v6090_v2 = vpop.permute.xlu0 %6089 }
 0x7d3   : > { %v6105_v24 = vsel %vm4625_vm9, %v6090_v2, 0 }
 0x7d4   : > { %11780 = vmatpush3.bf16.msra.mxu1 %v5169_v44 }
 0x7d5   : > { %11789 = vmatprep.subr.bf16.mxu1 %v5269_v26 }
 0x7d6   : > { %v6207_v44 = vpop.permute.xlu0 %6206 }
 0x7d7   : > { %11774 = vmatmul.mubr.msk.bf16.gmra.mrb[12].mxu1 %vm4831_vm11, %v12662_v35  ;;  %v6222_v35 = vsel %vm4625_vm9, %v6207_v44, 0 }
 0x7d8   : > { %11781 = vmatprep.mubr.msk.bf16.mxu1 %vm4831_vm11, %v12663_v17  ;;  %v6322_v17 = vpop.permute.xlu1 %6321 }
 0x7df   : > { %11782 = vmatmul.mubr.msk.bf16.vlgmr.msra.gmra.mrb[0].mxu1 %vm4831_vm11, %v12664_v56  ;;  %v12699_v56 = vld [vmem:[%s19500_s4 + $0x150] sm:$0xff]  }
 0x7e0   : > { %11790 = vmatpush3.bf16.msra.mxu1 %v5269_v26  ;;  %11785 = vmatprep.mubr.msk.bf16.mxu1 %vm4831_vm11, %v12665_v48  ;;  %v12698_v26 = vld [vmem:[%s19500_s4 + $0x14c] ss:$0 sps:$4 sm:$0x11]   ;;  %v12700_v48 = vld [vmem:[%s19500_s4 + $0x158] sm:$0xff]  }
 0x7e1   : > { %12215 = vmatprep.subr.msk.bf16.mxu1 %vm4625_vm9, %v5271_v51  ;;  %v12701_v51 = vld [vmem:[%s19500_s4 + $0x160] sm:$0xff]  }
 0x7e4   : > { %11792 = vmatpush3.bf16.msra.mxu1 %v5286_v10  ;;  %v6324_v10 = vpop.permute.xlu0 %6323 }
 0x7e5   : > { %11801 = vmatprep.subr.bf16.mxu1 %v5386_v8 }
 0x7e7   : > { %11786 = vmatmul.mubr.msk.bf16.gmra.mrb[16].mxu1 %vm4831_vm11, %v12666_v59  ;;  %v6339_v59 = vsel %vm4625_vm9, %v6324_v10, 0 }
 0x7e8   : > { %11793 = vmatprep.mubr.msk.bf16.mxu1 %vm4831_vm11, %v12667_v43  ;;  %v6439_v43 = vpop.permute.xlu1 %6438 }
 0x7ef   : > { %11794 = vmatmul.mubr.msk.bf16.vlgmr.msra.gmra.mrb[0].mxu1 %vm4831_vm11, %v12668_v63  ;;  %v12703_v63 = vld [vmem:[%s19500_s4 + $0x16c] sm:$0xff]  }
 0x7f0   : > { %11802 = vmatpush3.bf16.msra.mxu1 %v5386_v8  ;;  %11797 = vmatprep.mubr.msk.bf16.mxu1 %vm4831_vm11, %v12669_v60  ;;  %v12702_v8 = vld [vmem:[%s19500_s4 + $0x168] ss:$0 sps:$4 sm:$0x11]   ;;  %v6441_v60 = vpop.permute.xlu0 %6440 }
 0x7f1   : > { %12216 = vmatprep.subr.msk.bf16.mxu1 %vm4625_vm9, %v5388_v1  ;;  %v12704_v1 = vld [vmem:[%s19500_s4 + $0x174] sm:$0xff]  }
 0x7f4   : > { %11804 = vmatpush3.bf16.msra.mxu1 %v5403_v3  ;;  %v12705_v3 = vld [vmem:[%s19500_s4 + $0x17c] sm:$0xff]  }
 0x7f5   : > { %11813 = vmatprep.subr.bf16.mxu1 %v5503_v41 }
 0x7f7   : > { %11798 = vmatmul.mubr.msk.bf16.gmra.mrb[20].mxu1 %vm4831_vm11, %v12670_v45  ;;  %v6560_v45 = vpop.permute.xlu0 %6559 }
 0x7f8   : > { %11805 = vmatprep.mubr.msk.bf16.mxu1 %vm4831_vm11, %v12671_v52  ;;  %v6456_v52 = vsel %vm4625_vm9, %v6441_v60, 0 }
 0x7ff   : > { %11806 = vmatmul.mubr.msk.bf16.vlgmr.msra.gmra.mrb[0].mxu1 %vm4831_vm11, %v12672_v54  ;;  %v12706_v54 = vld [vmem:[%s19500_s4 + $0x184] ss:$0 sps:$4 sm:$0x11]  }
 0x800   : > { %11814 = vmatpush3.bf16.msra.mxu1 %v5503_v41  ;;  %11809 = vmatprep.mubr.msk.bf16.mxu1 %vm4831_vm11, %v12673_v40  ;;  %v6558_v41 = vpop.permute.xlu1 %6557 }
 0x801   : > { %12217 = vmatprep.subr.msk.bf16.mxu1 %vm4625_vm9, %v5505_v0  ;;  %v6566_v40 = vsel %vm6565_vm4, %v6558_v41, %v6560_v45  ;;  %v12707_v0 = vld [vmem:[%s19500_s4 + $0x188] sm:$0xff]  }
 0x804   : > { %11816 = vmatpush3.bf16.msra.mxu1 %v5520_v30 }
 0x805   : > { %11825 = vmatprep.subr.bf16.mxu1 %v5620_v42 }
 0x807   : > { %11810 = vmatmul.mubr.msk.bf16.gmra.mrb[24].mxu1 %vm4831_vm11, %v12674_v13  ;;  %v6564_v13 = vpop.permute.xlu0 %6563 }
 0x808   : > { %11817 = vmatprep.mubr.msk.bf16.mxu1 %vm4831_vm11, %v12675_v37  ;;  %v12708_v37 = vld [vmem:[%s19500_s4 + $0x190] sm:$0xff]  }
 0x80f   : > { %11818 = vmatmul.mubr.msk.bf16.vlgmr.msra.gmra.mrb[0].mxu1 %vm4831_vm11, %v12676_v33 }
 0x810   : > { %11826 = vmatpush3.bf16.msra.mxu1 %v5620_v42  ;;  %11821 = vmatprep.mubr.msk.bf16.mxu1 %vm4831_vm11, %v12677_v32  ;;  %v12709_v32 = vld [vmem:[%s19500_s4 + $0x198] sm:$0xff]  }
 0x811   : > { %12218 = vmatprep.subr.msk.bf16.mxu1 %vm4625_vm9, %v5622_v34  ;;  %v6562_v34 = vpop.permute.xlu1 %6561 }
 0x814   : > { %11828 = vmatpush3.bf16.msra.mxu1 %v5637_v16 }
 0x815   : > { %11837 = vmatprep.subr.bf16.mxu1 %v5737_v11 }
 0x817   : > { %11822 = vmatmul.mubr.msk.bf16.gmra.mrb[28].mxu1 %vm4831_vm11, %v12678_v5  ;;  %v6567_v5 = vsel %vm6565_vm4, %v6562_v34, %v6564_v13  ;;  %v12723_v34 = vld [vmem:[%s19500_s4 + $0x1f8] sm:$0xff]  }
 0x818   : > { %11829 = vmatprep.mubr.msk.bf16.mxu1 %vm4831_vm11, %v12679_v27  ;;  %v6682_v27 = vpop.permute.xlu1 %6681 }
 0x81f   : > { %11830 = vmatmul.mubr.msk.bf16.vlgmr.msra.gmra.mrb[0].mxu1 %vm4831_vm11, %v12680_v55  ;;  %v6582_v55 = vsel %vm4625_vm9, %v6567_v5, 0 }
 0x820   : > { %11838 = vmatpush3.bf16.msra.mxu1 %v5737_v11  ;;  %11833 = vmatprep.mubr.msk.bf16.mxu1 %vm4831_vm11, %v12681_v19  ;;  %v6684_v11 = vpop.permute.xlu0 %6683  ;;  %v12710_v19 = vld [vmem:[%s19500_s4 + $0x1a0] ss:$0 sps:$4 sm:$0x11]  }
 0x821   : > { %12219 = vmatprep.subr.msk.bf16.mxu1 %vm4625_vm9, %v5739_v21  ;;  %v6690_v21 = vsel %vm6689_vm12, %v6682_v27, %v6684_v11 }
 0x824   : > { %11840 = vmatpush3.bf16.msra.mxu1 %v5754_v18  ;;  %v12711_v18 = vld [vmem:[%s19500_s4 + $0x1a4] sm:$0xff]  }
 0x825   : > { %11849 = vmatprep.subr.bf16.mxu1 %v5854_v4 }
 0x827   : > { %11834 = vmatmul.mubr.msk.bf16.gmra.mrb[32].mxu1 %vm4831_vm11, %v12682_v46 }
 0x828   : > { %11841 = vmatprep.mubr.msk.bf16.mxu1 %vm4831_vm11, %v12683_v31 }
 0x82f   : > { %11842 = vmatmul.mubr.msk.bf16.vlgmr.msra.gmra.mrb[0].mxu1 %vm4831_vm11, %v12684_v28 }
 0x830   : > { %11850 = vmatpush3.bf16.msra.mxu1 %v5854_v4  ;;  %11845 = vmatprep.mubr.msk.bf16.mxu1 %vm4831_vm11, %v12685_v23  ;;  %v6688_v4 = vpop.permute.xlu0 %6687  ;;  %v12712_v23 = vld [vmem:[%s19500_s4 + $0x1ac] sm:$0xff]  }
 0x831   : > { %12220 = vmatprep.subr.msk.bf16.mxu1 %vm4625_vm9, %v5856_v15 }
 0x834   : > { %11852 = vmatpush3.bf16.msra.mxu1 %v5871_v53 }
 0x835   : > { %11861 = vmatprep.subr.bf16.mxu1 %v5971_v39 }
 0x837   : > { %11846 = vmatmul.mubr.msk.bf16.gmra.mrb[36].mxu1 %vm4831_vm11, %v12686_v9  ;;  %v12713_v9 = vld [vmem:[%s19500_s4 + $0x1b4] sm:$0xff]  }
 0x838   : > { %11853 = vmatprep.mubr.msk.bf16.mxu1 %vm4831_vm11, %v12687_v29 }
 0x83f   : > { %11854 = vmatmul.mubr.msk.bf16.vlgmr.msra.gmra.mrb[0].mxu1 %vm4831_vm11, %v12688_v7 }
 0x840   : > { %11862 = vmatpush3.bf16.msra.mxu1 %v5971_v39  ;;  %11857 = vmatprep.mubr.msk.bf16.mxu1 %vm4831_vm11, %v12689_v58  ;;  %v6686_v39 = vpop.permute.xlu1 %6685 }
 0x841   : > { %12221 = vmatprep.subr.msk.bf16.mxu1 %vm4625_vm9, %v5973_v57  ;;  %v6691_v58 = vsel %vm6689_vm12, %v6686_v39, %v6688_v4  ;;  %v6808_v57 = vpop.permute.xlu0 %6807 }
 0x844   : > { %11864 = vmatpush3.bf16.msra.mxu1 %v5988_v22  ;;  %v6806_v22 = vpop.permute.xlu1 %6805 }
 0x845   : > { %11873 = vmatprep.subr.bf16.mxu1 %v6088_v47 }
 0x847   : > { %11858 = vmatmul.mubr.msk.bf16.gmra.mrb[40].mxu1 %vm4831_vm11, %v12690_v6  ;;  %v6706_v6 = vsel %vm4625_vm9, %v6691_v58, 0 }
 0x848   : > { %11865 = vmatprep.mubr.msk.bf16.mxu1 %vm4831_vm11, %v12691_v61  ;;  %v6814_v61 = vsel %vm6813_vm13, %v6806_v22, %v6808_v57 }
 0x84f   : > { %11866 = vmatmul.mubr.msk.bf16.vlgmr.msra.gmra.mrb[0].mxu1 %vm4831_vm11, %v12692_v62  ;;  %v12715_v62 = vld [vmem:[%s19500_s4 + $0x1c0] sm:$0xff]  }
 0x850   : > { %11874 = vmatpush3.bf16.msra.mxu1 %v6088_v47  ;;  %11869 = vmatprep.mubr.msk.bf16.mxu1 %vm4831_vm11, %v12693_v38  ;;  %v12714_v47 = vld [vmem:[%s19500_s4 + $0x1bc] ss:$0 sps:$4 sm:$0x11]  }
 0x851   : > { %12222 = vmatprep.subr.msk.bf16.mxu1 %vm4625_vm9, %v6090_v2  ;;  %v6812_v2 = vpop.permute.xlu0 %6811 }
 0x854   : > { %11876 = vmatpush3.bf16.msra.mxu1 %v6105_v24 }
 0x855   : > { %11885 = vmatprep.subr.bf16.mxu1 %v6205_v49 }
 0x857   : > { %11870 = vmatmul.mubr.msk.bf16.gmra.mrb[44].mxu1 %vm4831_vm11, %v12694_v36 }
 0x858   : > { %11877 = vmatprep.mubr.msk.bf16.mxu1 %vm4831_vm11, %v12695_v50 }
 0x85f   : > { %11878 = vmatmul.mubr.msk.bf16.vlgmr.msra.gmra.mrb[0].mxu1 %vm4831_vm11, %v12696_v25 }
 0x860   : > { %11886 = vmatpush3.bf16.msra.mxu1 %v6205_v49  ;;  %11881 = vmatprep.mubr.msk.bf16.mxu1 %vm4831_vm11, %v12697_v12  ;;  %v12716_v49 = vld [vmem:[%s19500_s4 + $0x1c8] sm:$0xff]   ;;  %v12717_v12 = vld [vmem:[%s19500_s4 + $0x1d0] sm:$0xff]  }
 0x861   : > { %12223 = vmatprep.subr.msk.bf16.mxu1 %vm4625_vm9, %v6207_v44  ;;  %v6810_v44 = vpop.permute.xlu1 %6809 }
 0x864   : > { %11888 = vmatpush3.bf16.msra.mxu1 %v6222_v35 }
 0x865   : > { %11897 = vmatprep.subr.bf16.mxu1 %v6322_v17 }
 0x867   : > { %11882 = vmatmul.mubr.msk.bf16.gmra.mrb[48].mxu1 %vm4831_vm11, %v12698_v26 }
 0x868   : > { %11889 = vmatprep.mubr.msk.bf16.mxu1 %vm4831_vm11, %v12699_v56  ;;  %v6932_v56 = vpop.permute.xlu0 %6931 }
 0x86f   : > { %11890 = vmatmul.mubr.msk.bf16.vlgmr.msra.gmra.mrb[0].mxu1 %vm4831_vm11, %v12700_v48  ;;  %v6930_v48 = vpop.permute.xlu1 %6929 }
 0x870   : > { %11898 = vmatpush3.bf16.msra.mxu1 %v6322_v17  ;;  %11893 = vmatprep.mubr.msk.bf16.mxu1 %vm4831_vm11, %v12701_v51  ;;  %v6815_v17 = vsel %vm6813_vm13, %v6810_v44, %v6812_v2 }
 0x871   : > { %12224 = vmatprep.subr.msk.bf16.mxu1 %vm4625_vm9, %v6324_v10  ;;  %v6830_v51 = vsel %vm4625_vm9, %v6815_v17, 0  ;;  %v12718_v10 = vld [vmem:[%s19500_s4 + $0x1d8] ss:$0 sps:$4 sm:$0x11]  }
 0x874   : > { %11900 = vmatpush3.bf16.msra.mxu1 %v6339_v59  ;;  %v6938_v59 = vsel %vm6937_vm14, %v6930_v48, %v6932_v56 }
 0x875   : > { %11909 = vmatprep.subr.bf16.mxu1 %v6439_v43 }
 0x877   : > { %11894 = vmatmul.mubr.msk.bf16.gmra.mrb[52].mxu1 %vm4831_vm11, %v12702_v8  ;;  %v12719_v8 = vld [vmem:[%s19500_s4 + $0x1dc] sm:$0xff]  }
 0x878   : > { %11901 = vmatprep.mubr.msk.bf16.mxu1 %vm4831_vm11, %v12703_v63  ;;  %v6936_v63 = vpop.permute.xlu0 %6935 }
 0x87c   : > { %v7056_v13 = vpop.permute.xlu0 %7055 }
 0x87f   : > { %11902 = vmatmul.mubr.msk.bf16.vlgmr.msra.gmra.mrb[0].mxu1 %vm4831_vm11, %v12704_v1 }
 0x880   : > { %11910 = vmatpush3.bf16.msra.mxu1 %v6439_v43  ;;  %11905 = vmatprep.mubr.msk.bf16.mxu1 %vm4831_vm11, %v12705_v3  ;;  %v12720_v3 = vld [vmem:[%s19500_s4 + $0x1e4] sm:$0xff]  }
 0x881   : > { %12225 = vmatprep.subr.msk.bf16.mxu1 %vm4625_vm9, %v6441_v60 }
 0x884   : > { %11912 = vmatpush3.bf16.msra.mxu1 %v6456_v52  ;;  %v12721_v52 = vld [vmem:[%s19500_s4 + $0x1ec] sm:$0xff]  }
 0x885   : > { %11921 = vmatprep.subr.bf16.mxu1 %v6566_v40 }
 0x887   : > { %11906 = vmatmul.mubr.msk.bf16.gmra.mrb[56].mxu1 %vm4831_vm11, %v12706_v54  ;;  %v6934_v54 = vpop.permute.xlu1 %6933 }
 0x888   : > { %11913 = vmatprep.mubr.msk.bf16.mxu1 %vm4831_vm11, %v12707_v0 }
 0x88a   : > { %v11751_v30 = vpop.f32.mrb[4].mxu1 }
 0x88b   : > { %v4897_v42 = vpop.f32.mrb[5].mxu1 }
 0x88c   : > { %v11752_v33 = vpop.f32.mrb[6].mxu1 }
 0x88d   : > { %v4900_v16 = vpop.f32.mrb[7].mxu1  ;;  %v12722_v33 = vld [vmem:[%s19500_s4 + $0x1f4] ss:$0 sps:$4 sm:$0x11]  }
 0x88f   : > { %11914 = vmatmul.mubr.msk.bf16.vlgmr.msra.gmra.mrb[0].mxu1 %vm4831_vm11, %v12708_v37 }
 0x890   : > { %11922 = vmatpush3.bf16.msra.mxu1 %v6566_v40  ;;  %11917 = vmatprep.mubr.msk.bf16.mxu1 %vm4831_vm11, %v12709_v32 }
 0x891   : > { %12226 = vmatprep.subr.msk.bf16.mxu1 %vm4625_vm9, %v6567_v5  ;;  %v7060_v5 = vpop.permute.xlu0 %7059 }
 0x894   : > { %11924 = vmatpush3.bf16.msra.mxu1 %v6582_v55  ;;  %v12724_v55 = vld [vmem:[%s19500_s4 + $0x200] sm:$0xff]  }
 0x895   : > { %11933 = vmatprep.subr.bf16.mxu1 %v6690_v21 }
 0x897   : > { %11918 = vmatmul.mubr.msk.bf16.gmra.mrb[60].mxu1 %vm4831_vm11, %v12710_v19 }
 0x898   : > { %11925 = vmatprep.mubr.msk.bf16.mxu1 %vm4831_vm11, %v12711_v18  ;;  %v12725_v18 = vld [vmem:[%s19500_s4 + $0x208] sm:$0xff]  }
 0x89a   : > { %v11763_v46 = vpop.f32.mrb[8].mxu1 }
 0x89b   : > { %v5003_v31 = vadd.f32 %v11763_v46, %v11751_v30  ;;  %v4994_v28 = vpop.f32.mrb[9].mxu1  ;;  %v6939_v30 = vsel %vm6937_vm14, %v6934_v54, %v6936_v63 }
 0x89c   : > { %v4995_v15 = vadd.f32 %v4994_v28, %v4897_v42  ;;  %v11764_v53 = vpop.f32.mrb[10].mxu1  ;;  %v7054_v42 = vpop.permute.xlu1 %7053  ;;  %v6954_v37 = vsel %vm4625_vm9, %v6939_v30, 0 }
 0x89d   : > { %v4997_v29 = vpop.f32.mrb[11].mxu1  ;;  %v7062_v32 = vsel %vm7061_vm15, %v7054_v42, %v7056_v13 }
 0x89e   : > { %v4998_v7 = vadd.f32 %v4997_v29, %v4900_v16  ;;  %v12727_v29 = vld [vmem:[%s19500_s4 + $0x214] sm:$0xff]  }
 0x89f   : > { %11926 = vmatmul.mubr.msk.bf16.vlgmr.msra.gmra.mrb[0].mxu1 %vm4831_vm11, %v12712_v23  ;;  %v7180_v23 = vpop.permute.xlu0 %7179 }
 0x8a0   : > { %11934 = vmatpush3.bf16.msra.mxu1 %v6690_v21  ;;  %11929 = vmatprep.mubr.msk.bf16.mxu1 %vm4831_vm11, %v12713_v9  ;;  %v7058_v46 = vpop.permute.xlu1 %7057  ;;  %v12726_v9 = vld [vmem:[%s19500_s4 + $0x210] ss:$0 sps:$4 sm:$0x11]  }
 0x8a1   : > { %12227 = vmatprep.subr.msk.bf16.mxu1 %vm4625_vm9, %v6691_v58  ;;  %v7063_v28 = vsel %vm7061_vm15, %v7058_v46, %v7060_v5 }
 0x8a2   : > { %v7078_v53 = vsel %vm4625_vm9, %v7063_v28, 0 }
 0x8a3   : > { %v7184_v58 = vpop.permute.xlu0 %7183 }
 0x8a4   : > { %11936 = vmatpush3.bf16.msra.mxu1 %v6706_v6  ;;  %v12728_v6 = vld [vmem:[%s19500_s4 + $0x21c] sm:$0xff]  }
 0x8a5   : > { %11945 = vmatprep.subr.bf16.mxu1 %v6814_v61 }
 0x8a7   : > { %11930 = vmatmul.mubr.msk.bf16.gmra.mrb[64].mxu1 %vm4831_vm11, %v12714_v47 }
 0x8a8   : > { %11937 = vmatprep.mubr.msk.bf16.mxu1 %vm4831_vm11, %v12715_v62  ;;  %v12729_v62 = vld [vmem:[%s19500_s4 + $0x224] sm:$0xff]  }
 0x8aa   : > { %v11775_v38 = vpop.f32.mrb[12].mxu1 }
 0x8ab   : > { %v5124_v24 = vadd.f32 %v11775_v38, %v5003_v31  ;;  %v5104_v36 = vpop.f32.mrb[13].mxu1 }
 0x8ac   : > { %v5122_v50 = vadd.f32 %v5104_v36, %v4995_v15  ;;  %v11776_v25 = vpop.f32.mrb[14].mxu1  ;;  %v7178_v15 = vpop.permute.xlu1 %7177 }
 0x8ad   : > { %v5107_v35 = vpop.f32.mrb[15].mxu1  ;;  %v7186_v39 = vsel %vm7185_vm2, %v7178_v15, %v7180_v23 }
 0x8ae   : > { %v5123_v26 = vadd.f32 %v5107_v35, %v4998_v7  ;;  %v12731_v35 = vld [vmem:[%s19500_s4 + $0x230] sm:$0xff]  }
 0x8af   : > { %11938 = vmatmul.mubr.msk.bf16.vlgmr.msra.gmra.mrb[0].mxu1 %vm4831_vm11, %v12716_v49  ;;  %v7304_v49 = vpop.permute.xlu0 %7303 }
 0x8b0   : > { %11946 = vmatpush3.bf16.msra.mxu1 %v6814_v61  ;;  %11941 = vmatprep.mubr.msk.bf16.mxu1 %vm4831_vm11, %v12717_v12  ;;  %v7182_v38 = vpop.permute.xlu1 %7181  ;;  %v12730_v12 = vld [vmem:[%s19500_s4 + $0x22c] ss:$0 sps:$4 sm:$0x11]  }
 0x8b1   : > { %12228 = vmatprep.subr.msk.bf16.mxu1 %vm4625_vm9, %v6815_v17  ;;  %v7187_v36 = vsel %vm7185_vm2, %v7182_v38, %v7184_v58 }
 0x8b2   : > { %v7202_v25 = vsel %vm4625_vm9, %v7187_v36, 0 }
 0x8b3   : > { %v7308_v17 = vpop.permute.xlu0 %7307 }
 0x8b4   : > { %11948 = vmatpush3.bf16.msra.mxu1 %v6830_v51  ;;  %v12732_v51 = vld [vmem:[%s19500_s4 + $0x238] sm:$0xff]  }
 0x8b5   : > { %11957 = vmatprep.subr.bf16.mxu1 %v6938_v59 }
 0x8b7   : > { %11942 = vmatmul.mubr.msk.bf16.gmra.mrb[68].mxu1 %vm4831_vm11, %v12718_v10 }
 0x8b8   : > { %11949 = vmatprep.mubr.msk.bf16.mxu1 %vm4831_vm11, %v12719_v8  ;;  %v12733_v8 = vld [vmem:[%s19500_s4 + $0x240] sm:$0xff]  }
 0x8ba   : > { %v11787_v43 = vpop.f32.mrb[16].mxu1 }
 0x8bb   : > { %v5241_v60 = vadd.f32 %v11787_v43, %v5124_v24  ;;  %v5221_v1 = vpop.f32.mrb[17].mxu1 }
 0x8bc   : > { %v5239_v45 = vadd.f32 %v5221_v1, %v5122_v50  ;;  %v11788_v41 = vpop.f32.mrb[18].mxu1  ;;  %v7302_v50 = vpop.permute.xlu1 %7301 }
 0x8bd   : > { %v5224_v40 = vpop.f32.mrb[19].mxu1  ;;  %v7310_v44 = vsel %vm7309_vm5, %v7302_v50, %v7304_v49  ;;  %v12744_v50 = vld [vmem:[%s19500_s4 + $0x28c] sm:$0xff]  }
 0x8be   : > { %v5240_v0 = vadd.f32 %v5224_v40, %v5123_v26  ;;  %v12735_v40 = vld [vmem:[%s19500_s4 + $0x24c] sm:$0xff]  }
 0x8bf   : > { %11950 = vmatmul.mubr.msk.bf16.vlgmr.msra.gmra.mrb[0].mxu1 %vm4831_vm11, %v12720_v3  ;;  %v7428_v3 = vpop.permute.xlu0 %7427 }
 0x8c0   : > { %11958 = vmatpush3.bf16.msra.mxu1 %v6938_v59  ;;  %11953 = vmatprep.mubr.msk.bf16.mxu1 %vm4831_vm11, %v12721_v52  ;;  %v7306_v43 = vpop.permute.xlu1 %7305  ;;  %v12734_v52 = vld [vmem:[%s19500_s4 + $0x248] ss:$0 sps:$4 sm:$0x11]  }
 0x8c1   : > { %12229 = vmatprep.subr.msk.bf16.mxu1 %vm4625_vm9, %v6939_v30  ;;  %v7311_v1 = vsel %vm7309_vm5, %v7306_v43, %v7308_v17 }
 0x8c2   : > { %v7326_v41 = vsel %vm4625_vm9, %v7311_v1, 0 }
 0x8c3   : > { %v7432_v30 = vpop.permute.xlu0 %7431 }
 0x8c4   : > { %11960 = vmatpush3.bf16.msra.mxu1 %v6954_v37  ;;  %v12736_v37 = vld [vmem:[%s19500_s4 + $0x254] sm:$0xff]  }
 0x8c5   : > { %11969 = vmatprep.subr.bf16.mxu1 %v7062_v32 }
 0x8c7   : > { %11954 = vmatmul.mubr.msk.bf16.gmra.mrb[72].mxu1 %vm4831_vm11, %v12722_v33 }
 0x8c8   : > { %11961 = vmatprep.mubr.msk.bf16.mxu1 %vm4831_vm11, %v12723_v34  ;;  %v12737_v34 = vld [vmem:[%s19500_s4 + $0x25c] sm:$0xff]  }
 0x8ca   : > { %v11799_v16 = vpop.f32.mrb[20].mxu1 }
 0x8cb   : > { %v5358_v11 = vadd.f32 %v11799_v16, %v5241_v60  ;;  %v5338_v27 = vpop.f32.mrb[21].mxu1 }
 0x8cc   : > { %v5356_v19 = vadd.f32 %v5338_v27, %v5239_v45  ;;  %v11800_v21 = vpop.f32.mrb[22].mxu1  ;;  %v7426_v45 = vpop.permute.xlu1 %7425 }
 0x8cd   : > { %v5341_v4 = vpop.f32.mrb[23].mxu1  ;;  %v7434_v54 = vsel %vm7433_vm3, %v7426_v45, %v7428_v3  ;;  %v12749_v45 = vld [vmem:[%s19500_s4 + $0x2b0] sm:$0xff]  }
 0x8ce   : > { %v5357_v31 = vadd.f32 %v5341_v4, %v5240_v0  ;;  %v12739_v4 = vld [vmem:[%s19500_s4 + $0x268] sm:$0xff]  }
 0x8cf   : > { %11962 = vmatmul.mubr.msk.bf16.vlgmr.msra.gmra.mrb[0].mxu1 %vm4831_vm11, %v12724_v55  ;;  %v7552_v55 = vpop.permute.xlu0 %7551 }
 0x8d0   : > { %11970 = vmatpush3.bf16.msra.mxu1 %v7062_v32  ;;  %11965 = vmatprep.mubr.msk.bf16.mxu1 %vm4831_vm11, %v12725_v18  ;;  %v7430_v16 = vpop.permute.xlu1 %7429  ;;  %v12738_v18 = vld [vmem:[%s19500_s4 + $0x264] ss:$0 sps:$4 sm:$0x11]  }
 0x8d1   : > { %12230 = vmatprep.subr.msk.bf16.mxu1 %vm4625_vm9, %v7063_v28  ;;  %v7435_v27 = vsel %vm7433_vm3, %v7430_v16, %v7432_v30 }
 0x8d2   : > { %v7450_v21 = vsel %vm4625_vm9, %v7435_v27, 0 }
 0x8d3   : > { %v7556_v28 = vpop.permute.xlu0 %7555 }
 0x8d4   : > { %11972 = vmatpush3.bf16.msra.mxu1 %v7078_v53  ;;  %v12740_v53 = vld [vmem:[%s19500_s4 + $0x270] sm:$0xff]  }
 0x8d5   : > { %11981 = vmatprep.subr.bf16.mxu1 %v7186_v39 }
 0x8d7   : > { %11966 = vmatmul.mubr.msk.bf16.gmra.mrb[76].mxu1 %vm4831_vm11, %v12726_v9 }
 0x8d8   : > { %11973 = vmatprep.mubr.msk.bf16.mxu1 %vm4831_vm11, %v12727_v29  ;;  %v12741_v29 = vld [vmem:[%s19500_s4 + $0x278] sm:$0xff]  }
 0x8da   : > { %v11811_v7 = vpop.f32.mrb[24].mxu1 }
 0x8db   : > { %v5475_v57 = vadd.f32 %v11811_v7, %v5358_v11  ;;  %v5455_v22 = vpop.f32.mrb[25].mxu1 }
 0x8dc   : > { %v5473_v47 = vadd.f32 %v5455_v22, %v5356_v19  ;;  %v11812_v61 = vpop.f32.mrb[26].mxu1  ;;  %v7550_v19 = vpop.permute.xlu1 %7549 }
 0x8dd   : > { %v5458_v2 = vpop.f32.mrb[27].mxu1  ;;  %v7558_v46 = vsel %vm7557_vm7, %v7550_v19, %v7552_v55 }
 0x8de   : > { %v5474_v24 = vadd.f32 %v5458_v2, %v5357_v31  ;;  %v12743_v2 = vld [vmem:[%s19500_s4 + $0x284] sm:$0xff]  }
 0x8df   : > { %11974 = vmatmul.mubr.msk.bf16.vlgmr.msra.gmra.mrb[0].mxu1 %vm4831_vm11, %v12728_v6  ;;  %v7676_v6 = vpop.permute.xlu0 %7675 }
 0x8e0   : > { %11982 = vmatpush3.bf16.msra.mxu1 %v7186_v39  ;;  %11977 = vmatprep.mubr.msk.bf16.mxu1 %vm4831_vm11, %v12729_v62  ;;  %v7554_v7 = vpop.permute.xlu1 %7553  ;;  %v12742_v62 = vld [vmem:[%s19500_s4 + $0x280] ss:$0 sps:$4 sm:$0x11]  }
 0x8e1   : > { %12231 = vmatprep.subr.msk.bf16.mxu1 %vm4625_vm9, %v7187_v36  ;;  %v7559_v22 = vsel %vm7557_vm7, %v7554_v7, %v7556_v28 }
 0x8e2   : > { %v7574_v61 = vsel %vm4625_vm9, %v7559_v22, 0 }
 0x8e4   : > { %11984 = vmatpush3.bf16.msra.mxu1 %v7202_v25 }
 0x8e5   : > { %11993 = vmatprep.subr.bf16.mxu1 %v7310_v44 }
 0x8e7   : > { %11978 = vmatmul.mubr.msk.bf16.gmra.mrb[80].mxu1 %vm4831_vm11, %v12730_v12 }
 0x8e8   : > { %11985 = vmatprep.mubr.msk.bf16.mxu1 %vm4831_vm11, %v12731_v35  ;;  %v7680_v35 = vpop.permute.xlu0 %7679 }
 0x8ea   : > { %v11823_v26 = vpop.f32.mrb[28].mxu1 }
 0x8eb   : > { %v5592_v56 = vadd.f32 %v11823_v26, %v5475_v57  ;;  %v5572_v48 = vpop.f32.mrb[29].mxu1 }
 0x8ec   : > { %v5590_v10 = vadd.f32 %v5572_v48, %v5473_v47  ;;  %v11824_v59 = vpop.f32.mrb[30].mxu1  ;;  %v7674_v47 = vpop.permute.xlu1 %7673 }
 0x8ed   : > { %v5575_v63 = vpop.f32.mrb[31].mxu1  ;;  %v7682_v38 = vsel %vm7681_vm1, %v7674_v47, %v7676_v6  ;;  %v12747_v59 = vld [vmem:[%s19500_s4 + $0x2a0] sm:$0xff]  }
 0x8ee   : > { %v5591_v60 = vadd.f32 %v5575_v63, %v5474_v24 }
 0x8ef   : > { %11986 = vmatmul.mubr.msk.bf16.vlgmr.msra.gmra.mrb[0].mxu1 %vm4831_vm11, %v12732_v51 }
 0x8f0   : > { %11994 = vmatpush3.bf16.msra.mxu1 %v7310_v44  ;;  %11989 = vmatprep.mubr.msk.bf16.mxu1 %vm4831_vm11, %v12733_v8  ;;  %v12745_v44 = vld [vmem:[%s19500_s4 + $0x294] sm:$0xff]  }
 0x8f1   : > { %12232 = vmatprep.subr.msk.bf16.mxu1 %vm4625_vm9, %v7311_v1 }
 0x8f4   : > { %11996 = vmatpush3.bf16.msra.mxu1 %v7326_v41 }
 0x8f5   : > { %12005 = vmatprep.subr.bf16.mxu1 %v7434_v54 }
 0x8f7   : > { %11990 = vmatmul.mubr.msk.bf16.gmra.mrb[84].mxu1 %vm4831_vm11, %v12734_v52 }
 0x8f8   : > { %11997 = vmatprep.mubr.msk.bf16.mxu1 %vm4831_vm11, %v12735_v40 }
 0x8fa   : > { %v11835_v0 = vpop.f32.mrb[32].mxu1 }
 0x8fb   : > { %v5709_v13 = vadd.f32 %v11835_v0, %v5592_v56  ;;  %v5689_v42 = vpop.f32.mrb[33].mxu1  ;;  %v7678_v56 = vpop.permute.xlu1 %7677 }
 0x8fc   : > { %v5707_v33 = vadd.f32 %v5689_v42, %v5590_v10  ;;  %v11836_v32 = vpop.f32.mrb[34].mxu1  ;;  %v7683_v48 = vsel %vm7681_vm1, %v7678_v56, %v7680_v35  ;;  %v12746_v10 = vld [vmem:[%s19500_s4 + $0x29c] ss:$0 sps:$4 sm:$0x11]  }
 0x8fd   : > { %v5692_v5 = vpop.f32.mrb[35].mxu1  ;;  %v7698_v51 = vsel %vm4625_vm9, %v7683_v48, 0 }
 0x8fe   : > { %v5708_v11 = vadd.f32 %v5692_v5, %v5591_v60  ;;  %v12748_v60 = vld [vmem:[%s19500_s4 + $0x2a8] sm:$0xff]  }
 0x8ff   : > { %11998 = vmatmul.mubr.msk.bf16.vlgmr.msra.gmra.mrb[0].mxu1 %vm4831_vm11, %v12736_v37 }
 0x900   : > { %12006 = vmatpush3.bf16.msra.mxu1 %v7434_v54  ;;  %12001 = vmatprep.mubr.msk.bf16.mxu1 %vm4831_vm11, %v12737_v34  ;;  %v12750_v54 = vld [vmem:[%s19500_s4 + $0x2b8] ss:$0 sps:$4 sm:$0x11]  }
 0x901   : > { %12233 = vmatprep.subr.msk.bf16.mxu1 %vm4625_vm9, %v7435_v27 }
 0x904   : > { %12008 = vmatpush3.bf16.msra.mxu1 %v7450_v21 }
 0x905   : > { %12017 = vmatprep.subr.bf16.mxu1 %v7558_v46 }
 0x907   : > { %12002 = vmatmul.mubr.msk.bf16.gmra.mrb[88].mxu1 %vm4831_vm11, %v12738_v18 }
 0x908   : > { %12009 = vmatprep.mubr.msk.bf16.mxu1 %vm4831_vm11, %v12739_v4 }
 0x90a   : > { %v11847_v31 = vpop.f32.mrb[36].mxu1 }
 0x90b   : > { %v5826_v23 = vadd.f32 %v11847_v31, %v5709_v13  ;;  %v5806_v15 = vpop.f32.mrb[37].mxu1 }
 0x90c   : > { %v5824_v9 = vadd.f32 %v5806_v15, %v5707_v33  ;;  %v11848_v39 = vpop.f32.mrb[38].mxu1 }
 0x90d   : > { %v5809_v58 = vpop.f32.mrb[39].mxu1 }
 0x90e   : > { %v5825_v57 = vadd.f32 %v5809_v58, %v5708_v11 }
 0x90f   : > { %12010 = vmatmul.mubr.msk.bf16.vlgmr.msra.gmra.mrb[0].mxu1 %vm4831_vm11, %v12740_v53 }
 0x910   : > { %12018 = vmatpush3.bf16.msra.mxu1 %v7558_v46  ;;  %12013 = vmatprep.mubr.msk.bf16.mxu1 %vm4831_vm11, %v12741_v29 }
 0x911   : > { %12234 = vmatprep.subr.msk.bf16.mxu1 %vm4625_vm9, %v7559_v22 }
 0x914   : > { %12020 = vmatpush3.bf16.msra.mxu1 %v7574_v61 }
 0x915   : > { %12029 = vmatprep.subr.bf16.mxu1 %v7682_v38 }
 0x917   : > { %12014 = vmatmul.mubr.msk.bf16.gmra.mrb[92].mxu1 %vm4831_vm11, %v12742_v62 }
 0x918   : > { %12021 = vmatprep.mubr.msk.bf16.mxu1 %vm4831_vm11, %v12743_v2 }
 0x91a   : > { %v11859_v24 = vpop.f32.mrb[40].mxu1 }
 0x91b   : > { %v5943_v36 = vadd.f32 %v11859_v24, %v5826_v23  ;;  %v5923_v49 = vpop.f32.mrb[41].mxu1 }
 0x91c   : > { %v5941_v25 = vadd.f32 %v5923_v49, %v5824_v9  ;;  %v11860_v12 = vpop.f32.mrb[42].mxu1 }
 0x91d   : > { %v5926_v26 = vpop.f32.mrb[43].mxu1 }
 0x91e   : > { %v5942_v17 = vadd.f32 %v5926_v26, %v5825_v57 }
 0x91f   : > { %12022 = vmatmul.mubr.msk.bf16.vlgmr.msra.gmra.mrb[0].mxu1 %vm4831_vm11, %v12744_v50 }
 0x920   : > { %12030 = vmatpush3.bf16.msra.mxu1 %v7682_v38  ;;  %12025 = vmatprep.mubr.msk.bf16.mxu1 %vm4831_vm11, %v12745_v44 }
 0x921   : > { %12235 = vmatprep.subr.msk.bf16.mxu1 %vm4625_vm9, %v7683_v48 }
 0x924   : > { %12032 = vmatpush3.bf16.msra.mxu1 %v7698_v51 }
 0x927   : > { %12026 = vmatmul.mubr.msk.bf16.gmra.mrb[96].mxu1 %vm4831_vm11, %v12746_v10 }
 0x928   : > { %12033 = vmatprep.mubr.msk.bf16.mxu1 %vm4831_vm11, %v12747_v59 }
 0x92a   : > { %v11871_v8 = vpop.f32.mrb[44].mxu1 }
 0x92b   : > { %v6060_v43 = vadd.f32 %v11871_v8, %v5943_v36  ;;  %v6040_v63 = vpop.f32.mrb[45].mxu1 }
 0x92c   : > { %v6058_v1 = vadd.f32 %v6040_v63, %v5941_v25  ;;  %v11872_v3 = vpop.f32.mrb[46].mxu1 }
 0x92d   : > { %v6043_v41 = vpop.f32.mrb[47].mxu1 }
 0x92e   : > { %v6059_v52 = vadd.f32 %v6043_v41, %v5942_v17 }
 0x92f   : > { %12034 = vmatmul.mubr.msk.bf16.vlgmr.msra.gmra.mrb[0].mxu1 %vm4831_vm11, %v12748_v60 }
 0x930   : > { %12037 = vmatprep.mubr.msk.bf16.mxu1 %vm4831_vm11, %v12749_v45 }
 0x937   : > { %12038 = vmatmul.mubr.msk.bf16.gmra.mrb[100].mxu1 %vm4831_vm11, %v12750_v54  ;;  %vm10590_vm11 = vcmask 949248  }
 0x938   : > { %8637 = vmatprep.mubr.bf16.mxu1 %v21156_v20 }
 0x93a   : > { %v11883_v40 = vpop.f32.mrb[48].mxu1 }
 0x93b   : > { %v6177_v0 = vadd.f32 %v11883_v40, %v6060_v43  ;;  %v6157_v30 = vpop.f32.mrb[49].mxu1 }
 0x93c   : > { %v6175_v13 = vadd.f32 %v6157_v30, %v6058_v1  ;;  %v11884_v42 = vpop.f32.mrb[50].mxu1 }
 0x93d   : > { %v6160_v37 = vpop.f32.mrb[51].mxu1 }
 0x93e   : > { %v6176_v33 = vadd.f32 %v6160_v37, %v6059_v52 }
 0x94a   : > { %v11895_v32 = vpop.f32.mrb[52].mxu1 }
 0x94b   : > { %v6294_v34 = vadd.f32 %v11895_v32, %v6177_v0  ;;  %v6274_v16 = vpop.f32.mrb[53].mxu1 }
 0x94c   : > { %v6292_v5 = vadd.f32 %v6274_v16, %v6175_v13  ;;  %v11896_v11 = vpop.f32.mrb[54].mxu1 }
 0x94d   : > { %v6277_v27 = vpop.f32.mrb[55].mxu1 }
 0x94e   : > { %v6293_v55 = vadd.f32 %v6277_v27, %v6176_v33 }
 0x95a   : > { %v11907_v19 = vpop.f32.mrb[56].mxu1 }
 0x95b   : > { %v6411_v21 = vadd.f32 %v11907_v19, %v6294_v34  ;;  %v6391_v18 = vpop.f32.mrb[57].mxu1 }
 0x95c   : > { %v6409_v46 = vadd.f32 %v6391_v18, %v6292_v5  ;;  %v11908_v4 = vpop.f32.mrb[58].mxu1 }
 0x95d   : > { %v6394_v31 = vpop.f32.mrb[59].mxu1 }
 0x95e   : > { %v6410_v28 = vadd.f32 %v6394_v31, %v6293_v55 }
 0x96a   : > { %v11919_v23 = vpop.f32.mrb[60].mxu1 }
 0x96b   : > { %v6528_v15 = vadd.f32 %v11919_v23, %v6411_v21  ;;  %v6508_v53 = vpop.f32.mrb[61].mxu1 }
 0x96c   : > { %v6526_v9 = vadd.f32 %v6508_v53, %v6409_v46  ;;  %v11920_v39 = vpop.f32.mrb[62].mxu1 }
 0x96d   : > { %v6511_v29 = vpop.f32.mrb[63].mxu1 }
 0x96e   : > { %v6527_v7 = vadd.f32 %v6511_v29, %v6410_v28 }
 0x97a   : > { %v11931_v58 = vpop.f32.mrb[64].mxu1 }
 0x97b   : > { %v6654_v57 = vadd.f32 %v11931_v58, %v6528_v15  ;;  %v6634_v22 = vpop.f32.mrb[65].mxu1  ;;  %v7781_v15 = vpop.permute.xlu1 %7780 }
 0x97c   : > { %v6652_v6 = vadd.f32 %v6634_v22, %v6526_v9  ;;  %v11932_v47 = vpop.f32.mrb[66].mxu1 }
 0x97d   : > { %v6637_v61 = vpop.f32.mrb[67].mxu1 }
 0x97e   : > { %v6653_v62 = vadd.f32 %v6637_v61, %v6527_v7 }
 0x98a   : > { %v11943_v38 = vpop.f32.mrb[68].mxu1 }
 0x98b   : > { %v6778_v2 = vadd.f32 %v11943_v38, %v6654_v57  ;;  %v6758_v24 = vpop.f32.mrb[69].mxu1  ;;  %v7786_v57 = vpop.permute.xlu0 %7785 }
 0x98c   : > { %v6776_v36 = vadd.f32 %v6758_v24, %v6652_v6  ;;  %v11944_v49 = vpop.f32.mrb[70].mxu1  ;;  %v7791_v6 = vpop.permute.xlu1 %7790 }
 0x98d   : > { %v6761_v50 = vpop.f32.mrb[71].mxu1 }
 0x98e   : > { %v6777_v25 = vadd.f32 %v6761_v50, %v6653_v62 }
 0x98f   : > { %v7796_v38 = vpop.permute.xlu0 %7795 }
 0x990   : > { %v7801_v50 = vpop.permute.xlu1 %7800 }
 0x99a   : > { %v11955_v12 = vpop.f32.mrb[72].mxu1 }
 0x99b   : > { %v6902_v44 = vadd.f32 %v11955_v12, %v6778_v2  ;;  %v6882_v35 = vpop.f32.mrb[73].mxu1 }
 0x99c   : > { %v6900_v26 = vadd.f32 %v6882_v35, %v6776_v36  ;;  %v11956_v17 = vpop.f32.mrb[74].mxu1 }
 0x99d   : > { %v6885_v56 = vpop.f32.mrb[75].mxu1 }
 0x99e   : > { %v6901_v48 = vadd.f32 %v6885_v56, %v6777_v25 }
 0x9aa   : > { %v11967_v51 = vpop.f32.mrb[76].mxu1 }
 0x9ab   : > { %v7026_v10 = vadd.f32 %v11967_v51, %v6902_v44  ;;  %v7006_v59 = vpop.f32.mrb[77].mxu1 }
 0x9ac   : > { %v7024_v8 = vadd.f32 %v7006_v59, %v6900_v26  ;;  %v11968_v43 = vpop.f32.mrb[78].mxu1  ;;  %v7811_v59 = vpop.permute.xlu1 %7810 }
 0x9ad   : > { %v7009_v63 = vpop.f32.mrb[79].mxu1 }
 0x9ae   : > { %v7025_v60 = vadd.f32 %v7009_v63, %v6901_v48 }
 0x9ba   : > { %v11979_v1 = vpop.f32.mrb[80].mxu1 }
 0x9bb   : > { %v7150_v3 = vadd.f32 %v11979_v1, %v7026_v10  ;;  %v7130_v45 = vpop.f32.mrb[81].mxu1 }
 0x9bc   : > { %v7148_v41 = vadd.f32 %v7130_v45, %v7024_v8  ;;  %v11980_v52 = vpop.f32.mrb[82].mxu1  ;;  %v7806_v45 = vpop.permute.xlu0 %7805 }
 0x9bd   : > { %v7133_v54 = vpop.f32.mrb[83].mxu1  ;;  %v12751_v52 = vld [vmem:[#allocation2] ss:$28 sps:$4 sm:$0xff]  }
 0x9be   : > { %v7149_v40 = vadd.f32 %v7133_v54, %v7025_v60  ;;  %v12753_v54 = vld [vmem:[#allocation2 + $0x4] ss:$28 sps:$4 sm:$0xff]  }
 0x9bf   : > { %8177 = vmatprep.subr.bf16.mxu0 %v12753_v54 }
 0x9c0   : > { %8178 = vmatpush1.bf16.msra.mxu0 %v12751_v52  ;;  %v12777_v52 = vld [vmem:[#allocation2 + $0xb0] ss:$28 sps:$4 sm:$0xff]  }
 0x9ca   : > { %v11991_v0 = vpop.f32.mrb[84].mxu1 }
 0x9cb   : > { %v7274_v30 = vadd.f32 %v11991_v0, %v7150_v3  ;;  %v7254_v13 = vpop.f32.mrb[85].mxu1  ;;  %v12756_v0 = vld [vmem:[#allocation2 + $0x3c] ss:$28 sps:$4 sm:$0xff]  }
 0x9cc   : > { %v7272_v42 = vadd.f32 %v7254_v13, %v7148_v41  ;;  %v11992_v37 = vpop.f32.mrb[86].mxu1  ;;  %8179 = vmatprep.subr.bf16.mxu0 %v12756_v0  ;;  %v12782_v0 = vld [vmem:[#allocation2 + $0xec] ss:$28 sps:$4 sm:$0xff]  }
 0x9cd   : > { %v7257_v33 = vpop.f32.mrb[87].mxu1  ;;  %v12759_v37 = vld [vmem:[#allocation2 + $0x74] ss:$28 sps:$4 sm:$0xff]  }
 0x9ce   : > { %v7273_v32 = vadd.f32 %v7257_v33, %v7149_v40 }
 0x9da   : > { %v12003_v34 = vpop.f32.mrb[88].mxu1 }
 0x9db   : > { %v7398_v16 = vadd.f32 %v12003_v34, %v7274_v30  ;;  %v7378_v5 = vpop.f32.mrb[89].mxu1  ;;  %v12762_v34 = vld [vmem:[#allocation2 + $0xac] ss:$28 sps:$4 sm:$0xff]  }
 0x9dc   : > { %v7396_v11 = vadd.f32 %v7378_v5, %v7272_v42  ;;  %v12004_v27 = vpop.f32.mrb[90].mxu1  ;;  %v12754_v42 = vld [vmem:[#allocation2 + $0x38] ss:$28 sps:$4 sm:$0xff]   ;;  %v12765_v5 = vld [vmem:[#allocation2 + $0xe4] ss:$28 sps:$4 sm:$0xff]  }
 0x9dd   : > { %v7381_v55 = vpop.f32.mrb[91].mxu1  ;;  %8180 = vmatpush1.bf16.msra.mxu0 %v12754_v42  ;;  %v7941_v27 = vld [vmem:[#allocation2 + $0x118] sm:$0x33] }
 0x9de   : > { %v7397_v19 = vadd.f32 %v7381_v55, %v7273_v32  ;;  %v12757_v32 = vld [vmem:[#allocation2 + $0x70] ss:$28 sps:$4 sm:$0xff]   ;;  %8181 = vmatprep.subr.bf16.mxu0 %v12759_v37  ;;  %v11265_v55 = vcombine.high %v7941_v27, %v7941_v27 }
 0x9e1   : > { %8182 = vmatpush1.bf16.msra.mxu0 %v12757_v32 }
 0x9e2   : > { %8183 = vmatprep.subr.bf16.mxu0 %v12762_v34 }
 0x9ea   : > { %v12015_v21 = vpop.f32.mrb[92].mxu1 }
 0x9eb   : > { %v7522_v18 = vadd.f32 %v12015_v21, %v7398_v16  ;;  %v7502_v46 = vpop.f32.mrb[93].mxu1  ;;  %v12760_v16 = vld [vmem:[#allocation2 + $0xa8] ss:$28 sps:$4 sm:$0xff]   ;;  %v8160_v21 = vand.u32 %v11265_v55, %v17867_v14 }
 0x9ec   : > { %v7520_v4 = vadd.f32 %v7502_v46, %v7396_v11  ;;  %v12016_v31 = vpop.f32.mrb[94].mxu1  ;;  %8184 = vmatpush1.bf16.msra.mxu0 %v12760_v16  ;;  %v12763_v11 = vld [vmem:[#allocation2 + $0xe0] ss:$28 sps:$4 sm:$0xff]   ;;  %v12790_v55 = vld [vmem:[#allocation2 + $0x4c] ss:$28 sps:$4 sm:$0xff]  }
 0x9ed   : > { %v7505_v28 = vpop.f32.mrb[95].mxu1  ;;  %8185 = vmatprep.subr.bf16.mxu0 %v12765_v5  ;;  %v12787_v5 = vld [vmem:[#allocation2 + $0x14] ss:$28 sps:$4 sm:$0xff]  }
 0x9ee   : > { %v7521_v23 = vadd.f32 %v7505_v28, %v7397_v19  ;;  %v11264_v19 = vcombine.low %v7941_v27, %v7941_v27  ;;  %v12785_v27 = vld [vmem:[#allocation2 + $0x10] ss:$28 sps:$4 sm:$0xff]  }
 0x9f0   : > { %8186 = vmatpush1.bf16.msra.mxu0 %v12763_v11 }
 0x9f1   : > { %8187 = vmatprep.subr.bf16.mxu0 %v8160_v21  ;;  %v12793_v21 = vld [vmem:[#allocation2 + $0x84] ss:$28 sps:$4 sm:$0xff]  }
 0x9fa   : > { %v12027_v53 = vpop.f32.mrb[96].mxu1 }
 0x9fb   : > { %v7646_v9 = vadd.f32 %v12027_v53, %v7522_v18  ;;  %v7626_v39 = vpop.f32.mrb[97].mxu1  ;;  %v8157_v18 = vand.u32 %v11264_v19, %v17867_v14  ;;  %v12788_v19 = vld [vmem:[#allocation2 + $0x48] ss:$28 sps:$4 sm:$0xff]  }
 0x9fc   : > { %v7644_v29 = vadd.f32 %v7626_v39, %v7520_v4  ;;  %v12028_v7 = vpop.f32.mrb[98].mxu1 }
 0x9fd   : > { %v7629_v58 = vpop.f32.mrb[99].mxu1  ;;  %8188 = vmatpush1.bf16.msra.mxu0 %v8157_v18  ;;  %v12791_v18 = vld [vmem:[#allocation2 + $0x80] ss:$28 sps:$4 sm:$0xff]  }
 0x9fe   : > { %v7645_v22 = vadd.f32 %v7629_v58, %v7521_v23 }
 0xa02   : > { %v12035_v47 = vpop.f32.mrb[0].mxu1 }
 0xa03   : > { %v18479_v61 = vadd.f32 %v12035_v47, %v7791_v6  ;;  %v7734_v62 = vpop.f32.mrb[1].mxu1  ;;  %v12770_v6 = vld [vmem:[#allocation2 + $0xc] ss:$28 sps:$4 sm:$0xff]  }
 0xa04   : > { %v18481_v2 = vadd.f32 %v7781_v15, %v7734_v62  ;;  %v12036_v24 = vpop.f32.mrb[2].mxu1  ;;  %8248 = vmatprep.subr.bf16.mxu0 %v12770_v6  ;;  %v12807_v6 = vld [vmem:[#allocation2 + $0x130] ss:$0 sps:$4 sm:$0x33]  }
 0xa05   : > { %v18483_v36 = vadd.f32 %v12036_v24, %v7796_v38  ;;  %v7737_v49 = vpop.f32.mrb[3].mxu1  ;;  %v7822_v12 = vmax.f32 %v18479_v61, 0.0 }
 0xa06   : > { %v18485_v25 = vadd.f32 %v7786_v57, %v7737_v49  ;;  %v7820_v35 = vmax.f32 %v18481_v2, 0.0 }
 0xa07   : > { %v7823_v44 = vmax.f32 %v18483_v36, 0.0 }
 0xa08   : > { %v7821_v26 = vmax.f32 %v18485_v25, 0.0 }
 0xa09   : > { %v12504_v17 = vpack.i.bf16 %v7823_v44, %v7822_v12 }
 0xa0a   : > { %v12499_v56 = vpack.i.bf16 %v7821_v26, %v7820_v35  ;;  %v12039_v48 = vpop.f32.mrb[100].mxu1 }
 0xa0b   : > { %v7770_v51 = vadd.f32 %v12039_v48, %v7646_v9  ;;  %v7750_v10 = vpop.f32.mrb[101].mxu1  ;;  %12505 = vrot.lane.b32.xlu1 %v12504_v17, %s20406_s12  ;;  %v12773_v48 = vld [vmem:[#allocation2 + $0x44] ss:$28 sps:$4 sm:$0xff]  }
 0xa0c   : > { %v7768_v8 = vadd.f32 %v7750_v10, %v7644_v29  ;;  %v12040_v43 = vpop.f32.mrb[102].mxu1  ;;  %12500 = vrot.lane.b32.xlu0 %v12499_v56, %s20406_s12 }
 0xa0d   : > { %v7819_v63 = vadd.f32 %v7811_v59, %v7770_v51  ;;  %v7753_v60 = vpop.f32.mrb[103].mxu1  ;;  %v12771_v51 = vld [vmem:[#allocation2 + $0x40] ss:$28 sps:$4 sm:$0xff]  }
 0xa0e   : > { %v7817_v1 = vadd.f32 %v7801_v50, %v7768_v8  ;;  %v7769_v3 = vadd.f32 %v7753_v60, %v7645_v22  ;;  %v12776_v8 = vld [vmem:[#allocation2 + $0x7c] ss:$28 sps:$4 sm:$0xff]  }
 0xa0f   : > { %v7826_v41 = vmax.f32 %v7819_v63, 0.0  ;;  %v12774_v63 = vld [vmem:[#allocation2 + $0x78] ss:$28 sps:$4 sm:$0xff]  }
 0xa10   : > { %v7818_v40 = vadd.f32 %v7806_v45, %v7769_v3  ;;  %v7824_v30 = vmax.f32 %v7817_v1, 0.0  ;;  %v12779_v45 = vld [vmem:[#allocation2 + $0xb4] ss:$28 sps:$4 sm:$0xff]  }
 0xa11   : > { %7846 = vrot.lane.b32.xlu1 %v7826_v41, %s20406_s12 }
 0xa12   : > { %v7825_v13 = vmax.f32 %v7818_v40, 0.0 }
 0xa14   : > { %v12509_v33 = vpack.i.bf16 %v7825_v13, %v7824_v30 }
 0xa16   : > { %12510 = vrot.lane.b32.xlu0 %v12509_v33, %s20406_s12 }
 0xa7d   : > { %v12506_v46 = vpop.permute.xlu1 %12505 }
 0xa7e   : > { %v12508_v4 = vunpack.i.h.bf16 %v12506_v46  ;;  %v12507_v31 = vunpack.i.l.bf16 %v12506_v46  ;;  %v12501_v28 = vpop.permute.xlu0 %12500  ;;  %v12796_v46 = vld [vmem:[#allocation2 + $0xbc] ss:$28 sps:$4 sm:$0xff]  }
 0xa7f   : > { %v12503_v23 = vunpack.i.h.bf16 %v12501_v28  ;;  %v12502_v15 = vunpack.i.l.bf16 %v12501_v28  ;;  %v12799_v28 = vld [vmem:[#allocation2 + $0xf4] ss:$28 sps:$4 sm:$0xff]  }
 0xa80   : > { %v7858_v53 = vmax.f32 %v7823_v44, %v12508_v4  ;;  %v7857_v9 = vmax.f32 %v7822_v12, %v12507_v31  ;;  %v7943_v4 = vld [vmem:[#allocation2 + $0x128] sm:$0x33]  ;;  %v12794_v31 = vld [vmem:[#allocation2 + $0xb8] ss:$28 sps:$4 sm:$0xff]  }
 0xa81   : > { %v7856_v39 = vmax.f32 %v7821_v26, %v12503_v23  ;;  %v7855_v29 = vmax.f32 %v7820_v35, %v12502_v15  ;;  %v12768_v35 = vld [vmem:[#allocation2 + $0x8] ss:$28 sps:$4 sm:$0xff]   ;;  %v11269_v23 = vcombine.high %v7943_v4, %v7943_v4  ;;  %v12797_v15 = vld [vmem:[#allocation2 + $0xf0] ss:$28 sps:$4 sm:$0xff]  }
 0xa82   : > { %v12519_v7 = vpack.i.bf16 %v7858_v53, %v7857_v9 }
 0xa83   : > { %v12514_v58 = vpack.i.bf16 %v7856_v39, %v7855_v29  ;;  %v7847_v57 = vpop.permute.xlu1 %7846 }
 0xa84   : > { %12520 = vrot.lane.b32.xlu1 %v12519_v7, %s13300_s6  ;;  %v7861_v22 = vmax.f32 %v7826_v41, %v7847_v57  ;;  %v7942_v41 = vld [vmem:[#allocation2 + $0x120] sm:$0x33]  ;;  %v12803_v7 = vld [vmem:[#allocation2 + $0x50] ss:$28 sps:$4 sm:$0xff]  }
 0xa85   : > { %12515 = vrot.lane.b32.xlu0 %v12514_v58, %s13300_s6  ;;  %v11266_v42 = vcombine.low %v7942_v41, %v7942_v41  ;;  %v12804_v58 = vld [vmem:[#allocation2 + $0x88] ss:$28 sps:$4 sm:$0xff]   ;;  %v12805_v57 = vld [vmem:[#allocation2 + $0xc0] ss:$28 sps:$4 sm:$0xff]  }
 0xa87   : > { %v8163_v34 = vand.u32 %v11266_v42, %v17867_v14 }
 0xa88   : > { %7881 = vrot.lane.b32.xlu1 %v7861_v22, %s13300_s6  ;;  %v12511_v47 = vpop.permute.xlu0 %12510 }
 0xa89   : > { %v12513_v61 = vunpack.i.h.bf16 %v12511_v47  ;;  %v12512_v62 = vunpack.i.l.bf16 %v12511_v47  ;;  %v8175_v47 = vand.u32 %v12807_v6, %v17867_v14  ;;  %v8464_v6 = vld [vmem:[%s19503_s7 + $0x50] sm:$0xff] }
 0xa8b   : > { %v7860_v38 = vmax.f32 %v7825_v13, %v12513_v61  ;;  %v7859_v2 = vmax.f32 %v7824_v30, %v12512_v62  ;;  %v11267_v30 = vcombine.high %v7942_v41, %v7942_v41  ;;  %v12780_v13 = vld [vmem:[#allocation2 + $0xe8] ss:$28 sps:$4 sm:$0xff]   ;;  %v8454_v61 = vld [vmem:[%s19503_s7] sm:$0xff]  ;;  %v8461_v62 = vld [vmem:[%s19503_s7 + $0x38] sm:$0xff] }
 0xa8d   : > { %v12524_v24 = vpack.i.bf16 %v7860_v38, %v7859_v2  ;;  %v8166_v33 = vand.u32 %v11267_v30, %v17867_v14  ;;  %v8483_v30 = vld [vmem:[%s19503_s7 + $0xe8] sm:$0xff] }
 0xa8f   : > { %12525 = vrot.lane.b32.xlu0 %v12524_v24, %s13300_s6  ;;  %v8462_v24 = vld [vmem:[%s19503_s7 + $0x40] sm:$0xff]  ;;  %s21166_s6 = sld [smem:[#allocation363_spill]] }
 0xa95   : > { %s19453_s1 = scalar_lea.hbm %s21166_s6, %s11529_s19 }
 0xaf6   : > { %v12521_v25 = vpop.permute.xlu1 %12520 }
 0xaf7   : > { %v12516_v36 = vpop.permute.xlu0 %12515  ;;  %v12523_v26 = vunpack.i.h.bf16 %v12521_v25  ;;  %v12522_v17 = vunpack.i.l.bf16 %v12521_v25 }
 0xaf8   : > { %v12518_v49 = vunpack.i.h.bf16 %v12516_v36  ;;  %v12517_v50 = vunpack.i.l.bf16 %v12516_v36 }
 0xaf9   : > { %v7893_v10 = vmax.f32 %v7858_v53, %v12523_v26  ;;  %v7892_v59 = vmax.f32 %v7857_v9, %v12522_v17  ;;  %v11268_v53 = vcombine.low %v7943_v4, %v7943_v4  ;;  %v8172_v9 = vand.u32 %v11269_v23, %v17867_v14 }
 0xafa   : > { %v7891_v12 = vmax.f32 %v7856_v39, %v12518_v49  ;;  %v7890_v44 = vmax.f32 %v7855_v29, %v12517_v50  ;;  %v7882_v32 = vpop.permute.xlu1 %7881  ;;  %v12802_v29 = vld [vmem:[#allocation2 + $0x18] ss:$28 sps:$4 sm:$0xff]  }
 0xafb   : > { %v18506_v60 = vpack.c.bf16 %v7893_v10, %v7892_v59  ;;  %v7896_v16 = vmax.f32 %v7861_v22, %v7882_v32  ;;  %v8169_v39 = vand.u32 %v11268_v53, %v17867_v14  ;;  %v12806_v22 = vld [vmem:[#allocation2 + $0xf8] ss:$28 sps:$4 sm:$0xff]   ;;  %v8476_v59 = vld [vmem:[%s19503_s7 + $0xb0] sm:$0xff] }
 0xafc   : > { %v18501_v56 = vpack.c.bf16 %v7891_v12, %v7890_v44  ;;  %v8469_v10 = vld [vmem:[%s19503_s7 + $0x78] sm:$0xff] }
 0xafd   : > { %v18518_v11 = vpack.c.bf16 %v7896_v16, %v7896_v16 }
 0xafe   : > { %11271 = vmatmul.mubr.msk.bf16.vlgmr.msra.gmra.mrb[8].mxu0 %vm8143_vm6, %v18501_v56 }
 0xaff   : > { %8219 = vmatprep.mubr.bf16.mxu0 %v21156_v20  ;;  %8249 = vmatpush1.bf16.msra.mxu0 %v12768_v35 }
 0xb00   : > { %8250 = vmatprep.subr.bf16.mxu0 %v12773_v48  ;;  %v8475_v48 = vld [vmem:[%s19503_s7 + $0xa8] sm:$0xff] }
 0xb01   : > { %v12526_v43 = vpop.permute.xlu0 %12525 }
 0xb02   : > { %v12528_v1 = vunpack.i.h.bf16 %v12526_v43  ;;  %v12527_v3 = vunpack.i.l.bf16 %v12526_v43 }
 0xb03   : > { %8251 = vmatpush1.bf16.msra.mxu0 %v12771_v51 }
 0xb04   : > { %8252 = vmatprep.subr.bf16.mxu0 %v12776_v8  ;;  %v7895_v54 = vmax.f32 %v7860_v38, %v12528_v1  ;;  %v7894_v40 = vmax.f32 %v7859_v2, %v12527_v3  ;;  %v8455_v2 = vld [vmem:[%s19503_s7 + $0x8] sm:$0xff] }
 0xb06   : > { %11272 = vmatmul.mubr.msk.bf16.gmra.mrb[12].mxu0 %vm8143_vm6, %v18506_v60  ;;  %v18511_v37 = vpack.c.bf16 %v7895_v54, %v7894_v40  ;;  %v8482_v54 = vld [vmem:[%s19503_s7 + $0xe0] sm:$0xff]  ;;  %v8489_v40 = vld [vmem:[%s19503_s7 + $0x118] sm:$0xff] }
 0xb07   : > { %8229 = vmatprep.mubr.bf16.mxu0 %v21156_v20  ;;  %8253 = vmatpush1.bf16.msra.mxu0 %v12774_v63 }
 0xb08   : > { %8254 = vmatprep.subr.bf16.mxu0 %v12779_v45 }
 0xb0b   : > { %8255 = vmatpush1.bf16.msra.mxu0 %v12777_v52 }
 0xb0c   : > { %8256 = vmatprep.subr.bf16.mxu0 %v12782_v0 }
 0xb0e   : > { %11273 = vmatmul.mubr.msk.bf16.gmra.mrb[16].mxu0 %vm8143_vm6, %v18511_v37 }
 0xb0f   : > { %8239 = vmatprep.mubr.bf16.mxu0 %v21156_v20  ;;  %8257 = vmatpush1.bf16.msra.mxu0 %v12780_v13  ;;  %v8490_v13 = vld [vmem:[%s19503_s7 + $0x120] sm:$0xff] }
 0xb10   : > { %8258 = vmatprep.subr.bf16.mxu0 %v8166_v33 }
 0xb13   : > { %8259 = vmatpush1.bf16.msra.mxu0 %v8163_v34 }
 0xb14   : > { %8319 = vmatprep.subr.bf16.mxu0 %v12787_v5 }
 0xb16   : > { %11274 = vmatmul.mubr.msk.bf16.gmra.mrb[20].mxu0 %vm8143_vm6, %v18518_v11 }
 0xb17   : > { %8280 = vmatprep.mubr.bf16.mxu0 %v21156_v20 }
 0xb1e   : > { %11275 = vmatmul.mubr.msk.bf16.vlgmr.msra.gmra.mrb[24].mxu0 %vm8143_vm6, %v18501_v56 }
 0xb1f   : > { %8290 = vmatprep.mubr.bf16.mxu0 %v21156_v20  ;;  %8320 = vmatpush1.bf16.msra.mxu0 %v12785_v27  ;;  %v8496_v27 = vld [vmem:[%s19503_s7 + $0x150] sm:$0x3] }
 0xb20   : > { %8321 = vmatprep.subr.bf16.mxu0 %v12790_v55  ;;  %v8497_v55 = vld [vmem:[%s19503_s7 + $0x158] sm:$0x3] }
 0xb23   : > { %8322 = vmatpush1.bf16.msra.mxu0 %v12788_v19 }
 0xb24   : > { %8323 = vmatprep.subr.bf16.mxu0 %v12793_v21 }
 0xb26   : > { %11276 = vmatmul.mubr.msk.bf16.gmra.mrb[28].mxu0 %vm8143_vm6, %v18506_v60 }
 0xb27   : > { %8300 = vmatprep.mubr.bf16.mxu0 %v21156_v20  ;;  %8324 = vmatpush1.bf16.msra.mxu0 %v12791_v18 }
 0xb28   : > { %8325 = vmatprep.subr.bf16.mxu0 %v12796_v46 }
 0xb2b   : > { %8326 = vmatpush1.bf16.msra.mxu0 %v12794_v31 }
 0xb2c   : > { %8327 = vmatprep.subr.bf16.mxu0 %v12799_v28 }
 0xb2e   : > { %11277 = vmatmul.mubr.msk.bf16.gmra.mrb[32].mxu0 %vm8143_vm6, %v18511_v37 }
 0xb2f   : > { %8310 = vmatprep.mubr.bf16.mxu0 %v21156_v20  ;;  %8328 = vmatpush1.bf16.msra.mxu0 %v12797_v15  ;;  %v12813_v15 = vld [vmem:[%s19504_s8 + $0xc] ss:$16 sps:$4 sm:$0xff]  }
 0xb30   : > { %8329 = vmatprep.subr.bf16.mxu0 %v8172_v9  ;;  %v12811_v9 = vld [vmem:[%s19504_s8 + $0x8] ss:$16 sps:$4 sm:$0xff]  }
 0xb33   : > { %8330 = vmatpush1.bf16.msra.mxu0 %v8169_v39 }
 0xb34   : > { %12041 = vmatprep.subr.bf16.mxu0 %v12802_v29 }
 0xb36   : > { %11278 = vmatmul.mubr.msk.bf16.gmra.mrb[36].mxu0 %vm8143_vm6, %v18518_v11 }
 0xb37   : > { %8351 = vmatprep.mubr.bf16.mxu0 %v21156_v20 }
 0xb3e   : > { %11279 = vmatmul.mubr.msk.bf16.vlgmr.msra.gmra.mrb[40].mxu0 %vm8143_vm6, %v18501_v56 }
 0xb3f   : > { %8361 = vmatprep.mubr.bf16.mxu0 %v21156_v20  ;;  %12042 = vmatpush3.bf16.msra.mxu0 %v12802_v29  ;;  %v8456_v29 = vld [vmem:[%s19503_s7 + $0x10] sm:$0xff] }
 0xb40   : > { %12043 = vmatprep.subr.bf16.mxu0 %v12803_v7 }
 0xb43   : > { %12044 = vmatpush3.bf16.msra.mxu0 %v12803_v7  ;;  %v8463_v7 = vld [vmem:[%s19503_s7 + $0x48] sm:$0xff] }
 0xb44   : > { %12045 = vmatprep.subr.bf16.mxu0 %v12804_v58 }
 0xb46   : > { %11280 = vmatmul.mubr.msk.bf16.gmra.mrb[44].mxu0 %vm8143_vm6, %v18506_v60 }
 0xb47   : > { %8371 = vmatprep.mubr.bf16.mxu0 %v21156_v20  ;;  %12046 = vmatpush3.bf16.msra.mxu0 %v12804_v58  ;;  %v12819_v58 = vld [vmem:[%s19504_s8 + $0x2c] ss:$16 sps:$4 sm:$0xff]  }
 0xb48   : > { %12047 = vmatprep.subr.bf16.mxu0 %v12805_v57 }
 0xb4b   : > { %12048 = vmatpush3.bf16.msra.mxu0 %v12805_v57 }
 0xb4c   : > { %12049 = vmatprep.subr.bf16.mxu0 %v12806_v22 }
 0xb4e   : > { %11281 = vmatmul.mubr.msk.bf16.gmra.mrb[48].mxu0 %vm8143_vm6, %v18511_v37 }
 0xb4f   : > { %8381 = vmatprep.mubr.bf16.mxu0 %v21156_v20  ;;  %12050 = vmatpush3.bf16.msra.mxu0 %v12806_v22  ;;  %v8457_v22 = vld [vmem:[%s19503_s7 + $0x18] sm:$0xff] }
 0xb50   : > { %12051 = vmatprep.subr.bf16.mxu0 %v8175_v47 }
 0xb53   : > { %12052 = vmatpush3.bf16.msra.mxu0 %v8175_v47 }
 0xb56   : > { %11282 = vmatmul.mubr.msk.bf16.gmra.mrb[52].mxu0 %vm8143_vm6, %v18518_v11 }
 0xb57   : > { %12053 = vmatprep.mubr.msk.bf16.mxu0 %vm8143_vm6, %v18501_v56  ;;  %v8468_v56 = vld [vmem:[%s19503_s7 + $0x70] sm:$0xff] }
 0xb5e   : > { %12054 = vmatmul.mubr.msk.bf16.vlgmr.msra.gmra.mrb[56].mxu0 %vm8143_vm6, %v18506_v60 }
 0xb5f   : > { %12057 = vmatprep.mubr.msk.bf16.mxu0 %vm8143_vm6, %v18511_v37 }
 0xb66   : > { %12058 = vmatmul.mubr.msk.bf16.gmra.mrb[60].mxu0 %vm8143_vm6, %v18518_v11 }
 0xb67   : > { %8678 = vmatprep.mubr.bf16.mxu0 %v21156_v20 }
 0xbd1   : > { %v8211_v14 = vpop.f32.mrb[8].mxu0 }
 0xbd2   : > { %v8213_v38 = vpop.f32.mrb[9].mxu0  ;;  %v8503_v49 = vmul.f32 %v8454_v61, %v8211_v14  ;;  %v13319_v14 = vmov 1065369472  }
 0xbd3   : > { %v8215_v36 = vpop.f32.mrb[10].mxu0  ;;  %v8504_v12 = vmul.f32 %v8455_v2, %v8213_v38  ;;  %v12817_v2 = vld [vmem:[%s19504_s8 + $0x28] ss:$16 sps:$4 sm:$0xff]  }
 0xbd4   : > { %v8510_v50 = vmul.f32 %v8461_v62, %v8215_v36  ;;  %v8217_v25 = vpop.f32.mrb[11].mxu0 }
 0xbd5   : > { %v8511_v44 = vmul.f32 %v8462_v24, %v8217_v25 }
 0xbd6   : > { %v8552_v35 = vpack.c.bf16 %v8510_v50, %v8503_v49  ;;  %v12825_v49 = vld [vmem:[%s19504_s8 + $0x4c] ss:$16 sps:$4 sm:$0xff]  }
 0xbd7   : > { %v8553_v26 = vpack.c.bf16 %v8511_v44, %v8504_v12  ;;  %v12823_v12 = vld [vmem:[%s19504_s8 + $0x48] ss:$16 sps:$4 sm:$0xff]  }
 0xbd9   : > { %v8221_v17 = vpop.f32.mrb[12].mxu0  ;;  %8605 = vmatprep.subr.bf16.mxu1 %v8553_v26  ;;  %v8477_v26 = vld [vmem:[%s19503_s7 + $0xb8] sm:$0xff] }
 0xbda   : > { %v8223_v51 = vpop.f32.mrb[13].mxu0  ;;  %8606 = vmatpush1.bf16.msra.mxu1 %v8552_v35  ;;  %v8517_v43 = vmul.f32 %v8468_v56, %v8221_v17  ;;  %v8470_v35 = vld [vmem:[%s19503_s7 + $0x80] sm:$0xff]  ;;  %v12831_v17 = vld [vmem:[%s19504_s8 + $0x6c] ss:$16 sps:$4 sm:$0xff]  }
 0xbdb   : > { %v8225_v8 = vpop.f32.mrb[14].mxu0  ;;  %v8518_v1 = vmul.f32 %v8469_v10, %v8223_v51  ;;  %v8478_v51 = vld [vmem:[%s19503_s7 + $0xc0] sm:$0xff] }
 0xbdc   : > { %v8524_v63 = vmul.f32 %v8475_v48, %v8225_v8  ;;  %v8227_v60 = vpop.f32.mrb[15].mxu0  ;;  %v8471_v48 = vld [vmem:[%s19503_s7 + $0x88] sm:$0xff] }
 0xbdd   : > { %v8525_v3 = vmul.f32 %v8476_v59, %v8227_v60 }
 0xbde   : > { %v8559_v45 = vpack.c.bf16 %v8524_v63, %v8517_v43  ;;  %v12829_v63 = vld [vmem:[%s19504_s8 + $0x68] ss:$16 sps:$4 sm:$0xff]  }
 0xbdf   : > { %v8560_v41 = vpack.c.bf16 %v8525_v3, %v8518_v1  ;;  %v12837_v3 = vld [vmem:[%s19504_s8 + $0x8c] ss:$16 sps:$4 sm:$0xff]  }
 0xbe1   : > { %v8231_v52 = vpop.f32.mrb[16].mxu0  ;;  %8607 = vmatprep.subr.bf16.mxu1 %v8560_v41 }
 0xbe2   : > { %v8233_v0 = vpop.f32.mrb[17].mxu0  ;;  %8608 = vmatpush1.bf16.msra.mxu1 %v8559_v45  ;;  %v8531_v37 = vmul.f32 %v8482_v54, %v8231_v52  ;;  %v12835_v52 = vld [vmem:[%s19504_s8 + $0x88] ss:$16 sps:$4 sm:$0xff]  }
 0xbe3   : > { %v8235_v42 = vpop.f32.mrb[18].mxu0  ;;  %v8532_v34 = vmul.f32 %v8483_v30, %v8233_v0  ;;  %v8491_v0 = vld [vmem:[%s19503_s7 + $0x128] sm:$0xff] }
 0xbe4   : > { %v8538_v33 = vmul.f32 %v8489_v40, %v8235_v42  ;;  %v8237_v32 = vpop.f32.mrb[19].mxu0  ;;  %v8484_v40 = vld [vmem:[%s19503_s7 + $0xf0] sm:$0xff]  ;;  %v12843_v30 = vld [vmem:[%s19504_s8 + $0xac] ss:$16 sps:$4 sm:$0xff]  }
 0xbe5   : > { %v8539_v16 = vmul.f32 %v8490_v13, %v8237_v32  ;;  %v8485_v42 = vld [vmem:[%s19503_s7 + $0xf8] sm:$0xff] }
 0xbe6   : > { %v8566_v5 = vpack.c.bf16 %v8538_v33, %v8531_v37  ;;  %v8492_v37 = vld [vmem:[%s19503_s7 + $0x130] sm:$0xff] }
 0xbe7   : > { %v8567_v11 = vpack.c.bf16 %v8539_v16, %v8532_v34 }
 0xbe9   : > { %v8241_v19 = vpop.f32.mrb[20].mxu0  ;;  %8609 = vmatprep.subr.bf16.mxu1 %v8567_v11 }
 0xbea   : > { %v8545_v21 = vmul.f32 %v8496_v27, %v8241_v19  ;;  %v8243_v18 = vpop.f32.mrb[21].mxu0  ;;  %8610 = vmatpush1.bf16.msra.mxu1 %v8566_v5  ;;  %v12841_v5 = vld [vmem:[%s19504_s8 + $0xa8] ss:$16 sps:$4 sm:$0xff]  }
 0xbeb   : > { %v8546_v46 = vmul.f32 %v8497_v55, %v8243_v18  ;;  %v8245_v4 = vpop.f32.mrb[22].mxu0  ;;  %v12849_v55 = vld [vmem:[%s19504_s8 + $0xcc] ss:$16 sps:$4 sm:$0xff]   ;;  %v8498_v18 = vld [vmem:[%s19503_s7 + $0x160] sm:$0x3] }
 0xbec   : > { %v8573_v31 = vpack.c.bf16 %v8545_v21, %v8545_v21  ;;  %v8246_v28 = vpop.f32.mrb[23].mxu0  ;;  %v12847_v4 = vld [vmem:[%s19504_s8 + $0xc8] ss:$16 sps:$4 sm:$0xff]  }
 0xbed   : > { %v8574_v23 = vpack.c.bf16 %v8546_v46, %v8546_v46  ;;  %v8499_v46 = vld [vmem:[%s19503_s7 + $0x168] sm:$0x3]  ;;  %v12855_v28 = vld [vmem:[%s19504_s8 + $0xec] ss:$16 sps:$4 sm:$0xff]  }
 0xbee   : > { %v8585_v53 = vsel %vm4624_vm0, %v8573_v31, 0 }
 0xbef   : > { %11287 = vmatprep.subr.msk.bf16.mxu1 %vm4624_vm0, %v8574_v23 }
 0xbf0   : > { %8612 = vmatpush1.bf16.msra.mxu1 %v8585_v53 }
 0xbf1   : > { %v8282_v39 = vpop.f32.mrb[24].mxu0  ;;  %10165 = vmatprep.subr.bf16.mxu1 %v12813_v15 }
 0xbf2   : > { %v8284_v57 = vpop.f32.mrb[25].mxu0  ;;  %v8505_v61 = vmul.f32 %v8456_v29, %v8282_v39 }
 0xbf3   : > { %v8286_v47 = vpop.f32.mrb[26].mxu0  ;;  %11288 = vmatmul.mubr.msk.bf16.vlgmr.msra.gmra.mrb[104].mxu1 %vm8580_vm8, %v13319_v14  ;;  %v8506_v24 = vmul.f32 %v8457_v22, %v8284_v57  ;;  %v12861_v57 = vld [vmem:[%s19504_s8 + $0x10c] ss:$16 sps:$4 sm:$0xff]  }
 0xbf4   : > { %v8512_v62 = vmul.f32 %v8463_v7, %v8286_v47  ;;  %v8288_v38 = vpop.f32.mrb[27].mxu0  ;;  %10166 = vmatpush1.bf16.msra.mxu1 %v12811_v9  ;;  %v12853_v7 = vld [vmem:[%s19504_s8 + $0xe8] ss:$16 sps:$4 sm:$0xff]  }
 0xbf5   : > { %v8513_v36 = vmul.f32 %v8464_v6, %v8288_v38  ;;  %10167 = vmatprep.subr.bf16.mxu1 %v12819_v58  ;;  %v12859_v6 = vld [vmem:[%s19504_s8 + $0x108] ss:$16 sps:$4 sm:$0xff]   ;;  %v12867_v38 = vld [vmem:[%s19504_s8 + $0x12c] ss:$16 sps:$4 sm:$0xff]  }
 0xbf6   : > { %v8554_v50 = vpack.c.bf16 %v8512_v62, %v8505_v61  ;;  %v8458_v61 = vld [vmem:[%s19503_s7 + $0x20] sm:$0xff]  ;;  %v8465_v62 = vld [vmem:[%s19503_s7 + $0x58] sm:$0xff] }
 0xbf7   : > { %v8555_v25 = vpack.c.bf16 %v8513_v36, %v8506_v24  ;;  %v8459_v24 = vld [vmem:[%s19503_s7 + $0x28] sm:$0xff]  ;;  %v8466_v36 = vld [vmem:[%s19503_s7 + $0x60] sm:$0xff] }
 0xbf8   : > { %10168 = vmatpush1.bf16.msra.mxu1 %v12817_v2 }
 0xbf9   : > { %v8292_v44 = vpop.f32.mrb[28].mxu0  ;;  %8646 = vmatprep.subr.bf16.mxu0 %v8555_v25  ;;  %10169 = vmatprep.subr.bf16.mxu1 %v12825_v49 }
 0xbfa   : > { %v8294_v56 = vpop.f32.mrb[29].mxu0  ;;  %8647 = vmatpush1.bf16.msra.mxu0 %v8554_v50  ;;  %v8519_v59 = vmul.f32 %v8470_v35, %v8292_v44  ;;  %v12865_v44 = vld [vmem:[%s19504_s8 + $0x128] ss:$16 sps:$4 sm:$0xff]  }
 0xbfb   : > { %v8296_v10 = vpop.f32.mrb[30].mxu0  ;;  %v8520_v60 = vmul.f32 %v8471_v48, %v8294_v56 }
 0xbfc   : > { %v8526_v8 = vmul.f32 %v8477_v26, %v8296_v10  ;;  %v8298_v43 = vpop.f32.mrb[31].mxu0  ;;  %10170 = vmatpush1.bf16.msra.mxu1 %v12823_v12 }
 0xbfd   : > { %v8527_v1 = vmul.f32 %v8478_v51, %v8298_v43  ;;  %10171 = vmatprep.subr.bf16.mxu1 %v12831_v17  ;;  %v12873_v17 = vld [vmem:[%s19504_s8 + $0x14c] ss:$16 sps:$4 sm:$0xff]   ;;  %v12871_v51 = vld [vmem:[%s19504_s8 + $0x148] ss:$16 sps:$4 sm:$0xff]  }
 0xbfe   : > { %v8561_v45 = vpack.c.bf16 %v8526_v8, %v8519_v59  ;;  %v8472_v59 = vld [vmem:[%s19503_s7 + $0x90] sm:$0xff]  ;;  %v8479_v8 = vld [vmem:[%s19503_s7 + $0xc8] sm:$0xff] }
 0xbff   : > { %v8562_v41 = vpack.c.bf16 %v8527_v1, %v8520_v60  ;;  %v12879_v43 = vld [vmem:[%s19504_s8 + $0x16c] ss:$16 sps:$4 sm:$0xff]   ;;  %v8480_v1 = vld [vmem:[%s19503_s7 + $0xd0] sm:$0xff] }
 0xc00   : > { %10172 = vmatpush1.bf16.msra.mxu1 %v12829_v63  ;;  %v8473_v60 = vld [vmem:[%s19503_s7 + $0x98] sm:$0xff] }
 0xc01   : > { %v8302_v54 = vpop.f32.mrb[32].mxu0  ;;  %8648 = vmatprep.subr.bf16.mxu0 %v8562_v41  ;;  %10173 = vmatprep.subr.bf16.mxu1 %v12837_v3 }
 0xc02   : > { %v8304_v13 = vpop.f32.mrb[33].mxu0  ;;  %8649 = vmatpush1.bf16.msra.mxu0 %v8561_v45  ;;  %v8533_v32 = vmul.f32 %v8484_v40, %v8302_v54  ;;  %v12877_v54 = vld [vmem:[%s19504_s8 + $0x168] ss:$16 sps:$4 sm:$0xff]  }
 0xc03   : > { %v8306_v33 = vpop.f32.mrb[34].mxu0  ;;  %v8534_v11 = vmul.f32 %v8485_v42, %v8304_v13 }
 0xc04   : > { %v8540_v34 = vmul.f32 %v8491_v0, %v8306_v33  ;;  %v8308_v16 = vpop.f32.mrb[35].mxu0  ;;  %10174 = vmatpush1.bf16.msra.mxu1 %v12835_v52 }
 0xc05   : > { %v8541_v27 = vmul.f32 %v8492_v37, %v8308_v16  ;;  %10175 = vmatprep.subr.bf16.mxu1 %v12843_v30  ;;  %v12885_v30 = vld [vmem:[%s19504_s8 + $0x18c] ss:$16 sps:$4 sm:$0xff]   ;;  %v12883_v37 = vld [vmem:[%s19504_s8 + $0x188] ss:$16 sps:$4 sm:$0xff]  }
 0xc06   : > { %v8568_v19 = vpack.c.bf16 %v8540_v34, %v8533_v32  ;;  %v8486_v32 = vld [vmem:[%s19503_s7 + $0x100] sm:$0xff]  ;;  %v8493_v34 = vld [vmem:[%s19503_s7 + $0x138] sm:$0xff] }
 0xc07   : > { %v8569_v21 = vpack.c.bf16 %v8541_v27, %v8534_v11  ;;  %v12891_v16 = vld [vmem:[%s19504_s8 + $0x1ac] ss:$16 sps:$4 sm:$0xff]   ;;  %v8494_v27 = vld [vmem:[%s19503_s7 + $0x140] sm:$0xff] }
 0xc08   : > { %10176 = vmatpush1.bf16.msra.mxu1 %v12841_v5  ;;  %v8487_v11 = vld [vmem:[%s19503_s7 + $0x108] sm:$0xff] }
 0xc09   : > { %v8312_v31 = vpop.f32.mrb[36].mxu0  ;;  %8650 = vmatprep.subr.bf16.mxu0 %v8569_v21  ;;  %10177 = vmatprep.subr.bf16.mxu1 %v12849_v55 }
 0xc0a   : > { %v8547_v23 = vmul.f32 %v8498_v18, %v8312_v31  ;;  %v8314_v15 = vpop.f32.mrb[37].mxu0  ;;  %8651 = vmatpush1.bf16.msra.mxu0 %v8568_v19 }
 0xc0b   : > { %v8548_v53 = vmul.f32 %v8499_v46, %v8314_v15  ;;  %v8316_v9 = vpop.f32.mrb[38].mxu0  ;;  %v12889_v46 = vld [vmem:[%s19504_s8 + $0x1a8] ss:$16 sps:$4 sm:$0xff]  }
 0xc0c   : > { %v8575_v39 = vpack.c.bf16 %v8547_v23, %v8547_v23  ;;  %v8317_v29 = vpop.f32.mrb[39].mxu0  ;;  %10178 = vmatpush1.bf16.msra.mxu1 %v12847_v4  ;;  %v8501_v9 = vld [vmem:[%s19503_s7 + $0x178] sm:$0x3] }
 0xc0d   : > { %v8576_v58 = vpack.c.bf16 %v8548_v53, %v8548_v53  ;;  %10179 = vmatprep.subr.bf16.mxu1 %v12855_v28  ;;  %v12897_v28 = vld [vmem:[%s19504_s8 + $0x1cc] ss:$16 sps:$4 sm:$0xff]   ;;  %v8500_v53 = vld [vmem:[%s19503_s7 + $0x170] sm:$0x3] }
 0xc0e   : > { %v8591_v22 = vsel %vm4624_vm0, %v8575_v39, 0  ;;  %v12895_v39 = vld [vmem:[%s19504_s8 + $0x1c8] ss:$16 sps:$4 sm:$0xff]  }
 0xc0f   : > { %11289 = vmatprep.subr.msk.bf16.mxu0 %vm4624_vm0, %v8576_v58 }
 0xc10   : > { %8653 = vmatpush1.bf16.msra.mxu0 %v8591_v22  ;;  %10180 = vmatpush1.bf16.msra.mxu1 %v12853_v7 }
 0xc11   : > { %v8353_v47 = vpop.f32.mrb[40].mxu0  ;;  %10181 = vmatprep.subr.bf16.mxu1 %v12861_v57 }
 0xc12   : > { %v8355_v2 = vpop.f32.mrb[41].mxu0  ;;  %v8507_v50 = vmul.f32 %v8458_v61, %v8353_v47 }
 0xc13   : > { %v8357_v49 = vpop.f32.mrb[42].mxu0  ;;  %11290 = vmatmul.mubr.msk.bf16.vlgmr.msra.gmra.mrb[64].mxu0 %vm8580_vm8, %v13319_v14  ;;  %v8508_v35 = vmul.f32 %v8459_v24, %v8355_v2  ;;  %v8474_v2 = vld [vmem:[%s19503_s7 + $0xa0] sm:$0xff]  ;;  %v8481_v24 = vld [vmem:[%s19503_s7 + $0xd8] sm:$0xff] }
 0xc14   : > { %v8514_v25 = vmul.f32 %v8465_v62, %v8357_v49  ;;  %v8359_v12 = vpop.f32.mrb[43].mxu0  ;;  %8719 = vmatprep.mubr.bf16.mxu0 %v21156_v20  ;;  %10182 = vmatpush1.bf16.msra.mxu1 %v12859_v6 }
 0xc15   : > { %v8515_v26 = vmul.f32 %v8466_v36, %v8359_v12  ;;  %10183 = vmatprep.subr.bf16.mxu1 %v12867_v38  ;;  %v13320_v36 = vmov 0.0  }
 0xc16   : > { %v8556_v56 = vpack.c.bf16 %v8514_v25, %v8507_v50  ;;  %v8460_v50 = vld [vmem:[%s19503_s7 + $0x30] sm:$0xff]  ;;  %v8467_v25 = vld [vmem:[%s19503_s7 + $0x68] sm:$0xff] }
 0xc17   : > { %v8557_v48 = vpack.c.bf16 %v8515_v26, %v8508_v35 }
 0xc18   : > { %10184 = vmatpush1.bf16.msra.mxu1 %v12865_v44 }
 0xc19   : > { %v8363_v10 = vpop.f32.mrb[44].mxu0  ;;  %8687 = vmatprep.subr.bf16.mxu0 %v8557_v48  ;;  %10185 = vmatprep.subr.bf16.mxu1 %v12873_v17 }
 0xc1a   : > { %v8365_v63 = vpop.f32.mrb[45].mxu0  ;;  %8688 = vmatpush1.bf16.msra.mxu0 %v8556_v56  ;;  %v8521_v45 = vmul.f32 %v8472_v59, %v8363_v10  ;;  %v8502_v59 = vld [vmem:[%s19503_s7 + $0x180] sm:$0x3] }
 0xc1b   : > { %v8367_v3 = vpop.f32.mrb[46].mxu0  ;;  %v8522_v40 = vmul.f32 %v8473_v60, %v8365_v63  ;;  %v8495_v63 = vld [vmem:[%s19503_s7 + $0x148] sm:$0xff] }
 0xc1c   : > { %v8528_v41 = vmul.f32 %v8479_v8, %v8367_v3  ;;  %v8369_v52 = vpop.f32.mrb[47].mxu0  ;;  %10186 = vmatpush1.bf16.msra.mxu1 %v12871_v51 }
 0xc1d   : > { %v8529_v0 = vmul.f32 %v8480_v1, %v8369_v52  ;;  %10187 = vmatprep.subr.bf16.mxu1 %v12879_v43  ;;  %v8488_v43 = vld [vmem:[%s19503_s7 + $0x110] sm:$0xff] }
 0xc1e   : > { %v8563_v13 = vpack.c.bf16 %v8528_v41, %v8521_v45 }
 0xc1f   : > { %v8564_v42 = vpack.c.bf16 %v8529_v0, %v8522_v40  ;;  %v12810_v40 = vld [vmem:[%s19504_s8 + $0x4] ss:$16 sps:$4 sm:$0xff]  }
 0xc20   : > { %10188 = vmatpush1.bf16.msra.mxu1 %v12877_v54 }
 0xc21   : > { %v8373_v33 = vpop.f32.mrb[48].mxu0  ;;  %8689 = vmatprep.subr.bf16.mxu0 %v8564_v42  ;;  %10189 = vmatprep.subr.bf16.mxu1 %v12885_v30  ;;  %v12808_v30 = vld [vmem:[%s19504_s8] ss:$16 sps:$4 sm:$0xff]   ;;  %v12901_v42 = vld [vmem:[%s19504_s8 + $0x1e8] ss:$16 sps:$4 sm:$0xff]  }
 0xc22   : > { %v8375_v5 = vpop.f32.mrb[49].mxu0  ;;  %8690 = vmatpush1.bf16.msra.mxu0 %v8563_v13  ;;  %v8535_v19 = vmul.f32 %v8486_v32, %v8373_v33  ;;  %v12816_v13 = vld [vmem:[%s19504_s8 + $0x24] ss:$16 sps:$4 sm:$0xff]   ;;  %v12814_v33 = vld [vmem:[%s19504_s8 + $0x20] ss:$16 sps:$4 sm:$0xff]  }
 0xc23   : > { %v8377_v55 = vpop.f32.mrb[50].mxu0  ;;  %v8536_v4 = vmul.f32 %v8487_v11, %v8375_v5  ;;  %v12822_v32 = vld [vmem:[%s19504_s8 + $0x44] ss:$16 sps:$4 sm:$0xff]   ;;  %v12826_v5 = vld [vmem:[%s19504_s8 + $0x60] ss:$16 sps:$4 sm:$0xff]  }
 0xc24   : > { %v8542_v21 = vmul.f32 %v8493_v34, %v8377_v55  ;;  %v8379_v18 = vpop.f32.mrb[51].mxu0  ;;  %10190 = vmatpush1.bf16.msra.mxu1 %v12883_v37  ;;  %v12903_v37 = vld [vmem:[%s19504_s8 + $0x1ec] ss:$16 sps:$4 sm:$0xff]   ;;  %v12820_v34 = vld [vmem:[%s19504_s8 + $0x40] ss:$16 sps:$4 sm:$0xff]  }
 0xc25   : > { %v8543_v31 = vmul.f32 %v8494_v27, %v8379_v18  ;;  %10191 = vmatprep.subr.bf16.mxu1 %v12891_v16  ;;  %v12828_v16 = vld [vmem:[%s19504_s8 + $0x64] ss:$16 sps:$4 sm:$0xff]   ;;  %v12832_v27 = vld [vmem:[%s19504_s8 + $0x80] ss:$16 sps:$4 sm:$0xff]  }
 0xc26   : > { %v8570_v23 = vpack.c.bf16 %v8542_v21, %v8535_v19  ;;  %v12834_v11 = vld [vmem:[%s19504_s8 + $0x84] ss:$16 sps:$4 sm:$0xff]   ;;  %v12838_v19 = vld [vmem:[%s19504_s8 + $0xa0] ss:$16 sps:$4 sm:$0xff]  }
 0xc27   : > { %v8571_v15 = vpack.c.bf16 %v8543_v31, %v8536_v4  ;;  %v12840_v55 = vld [vmem:[%s19504_s8 + $0xa4] ss:$16 sps:$4 sm:$0xff]   ;;  %v12844_v18 = vld [vmem:[%s19504_s8 + $0xc0] ss:$16 sps:$4 sm:$0xff]  }
 0xc28   : > { %10192 = vmatpush1.bf16.msra.mxu1 %v12889_v46  ;;  %v12846_v21 = vld [vmem:[%s19504_s8 + $0xc4] ss:$16 sps:$4 sm:$0xff]   ;;  %v12850_v4 = vld [vmem:[%s19504_s8 + $0xe0] ss:$16 sps:$4 sm:$0xff]  }
 0xc29   : > { %v8383_v29 = vpop.f32.mrb[52].mxu0  ;;  %8691 = vmatprep.subr.bf16.mxu0 %v8571_v15  ;;  %10193 = vmatprep.subr.bf16.mxu1 %v12897_v28  ;;  %v12852_v46 = vld [vmem:[%s19504_s8 + $0xe4] ss:$16 sps:$4 sm:$0xff]   ;;  %v12856_v28 = vld [vmem:[%s19504_s8 + $0x100] ss:$16 sps:$4 sm:$0xff]  }
 0xc2a   : > { %v8549_v7 = vmul.f32 %v8500_v53, %v8383_v29  ;;  %v8385_v58 = vpop.f32.mrb[53].mxu0  ;;  %8692 = vmatpush1.bf16.msra.mxu0 %v8570_v23  ;;  %v12858_v31 = vld [vmem:[%s19504_s8 + $0x104] ss:$16 sps:$4 sm:$0xff]   ;;  %v12862_v15 = vld [vmem:[%s19504_s8 + $0x120] ss:$16 sps:$4 sm:$0xff]  }
 0xc2b   : > { %v8550_v57 = vmul.f32 %v8501_v9, %v8385_v58  ;;  %v8387_v22 = vpop.f32.mrb[54].mxu0  ;;  %v12864_v23 = vld [vmem:[%s19504_s8 + $0x124] ss:$16 sps:$4 sm:$0xff]   ;;  %v12868_v9 = vld [vmem:[%s19504_s8 + $0x140] ss:$16 sps:$4 sm:$0xff]  }
 0xc2c   : > { %v8577_v6 = vpack.c.bf16 %v8549_v7, %v8549_v7  ;;  %v8388_v47 = vpop.f32.mrb[55].mxu0  ;;  %10194 = vmatpush1.bf16.msra.mxu1 %v12895_v39  ;;  %v12870_v53 = vld [vmem:[%s19504_s8 + $0x144] ss:$16 sps:$4 sm:$0xff]   ;;  %v12874_v29 = vld [vmem:[%s19504_s8 + $0x160] ss:$16 sps:$4 sm:$0xff]  }
 0xc2d   : > { %v8578_v61 = vpack.c.bf16 %v8550_v57, %v8550_v57  ;;  %10195 = vmatprep.subr.bf16.mxu1 %v12903_v37  ;;  %v12876_v39 = vld [vmem:[%s19504_s8 + $0x164] ss:$16 sps:$4 sm:$0xff]   ;;  %v12880_v58 = vld [vmem:[%s19504_s8 + $0x180] ss:$16 sps:$4 sm:$0xff]   ;;  %v12943_v37 = vld [vmem:[%s19504_s8 + $0x2c8] ss:$16 sps:$4 sm:$0xff]  }
 0xc2e   : > { %v8597_v62 = vsel %vm4624_vm0, %v8577_v6, 0  ;;  %v12882_v7 = vld [vmem:[%s19504_s8 + $0x184] ss:$16 sps:$4 sm:$0xff]   ;;  %v12886_v22 = vld [vmem:[%s19504_s8 + $0x1a0] ss:$16 sps:$4 sm:$0xff]  }
 0xc2f   : > { %11291 = vmatprep.subr.msk.bf16.mxu0 %vm4624_vm0, %v8578_v61  ;;  %v12888_v57 = vld [vmem:[%s19504_s8 + $0x1a4] ss:$16 sps:$4 sm:$0xff]   ;;  %v12892_v47 = vld [vmem:[%s19504_s8 + $0x1c0] ss:$16 sps:$4 sm:$0xff]  }
 0xc30   : > { %8694 = vmatpush1.bf16.msra.mxu0 %v8597_v62  ;;  %10196 = vmatpush1.bf16.msra.mxu1 %v12901_v42  ;;  %v12894_v6 = vld [vmem:[%s19504_s8 + $0x1c4] ss:$16 sps:$4 sm:$0xff]   ;;  %v12898_v62 = vld [vmem:[%s19504_s8 + $0x1e0] ss:$16 sps:$4 sm:$0xff]  }
 0xc31   : > { %v12055_v38 = vpop.f32.mrb[56].mxu0  ;;  %12061 = vmatprep.subr.bf16.mxu0 %v13320_v36  ;;  %v12900_v61 = vld [vmem:[%s19504_s8 + $0x1e4] ss:$16 sps:$4 sm:$0xff]   ;;  %v12940_v42 = vld [vmem:[%s19504_s8 + $0x2c0] ss:$16 sps:$4 sm:$0xff]  }
 0xc32   : > { %v8424_v49 = vpop.f32.mrb[57].mxu0  ;;  %v8523_v44 = vmul.f32 %v12055_v38, %v8474_v2  ;;  %v12906_v38 = vld [vmem:[%s19504_s8 + $0x204] ss:$16 sps:$4 sm:$0xff]  }
 0xc33   : > { %v12056_v12 = vpop.f32.mrb[58].mxu0  ;;  %11292 = vmatmul.mubr.msk.bf16.vlgmr.msra.gmra.mrb[68].mxu0 %vm8580_vm8, %v13319_v14  ;;  %v8509_v17 = vmul.f32 %v8460_v50, %v8424_v49  ;;  %v12904_v50 = vld [vmem:[%s19504_s8 + $0x200] ss:$16 sps:$4 sm:$0xff]  }
 0xc34   : > { %v8530_v35 = vmul.f32 %v12056_v12, %v8481_v24  ;;  %v8427_v26 = vpop.f32.mrb[59].mxu0  ;;  %12069 = vmatprep.mubr.msk.bf16.mxu0 %vm13321_vm10, %v13320_v36 }
 0xc35   : > { %v8516_v56 = vmul.f32 %v8467_v25, %v8427_v26  ;;  %v12907_v25 = vld [vmem:[%s19504_s8 + $0x208] ss:$16 sps:$4 sm:$0xff]   ;;  %v12915_v26 = vld [vmem:[%s19504_s8 + $0x22c] ss:$16 sps:$4 sm:$0xff]  }
 0xc36   : > { %v8565_v48 = vpack.c.bf16 %v8530_v35, %v8523_v44  ;;  %v12912_v35 = vld [vmem:[%s19504_s8 + $0x224] ss:$16 sps:$4 sm:$0xff]  }
 0xc37   : > { %v8558_v51 = vpack.c.bf16 %v8516_v56, %v8509_v17  ;;  %v12910_v17 = vld [vmem:[%s19504_s8 + $0x220] ss:$16 sps:$4 sm:$0xff]   ;;  %v12913_v56 = vld [vmem:[%s19504_s8 + $0x228] ss:$16 sps:$4 sm:$0xff]  }
 0xc39   : > { %v12059_v10 = vpop.f32.mrb[60].mxu0  ;;  %12062 = vmatpush3.bf16.msra.mxu0 %v8558_v51  ;;  %v12921_v51 = vld [vmem:[%s19504_s8 + $0x24c] ss:$16 sps:$4 sm:$0xff]  }
 0xc3a   : > { %v8440_v8 = vpop.f32.mrb[61].mxu0  ;;  %12063 = vmatprep.subr.bf16.mxu0 %v13320_v36  ;;  %v8551_v1 = vmul.f32 %v12059_v10, %v8502_v59  ;;  %v12916_v10 = vld [vmem:[%s19504_s8 + $0x240] ss:$16 sps:$4 sm:$0xff]   ;;  %v12919_v59 = vld [vmem:[%s19504_s8 + $0x248] ss:$16 sps:$4 sm:$0xff]  }
 0xc3b   : > { %v12060_v60 = vpop.f32.mrb[62].mxu0  ;;  %v8537_v45 = vmul.f32 %v8488_v43, %v8440_v8  ;;  %v12924_v8 = vld [vmem:[%s19504_s8 + $0x264] ss:$16 sps:$4 sm:$0xff]   ;;  %v12927_v43 = vld [vmem:[%s19504_s8 + $0x26c] ss:$16 sps:$4 sm:$0xff]  }
 0xc3c   : > { %v8443_v3 = vpop.f32.mrb[63].mxu0  ;;  %v8579_v54 = vpack.c.bf16 %v8551_v1, %v8551_v1  ;;  %v12925_v60 = vld [vmem:[%s19504_s8 + $0x268] ss:$16 sps:$4 sm:$0xff]   ;;  %v12930_v1 = vld [vmem:[%s19504_s8 + $0x284] ss:$16 sps:$4 sm:$0xff]  }
 0xc3d   : > { %v8544_v41 = vmul.f32 %v8495_v63, %v8443_v3  ;;  %12064 = vmatpush3.bf16.msra.mxu0 %v8565_v48  ;;  %v12918_v48 = vld [vmem:[%s19504_s8 + $0x244] ss:$16 sps:$4 sm:$0xff]   ;;  %v12922_v63 = vld [vmem:[%s19504_s8 + $0x260] ss:$16 sps:$4 sm:$0xff]   ;;  %v12933_v3 = vld [vmem:[%s19504_s8 + $0x28c] ss:$16 sps:$4 sm:$0xff]  }
 0xc3e   : > { %12065 = vmatprep.subr.bf16.mxu0 %v13320_v36  ;;  %v8603_v0 = vsel %vm4624_vm0, %v8579_v54, 0  ;;  %v12939_v54 = vld [vmem:[%s19504_s8 + $0x2ac] ss:$16 sps:$4 sm:$0xff]   ;;  %vm9997_vm0 = vcmask 261120  }
 0xc3f   : > { %v8572_v52 = vpack.c.bf16 %v8544_v41, %v8537_v45  ;;  %v12928_v45 = vld [vmem:[%s19504_s8 + $0x280] ss:$16 sps:$4 sm:$0xff]   ;;  %v12931_v41 = vld [vmem:[%s19504_s8 + $0x288] ss:$16 sps:$4 sm:$0xff]  }
 0xc41   : > { %12066 = vmatpush3.bf16.msra.mxu0 %v8572_v52  ;;  %v12936_v52 = vld [vmem:[%s19504_s8 + $0x2a4] ss:$16 sps:$4 sm:$0xff]  }
 0xc42   : > { %12067 = vmatprep.subr.bf16.mxu0 %v13320_v36 }
 0xc45   : > { %12068 = vmatpush3.bf16.msra.mxu0 %v8603_v0  ;;  %v12937_v0 = vld [vmem:[%s19504_s8 + $0x2a8] ss:$16 sps:$4 sm:$0xff]  }
 0xc46   : > { %10001 = vmatprep.subr.bf16.mxu0 %v12810_v40  ;;  %v12934_v40 = vld [vmem:[%s19504_s8 + $0x2a0] ss:$16 sps:$4 sm:$0xff]  }
 0xc48   : > { %12070 = vmatmul.mubr.msk.bf16.vlgmr.msra.gmra.mrb[72].mxu0 %vm8580_vm8, %v13319_v14  ;;  %v12909_v14 = vld [vmem:[%s19504_s8 + $0x20c] ss:$16 sps:$4 sm:$0xff]  }
 0xc49   : > { %10002 = vmatpush1.bf16.msra.mxu0 %v12808_v30  ;;  %10206 = vmatprep.subr.bf16.mxu1 %v12909_v14  ;;  %v12942_v30 = vld [vmem:[%s19504_s8 + $0x2c4] ss:$16 sps:$4 sm:$0xff]   ;;  %v12946_v14 = vld [vmem:[%s19504_s8 + $0x2e0] ss:$16 sps:$4 sm:$0xff]  }
 0xc4a   : > { %10003 = vmatprep.subr.bf16.mxu0 %v12816_v13  ;;  %v12945_v13 = vld [vmem:[%s19504_s8 + $0x2cc] ss:$16 sps:$4 sm:$0xff]  }
 0xc4d   : > { %10004 = vmatpush1.bf16.msra.mxu0 %v12814_v33  ;;  %v12948_v33 = vld [vmem:[%s19504_s8 + $0x2e4] ss:$16 sps:$4 sm:$0xff]  }
 0xc4e   : > { %10005 = vmatprep.subr.bf16.mxu0 %v12822_v32  ;;  %v12951_v32 = vld [vmem:[%s19504_s8 + $0x2ec] ss:$16 sps:$4 sm:$0xff]  }
 0xc51   : > { %10006 = vmatpush1.bf16.msra.mxu0 %v12820_v34  ;;  %v12949_v34 = vld [vmem:[%s19504_s8 + $0x2e8] ss:$16 sps:$4 sm:$0xff]  }
 0xc52   : > { %10007 = vmatprep.subr.bf16.mxu0 %v12828_v16  ;;  %v12954_v16 = vld [vmem:[%s19504_s8 + $0x304] ss:$16 sps:$4 sm:$0xff]  }
 0xc55   : > { %10008 = vmatpush1.bf16.msra.mxu0 %v12826_v5  ;;  %v12957_v5 = vld [vmem:[%s19504_s8 + $0x30c] ss:$16 sps:$4 sm:$0xff]  }
 0xc56   : > { %10009 = vmatprep.subr.bf16.mxu0 %v12834_v11 }
 0xc59   : > { %10010 = vmatpush1.bf16.msra.mxu0 %v12832_v27 }
 0xc5a   : > { %10011 = vmatprep.subr.bf16.mxu0 %v12840_v55  ;;  %v12952_v55 = vld [vmem:[%s19504_s8 + $0x300] ss:$16 sps:$4 sm:$0xff]  }
 0xc5d   : > { %10012 = vmatpush1.bf16.msra.mxu0 %v12838_v19  ;;  %v12955_v19 = vld [vmem:[%s19504_s8 + $0x308] ss:$16 sps:$4 sm:$0xff]  }
 0xc5e   : > { %10013 = vmatprep.subr.bf16.mxu0 %v12846_v21 }
 0xc61   : > { %10014 = vmatpush1.bf16.msra.mxu0 %v12844_v18 }
 0xc62   : > { %10015 = vmatprep.subr.bf16.mxu0 %v12852_v46  ;;  %v12960_v46 = vld [vmem:[%s19504_s8 + $0x324] ss:$16 sps:$4 sm:$0xff]  }
 0xc65   : > { %10016 = vmatpush1.bf16.msra.mxu0 %v12850_v4  ;;  %v12963_v4 = vld [vmem:[%s19504_s8 + $0x32c] ss:$16 sps:$4 sm:$0xff]  }
 0xc66   : > { %10017 = vmatprep.subr.bf16.mxu0 %v12858_v31 }
 0xc69   : > { %10018 = vmatpush1.bf16.msra.mxu0 %v12856_v28  ;;  %v12958_v28 = vld [vmem:[%s19504_s8 + $0x320] ss:$16 sps:$4 sm:$0xff]  }
 0xc6a   : > { %10019 = vmatprep.subr.bf16.mxu0 %v12864_v23  ;;  %v12961_v23 = vld [vmem:[%s19504_s8 + $0x328] ss:$16 sps:$4 sm:$0xff]  }
 0xc6d   : > { %10020 = vmatpush1.bf16.msra.mxu0 %v12862_v15  ;;  %v12966_v15 = vld [vmem:[%s19504_s8 + $0x344] ss:$16 sps:$4 sm:$0xff]  }
 0xc6e   : > { %10021 = vmatprep.subr.bf16.mxu0 %v12870_v53  ;;  %v12969_v53 = vld [vmem:[%s19504_s8 + $0x34c] ss:$16 sps:$4 sm:$0xff]  }
 0xc71   : > { %10022 = vmatpush1.bf16.msra.mxu0 %v12868_v9  ;;  %v12964_v9 = vld [vmem:[%s19504_s8 + $0x340] ss:$16 sps:$4 sm:$0xff]  }
 0xc72   : > { %10023 = vmatprep.subr.bf16.mxu0 %v12876_v39  ;;  %v12967_v39 = vld [vmem:[%s19504_s8 + $0x348] ss:$16 sps:$4 sm:$0xff]  }
 0xc75   : > { %10024 = vmatpush1.bf16.msra.mxu0 %v12874_v29  ;;  %v12972_v29 = vld [vmem:[%s19504_s8 + $0x364] ss:$16 sps:$4 sm:$0xff]  }
 0xc76   : > { %10025 = vmatprep.subr.bf16.mxu0 %v12882_v7  ;;  %v12975_v7 = vld [vmem:[%s19504_s8 + $0x36c] ss:$16 sps:$4 sm:$0xff]  }
 0xc79   : > { %10026 = vmatpush1.bf16.msra.mxu0 %v12880_v58  ;;  %v12970_v58 = vld [vmem:[%s19504_s8 + $0x360] ss:$16 sps:$4 sm:$0xff]  }
 0xc7a   : > { %10027 = vmatprep.subr.bf16.mxu0 %v12888_v57  ;;  %v12973_v57 = vld [vmem:[%s19504_s8 + $0x368] ss:$16 sps:$4 sm:$0xff]  }
 0xc7d   : > { %10028 = vmatpush1.bf16.msra.mxu0 %v12886_v22  ;;  %v12978_v22 = vld [vmem:[%s19504_s8 + $0x384] ss:$16 sps:$4 sm:$0xff]  }
 0xc7e   : > { %10029 = vmatprep.subr.bf16.mxu0 %v12894_v6  ;;  %v12981_v6 = vld [vmem:[%s19504_s8 + $0x38c] ss:$16 sps:$4 sm:$0xff]  }
 0xc81   : > { %10030 = vmatpush1.bf16.msra.mxu0 %v12892_v47  ;;  %v12976_v47 = vld [vmem:[%s19504_s8 + $0x380] ss:$16 sps:$4 sm:$0xff]  }
 0xc82   : > { %10031 = vmatprep.subr.bf16.mxu0 %v12900_v61  ;;  %v12979_v61 = vld [vmem:[%s19504_s8 + $0x388] ss:$16 sps:$4 sm:$0xff]  }
 0xc85   : > { %10032 = vmatpush1.bf16.msra.mxu0 %v12898_v62  ;;  %v12984_v62 = vld [vmem:[%s19504_s8 + $0x3a4] ss:$16 sps:$4 sm:$0xff]  }
 0xc86   : > { %10042 = vmatprep.subr.bf16.mxu0 %v12906_v38  ;;  %v12987_v38 = vld [vmem:[%s19504_s8 + $0x3ac] ss:$16 sps:$4 sm:$0xff]  }
 0xcc6   : > { %v8639_v2 = vpop.f32.mrb[104].mxu1 }
 0xcc7   : > { %v8641_v24 = vpop.f32.mrb[105].mxu1  ;;  %v8768_v12 = vpack.c.bf16 %v8639_v2, %v8639_v2  ;;  %v12982_v2 = vld [vmem:[%s19504_s8 + $0x3a0] ss:$16 sps:$4 sm:$0xff]  }
 0xcc8   : > { %v8769_v36 = vpack.c.bf16 %v8641_v24, %v8641_v24  ;;  %v8643_v49 = vpop.f32.mrb[106].mxu1  ;;  %v12985_v24 = vld [vmem:[%s19504_s8 + $0x3a8] ss:$16 sps:$4 sm:$0xff]  }
 0xcc9   : > { %v8644_v44 = vpop.f32.mrb[107].mxu1  ;;  %v12993_v49 = vld [vmem:[%s19504_s8 + $0x3cc] ss:$16 sps:$4 sm:$0xff]  }
 0xcca   : > { %10033 = vmatprep.mubr.bf16.mxu0 %v8769_v36  ;;  %10197 = vmatprep.mubr.bf16.mxu1 %v8769_v36  ;;  %v12990_v36 = vld [vmem:[%s19504_s8 + $0x3c4] ss:$16 sps:$4 sm:$0xff]   ;;  %v12999_v44 = vld [vmem:[%s19504_s8 + $0x3ec] ss:$16 sps:$4 sm:$0xff]  }
 0xccb   : > { %10034 = vmatmul.mubr.bf16.vlgmr.msra.gmra.mrb[76].mxu0 %v8768_v12  ;;  %10198 = vmatmul.mubr.bf16.vlgmr.msra.gmra.mrb[108].mxu1 %v8768_v12  ;;  %v12996_v12 = vld [vmem:[%s19504_s8 + $0x3e4] ss:$16 sps:$4 sm:$0xff]  }
 0xccc   : > { %10043 = vmatpush1.bf16.msra.mxu0 %v12904_v50  ;;  %10207 = vmatpush1.bf16.msra.mxu1 %v12907_v25  ;;  %v12988_v50 = vld [vmem:[%s19504_s8 + $0x3c0] ss:$16 sps:$4 sm:$0xff]   ;;  %v12991_v25 = vld [vmem:[%s19504_s8 + $0x3c8] ss:$16 sps:$4 sm:$0xff]  }
 0xccd   : > { %10044 = vmatprep.subr.bf16.mxu0 %v12912_v35  ;;  %10208 = vmatprep.subr.bf16.mxu1 %v12915_v26  ;;  %v12994_v35 = vld [vmem:[%s19504_s8 + $0x3e0] ss:$16 sps:$4 sm:$0xff]   ;;  %v12997_v26 = vld [vmem:[%s19504_s8 + $0x3e8] ss:$16 sps:$4 sm:$0xff]  }
 0xcd0   : > { %10045 = vmatpush1.bf16.msra.mxu0 %v12910_v17  ;;  %10209 = vmatpush1.bf16.msra.mxu1 %v12913_v56  ;;  %v13002_v17 = vld [vmem:[%s19504_s8 + $0x404] ss:$16 sps:$4 sm:$0xff]   ;;  %v13005_v56 = vld [vmem:[%s19504_s8 + $0x40c] ss:$16 sps:$4 sm:$0xff]  }
 0xcd1   : > { %10046 = vmatprep.subr.bf16.mxu0 %v12918_v48  ;;  %10210 = vmatprep.subr.bf16.mxu1 %v12921_v51 }
 0xcd4   : > { %10047 = vmatpush1.bf16.msra.mxu0 %v12916_v10  ;;  %10211 = vmatpush1.bf16.msra.mxu1 %v12919_v59  ;;  %v13000_v59 = vld [vmem:[%s19504_s8 + $0x400] ss:$16 sps:$4 sm:$0xff]  }
 0xcd5   : > { %10048 = vmatprep.subr.bf16.mxu0 %v12924_v8  ;;  %10212 = vmatprep.subr.bf16.mxu1 %v12927_v43  ;;  %v13003_v8 = vld [vmem:[%s19504_s8 + $0x408] ss:$16 sps:$4 sm:$0xff]  }
 0xcd8   : > { %10049 = vmatpush1.bf16.msra.mxu0 %v12922_v63  ;;  %10213 = vmatpush1.bf16.msra.mxu1 %v12925_v60  ;;  %v13008_v63 = vld [vmem:[%s19504_s8 + $0x424] ss:$16 sps:$4 sm:$0xff]   ;;  %v13011_v60 = vld [vmem:[%s19504_s8 + $0x42c] ss:$16 sps:$4 sm:$0xff]  }
 0xcd9   : > { %10050 = vmatprep.subr.bf16.mxu0 %v12930_v1  ;;  %10214 = vmatprep.subr.bf16.mxu1 %v12933_v3 }
 0xcdc   : > { %10051 = vmatpush1.bf16.msra.mxu0 %v12928_v45  ;;  %10215 = vmatpush1.bf16.msra.mxu1 %v12931_v41  ;;  %v13006_v45 = vld [vmem:[%s19504_s8 + $0x420] ss:$16 sps:$4 sm:$0xff]   ;;  %v13009_v41 = vld [vmem:[%s19504_s8 + $0x428] ss:$16 sps:$4 sm:$0xff]  }
 0xcdd   : > { %10052 = vmatprep.subr.bf16.mxu0 %v12936_v52  ;;  %10216 = vmatprep.subr.bf16.mxu1 %v12939_v54  ;;  %v13014_v52 = vld [vmem:[%s19504_s8 + $0x444] ss:$16 sps:$4 sm:$0xff]   ;;  %v13017_v54 = vld [vmem:[%s19504_s8 + $0x44c] ss:$16 sps:$4 sm:$0xff]  }
 0xce0   : > { %10053 = vmatpush1.bf16.msra.mxu0 %v12934_v40  ;;  %10217 = vmatpush1.bf16.msra.mxu1 %v12937_v0  ;;  %v13012_v40 = vld [vmem:[%s19504_s8 + $0x440] ss:$16 sps:$4 sm:$0xff]   ;;  %v13015_v0 = vld [vmem:[%s19504_s8 + $0x448] ss:$16 sps:$4 sm:$0xff]  }
 0xce1   : > { %10054 = vmatprep.subr.bf16.mxu0 %v12942_v30  ;;  %10218 = vmatprep.subr.bf16.mxu1 %v12945_v13  ;;  %v13020_v30 = vld [vmem:[%s19504_s8 + $0x464] ss:$16 sps:$4 sm:$0xff]   ;;  %v13023_v13 = vld [vmem:[%s19504_s8 + $0x46c] ss:$16 sps:$4 sm:$0xff]  }
 0xce4   : > { %10055 = vmatpush1.bf16.msra.mxu0 %v12940_v42  ;;  %10219 = vmatpush1.bf16.msra.mxu1 %v12943_v37  ;;  %v13018_v42 = vld [vmem:[%s19504_s8 + $0x460] ss:$16 sps:$4 sm:$0xff]   ;;  %v13021_v37 = vld [vmem:[%s19504_s8 + $0x468] ss:$16 sps:$4 sm:$0xff]  }
 0xce5   : > { %10056 = vmatprep.subr.bf16.mxu0 %v12948_v33  ;;  %10220 = vmatprep.subr.bf16.mxu1 %v12951_v32  ;;  %v13026_v33 = vld [vmem:[%s19504_s8 + $0x484] ss:$16 sps:$4 sm:$0xff]   ;;  %v13029_v32 = vld [vmem:[%s19504_s8 + $0x48c] ss:$16 sps:$4 sm:$0xff]  }
 0xce6   : > { %v19015_v11 = vpop.f32.mrb[64].mxu0 }
 0xce7   : > { %v8682_v27 = vpop.f32.mrb[65].mxu0  ;;  %v8770_v51 = vpack.c.bf16 %v19015_v11, %v19015_v11 }
 0xce8   : > { %10057 = vmatpush1.bf16.msra.mxu0 %v12946_v14  ;;  %10221 = vmatpush1.bf16.msra.mxu1 %v12949_v34  ;;  %v8771_v21 = vpack.c.bf16 %v8682_v27, %v8682_v27  ;;  %v8684_v18 = vpop.f32.mrb[66].mxu0  ;;  %v13024_v14 = vld [vmem:[%s19504_s8 + $0x480] ss:$16 sps:$4 sm:$0xff]   ;;  %v13027_v34 = vld [vmem:[%s19504_s8 + $0x488] ss:$16 sps:$4 sm:$0xff]  }
 0xce9   : > { %10058 = vmatprep.subr.bf16.mxu0 %v12954_v16  ;;  %10222 = vmatprep.subr.bf16.mxu1 %v12957_v5  ;;  %v8685_v31 = vpop.f32.mrb[67].mxu0  ;;  %v13032_v16 = vld [vmem:[%s19504_s8 + $0x4a4] ss:$16 sps:$4 sm:$0xff]   ;;  %v13035_v5 = vld [vmem:[%s19504_s8 + $0x4ac] ss:$16 sps:$4 sm:$0xff]  }
 0xcea   : > { %10074 = vmatprep.mubr.bf16.mxu0 %v8771_v21  ;;  %10238 = vmatprep.mubr.bf16.mxu1 %v8771_v21  ;;  %v13030_v27 = vld [vmem:[%s19504_s8 + $0x4a0] ss:$16 sps:$4 sm:$0xff]   ;;  %v13038_v21 = vld [vmem:[%s19504_s8 + $0x4c4] ss:$16 sps:$4 sm:$0xff]   ;;  %v13041_v18 = vld [vmem:[%s19504_s8 + $0x4cc] ss:$16 sps:$4 sm:$0xff]  }
 0xceb   : > { %v13036_v31 = vld [vmem:[%s19504_s8 + $0x4c0] ss:$16 sps:$4 sm:$0xff]  }
 0xcec   : > { %10059 = vmatpush1.bf16.msra.mxu0 %v12952_v55  ;;  %10223 = vmatpush1.bf16.msra.mxu1 %v12955_v19  ;;  %v13033_v55 = vld [vmem:[%s19504_s8 + $0x4a8] ss:$16 sps:$4 sm:$0xff]  }
 0xced   : > { %10060 = vmatprep.subr.bf16.mxu0 %v12960_v46  ;;  %10224 = vmatprep.subr.bf16.mxu1 %v12963_v4 }
 0xcf0   : > { %10061 = vmatpush1.bf16.msra.mxu0 %v12958_v28  ;;  %10225 = vmatpush1.bf16.msra.mxu1 %v12961_v23  ;;  %v13039_v28 = vld [vmem:[%s19504_s8 + $0x4c8] ss:$16 sps:$4 sm:$0xff]   ;;  %v13044_v23 = vld [vmem:[%s19504_s8 + $0x4e4] ss:$16 sps:$4 sm:$0xff]  }
 0xcf1   : > { %10062 = vmatprep.subr.bf16.mxu0 %v12966_v15  ;;  %10226 = vmatprep.subr.bf16.mxu1 %v12969_v53  ;;  %v13047_v15 = vld [vmem:[%s19504_s8 + $0x4ec] ss:$16 sps:$4 sm:$0xff]   ;;  %v13042_v53 = vld [vmem:[%s19504_s8 + $0x4e0] ss:$16 sps:$4 sm:$0xff]  }
 0xcf4   : > { %10063 = vmatpush1.bf16.msra.mxu0 %v12964_v9  ;;  %10227 = vmatpush1.bf16.msra.mxu1 %v12967_v39  ;;  %v13045_v9 = vld [vmem:[%s19504_s8 + $0x4e8] ss:$16 sps:$4 sm:$0xff]   ;;  %v13050_v39 = vld [vmem:[%s19504_s8 + $0x504] ss:$16 sps:$4 sm:$0xff]  }
 0xcf5   : > { %10064 = vmatprep.subr.bf16.mxu0 %v12972_v29  ;;  %10228 = vmatprep.subr.bf16.mxu1 %v12975_v7  ;;  %v13053_v29 = vld [vmem:[%s19504_s8 + $0x50c] ss:$16 sps:$4 sm:$0xff]   ;;  %v13048_v7 = vld [vmem:[%s19504_s8 + $0x500] ss:$16 sps:$4 sm:$0xff]  }
 0xcf8   : > { %10065 = vmatpush1.bf16.msra.mxu0 %v12970_v58  ;;  %10229 = vmatpush1.bf16.msra.mxu1 %v12973_v57  ;;  %v13051_v58 = vld [vmem:[%s19504_s8 + $0x508] ss:$16 sps:$4 sm:$0xff]   ;;  %v13056_v57 = vld [vmem:[%s19504_s8 + $0x524] ss:$16 sps:$4 sm:$0xff]  }
 0xcf9   : > { %10066 = vmatprep.subr.bf16.mxu0 %v12978_v22  ;;  %10230 = vmatprep.subr.bf16.mxu1 %v12981_v6  ;;  %v13059_v22 = vld [vmem:[%s19504_s8 + $0x52c] ss:$16 sps:$4 sm:$0xff]   ;;  %v13054_v6 = vld [vmem:[%s19504_s8 + $0x520] ss:$16 sps:$4 sm:$0xff]  }
 0xcfc   : > { %10067 = vmatpush1.bf16.msra.mxu0 %v12976_v47  ;;  %10231 = vmatpush1.bf16.msra.mxu1 %v12979_v61  ;;  %v13057_v47 = vld [vmem:[%s19504_s8 + $0x528] ss:$16 sps:$4 sm:$0xff]   ;;  %v13062_v61 = vld [vmem:[%s19504_s8 + $0x544] ss:$16 sps:$4 sm:$0xff]  }
 0xcfd   : > { %10068 = vmatprep.subr.bf16.mxu0 %v12984_v62  ;;  %10232 = vmatprep.subr.bf16.mxu1 %v12987_v38  ;;  %v13065_v62 = vld [vmem:[%s19504_s8 + $0x54c] ss:$16 sps:$4 sm:$0xff]   ;;  %v13060_v38 = vld [vmem:[%s19504_s8 + $0x540] ss:$16 sps:$4 sm:$0xff]  }
 0xd00   : > { %10069 = vmatpush1.bf16.msra.mxu0 %v12982_v2  ;;  %10233 = vmatpush1.bf16.msra.mxu1 %v12985_v24  ;;  %v13063_v2 = vld [vmem:[%s19504_s8 + $0x548] ss:$16 sps:$4 sm:$0xff]   ;;  %v13068_v24 = vld [vmem:[%s19504_s8 + $0x564] ss:$16 sps:$4 sm:$0xff]  }
 0xd01   : > { %10070 = vmatprep.subr.bf16.mxu0 %v12990_v36  ;;  %10234 = vmatprep.subr.bf16.mxu1 %v12993_v49  ;;  %v13071_v36 = vld [vmem:[%s19504_s8 + $0x56c] ss:$16 sps:$4 sm:$0xff]   ;;  %v13066_v49 = vld [vmem:[%s19504_s8 + $0x560] ss:$16 sps:$4 sm:$0xff]  }
 0xd04   : > { %10071 = vmatpush1.bf16.msra.mxu0 %v12988_v50  ;;  %10235 = vmatpush1.bf16.msra.mxu1 %v12991_v25  ;;  %v13069_v50 = vld [vmem:[%s19504_s8 + $0x568] ss:$16 sps:$4 sm:$0xff]   ;;  %v13074_v25 = vld [vmem:[%s19504_s8 + $0x584] ss:$16 sps:$4 sm:$0xff]  }
 0xd05   : > { %10072 = vmatprep.subr.bf16.mxu0 %v12996_v12  ;;  %10236 = vmatprep.subr.bf16.mxu1 %v12999_v44  ;;  %v13077_v12 = vld [vmem:[%s19504_s8 + $0x58c] ss:$16 sps:$4 sm:$0xff]   ;;  %v13072_v44 = vld [vmem:[%s19504_s8 + $0x580] ss:$16 sps:$4 sm:$0xff]  }
 0xd06   : > { %v19113_v48 = vpop.f32.mrb[68].mxu0 }
 0xd07   : > { %v8723_v10 = vpop.f32.mrb[69].mxu0 }
 0xd08   : > { %10073 = vmatpush1.bf16.msra.mxu0 %v12994_v35  ;;  %10237 = vmatpush1.bf16.msra.mxu1 %v12997_v26  ;;  %v8725_v43 = vpop.f32.mrb[70].mxu0  ;;  %v8773_v3 = vpack.c.bf16 %v8723_v10, %v8723_v10  ;;  %v13075_v35 = vld [vmem:[%s19504_s8 + $0x588] ss:$16 sps:$4 sm:$0xff]   ;;  %v13080_v26 = vld [vmem:[%s19504_s8 + $0x5a4] ss:$16 sps:$4 sm:$0xff]  }
 0xd09   : > { %10083 = vmatprep.subr.bf16.mxu0 %v13002_v17  ;;  %10247 = vmatprep.subr.bf16.mxu1 %v13005_v56  ;;  %v8726_v1 = vpop.f32.mrb[71].mxu0  ;;  %v13083_v17 = vld [vmem:[%s19504_s8 + $0x5ac] ss:$16 sps:$4 sm:$0xff]   ;;  %v13078_v56 = vld [vmem:[%s19504_s8 + $0x5a0] ss:$16 sps:$4 sm:$0xff]  }
 0xd0a   : > { %v13086_v10 = vld [vmem:[%s19504_s8 + $0x5c4] ss:$16 sps:$4 sm:$0xff]   ;;  %v13087_v43 = vld [vmem:[%s19504_s8 + $0x5c8] ss:$16 sps:$4 sm:$0xff]   ;;  %v13090_v1 = vld [vmem:[%s19504_s8 + $0x5e0] ss:$16 sps:$4 sm:$0xff]  }
 0xd0b   : > { %10075 = vmatmul.mubr.bf16.vlgmr.msra.gmra.mrb[76].mxu0 %v8770_v51  ;;  %10239 = vmatmul.mubr.bf16.vlgmr.msra.gmra.mrb[108].mxu1 %v8770_v51  ;;  %v13081_v51 = vld [vmem:[%s19504_s8 + $0x5a8] ss:$16 sps:$4 sm:$0xff]  }
 0xd0c   : > { %10084 = vmatpush1.bf16.msra.mxu0 %v13000_v59  ;;  %10248 = vmatpush1.bf16.msra.mxu1 %v13003_v8  ;;  %v13089_v59 = vld [vmem:[%s19504_s8 + $0x5cc] ss:$16 sps:$4 sm:$0xff]   ;;  %v13084_v8 = vld [vmem:[%s19504_s8 + $0x5c0] ss:$16 sps:$4 sm:$0xff]  }
 0xd0d   : > { %10085 = vmatprep.subr.bf16.mxu0 %v13008_v63  ;;  %10249 = vmatprep.subr.bf16.mxu1 %v13011_v60  ;;  %v13092_v63 = vld [vmem:[%s19504_s8 + $0x5e4] ss:$16 sps:$4 sm:$0xff]   ;;  %v13095_v60 = vld [vmem:[%s19504_s8 + $0x5ec] ss:$16 sps:$4 sm:$0xff]  }
 0xd0e   : > { %10115 = vmatprep.mubr.bf16.mxu0 %v8773_v3  ;;  %10279 = vmatprep.mubr.bf16.mxu1 %v8773_v3  ;;  %v13093_v3 = vld [vmem:[%s19504_s8 + $0x5e8] ss:$16 sps:$4 sm:$0xff]  }
 0xd10   : > { %10086 = vmatpush1.bf16.msra.mxu0 %v13006_v45  ;;  %10250 = vmatpush1.bf16.msra.mxu1 %v13009_v41  ;;  %v13098_v45 = vld [vmem:[%s19504_s8 + $0x604] ss:$16 sps:$4 sm:$0xff]   ;;  %v13096_v41 = vld [vmem:[%s19504_s8 + $0x600] ss:$16 sps:$4 sm:$0xff]  }
 0xd11   : > { %10087 = vmatprep.subr.bf16.mxu0 %v13014_v52  ;;  %10251 = vmatprep.subr.bf16.mxu1 %v13017_v54  ;;  %v8772_v52 = vpack.c.bf16 %v19113_v48, %v19113_v48  ;;  %v13101_v54 = vld [vmem:[%s19504_s8 + $0x624] ss:$16 sps:$4 sm:$0xff]  }
 0xd14   : > { %10088 = vmatpush1.bf16.msra.mxu0 %v13012_v40  ;;  %10252 = vmatpush1.bf16.msra.mxu1 %v13015_v0  ;;  %v13099_v40 = vld [vmem:[%s19504_s8 + $0x620] ss:$16 sps:$4 sm:$0xff]   ;;  %v13104_v0 = vld [vmem:[%s19504_s8 + $0x60c] ss:$16 sps:$4 sm:$0xff]  }
 0xd15   : > { %10089 = vmatprep.subr.bf16.mxu0 %v13020_v30  ;;  %10253 = vmatprep.subr.bf16.mxu1 %v13023_v13  ;;  %v13102_v30 = vld [vmem:[%s19504_s8 + $0x608] ss:$16 sps:$4 sm:$0xff]   ;;  %v13107_v13 = vld [vmem:[%s19504_s8 + $0x62c] ss:$16 sps:$4 sm:$0xff]  }
 0xd18   : > { %10090 = vmatpush1.bf16.msra.mxu0 %v13018_v42  ;;  %10254 = vmatpush1.bf16.msra.mxu1 %v13021_v37  ;;  %v13105_v42 = vld [vmem:[%s19504_s8 + $0x628] ss:$16 sps:$4 sm:$0xff]   ;;  %v13108_v37 = vld [vmem:[%s19506_s10 + $0x40] sm:$0xff]  }
 0xd19   : > { %10091 = vmatprep.subr.bf16.mxu0 %v13026_v33  ;;  %10255 = vmatprep.subr.bf16.mxu1 %v13029_v32  ;;  %v13109_v33 = vld [vmem:[%s19506_s10] sm:$0xff]   ;;  %v13110_v32 = vld [vmem:[%s19506_s10 + $0x48] sm:$0xff]  }
 0xd1b   : > { %v19177_v11 = vpop.f32.mrb[72].mxu0 }
 0xd1c   : > { %10092 = vmatpush1.bf16.msra.mxu0 %v13024_v14  ;;  %10256 = vmatpush1.bf16.msra.mxu1 %v13027_v34  ;;  %v12071_v19 = vpop.f32.mrb[73].mxu0  ;;  %v8774_v48 = vpack.c.bf16 %v19177_v11, %v19177_v11  ;;  %v13112_v14 = vld [vmem:[%s19506_s10 + $0x50] sm:$0xff]   ;;  %v13116_v11 = vld [vmem:[%s19506_s10 + $0x60] sm:$0xff]  }
 0xd1d   : > { %10093 = vmatprep.subr.bf16.mxu0 %v13032_v16  ;;  %10257 = vmatprep.subr.bf16.mxu1 %v13035_v5  ;;  %v8765_v46 = vpop.f32.mrb[74].mxu0  ;;  %v13113_v34 = vld [vmem:[%s19506_s10 + $0x10] sm:$0xff]   ;;  %v13114_v16 = vld [vmem:[%s19506_s10 + $0x58] sm:$0xff]   ;;  %v13119_v19 = vld [vmem:[%s19506_s10 + $0x28] sm:$0xff]  }
 0xd1e   : > { %v12072_v4 = vpop.f32.mrb[75].mxu0  ;;  %v13115_v5 = vld [vmem:[%s19506_s10 + $0x18] sm:$0xff]  }
 0xd1f   : > { %v13122_v46 = vld [vmem:[%s19506_s10 + $0x78] sm:$0xff]  }
 0xd20   : > { %10094 = vmatpush1.bf16.msra.mxu0 %v13030_v27  ;;  %10258 = vmatpush1.bf16.msra.mxu1 %v13033_v55  ;;  %v13117_v27 = vld [vmem:[%s19506_s10 + $0x20] sm:$0xff]   ;;  %v13118_v55 = vld [vmem:[%s19506_s10 + $0x68] sm:$0xff]   ;;  %v13123_v4 = vld [vmem:[%s19506_s10 + $0x38] sm:$0xff]  }
 0xd21   : > { %10095 = vmatprep.subr.bf16.mxu0 %v13038_v21  ;;  %10259 = vmatprep.subr.bf16.mxu1 %v13041_v18  ;;  %v13120_v21 = vld [vmem:[%s19506_s10 + $0x70] sm:$0xff]  }
 0xd22   : > { %v13121_v18 = vld [vmem:[%s19506_s10 + $0x30] sm:$0xff]  }
 0xd24   : > { %10096 = vmatpush1.bf16.msra.mxu0 %v13036_v31  ;;  %10260 = vmatpush1.bf16.msra.mxu1 %v13039_v28  ;;  %v13124_v31 = vld [vmem:[%s19506_s10 + $0xc0] sm:$0xff]  }
 0xd25   : > { %10097 = vmatprep.subr.bf16.mxu0 %v13044_v23  ;;  %10261 = vmatprep.subr.bf16.mxu1 %v13047_v15 }
 0xd28   : > { %10098 = vmatpush1.bf16.msra.mxu0 %v13042_v53  ;;  %10262 = vmatpush1.bf16.msra.mxu1 %v13045_v9  ;;  %v8975_v9 = vld [vmem:[%s19505_s9] sm:$0xf] }
 0xd29   : > { %10099 = vmatprep.subr.bf16.mxu0 %v13050_v39  ;;  %10263 = vmatprep.subr.bf16.mxu1 %v13053_v29  ;;  %v21157_v39 = vld [vmem:[#allocation17_spill] sm:$0xff] }
 0xd2a   : > { %v21158_v29 = vsub.s32 0, %v21157_v39 }
 0xd2c   : > { %10100 = vmatpush1.bf16.msra.mxu0 %v13048_v7  ;;  %10264 = vmatpush1.bf16.msra.mxu1 %v13051_v58  ;;  %v9980_v7 = vrot.slane %v8975_v9, %v21158_v29  ;;  %v21159_v58 = vsub.s32 1, %v21157_v39 }
 0xd2d   : > { %10101 = vmatprep.subr.bf16.mxu0 %v13056_v57  ;;  %10265 = vmatprep.subr.bf16.mxu1 %v13059_v22 }
 0xd2e   : > { %v9984_v57 = vrot.slane %v8975_v9, %v21159_v58 }
 0xd30   : > { %10102 = vmatpush1.bf16.msra.mxu0 %v13054_v6  ;;  %10266 = vmatpush1.bf16.msra.mxu1 %v13057_v47 }
 0xd31   : > { %10103 = vmatprep.subr.bf16.mxu0 %v13062_v61  ;;  %10267 = vmatprep.subr.bf16.mxu1 %v13065_v62 }
 0xd34   : > { %10104 = vmatpush1.bf16.msra.mxu0 %v13060_v38  ;;  %10268 = vmatpush1.bf16.msra.mxu1 %v13063_v2  ;;  %v21160_v38 = vsub.s32 2, %v21157_v39 }
 0xd35   : > { %10105 = vmatprep.subr.bf16.mxu0 %v13068_v24  ;;  %10269 = vmatprep.subr.bf16.mxu1 %v13071_v36 }
 0xd36   : > { %v9988_v2 = vrot.slane %v8975_v9, %v21160_v38 }
 0xd38   : > { %10106 = vmatpush1.bf16.msra.mxu0 %v13066_v49  ;;  %10270 = vmatpush1.bf16.msra.mxu1 %v13069_v50  ;;  %v21161_v49 = vsub.s32 3, %v21157_v39 }
 0xd39   : > { %10107 = vmatprep.subr.bf16.mxu0 %v13074_v25  ;;  %10271 = vmatprep.subr.bf16.mxu1 %v13077_v12 }
 0xd3a   : > { %v9992_v50 = vrot.slane %v8975_v9, %v21161_v49 }
 0xd3c   : > { %10108 = vmatpush1.bf16.msra.mxu0 %v13072_v44  ;;  %10272 = vmatpush1.bf16.msra.mxu1 %v13075_v35  ;;  %v13125_v44 = vld [vmem:[%s19506_s10 + $0x80] sm:$0xff]  }
 0xd3d   : > { %10109 = vmatprep.subr.bf16.mxu0 %v13080_v26  ;;  %10273 = vmatprep.subr.bf16.mxu1 %v13083_v17  ;;  %v13126_v17 = vld [vmem:[%s19506_s10 + $0xc8] sm:$0xff]  }
 0xd40   : > { %10110 = vmatpush1.bf16.msra.mxu0 %v13078_v56  ;;  %10274 = vmatpush1.bf16.msra.mxu1 %v13081_v51 }
 0xd41   : > { %10111 = vmatprep.subr.bf16.mxu0 %v13086_v10  ;;  %10275 = vmatprep.subr.bf16.mxu1 %v13089_v59 }
 0xd44   : > { %10112 = vmatpush1.bf16.msra.mxu0 %v13084_v8  ;;  %10276 = vmatpush1.bf16.msra.mxu1 %v13087_v43 }
 0xd45   : > { %10113 = vmatprep.subr.bf16.mxu0 %v13092_v63  ;;  %10277 = vmatprep.subr.bf16.mxu1 %v13095_v60  ;;  %v13127_v63 = vld [vmem:[%s19506_s10 + $0x88] sm:$0xff]  }
 0xd48   : > { %10114 = vmatpush1.bf16.msra.mxu0 %v13090_v1  ;;  %10278 = vmatpush1.bf16.msra.mxu1 %v13093_v3  ;;  %v13128_v1 = vld [vmem:[%s19506_s10 + $0xd0] sm:$0xff]  }
 0xd49   : > { %10124 = vmatprep.subr.bf16.mxu0 %v13098_v45 }
 0xd4b   : > { %10116 = vmatmul.mubr.bf16.vlgmr.msra.gmra.mrb[76].mxu0 %v8772_v52  ;;  %10280 = vmatmul.mubr.bf16.vlgmr.msra.gmra.mrb[108].mxu1 %v8772_v52  ;;  %v13130_v52 = vld [vmem:[%s19506_s10 + $0xd8] sm:$0xff]  }
 0xd4c   : > { %10125 = vmatpush1.bf16.msra.mxu0 %v13096_v41  ;;  %10156 = vmatprep.mubr.bf16.mxu0 %v21156_v20  ;;  %v13129_v41 = vld [vmem:[%s19506_s10 + $0x90] sm:$0xff]  }
 0xd4d   : > { %10126 = vmatprep.subr.bf16.mxu0 %v13101_v54  ;;  %v13131_v54 = vld [vmem:[%s19506_s10 + $0x98] sm:$0xff]  }
 0xd50   : > { %10127 = vmatpush1.bf16.msra.mxu0 %v13099_v40  ;;  %v13132_v40 = vld [vmem:[%s19506_s10 + $0xe0] sm:$0xff]  }
 0xd51   : > { %10288 = vmatprep.subr.bf16.mxu0 %v13104_v0  ;;  %v13133_v0 = vld [vmem:[%s19506_s10 + $0xa0] sm:$0xff]  }
 0xd57   : > { %11494 = vmatmul.mubr.msk.bf16.vlgmr.msra.gmra.mrb[76].mxu0 %vm9997_vm0, %v8774_v48 }
 0xd58   : > { %10289 = vmatpush1.bf16.msra.mxu0 %v13102_v30  ;;  %10320 = vmatprep.mubr.bf16.mxu0 %v21156_v20  ;;  %v13111_v20 = vld [vmem:[%s19506_s10 + $0x8] sm:$0xff]  }
 0xd59   : > { %10290 = vmatprep.subr.bf16.mxu0 %v13107_v13  ;;  %v13135_v30 = vld [vmem:[%s19506_s10 + $0xa8] sm:$0xff]   ;;  %v13136_v13 = vld [vmem:[%s19506_s10 + $0xf0] sm:$0xff]  }
 0xd5c   : > { %10291 = vmatpush1.bf16.msra.mxu0 %v13105_v42  ;;  %v13137_v42 = vld [vmem:[%s19506_s10 + $0xb0] sm:$0xff]  }
 0xd5d   : > { %11697 = vmatprep.subr.bf16.mxu0 %v13108_v37  ;;  %v13138_v37 = vld [vmem:[%s19506_s10 + $0xf8] ss:$0 sps:$4 sm:$0x33]  }
 0xd5f   : > { %11495 = vmatmul.mubr.msk.bf16.vlgmr.msra.gmra.mrb[80].mxu0 %vm9997_vm0, %v8774_v48  ;;  %v13134_v48 = vld [vmem:[%s19506_s10 + $0xe8] sm:$0xff]  }
 0xd60   : > { %11698 = vmatpush3.bf16.msra.mxu0 %v13109_v33  ;;  %v13139_v33 = vld [vmem:[%s19506_s10 + $0xb8] sm:$0xff]  }
 0xd61   : > { %11699 = vmatprep.subr.bf16.mxu0 %v13110_v32 }
 0xd64   : > { %11700 = vmatpush3.bf16.msra.mxu0 %v13111_v20 }
 0xd65   : > { %11701 = vmatprep.subr.bf16.mxu0 %v13112_v14 }
 0xd68   : > { %11702 = vmatpush3.bf16.msra.mxu0 %v13113_v34 }
 0xd69   : > { %11703 = vmatprep.subr.bf16.mxu0 %v13114_v16 }
 0xd6c   : > { %11704 = vmatpush3.bf16.msra.mxu0 %v13115_v5 }
 0xd6d   : > { %11705 = vmatprep.subr.bf16.mxu0 %v13116_v11 }
 0xd70   : > { %11706 = vmatpush3.bf16.msra.mxu0 %v13117_v27  ;;  %v10400_v27 = vld [vmem:[%s21162_s29] sm:$0x1] }
 0xd71   : > { %11707 = vmatprep.subr.bf16.mxu0 %v13118_v55 }
 0xd74   : > { %11708 = vmatpush3.bf16.msra.mxu0 %v13119_v19 }
 0xd75   : > { %11709 = vmatprep.subr.bf16.mxu0 %v13120_v21 }
 0xd78   : > { %11710 = vmatpush3.bf16.msra.mxu0 %v13121_v18 }
 0xd79   : > { %11711 = vmatprep.subr.bf16.mxu0 %v13122_v46 }
 0xd7c   : > { %11712 = vmatpush3.bf16.msra.mxu0 %v13123_v4 }
 0xd7d   : > { %11719 = vmatprep.subr.bf16.mxu0 %v13124_v31 }
 0xe1e   : > { %v10281_v28 = vpop.f32.mrb[108].mxu1 }
 0xe1f   : > { %v10283_v23 = vpop.f32.mrb[109].mxu1  ;;  %v12075_v35 = vadd.f32 %v10281_v28, %v9988_v2 }
 0xe20   : > { %v10285_v15 = vpop.f32.mrb[110].mxu1  ;;  %v12077_v56 = vadd.f32 %v10283_v23, %v9992_v50 }
 0xe21   : > { %v10286_v53 = vpop.f32.mrb[111].mxu1 }
 0xe2a   : > { %v10158_v22 = vpop.f32.mrb[76].mxu0 }
 0xe2b   : > { %v12073_v6 = vadd.f32 %v10158_v22, %v9980_v7  ;;  %v10160_v47 = vpop.f32.mrb[77].mxu0 }
 0xe2c   : > { %v12074_v61 = vadd.f32 %v10160_v47, %v9984_v57  ;;  %v10162_v62 = vpop.f32.mrb[78].mxu0 }
 0xe2d   : > { %v10329_v24 = vmax.f32 %v12073_v6, 0.0  ;;  %v10163_v36 = vpop.f32.mrb[79].mxu0 }
 0xe2e   : > { %v10330_v25 = vmax.f32 %v12074_v61, 0.0 }
 0xe2f   : > { %v10333_v26 = vpack.c.bf16 %v10329_v24, %v10329_v24 }
 0xe30   : > { %v10334_v12 = vpack.c.bf16 %v10330_v25, %v10330_v25 }
 0xe32   : > { %v10322_v51 = vpop.f32.mrb[80].mxu0  ;;  %10629 = vmatprep.mubr.bf16.mxu0 %v10334_v12 }
 0xe33   : > { %v12076_v10 = vadd.f32 %v12075_v35, %v10322_v51  ;;  %v10324_v59 = vpop.f32.mrb[81].mxu0  ;;  %10630 = vmatmul.mubr.bf16.vlgmr.msra.gmra.mrb[84].mxu0 %v10333_v26 }
 0xe34   : > { %v12078_v8 = vadd.f32 %v12077_v56, %v10324_v59  ;;  %11720 = vmatpush3.bf16.msra.mxu0 %v13125_v44  ;;  %v10326_v43 = vpop.f32.mrb[82].mxu0 }
 0xe35   : > { %v10327_v60 = vpop.f32.mrb[83].mxu0  ;;  %11721 = vmatprep.subr.bf16.mxu0 %v13126_v17  ;;  %v10331_v32 = vmax.f32 %v12076_v10, 0.0 }
 0xe36   : > { %v10332_v3 = vmax.f32 %v12078_v8, 0.0 }
 0xe37   : > { %v10335_v20 = vpack.c.bf16 %v10331_v32, %v10331_v32 }
 0xe38   : > { %v10336_v45 = vpack.c.bf16 %v10332_v3, %v10332_v3  ;;  %11722 = vmatpush3.bf16.msra.mxu0 %v13127_v63 }
 0xe39   : > { %11723 = vmatprep.subr.bf16.mxu0 %v13128_v1 }
 0xe3a   : > { %11528 = vmatprep.mubr.msk.bf16.mxu0 %vm10590_vm11, %v10336_v45 }
 0xe3c   : > { %11724 = vmatpush3.bf16.msra.mxu0 %v13129_v41 }
 0xe3d   : > { %11725 = vmatprep.subr.bf16.mxu0 %v13130_v52 }
 0xe40   : > { %11726 = vmatpush3.bf16.msra.mxu0 %v13131_v54 }
 0xe41   : > { %11727 = vmatprep.subr.bf16.mxu0 %v13132_v40 }
 0xe44   : > { %11728 = vmatpush3.bf16.msra.mxu0 %v13133_v0 }
 0xe45   : > { %11729 = vmatprep.subr.bf16.mxu0 %v13134_v48 }
 0xe48   : > { %11730 = vmatpush3.bf16.msra.mxu0 %v13135_v30 }
 0xe49   : > { %11731 = vmatprep.subr.bf16.mxu0 %v13136_v13 }
 0xe4c   : > { %11732 = vmatpush3.bf16.msra.mxu0 %v13137_v42 }
 0xe4d   : > { %12236 = vmatprep.subr.msk.bf16.mxu0 %vm4625_vm9, %v13138_v37  ;;  %vm10677_vm9 = vcmask 73728  }
 0xe50   : > { %11734 = vmatpush3.bf16.msra.mxu0 %v13139_v33 }
 0xe53   : > { %10670 = vmatmul.mubr.bf16.vlgmr.msra.gmra.mrb[88].mxu0 %v10335_v20 }
 0xf06   : > { %v11713_v14 = vpop.f32.mrb[84].mxu0 }
 0xf07   : > { %v11714_v34 = vpop.f32.mrb[85].mxu0 }
 0xf08   : > { %v11715_v16 = vadd.f32 %v11714_v34, %v11713_v14  ;;  %v11716_v5 = vpop.f32.mrb[86].mxu0 }
 0xf09   : > { %v11717_v11 = vpop.f32.mrb[87].mxu0 }
 0xf0a   : > { %v10632_v21 = vadd.f32 %v11715_v16, %v10400_v27 }
 0xf26   : > { %v11735_v55 = vpop.f32.mrb[88].mxu0 }
 0xf27   : > { %v11736_v19 = vpop.f32.mrb[89].mxu0 }
 0xf28   : > { %v11737_v18 = vadd.f32 %v11736_v19, %v11735_v55  ;;  %v11738_v46 = vpop.f32.mrb[90].mxu0 }
 0xf29   : > { %v11739_v4 = vpop.f32.mrb[91].mxu0 }
 0xf2a   : > { %v10672_v31 = vadd.f32 %v11737_v18, %v10632_v21 }
 0xf2c   : > { %v10678_v28 = vsel %vm10677_vm9, %v10672_v31, -inf }
 0xf2d   : > { %10679 = vmax.xlane.f32.xlu0 %v10678_v28 }
 0xfba   : > { %v10680_v23 = vpop.xlane.xlu0 %10679 }
 0xfbb   : > { %v10681_v15 = vsub.f32 %v10672_v31, %v10680_v23 }
 0xfbd   : > { %v10682_v53 = vmul.f32 1.442695, %v10681_v15 }
 0xfbf   : > { %13140 = vpow2.f32 %v10682_v53 }
 0xfc9   : > { %v13141_v9 = vpop.eup %13140 }
 0xfca   : > { %v10684_v39 = vsel %vm10677_vm9, %v13141_v9, 0.0 }
 0xfcb   : > { %10685 = vadd.xlane.f32.xlu1 %v10684_v39 }
0x1058   : > { %v10686_v29 = vpop.xlane.xlu1 %10685 }
0x1059   : > { %13142 = vlog2.f32 %v10686_v29 }
0x1063   : > { %v13143_v7 = vpop.eup %13142 }
0x1064   : > { %v10688_v58 = vmul.f32 0.6931472, %v13143_v7 }
0x1066   : > { %v10689_v57 = vsub.f32 %v10681_v15, %v10688_v58 }
0x1068   : > { %10690 = vst.msk [vmem:[%s418_s30] sm:$0x1] %vm10677_vm9, %v10689_v57 }
0x1069   : > { %13192 = shalt.err (!%p13189_p7)
}
0x106a   : > { %s13193_s22 = scalar_lea.hbm %s19453_s1, 16  ;;  %s13197_s13 = scalar_lea.hbm %s21166_s6, 32 }
0x106b   : > { %p13194_p8 = scmp.ne.s32.totalorder %s19453_s1, %s13193_s22  ;;  %p13198_p1 = scmp.lt.u32.totalorder %s19453_s1, %s21166_s6 }
0x106c   : > { %p13199_p0 = scmp.lt.u32.totalorder %s13197_s13, %s13193_s22  ;;  %p13201_p6 = scmp.lt.u32.totalorder %s13193_s22, %s19453_s1 }
0x106d   : > { %p13195_p11 = pnand %p13194_p8, %p21167_p9 }
0x106e   : > { %p13200_p5 = por %p13199_p0, %p13198_p1 }
0x106f   : > { %p13196_p13 = pneg %p13195_p11 }
0x1070   : > { %p13202_p10 = por %p13201_p6, %p13200_p5 }
0x1072   : > { %p13203_p12 = pnand %p13202_p10, %p13196_p13 }
0x1074   : > { %13206 = shalt.err (!%p13203_p12)
}
0x1075   : > { %12242 = dma.vmem_to_hbm [thread:$0]  (%p21167_p9), %s19455_s18, 16, %s19453_s1, %s10692_s11  }
0x1076 PF: > { %s21168_s29 = sld [smem:[#allocation11_spill]]  ;;  %s21169_s26 = sld [smem:[#allocation8_spill]] }
0x1077   : > { %s21170_s20 = sld [smem:[#allocation16_spill]] }
0x107c   : > { %p12254_p2 = scmp.ge.s32.totalorder %s21168_s29, 2  ;;  %s10716_s17 = sand.u32 1, %s21169_s26  }
0x107d   : > { %p21171_p3 = scmp.ne.s32.totalorder %s21170_s20, 0  ;;  %s10717_s19 = scalar_lea.sflag [#allocation4], %s10716_s17 }
0x107f   : > { %p12249_p4 = pnand %p12254_p2, %p21171_p3 }
0x1081   : > { %13228 = dma.done.wait (!%p12249_p4), %s10717_s19, 16  }
0x1082   : > { %13230 = vsyncadd (!%p12249_p4), %s10717_s19, 4294967280  ;;  %s21172_s24 = sld [smem:[#allocation13_spill]]  ;;  %s21173_s21 = sld [smem:[#allocation9_spill]] }
0x1083   : > { %s21174_s22 = sld [smem:[#allocation10_spill]]  ;;  %s21175_s23 = sld [smem:[#allocation14_spill]] }
0x1088   : > { %p23_p7 = scmp.ge.s32.totalorder %s21172_s24, 4  }
0x108a   :  { %25 = sbr.rel (!%p23_p7) target bundleno = 10 (0xa), region = 132 }
0x1091   :  { %10721 = vsyncpa [#allocation3], 1 }
0x1092   :  { %10723 = vsyncpa [#allocation3 + $0x1], 1 }
0x1093   :  { %10724 = vsyncpa [#allocation4], 1 }
0x1094   :  { %10726 = vsyncpa [#allocation4 + $0x1], 1 }

</bundles_post_ra>
